<compile_context>
chip_gen: v7x
topology: tpu7x:2x2x1
jax: 0.10.0
libtpu: 0.0.40
codegen_flags: <defaults>
</compile_context>

<pallas_src>
import numpy as np
import jax
import jax.numpy as jnp
from jax.experimental import pallas as pl
from jax.experimental.pallas import tpu as pltpu

LANE = 128


def _round_up(x, m):
    return -(-x // m) * m


# ----------------------------------------------------------------------------
# Parameter preparation (run ONCE, outside the jitted forward)
# ----------------------------------------------------------------------------
def prepare_params(params, img_hw=28):
    """Fold the 3x3 taps into dense matmul weights, pad features to 128-lane multiples,
    permute fc1's rows to the kernel's (H, W, C) feature order.  Everything bf16 except biases."""
    w1, b1, w2, b2, fw1, fb1, fw2, fb2 = [np.asarray(p, np.float32) for p in params]
    H = W = img_hw
    C1 = w1.shape[0]          # 32
    C2 = w2.shape[0]          # 64
    assert w1.shape[1] == 1 and w1.shape[2:] == (3, 3) and w2.shape[1:] == (C1, 3, 3)

    Q1 = (W - 2) // 2         # pooled cols after layer 1 (13)
    R1 = (H - 2) // 2         # pooled rows after layer 1 (13)
    Q2 = (Q1 - 2) // 2        # 5
    R2 = (R1 - 2) // 2        # 5
    L1, L1p = Q1 * C1, _round_up(Q1 * C1, LANE)     # 416 -> 512
    L2, L2p = Q2 * C2, _round_up(Q2 * C2, LANE)     # 320 -> 384
    assert fw1.shape[1] == C2 * R2 * Q2, "fc1 expects 64*5*5 features (28x28 input)"

    w1_hwio = np.transpose(w1, (2, 3, 1, 0))        # (3,3,1,C1)
    w2_hwio = np.transpose(w2, (2, 3, 1, 0))        # (3,3,C1,C2)

    # conv1: da- and db-folded weight.  LHS feature = da*W + input_col.
    # Output col = colpar*L1p + q1*C1 + c1  (colpar 0/1 = even/odd conv column -> pool pair).
    W1cat = np.zeros((3 * W, 2 * L1p), np.float32)
    for da in range(3):
        for cp in range(2):
            for q1 in range(Q1):
                j1 = 2 * q1 + cp
                for db in range(3):
                    W1cat[da * W + j1 + db,
                          cp * L1p + q1 * C1: cp * L1p + (q1 + 1) * C1] = w1_hwio[da, db, 0]
    b1t = np.zeros((1, L1p), np.float32)
    b1t[0, :L1] = np.tile(b1, Q1)

    # conv2: db-folded weight per row tap da.  Rows indexed by layer-1 feature q1*C1 + c1
    # (rows >= L1 are zero so the L1p padding contributes nothing).
    W2f = np.zeros((3, L1p, 2 * L2p), np.float32)
    for da in range(3):
        for cp in range(2):
            for q2 in range(Q2):
                j2 = 2 * q2 + cp
                for db in range(3):
                    q1 = j2 + db
                    W2f[da, q1 * C1:(q1 + 1) * C1,
                        cp * L2p + q2 * C2: cp * L2p + (q2 + 1) * C2] = w2_hwio[da, db]
    b2t = np.zeros((1, L2p), np.float32)
    b2t[0, :L2] = np.tile(b2, Q2)

    # fc1: per-pooled-row weight blocks over (q2, c2)-ordered (lane-padded) features.
    # Torch flattens (C, H, W); our features are (W=q2, C=c2) per pooled row p2.
    O1 = fw1.shape[0]
    t = fw1.reshape(O1, C2, R2, Q2).transpose(2, 3, 1, 0)     # (p2, q2, c2, o)
    Wf1 = np.zeros((R2, L2p, O1), np.float32)
    Wf1[:, :L2, :] = t.reshape(R2, Q2 * C2, O1)
    Wf2 = fw2.T                                               # (O1, 10)

    return dict(
        w1=jnp.asarray(W1cat, jnp.bfloat16), b1=jnp.asarray(b1t, jnp.float32),
        w2=jnp.asarray(W2f, jnp.bfloat16), b2=jnp.asarray(b2t, jnp.float32),
        wf1=jnp.asarray(Wf1, jnp.bfloat16), bf1=jnp.asarray(fb1[None, :], jnp.float32),
        wf2=jnp.asarray(Wf2, jnp.bfloat16), bf2=jnp.asarray(fb2[None, :], jnp.float32),
    )


# ----------------------------------------------------------------------------
# Fused forward (single pallas_call, grid over batch tiles)
# ----------------------------------------------------------------------------
def convnet_forward(x_nchw, prep, *, nb=64):
    N, C0, H, W = x_nchw.shape
    assert C0 == 1 and H == 28 and W == 28, "ConvNet expects (N, 1, 28, 28) inputs"
    R1 = (H - 2) // 2                    # 13 pooled rows after layer 1
    R2 = (R1 - 2) // 2                   # 5  pooled rows after layer 2
    K1 = 3 * W                           # 84 (da-folded conv1 contraction)
    L1p = prep["b1"].shape[1]            # 512
    L2p = prep["b2"].shape[1]            # 384
    O1 = prep["bf1"].shape[1]            # 128
    O2 = prep["bf2"].shape[1]            # 10

    # ---- batch tiling: NB samples per grid step, G >= 2 when the batch allows it ----
    NB = min(_round_up(nb, 8), _round_up(N, 8))
    if N >= 16:
        NB = min(NB, _round_up(pl.cdiv(N, 2), 8))   # let v7x shard the batch axis over 2 TCs
    NB = max(NB, 8)
    G = pl.cdiv(N, NB)
    Np = G * NB
    M1, M2 = R1 * NB, R2 * NB

    # ---- glue: da/db-folded, pooled-row-major conv1 source (cheap XLA on a tiny array) ----
    x = x_nchw.reshape(N, H, W).astype(jnp.bfloat16)
    if Np != N:
        x = jnp.concatenate([x, jnp.zeros((Np - N, H, W), x.dtype)], axis=0)

    def build(apar):
        # rows 2p + apar + da for pooled row p, concatenated over da along features
        taps = [x[:, apar + da: apar + da + 2 * R1 - 1: 2, :] for da in range(3)]  # (Np, R1, W)
        cat = jnp.concatenate(taps, axis=-1)                                        # (Np, R1, 3W)
        cat = cat.reshape(G, NB, R1, K1).transpose(0, 2, 1, 3)                      # (G, R1, NB, 3W)
        return cat.reshape(G, M1, K1)

    xcat = jnp.stack([build(0), build(1)], axis=1)                                  # (G, 2, M1, K1)

    # ---- fused kernel: conv1 -> conv2 -> fc1 -> fc2, all intermediates stay in VMEM ----
    def kernel(xc_ref, w1_ref, b1_ref, w2_ref, b2_ref,
               wf1_ref, bf1_ref, wf2_ref, bf2_ref, o_ref):
        # conv1 + bias + relu + 2x2 maxpool: one matmul per output-row parity.
        a0 = jnp.dot(xc_ref[0, 0], w1_ref[...], preferred_element_type=jnp.float32)  # (M1, 2*L1p)
        a1 = jnp.dot(xc_ref[0, 1], w1_ref[...], preferred_element_type=jnp.float32)
        m1 = jnp.maximum(jnp.maximum(a0[:, :L1p], a0[:, L1p:]),
                         jnp.maximum(a1[:, :L1p], a1[:, L1p:]))
        # relu(maxpool(conv + bias)) == maxpool(relu(conv + bias))
        y1 = jnp.maximum(m1 + b1_ref[...], 0.0).astype(jnp.bfloat16)                 # (M1, L1p)

        # conv2 sources: pooled-row-major layout -> row tap s is 5 contiguous NB-row slabs.
        srcs = [jnp.concatenate(
                    [y1[(s + 2 * p) * NB:(s + 2 * p + 1) * NB] for p in range(R2)], axis=0)
                for s in range(4)]                                                   # (M2, L1p) each

        acc = []
        for apar in range(2):
            a = jnp.dot(srcs[apar], w2_ref[0], preferred_element_type=jnp.float32)   # (M2, 2*L2p)
            a = a + jnp.dot(srcs[apar + 1], w2_ref[1], preferred_element_type=jnp.float32)
            a = a + jnp.dot(srcs[apar + 2], w2_ref[2], preferred_element_type=jnp.float32)
            acc.append(a)
        m2 = jnp.maximum(jnp.maximum(acc[0][:, :L2p], acc[0][:, L2p:]),
                         jnp.maximum(acc[1][:, :L2p], acc[1][:, L2p:]))
        y2 = jnp.maximum(m2 + b2_ref[...], 0.0).astype(jnp.bfloat16)                 # (M2, L2p)

        # fc1 (relu) + fc2: per-pooled-row weight blocks on contiguous NB-row slabs.
        h = jnp.dot(y2[0:NB], wf1_ref[0], preferred_element_type=jnp.float32)        # (NB, O1)
        for p in range(1, R2):
            h = h + jnp.dot(y2[p * NB:(p + 1) * NB], wf1_ref[p],
                            preferred_element_type=jnp.float32)
        h = jnp.maximum(h + bf1_ref[...], 0.0).astype(jnp.bfloat16)
        o = jnp.dot(h, wf2_ref[...], preferred_element_type=jnp.float32) + bf2_ref[...]
        o_ref[0] = o.astype(o_ref.dtype)

    in_specs = [
        pl.BlockSpec((1, 2, M1, K1), lambda g: (g, 0, 0, 0)),      # folded conv1 source
        pl.BlockSpec((K1, 2 * L1p), lambda g: (0, 0)),             # conv1 weight (da+db folded)
        pl.BlockSpec((1, L1p), lambda g: (0, 0)),                  # conv1 bias (tiled, padded)
        pl.BlockSpec((3, L1p, 2 * L2p), lambda g: (0, 0, 0)),      # conv2 weight (db folded)
        pl.BlockSpec((1, L2p), lambda g: (0, 0)),                  # conv2 bias
        pl.BlockSpec((R2, L2p, O1), lambda g: (0, 0, 0)),          # fc1 weight (per pooled row)
        pl.BlockSpec((1, O1), lambda g: (0, 0)),                   # fc1 bias
        pl.BlockSpec((O1, O2), lambda g: (0, 0)),                  # fc2 weight
        pl.BlockSpec((1, O2), lambda g: (0, 0)),                   # fc2 bias
    ]

    # VMEM budget from buffer math (+50% headroom), clamped to a safe range for all generations.
    weights_b = 2 * (K1 * 2 * L1p + 3 * L1p * 2 * L2p + R2 * L2p * O1 + O1 * O2) \
        + 4 * (L1p + L2p + O1 + O2)
    live_b = (2 * 2 * M1 * K1 * 2 + 2 * NB * O2 * 4              # pipelined in/out blocks
              + 2 * M1 * 2 * L1p * 4 + 2 * M1 * L1p * 4          # conv1 results + epilogue temps
              + M1 * L1p * 2 + 4 * M2 * L1p * 2                  # y1 + conv2 source slabs
              + 2 * M2 * 2 * L2p * 4 + 2 * M2 * L2p * 4          # conv2 accs + temps
              + M2 * L2p * 2 + 4 * NB * O1 * 4)                  # y2 + fc temporaries
    vmem_limit = int(min(48 * 2 ** 20, max(24 * 2 ** 20, 1.5 * (2 * weights_b + live_b))))

    out = pl.pallas_call(
        kernel,
        out_shape=jax.ShapeDtypeStruct((G, NB, O2), jnp.float32),
        grid=(G,),
        in_specs=in_specs,
        out_specs=pl.BlockSpec((1, NB, O2), lambda g: (g, 0, 0)),
        compiler_params=pltpu.CompilerParams(
            dimension_semantics=("parallel",),
            vmem_limit_bytes=vmem_limit),
    )(xcat, prep["w1"], prep["b1"], prep["w2"], prep["b2"],
      prep["wf1"], prep["bf1"], prep["wf2"], prep["bf2"])

    return out.reshape(Np, O2)[:N]


# ----------------------------------------------------------------------------
# Pure-JAX reference (mirrors the PyTorch module exactly)
# ----------------------------------------------------------------------------
def reference(x, params):
    w1, b1, w2, b2, fw1, fb1, fw2, fb2 = params

    def conv(x, w, b):
        y = jax.lax.conv_general_dilated(
            x, w, window_strides=(1, 1), padding="VALID",
            dimension_numbers=("NCHW", "OIHW", "NCHW"))
        return y + b[None, :, None, None]

    def pool(x):
        return jax.lax.reduce_window(x, -jnp.inf, jax.lax.max,
                                     (1, 1, 2, 2), (1, 1, 2, 2), "VALID")

    y = pool(jnp.maximum(conv(x, w1, b1), 0.0))
    y = pool(jnp.maximum(conv(y, w2, b2), 0.0))
    f = y.reshape(x.shape[0], -1)
    h = jnp.maximum(f @ fw1.T + fb1, 0.0)
    return h @ fw2.T + fb2


if __name__ == "__main__":
    key = jax.random.PRNGKey(0)
    ks = jax.random.split(key, 9)

    def u(k, shape, fan_in):
        bound = 1.0 / float(np.sqrt(fan_in))
        return jax.random.uniform(k, shape, jnp.float32, -bound, bound)

    # PyTorch-shaped parameters (deterministic, PyTorch-like uniform init)
    w1 = u(ks[0], (32, 1, 3, 3), 9)        # conv1.weight (OIHW)
    b1 = u(ks[1], (32,), 9)                # conv1.bias
    w2 = u(ks[2], (64, 32, 3, 3), 288)     # conv2.weight
    b2 = u(ks[3], (64,), 288)              # conv2.bias
    fw1 = u(ks[4], (128, 1600), 1600)      # fc1.weight (out, in)
    fb1 = u(ks[5], (128,), 1600)           # fc1.bias
    fw2 = u(ks[6], (10, 128), 128)         # fc2.weight
    fb2 = u(ks[7], (10,), 128)             # fc2.bias
    params = (w1, b1, w2, b2, fw1, fb1, fw2, fb2)

    # 28x28 single-channel input is required by fc1 = Linear(64*5*5, 128); small batch of 2.
    x = jax.random.normal(ks[8], (2, 1, 28, 28), jnp.float32)

    prep = prepare_params(params)          # tap folding / padding / permutes hoisted out of forward
    fwd = jax.jit(convnet_forward)
    out = jax.block_until_ready(fwd(x, prep))
    assert out.shape == (2, 10)

    # bf16 MXU operands with f32 accumulation -> compare at a documented relaxed tolerance.
    ref = reference(x, params)
    np.testing.assert_allclose(np.asarray(out), np.asarray(ref), rtol=2e-2, atol=2e-2)

    print("KERNEL_OK")
</pallas_src>

<mosaic_0001>
module attributes {stable_mosaic.version = 11 : i64} {
  func.func @kernel(%arg0: i32, %arg1: memref<1x2x104x84xbf16, #tpu.memory_space<vmem>>, %arg2: memref<84x1024xbf16, #tpu.memory_space<vmem>>, %arg3: memref<1x512xf32, #tpu.memory_space<vmem>>, %arg4: memref<3x512x768xbf16, #tpu.memory_space<vmem>>, %arg5: memref<1x384xf32, #tpu.memory_space<vmem>>, %arg6: memref<5x384x128xbf16, #tpu.memory_space<vmem>>, %arg7: memref<1x128xf32, #tpu.memory_space<vmem>>, %arg8: memref<128x10xbf16, #tpu.memory_space<vmem>>, %arg9: memref<1x10xf32, #tpu.memory_space<vmem>>, %arg10: memref<1x8x10xf32, #tpu.memory_space<vmem>>) attributes {dimension_semantics = [#tpu.dimension_semantics<parallel>], iteration_bounds = array<i64: 1>, scalar_prefetch = 0 : i64, scratch_operands = 0 : i64, tpu.core_type = #tpu.core_type<tc>, window_params = [{transform_indices = @transform_0, window_bounds = array<i64: 1, 2, 104, 84>}, {pipeline_mode = #tpu.pipeline_mode<synchronous>, transform_indices = @transform_1, window_bounds = array<i64: 84, 1024>}, {pipeline_mode = #tpu.pipeline_mode<synchronous>, transform_indices = @transform_2, window_bounds = array<i64: 1, 512>}, {pipeline_mode = #tpu.pipeline_mode<synchronous>, transform_indices = @transform_3, window_bounds = array<i64: 3, 512, 768>}, {pipeline_mode = #tpu.pipeline_mode<synchronous>, transform_indices = @transform_4, window_bounds = array<i64: 1, 384>}, {pipeline_mode = #tpu.pipeline_mode<synchronous>, transform_indices = @transform_5, window_bounds = array<i64: 5, 384, 128>}, {pipeline_mode = #tpu.pipeline_mode<synchronous>, transform_indices = @transform_6, window_bounds = array<i64: 1, 128>}, {pipeline_mode = #tpu.pipeline_mode<synchronous>, transform_indices = @transform_7, window_bounds = array<i64: 128, 10>}, {pipeline_mode = #tpu.pipeline_mode<synchronous>, transform_indices = @transform_8, window_bounds = array<i64: 1, 10>}, {transform_indices = @transform_9, window_bounds = array<i64: 1, 8, 10>}]} {
    %c0 = arith.constant 0 : index
    %c0_0 = arith.constant 0 : index
    %c0_1 = arith.constant 0 : index
    %c0_2 = arith.constant 0 : index
    %0 = vector.load %arg1[%c0, %c0_0, %c0_1, %c0_2] : memref<1x2x104x84xbf16, #tpu.memory_space<vmem>>, vector<1x1x104x84xbf16>
    %1 = vector.shape_cast %0 : vector<1x1x104x84xbf16> to vector<104x84xbf16>
    %c0_3 = arith.constant 0 : index
    %c0_4 = arith.constant 0 : index
    %2 = vector.load %arg2[%c0_3, %c0_4] : memref<84x1024xbf16, #tpu.memory_space<vmem>>, vector<84x1024xbf16>
    %cst = arith.constant dense<0.000000e+00> : vector<104x1024xf32>
    %3 = tpu.matmul %1, %2, %cst {dimension_numbers = #tpu.dot_dimension_numbers<[1], [0], [0], [1], [0, 0, 1, 1], [], []>} : vector<104x84xbf16>, vector<84x1024xbf16>, vector<104x1024xf32> -> vector<104x1024xf32>
    %c0_5 = arith.constant 0 : index
    %c1 = arith.constant 1 : index
    %c0_6 = arith.constant 0 : index
    %c0_7 = arith.constant 0 : index
    %4 = vector.load %arg1[%c0_5, %c1, %c0_6, %c0_7] : memref<1x2x104x84xbf16, #tpu.memory_space<vmem>>, vector<1x1x104x84xbf16>
    %5 = vector.shape_cast %4 : vector<1x1x104x84xbf16> to vector<104x84xbf16>
    %c0_8 = arith.constant 0 : index
    %c0_9 = arith.constant 0 : index
    %6 = vector.load %arg2[%c0_8, %c0_9] : memref<84x1024xbf16, #tpu.memory_space<vmem>>, vector<84x1024xbf16>
    %cst_10 = arith.constant dense<0.000000e+00> : vector<104x1024xf32>
    %7 = tpu.matmul %5, %6, %cst_10 {dimension_numbers = #tpu.dot_dimension_numbers<[1], [0], [0], [1], [0, 0, 1, 1], [], []>} : vector<104x84xbf16>, vector<84x1024xbf16>, vector<104x1024xf32> -> vector<104x1024xf32>
    %8 = vector.extract_strided_slice %3 {offsets = [0, 0], sizes = [104, 512], strides = [1, 1]} : vector<104x1024xf32> to vector<104x512xf32>
    %9 = vector.extract_strided_slice %3 {offsets = [0, 512], sizes = [104, 512], strides = [1, 1]} : vector<104x1024xf32> to vector<104x512xf32>
    %10 = arith.maximumf %8, %9 : vector<104x512xf32>
    %11 = vector.extract_strided_slice %7 {offsets = [0, 0], sizes = [104, 512], strides = [1, 1]} : vector<104x1024xf32> to vector<104x512xf32>
    %12 = vector.extract_strided_slice %7 {offsets = [0, 512], sizes = [104, 512], strides = [1, 1]} : vector<104x1024xf32> to vector<104x512xf32>
    %13 = arith.maximumf %11, %12 : vector<104x512xf32>
    %14 = arith.maximumf %10, %13 : vector<104x512xf32>
    %c0_11 = arith.constant 0 : index
    %c0_12 = arith.constant 0 : index
    %15 = vector.load %arg3[%c0_11, %c0_12] : memref<1x512xf32, #tpu.memory_space<vmem>>, vector<1x512xf32>
    %16 = vector.broadcast %15 : vector<1x512xf32> to vector<104x512xf32>
    %17 = arith.addf %14, %16 : vector<104x512xf32>
    %cst_13 = arith.constant 0.000000e+00 : f32
    %18 = vector.broadcast %cst_13 : f32 to vector<104x512xf32>
    %19 = arith.maximumf %17, %18 : vector<104x512xf32>
    %20 = arith.truncf %19 : vector<104x512xf32> to vector<104x512xbf16>
    %21 = vector.extract_strided_slice %20 {offsets = [0, 0], sizes = [8, 512], strides = [1, 1]} : vector<104x512xbf16> to vector<8x512xbf16>
    %22 = vector.extract_strided_slice %20 {offsets = [16, 0], sizes = [8, 512], strides = [1, 1]} : vector<104x512xbf16> to vector<8x512xbf16>
    %23 = vector.extract_strided_slice %20 {offsets = [32, 0], sizes = [8, 512], strides = [1, 1]} : vector<104x512xbf16> to vector<8x512xbf16>
    %24 = vector.extract_strided_slice %20 {offsets = [48, 0], sizes = [8, 512], strides = [1, 1]} : vector<104x512xbf16> to vector<8x512xbf16>
    %25 = vector.extract_strided_slice %20 {offsets = [64, 0], sizes = [8, 512], strides = [1, 1]} : vector<104x512xbf16> to vector<8x512xbf16>
    %26 = tpu.concatenate %21, %22, %23, %24, %25 in 0 : vector<8x512xbf16>, vector<8x512xbf16>, vector<8x512xbf16>, vector<8x512xbf16>, vector<8x512xbf16> -> vector<40x512xbf16>
    %27 = vector.extract_strided_slice %20 {offsets = [8, 0], sizes = [8, 512], strides = [1, 1]} : vector<104x512xbf16> to vector<8x512xbf16>
    %28 = vector.extract_strided_slice %20 {offsets = [24, 0], sizes = [8, 512], strides = [1, 1]} : vector<104x512xbf16> to vector<8x512xbf16>
    %29 = vector.extract_strided_slice %20 {offsets = [40, 0], sizes = [8, 512], strides = [1, 1]} : vector<104x512xbf16> to vector<8x512xbf16>
    %30 = vector.extract_strided_slice %20 {offsets = [56, 0], sizes = [8, 512], strides = [1, 1]} : vector<104x512xbf16> to vector<8x512xbf16>
    %31 = vector.extract_strided_slice %20 {offsets = [72, 0], sizes = [8, 512], strides = [1, 1]} : vector<104x512xbf16> to vector<8x512xbf16>
    %32 = tpu.concatenate %27, %28, %29, %30, %31 in 0 : vector<8x512xbf16>, vector<8x512xbf16>, vector<8x512xbf16>, vector<8x512xbf16>, vector<8x512xbf16> -> vector<40x512xbf16>
    %33 = vector.extract_strided_slice %20 {offsets = [16, 0], sizes = [8, 512], strides = [1, 1]} : vector<104x512xbf16> to vector<8x512xbf16>
    %34 = vector.extract_strided_slice %20 {offsets = [32, 0], sizes = [8, 512], strides = [1, 1]} : vector<104x512xbf16> to vector<8x512xbf16>
    %35 = vector.extract_strided_slice %20 {offsets = [48, 0], sizes = [8, 512], strides = [1, 1]} : vector<104x512xbf16> to vector<8x512xbf16>
    %36 = vector.extract_strided_slice %20 {offsets = [64, 0], sizes = [8, 512], strides = [1, 1]} : vector<104x512xbf16> to vector<8x512xbf16>
    %37 = vector.extract_strided_slice %20 {offsets = [80, 0], sizes = [8, 512], strides = [1, 1]} : vector<104x512xbf16> to vector<8x512xbf16>
    %38 = tpu.concatenate %33, %34, %35, %36, %37 in 0 : vector<8x512xbf16>, vector<8x512xbf16>, vector<8x512xbf16>, vector<8x512xbf16>, vector<8x512xbf16> -> vector<40x512xbf16>
    %39 = vector.extract_strided_slice %20 {offsets = [24, 0], sizes = [8, 512], strides = [1, 1]} : vector<104x512xbf16> to vector<8x512xbf16>
    %40 = vector.extract_strided_slice %20 {offsets = [40, 0], sizes = [8, 512], strides = [1, 1]} : vector<104x512xbf16> to vector<8x512xbf16>
    %41 = vector.extract_strided_slice %20 {offsets = [56, 0], sizes = [8, 512], strides = [1, 1]} : vector<104x512xbf16> to vector<8x512xbf16>
    %42 = vector.extract_strided_slice %20 {offsets = [72, 0], sizes = [8, 512], strides = [1, 1]} : vector<104x512xbf16> to vector<8x512xbf16>
    %43 = vector.extract_strided_slice %20 {offsets = [88, 0], sizes = [8, 512], strides = [1, 1]} : vector<104x512xbf16> to vector<8x512xbf16>
    %44 = tpu.concatenate %39, %40, %41, %42, %43 in 0 : vector<8x512xbf16>, vector<8x512xbf16>, vector<8x512xbf16>, vector<8x512xbf16>, vector<8x512xbf16> -> vector<40x512xbf16>
    %c0_14 = arith.constant 0 : index
    %c0_15 = arith.constant 0 : index
    %c0_16 = arith.constant 0 : index
    %45 = vector.load %arg4[%c0_14, %c0_15, %c0_16] : memref<3x512x768xbf16, #tpu.memory_space<vmem>>, vector<1x512x768xbf16>
    %46 = vector.shape_cast %45 : vector<1x512x768xbf16> to vector<512x768xbf16>
    %cst_17 = arith.constant dense<0.000000e+00> : vector<40x768xf32>
    %47 = tpu.matmul %26, %46, %cst_17 {dimension_numbers = #tpu.dot_dimension_numbers<[1], [0], [0], [1], [0, 0, 1, 1], [], []>} : vector<40x512xbf16>, vector<512x768xbf16>, vector<40x768xf32> -> vector<40x768xf32>
    %c1_18 = arith.constant 1 : index
    %c0_19 = arith.constant 0 : index
    %c0_20 = arith.constant 0 : index
    %48 = vector.load %arg4[%c1_18, %c0_19, %c0_20] : memref<3x512x768xbf16, #tpu.memory_space<vmem>>, vector<1x512x768xbf16>
    %49 = vector.shape_cast %48 : vector<1x512x768xbf16> to vector<512x768xbf16>
    %cst_21 = arith.constant dense<0.000000e+00> : vector<40x768xf32>
    %50 = tpu.matmul %32, %49, %cst_21 {dimension_numbers = #tpu.dot_dimension_numbers<[1], [0], [0], [1], [0, 0, 1, 1], [], []>} : vector<40x512xbf16>, vector<512x768xbf16>, vector<40x768xf32> -> vector<40x768xf32>
    %51 = arith.addf %47, %50 : vector<40x768xf32>
    %c2 = arith.constant 2 : index
    %c0_22 = arith.constant 0 : index
    %c0_23 = arith.constant 0 : index
    %52 = vector.load %arg4[%c2, %c0_22, %c0_23] : memref<3x512x768xbf16, #tpu.memory_space<vmem>>, vector<1x512x768xbf16>
    %53 = vector.shape_cast %52 : vector<1x512x768xbf16> to vector<512x768xbf16>
    %cst_24 = arith.constant dense<0.000000e+00> : vector<40x768xf32>
    %54 = tpu.matmul %38, %53, %cst_24 {dimension_numbers = #tpu.dot_dimension_numbers<[1], [0], [0], [1], [0, 0, 1, 1], [], []>} : vector<40x512xbf16>, vector<512x768xbf16>, vector<40x768xf32> -> vector<40x768xf32>
    %55 = arith.addf %51, %54 : vector<40x768xf32>
    %c0_25 = arith.constant 0 : index
    %c0_26 = arith.constant 0 : index
    %c0_27 = arith.constant 0 : index
    %56 = vector.load %arg4[%c0_25, %c0_26, %c0_27] : memref<3x512x768xbf16, #tpu.memory_space<vmem>>, vector<1x512x768xbf16>
    %57 = vector.shape_cast %56 : vector<1x512x768xbf16> to vector<512x768xbf16>
    %cst_28 = arith.constant dense<0.000000e+00> : vector<40x768xf32>
    %58 = tpu.matmul %32, %57, %cst_28 {dimension_numbers = #tpu.dot_dimension_numbers<[1], [0], [0], [1], [0, 0, 1, 1], [], []>} : vector<40x512xbf16>, vector<512x768xbf16>, vector<40x768xf32> -> vector<40x768xf32>
    %c1_29 = arith.constant 1 : index
    %c0_30 = arith.constant 0 : index
    %c0_31 = arith.constant 0 : index
    %59 = vector.load %arg4[%c1_29, %c0_30, %c0_31] : memref<3x512x768xbf16, #tpu.memory_space<vmem>>, vector<1x512x768xbf16>
    %60 = vector.shape_cast %59 : vector<1x512x768xbf16> to vector<512x768xbf16>
    %cst_32 = arith.constant dense<0.000000e+00> : vector<40x768xf32>
    %61 = tpu.matmul %38, %60, %cst_32 {dimension_numbers = #tpu.dot_dimension_numbers<[1], [0], [0], [1], [0, 0, 1, 1], [], []>} : vector<40x512xbf16>, vector<512x768xbf16>, vector<40x768xf32> -> vector<40x768xf32>
    %62 = arith.addf %58, %61 : vector<40x768xf32>
    %c2_33 = arith.constant 2 : index
    %c0_34 = arith.constant 0 : index
    %c0_35 = arith.constant 0 : index
    %63 = vector.load %arg4[%c2_33, %c0_34, %c0_35] : memref<3x512x768xbf16, #tpu.memory_space<vmem>>, vector<1x512x768xbf16>
    %64 = vector.shape_cast %63 : vector<1x512x768xbf16> to vector<512x768xbf16>
    %cst_36 = arith.constant dense<0.000000e+00> : vector<40x768xf32>
    %65 = tpu.matmul %44, %64, %cst_36 {dimension_numbers = #tpu.dot_dimension_numbers<[1], [0], [0], [1], [0, 0, 1, 1], [], []>} : vector<40x512xbf16>, vector<512x768xbf16>, vector<40x768xf32> -> vector<40x768xf32>
    %66 = arith.addf %62, %65 : vector<40x768xf32>
    %67 = vector.extract_strided_slice %55 {offsets = [0, 0], sizes = [40, 384], strides = [1, 1]} : vector<40x768xf32> to vector<40x384xf32>
    %68 = vector.extract_strided_slice %55 {offsets = [0, 384], sizes = [40, 384], strides = [1, 1]} : vector<40x768xf32> to vector<40x384xf32>
    %69 = arith.maximumf %67, %68 : vector<40x384xf32>
    %70 = vector.extract_strided_slice %66 {offsets = [0, 0], sizes = [40, 384], strides = [1, 1]} : vector<40x768xf32> to vector<40x384xf32>
    %71 = vector.extract_strided_slice %66 {offsets = [0, 384], sizes = [40, 384], strides = [1, 1]} : vector<40x768xf32> to vector<40x384xf32>
    %72 = arith.maximumf %70, %71 : vector<40x384xf32>
    %73 = arith.maximumf %69, %72 : vector<40x384xf32>
    %c0_37 = arith.constant 0 : index
    %c0_38 = arith.constant 0 : index
    %74 = vector.load %arg5[%c0_37, %c0_38] : memref<1x384xf32, #tpu.memory_space<vmem>>, vector<1x384xf32>
    %75 = vector.broadcast %74 : vector<1x384xf32> to vector<40x384xf32>
    %76 = arith.addf %73, %75 : vector<40x384xf32>
    %cst_39 = arith.constant 0.000000e+00 : f32
    %77 = vector.broadcast %cst_39 : f32 to vector<40x384xf32>
    %78 = arith.maximumf %76, %77 : vector<40x384xf32>
    %79 = arith.truncf %78 : vector<40x384xf32> to vector<40x384xbf16>
    %80 = vector.extract_strided_slice %79 {offsets = [0, 0], sizes = [8, 384], strides = [1, 1]} : vector<40x384xbf16> to vector<8x384xbf16>
    %c0_40 = arith.constant 0 : index
    %c0_41 = arith.constant 0 : index
    %c0_42 = arith.constant 0 : index
    %81 = vector.load %arg6[%c0_40, %c0_41, %c0_42] : memref<5x384x128xbf16, #tpu.memory_space<vmem>>, vector<1x384x128xbf16>
    %82 = vector.shape_cast %81 : vector<1x384x128xbf16> to vector<384x128xbf16>
    %cst_43 = arith.constant dense<0.000000e+00> : vector<8x128xf32>
    %83 = tpu.matmul %80, %82, %cst_43 {dimension_numbers = #tpu.dot_dimension_numbers<[1], [0], [0], [1], [0, 0, 1, 1], [], []>} : vector<8x384xbf16>, vector<384x128xbf16>, vector<8x128xf32> -> vector<8x128xf32>
    %84 = vector.extract_strided_slice %79 {offsets = [8, 0], sizes = [8, 384], strides = [1, 1]} : vector<40x384xbf16> to vector<8x384xbf16>
    %c1_44 = arith.constant 1 : index
    %c0_45 = arith.constant 0 : index
    %c0_46 = arith.constant 0 : index
    %85 = vector.load %arg6[%c1_44, %c0_45, %c0_46] : memref<5x384x128xbf16, #tpu.memory_space<vmem>>, vector<1x384x128xbf16>
    %86 = vector.shape_cast %85 : vector<1x384x128xbf16> to vector<384x128xbf16>
    %cst_47 = arith.constant dense<0.000000e+00> : vector<8x128xf32>
    %87 = tpu.matmul %84, %86, %cst_47 {dimension_numbers = #tpu.dot_dimension_numbers<[1], [0], [0], [1], [0, 0, 1, 1], [], []>} : vector<8x384xbf16>, vector<384x128xbf16>, vector<8x128xf32> -> vector<8x128xf32>
    %88 = arith.addf %83, %87 : vector<8x128xf32>
    %89 = vector.extract_strided_slice %79 {offsets = [16, 0], sizes = [8, 384], strides = [1, 1]} : vector<40x384xbf16> to vector<8x384xbf16>
    %c2_48 = arith.constant 2 : index
    %c0_49 = arith.constant 0 : index
    %c0_50 = arith.constant 0 : index
    %90 = vector.load %arg6[%c2_48, %c0_49, %c0_50] : memref<5x384x128xbf16, #tpu.memory_space<vmem>>, vector<1x384x128xbf16>
    %91 = vector.shape_cast %90 : vector<1x384x128xbf16> to vector<384x128xbf16>
    %cst_51 = arith.constant dense<0.000000e+00> : vector<8x128xf32>
    %92 = tpu.matmul %89, %91, %cst_51 {dimension_numbers = #tpu.dot_dimension_numbers<[1], [0], [0], [1], [0, 0, 1, 1], [], []>} : vector<8x384xbf16>, vector<384x128xbf16>, vector<8x128xf32> -> vector<8x128xf32>
    %93 = arith.addf %88, %92 : vector<8x128xf32>
    %94 = vector.extract_strided_slice %79 {offsets = [24, 0], sizes = [8, 384], strides = [1, 1]} : vector<40x384xbf16> to vector<8x384xbf16>
    %c3 = arith.constant 3 : index
    %c0_52 = arith.constant 0 : index
    %c0_53 = arith.constant 0 : index
    %95 = vector.load %arg6[%c3, %c0_52, %c0_53] : memref<5x384x128xbf16, #tpu.memory_space<vmem>>, vector<1x384x128xbf16>
    %96 = vector.shape_cast %95 : vector<1x384x128xbf16> to vector<384x128xbf16>
    %cst_54 = arith.constant dense<0.000000e+00> : vector<8x128xf32>
    %97 = tpu.matmul %94, %96, %cst_54 {dimension_numbers = #tpu.dot_dimension_numbers<[1], [0], [0], [1], [0, 0, 1, 1], [], []>} : vector<8x384xbf16>, vector<384x128xbf16>, vector<8x128xf32> -> vector<8x128xf32>
    %98 = arith.addf %93, %97 : vector<8x128xf32>
    %99 = vector.extract_strided_slice %79 {offsets = [32, 0], sizes = [8, 384], strides = [1, 1]} : vector<40x384xbf16> to vector<8x384xbf16>
    %c4 = arith.constant 4 : index
    %c0_55 = arith.constant 0 : index
    %c0_56 = arith.constant 0 : index
    %100 = vector.load %arg6[%c4, %c0_55, %c0_56] : memref<5x384x128xbf16, #tpu.memory_space<vmem>>, vector<1x384x128xbf16>
    %101 = vector.shape_cast %100 : vector<1x384x128xbf16> to vector<384x128xbf16>
    %cst_57 = arith.constant dense<0.000000e+00> : vector<8x128xf32>
    %102 = tpu.matmul %99, %101, %cst_57 {dimension_numbers = #tpu.dot_dimension_numbers<[1], [0], [0], [1], [0, 0, 1, 1], [], []>} : vector<8x384xbf16>, vector<384x128xbf16>, vector<8x128xf32> -> vector<8x128xf32>
    %103 = arith.addf %98, %102 : vector<8x128xf32>
    %c0_58 = arith.constant 0 : index
    %c0_59 = arith.constant 0 : index
    %104 = vector.load %arg7[%c0_58, %c0_59] : memref<1x128xf32, #tpu.memory_space<vmem>>, vector<1x128xf32>
    %105 = vector.broadcast %104 : vector<1x128xf32> to vector<8x128xf32>
    %106 = arith.addf %103, %105 : vector<8x128xf32>
    %cst_60 = arith.constant 0.000000e+00 : f32
    %107 = vector.broadcast %cst_60 : f32 to vector<8x128xf32>
    %108 = arith.maximumf %106, %107 : vector<8x128xf32>
    %109 = arith.truncf %108 : vector<8x128xf32> to vector<8x128xbf16>
    %c0_61 = arith.constant 0 : index
    %c0_62 = arith.constant 0 : index
    %110 = vector.load %arg8[%c0_61, %c0_62] : memref<128x10xbf16, #tpu.memory_space<vmem>>, vector<128x10xbf16>
    %cst_63 = arith.constant dense<0.000000e+00> : vector<8x10xf32>
    %111 = tpu.matmul %109, %110, %cst_63 {dimension_numbers = #tpu.dot_dimension_numbers<[1], [0], [0], [1], [0, 0, 1, 1], [], []>} : vector<8x128xbf16>, vector<128x10xbf16>, vector<8x10xf32> -> vector<8x10xf32>
    %c0_64 = arith.constant 0 : index
    %c0_65 = arith.constant 0 : index
    %112 = vector.load %arg9[%c0_64, %c0_65] : memref<1x10xf32, #tpu.memory_space<vmem>>, vector<1x10xf32>
    %113 = vector.broadcast %112 : vector<1x10xf32> to vector<8x10xf32>
    %114 = arith.addf %111, %113 : vector<8x10xf32>
    %c0_66 = arith.constant 0 : index
    %c0_67 = arith.constant 0 : index
    %c0_68 = arith.constant 0 : index
    %115 = vector.load %arg10[%c0_66, %c0_67, %c0_68] : memref<1x8x10xf32, #tpu.memory_space<vmem>>, vector<1x8x10xf32>
    %116 = vector.shape_cast %115 : vector<1x8x10xf32> to vector<8x10xf32>
    %117 = vector.shape_cast %114 : vector<8x10xf32> to vector<1x8x10xf32>
    tpu.vector_store %arg10[%c0_66, %c0_67, %c0_68], %117 {strides = array<i32>} : memref<1x8x10xf32, #tpu.memory_space<vmem>>, vector<1x8x10xf32>,
    return
  }
  func.func @transform_0(%arg0: i32) -> (i32, i32, i32, i32) {
    %c0_i32 = arith.constant 0 : i32
    %c0_i32_0 = arith.constant 0 : i32
    %c0_i32_1 = arith.constant 0 : i32
    %c0_i32_2 = arith.constant 0 : i32
    return %arg0, %c0_i32, %c0_i32_0, %c0_i32_1 : i32, i32, i32, i32
  }
  func.func @transform_1(%arg0: i32) -> (i32, i32) {
    %c0_i32 = arith.constant 0 : i32
    %c0_i32_0 = arith.constant 0 : i32
    %c0_i32_1 = arith.constant 0 : i32
    return %c0_i32, %c0_i32_0 : i32, i32
  }
  func.func @transform_2(%arg0: i32) -> (i32, i32) {
    %c0_i32 = arith.constant 0 : i32
    %c0_i32_0 = arith.constant 0 : i32
    %c0_i32_1 = arith.constant 0 : i32
    return %c0_i32, %c0_i32_0 : i32, i32
  }
  func.func @transform_3(%arg0: i32) -> (i32, i32, i32) {
    %c0_i32 = arith.constant 0 : i32
    %c0_i32_0 = arith.constant 0 : i32
    %c0_i32_1 = arith.constant 0 : i32
    %c0_i32_2 = arith.constant 0 : i32
    return %c0_i32, %c0_i32_0, %c0_i32_1 : i32, i32, i32
  }
  func.func @transform_4(%arg0: i32) -> (i32, i32) {
    %c0_i32 = arith.constant 0 : i32
    %c0_i32_0 = arith.constant 0 : i32
    %c0_i32_1 = arith.constant 0 : i32
    return %c0_i32, %c0_i32_0 : i32, i32
  }
  func.func @transform_5(%arg0: i32) -> (i32, i32, i32) {
    %c0_i32 = arith.constant 0 : i32
    %c0_i32_0 = arith.constant 0 : i32
    %c0_i32_1 = arith.constant 0 : i32
    %c0_i32_2 = arith.constant 0 : i32
    return %c0_i32, %c0_i32_0, %c0_i32_1 : i32, i32, i32
  }
  func.func @transform_6(%arg0: i32) -> (i32, i32) {
    %c0_i32 = arith.constant 0 : i32
    %c0_i32_0 = arith.constant 0 : i32
    %c0_i32_1 = arith.constant 0 : i32
    return %c0_i32, %c0_i32_0 : i32, i32
  }
  func.func @transform_7(%arg0: i32) -> (i32, i32) {
    %c0_i32 = arith.constant 0 : i32
    %c0_i32_0 = arith.constant 0 : i32
    %c0_i32_1 = arith.constant 0 : i32
    return %c0_i32, %c0_i32_0 : i32, i32
  }
  func.func @transform_8(%arg0: i32) -> (i32, i32) {
    %c0_i32 = arith.constant 0 : i32
    %c0_i32_0 = arith.constant 0 : i32
    %c0_i32_1 = arith.constant 0 : i32
    return %c0_i32, %c0_i32_0 : i32, i32
  }
  func.func @transform_9(%arg0: i32) -> (i32, i32, i32) {
    %c0_i32 = arith.constant 0 : i32
    %c0_i32_0 = arith.constant 0 : i32
    %c0_i32_1 = arith.constant 0 : i32
    return %arg0, %c0_i32, %c0_i32_0 : i32, i32, i32
  }
}

</mosaic_0001>

<bundles_post_ra>
// kernel: convnet_forward.1
= control target key start
LH: loop header
LB: loop body
LE: loop exit
PB: predicated region body
PF: predicated region fallthrough
CT: control target
= control target key end

     0   :  { %14 = vsyncpa [#allocation3], 0  ;;  %s15732_s0 = inlined_call_operand.vmem [shape: bf16[1,2,104,84], index: 0, kind: input, shape index: {}]   ;;  %s15733_s1 = inlined_call_operand.hbm [shape: bf16[84,1024], index: 1, kind: input, shape index: {}]   ;;  %s15734_s2 = inlined_call_operand.hbm [shape: f32[1,512], index: 2, kind: input, shape index: {}]   ;;  %s15735_s3 = inlined_call_operand.hbm [shape: bf16[3,512,768], index: 3, kind: input, shape index: {}]   ;;  %s15736_s4 = inlined_call_operand.hbm [shape: f32[1,384], index: 4, kind: input, shape index: {}]   ;;  %s15737_s5 = inlined_call_operand.hbm [shape: bf16[5,384,128], index: 5, kind: input, shape index: {}]   ;;  %s15738_s6 = inlined_call_operand.hbm [shape: f32[1,128], index: 6, kind: input, shape index: {}]   ;;  %s15739_s7 = inlined_call_operand.vmem [shape: bf16[128,10], index: 7, kind: input, shape index: {}]   ;;  %s15740_s8 = inlined_call_operand.hbm [shape: f32[1,10], index: 8, kind: input, shape index: {}]   ;;  %s15741_s9 = inlined_call_operand.vmem [shape: f32[1,8,10], index: 9, kind: output, shape index: {}]  }
   0x1   :  { %15 = vsyncpa [#allocation5], 0 }
   0x2   :  { %16 = vsyncpa [#allocation8], 0 }
   0x3   :  { %17 = vsyncpa [#allocation11], 0  ;;  %s11935_s30 = smov [#allocation4]   ;;  %s11936_s11 = smov [#allocation7]  }
   0x4   :  { %s38_s10 = sshll.u32 %s11935_s30, 4  ;;  %s60_s12 = sshll.u32 %s11936_s11, 4  ;;  %s39_s10 = int_to_ptr.vmem [resolvable:$true] %s38_s10  ;;  %s61_s12 = int_to_ptr.vmem [resolvable:$true] %s60_s12 }
   0x5   :  { %s11773_s15 = scalar_lea.hbm %s15734_s2, 64 }
   0x6   :  { %p11774_p0 = scmp.ne.s32.totalorder %s15734_s2, %s11773_s15  ;;  %p11777_p1 = scmp.lt.u32.totalorder %s11773_s15, %s15734_s2 }
   0x8   :  { %p11779_p2 = pnand %p11777_p1, %p11774_p0 }
   0xa   :  { %11782 = shalt.err (!%p11779_p2)
}
   0xb   :  { %s11783_s20 = scalar_lea.vmem %s39_s10, 64  ;;  %p11788_p4 = scmp.lt.s32.totalorder %s39_s10, %s39_s10 }
   0xc   :  { %p11784_p3 = scmp.ne.s32.totalorder %s39_s10, %s11783_s20  ;;  %p11789_p5 = scmp.lt.s32.totalorder %s11783_s20, %s11783_s20 }
   0xe   :  { %p11790_p6 = por %p11789_p5, %p11788_p4 }
  0x10   :  { %p11791_p7 = pnand %p11790_p6, %p11784_p3 }
  0x12   :  { %11794 = shalt.err (!%p11791_p7)
}
  0x13   :  { %41 = dma.hbm_to_vmem [thread:$0]  %s15734_s2, 64, %s39_s10, [#allocation5]  }
  0x14   :  { %s11795_s25 = scalar_lea.hbm %s15736_s4, 48 }
  0x15   :  { %p11796_p8 = scmp.ne.s32.totalorder %s15736_s4, %s11795_s25  ;;  %p11799_p9 = scmp.lt.u32.totalorder %s11795_s25, %s15736_s4 }
  0x17   :  { %p11801_p10 = pnand %p11799_p9, %p11796_p8 }
  0x19   :  { %11804 = shalt.err (!%p11801_p10)
}
  0x1a   :  { %s11805_s30 = scalar_lea.vmem %s61_s12, 48  ;;  %s11809_s11 = scalar_lea.vmem %s61_s12, 64 }
  0x1b   :  { %p11806_p11 = scmp.ne.s32.totalorder %s61_s12, %s11805_s30  ;;  %p11810_p12 = scmp.lt.s32.totalorder %s61_s12, %s61_s12 }
  0x1c   :  { %p11811_p13 = scmp.lt.s32.totalorder %s11809_s11, %s11805_s30 }
  0x1e   :  { %p11812_p0 = por %p11811_p13, %p11810_p12 }
  0x20   :  { %p11813_p1 = pnand %p11812_p0, %p11806_p11 }
  0x22   :  { %11816 = shalt.err (!%p11813_p1)
}
  0x23   :  { %63 = dma.hbm_to_vmem [thread:$0]  %s15736_s4, 48, %s61_s12, [#allocation8]  }
  0x24   :  { %s11937_s13 = smov [#allocation10]   ;;  %s11938_s15 = smov [#allocation2]  }
  0x25   :  { %s82_s14 = sshll.u32 %s11937_s13, 4  ;;  %s25_s16 = sshll.u32 %s11938_s15, 4  ;;  %s83_s14 = int_to_ptr.vmem [resolvable:$true] %s82_s14  ;;  %s12025_s16 = int_to_ptr.vmem [resolvable:$true] %s25_s16 }
  0x26   :  { %s11817_s19 = scalar_lea.hbm %s15738_s6, 16 }
  0x27   :  { %p11818_p2 = scmp.ne.s32.totalorder %s15738_s6, %s11817_s19  ;;  %p11821_p3 = scmp.lt.u32.totalorder %s11817_s19, %s15738_s6 }
  0x29   :  { %p11823_p4 = pnand %p11821_p3, %p11818_p2 }
  0x2b   :  { %11826 = shalt.err (!%p11823_p4)
}
  0x2c   :  { %s11827_s4 = scalar_lea.vmem %s83_s14, 16  ;;  %s11831_s12 = scalar_lea.vmem %s83_s14, 32 }
  0x2d   :  { %p11828_p5 = scmp.ne.s32.totalorder %s83_s14, %s11827_s4  ;;  %p11832_p6 = scmp.lt.s32.totalorder %s83_s14, %s83_s14 }
  0x2e   :  { %p11833_p7 = scmp.lt.s32.totalorder %s11831_s12, %s11827_s4 }
  0x30   :  { %p11834_p8 = por %p11833_p7, %p11832_p6 }
  0x32   :  { %p11835_p9 = pnand %p11834_p8, %p11828_p5 }
  0x34   :  { %11838 = shalt.err (!%p11835_p9)
}
  0x35   :  { %85 = dma.hbm_to_vmem [thread:$0]  %s15738_s6, 16, %s83_s14, [#allocation11]  }
  0x36   :  { %s11839_s28 = scalar_lea.hbm %s15733_s1, 5632 }
  0x37   :  { %p11840_p10 = scmp.ne.s32.totalorder %s15733_s1, %s11839_s28  ;;  %p11843_p11 = scmp.lt.u32.totalorder %s11839_s28, %s15733_s1 }
  0x39   :  { %p11845_p12 = pnand %p11843_p11, %p11840_p10 }
  0x3b   :  { %11848 = shalt.err (!%p11845_p12)
}
  0x3c   :  { %s11849_s10 = scalar_lea.vmem %s12025_s16, 5632  ;;  %p11854_p0 = scmp.lt.s32.totalorder %s12025_s16, %s12025_s16 }
  0x3d   :  { %p11850_p13 = scmp.ne.s32.totalorder %s12025_s16, %s11849_s10  ;;  %p11855_p1 = scmp.lt.s32.totalorder %s11849_s10, %s11849_s10 }
  0x3f   :  { %p11856_p2 = por %p11855_p1, %p11854_p0 }
  0x41   :  { %p11857_p3 = pnand %p11856_p2, %p11850_p13 }
  0x43   :  { %11860 = shalt.err (!%p11857_p3)
}
  0x44   :  { %s11939_s6 = smov 512   ;;  %s11940_s13 = smov 32  }
  0x45   :  { %31 = dma.hbm_to_vmem [thread:$0]  %s15733_s1, 5632, %s12025_s16, [#allocation3], %s11939_s6, %s11939_s6, %s11940_s13  }
  0x46   :  { %s11941_s17 = smov [#allocation6]   ;;  %s11861_s21 = scalar_lea.hbm %s15735_s3, 73728 }
  0x47   :  { %s47_s18 = sshll.u32 %s11941_s17, 4  ;;  %p11862_p4 = scmp.ne.s32.totalorder %s15735_s3, %s11861_s21  ;;  %s48_s18 = int_to_ptr.vmem [resolvable:$true] %s47_s18 }
  0x48   :  { %p11865_p5 = scmp.lt.u32.totalorder %s11861_s21, %s15735_s3 }
  0x4a   :  { %p11867_p6 = pnand %p11865_p5, %p11862_p4 }
  0x4c   :  { %11870 = shalt.err (!%p11867_p6)
}
  0x4d   :  { %s11871_s24 = scalar_lea.vmem %s48_s18, 73728  ;;  %p11876_p8 = scmp.lt.s32.totalorder %s48_s18, %s48_s18 }
  0x4e   :  { %p11872_p7 = scmp.ne.s32.totalorder %s48_s18, %s11871_s24  ;;  %p11877_p9 = scmp.lt.s32.totalorder %s11871_s24, %s11871_s24 }
  0x50   :  { %p11878_p10 = por %p11877_p9, %p11876_p8 }
  0x52   :  { %p11879_p11 = pnand %p11878_p10, %p11872_p7 }
  0x54   :  { %11882 = shalt.err (!%p11879_p11)
}
  0x55   :  { %s11942_s1 = smov 384   ;;  %s11943_s16 = smov 24  }
  0x56   :  { %53 = dma.hbm_to_vmem [thread:$0]  %s15735_s3, 73728, %s48_s18, [#allocation5], %s11942_s1, %s11942_s1, %s11943_s16  }
  0x57   :  { %s11944_s27 = smov [#allocation9]   ;;  %s11883_s11 = scalar_lea.hbm %s15737_s5, 15360 }
  0x58   :  { %s69_s28 = sshll.u32 %s11944_s27, 4  ;;  %p11884_p12 = scmp.ne.s32.totalorder %s15737_s5, %s11883_s11  ;;  %s70_s28 = int_to_ptr.vmem [resolvable:$true] %s69_s28 }
  0x59   :  { %p11887_p13 = scmp.lt.u32.totalorder %s11883_s11, %s15737_s5 }
  0x5b   :  { %p11889_p0 = pnand %p11887_p13, %p11884_p12 }
  0x5d   :  { %11892 = shalt.err (!%p11889_p0)
}
  0x5e   :  { %s11893_s14 = scalar_lea.vmem %s70_s28, 15360  ;;  %p11898_p2 = scmp.lt.s32.totalorder %s70_s28, %s70_s28 }
  0x5f   :  { %p11894_p1 = scmp.ne.s32.totalorder %s70_s28, %s11893_s14  ;;  %p11899_p3 = scmp.lt.s32.totalorder %s11893_s14, %s11893_s14 }
  0x61   :  { %p11900_p4 = por %p11899_p3, %p11898_p2 }
  0x63   :  { %p11901_p5 = pnand %p11900_p4, %p11894_p1 }
  0x65   :  { %11904 = shalt.err (!%p11901_p5)
}
  0x66   :  { %s11945_s3 = smov 64   ;;  %s11946_s15 = smov 4  }
  0x67   :  { %75 = dma.hbm_to_vmem [thread:$0]  %s15737_s5, 15360, %s70_s28, [#allocation8], %s11945_s3, %s11945_s3, %s11946_s15  }
  0x68   :  { %s11947_s19 = smov [#allocation12]   ;;  %s11905_s23 = scalar_lea.hbm %s15740_s8, 16 }
  0x69   :  { %s94_s20 = sshll.u32 %s11947_s19, 4  ;;  %p11906_p6 = scmp.ne.s32.totalorder %s15740_s8, %s11905_s23  ;;  %s95_s20 = int_to_ptr.vmem [resolvable:$true] %s94_s20 }
  0x6a   :  { %p11909_p7 = scmp.lt.u32.totalorder %s11905_s23, %s15740_s8 }
  0x6c   :  { %p11911_p8 = pnand %p11909_p7, %p11906_p6 }
  0x6e   :  { %11914 = shalt.err (!%p11911_p8)
}
  0x6f   :  { %s11915_s16 = scalar_lea.vmem %s95_s20, 16  ;;  %s11919_s5 = scalar_lea.vmem %s95_s20, 32 }
  0x70   :  { %p11916_p9 = scmp.ne.s32.totalorder %s95_s20, %s11915_s16  ;;  %p11920_p10 = scmp.lt.s32.totalorder %s95_s20, %s95_s20 }
  0x71   :  { %p11921_p11 = scmp.lt.s32.totalorder %s11919_s5, %s11915_s16 }
  0x73   :  { %p11922_p12 = por %p11921_p11, %p11920_p10 }
  0x75   :  { %p11923_p13 = pnand %p11922_p12, %p11916_p9 }
  0x77   :  { %11926 = shalt.err (!%p11923_p13)
}
  0x78   :  { %97 = dma.hbm_to_vmem [thread:$0]  %s15740_s8, 16, %s95_s20, [#allocation11]  }
  0x79   :  { %11927 = dma.done.wait [#allocation3], 5632  }
  0x7a   :  { %11928 = vsyncadd [#allocation3], 4294961664 }
  0x7b   :  { %11929 = dma.done.wait [#allocation5], 73792  }
  0x7c   :  { %11930 = vsyncadd [#allocation5], 4294893504 }
  0x7d   :  { %11931 = dma.done.wait [#allocation8], 15408  }
  0x7e   :  { %11932 = vsyncadd [#allocation8], 4294951888 }
  0x7f   :  { %11933 = dma.done.wait [#allocation11], 32  }
  0x80   :  { %11934 = vsyncadd [#allocation11], 4294967264  ;;  %v11948_v0 = vmov 0   ;;  %v133_v1 = vld [vmem:[#allocation2] sm:$0xff]  ;;  %v134_v3 = vld [vmem:[#allocation2 + $0x8] sm:$0xff]  ;;  %vm452_vm0 = vcmask 1041408  }
  0x81   :  { %509 = vmatprep.mubr.bf16.mxu0 %v11948_v0  ;;  %638 = vmatprep.mubr.bf16.mxu1 %v11948_v0  ;;  %v137_v2 = vld [vmem:[#allocation2 + $0x20] sm:$0xff]  ;;  %v138_v5 = vld [vmem:[#allocation2 + $0x28] sm:$0xff]  ;;  %v136_v47 = vld [vmem:[#allocation2 + $0x18] sm:$0xff]  ;;  %vm430_vm1 = vcmask 687104   ;;  %vm1639_vm2 = vcmask 1043456   ;;  %vm11950_vm3 = vmmov 0  }
  0x82   :  { %v12094_v4 = vcombine.high %v133_v1, %v137_v2  ;;  %v12096_v6 = vcombine.low %v133_v1, %v137_v2  ;;  %v141_v7 = vld [vmem:[#allocation2 + $0x40] sm:$0xff]  ;;  %v12098_v9 = vcombine.high %v134_v3, %v138_v5  ;;  %v12100_v10 = vcombine.low %v134_v3, %v138_v5  ;;  %v142_v12 = vld [vmem:[#allocation2 + $0x48] sm:$0xff]  ;;  %v140_v48 = vld [vmem:[#allocation2 + $0x38] sm:$0xff] }
  0x83   :  { %v145_v8 = vld [vmem:[#allocation2 + $0x60] sm:$0xff]  ;;  %v146_v13 = vld [vmem:[#allocation2 + $0x68] sm:$0xff]  ;;  %v12173_v52 = vcombine.high %v136_v47, %v140_v48  ;;  %v144_v53 = vld [vmem:[#allocation2 + $0x58] sm:$0xff]  ;;  %v12182_v56 = vcombine.low %v136_v47, %v140_v48  ;;  %vm9105_vm4 = vcmask 80896  }
  0x84   :  { %v12102_v11 = vcombine.high %v141_v7, %v145_v8  ;;  %v149_v14 = vld [vmem:[#allocation2 + $0x80] sm:$0xff]  ;;  %477 = vmatprep.subr.bf16.mxu0 %v12094_v4  ;;  %v12105_v15 = vcombine.high %v142_v12, %v146_v13  ;;  %v150_v17 = vld [vmem:[#allocation2 + $0x88] sm:$0xff]  ;;  %10244 = vmatprep.subr.bf16.mxu1 %v12098_v9  ;;  %v12109_v19 = vcombine.low %v141_v7, %v145_v8  ;;  %v148_v54 = vld [vmem:[#allocation2 + $0x78] sm:$0xff] }
  0x85   :  { %v153_v16 = vld [vmem:[#allocation2 + $0xa0] sm:$0xff]  ;;  %v154_v18 = vld [vmem:[#allocation2 + $0xa8] sm:$0xff]  ;;  %478 = vmatpush1.bf16.msra.mxu0 %v12096_v6  ;;  %10250 = vmatpush1.bf16.msra.mxu1 %v12100_v10  ;;  %v12113_v20 = vcombine.low %v142_v12, %v146_v13  ;;  %v12179_v55 = vld [vmem:[%s15732_s0 + $0x18] sm:$0xff]   ;;  %v12186_v57 = vcombine.high %v144_v53, %v148_v54  ;;  %v12194_v60 = vcombine.low %v144_v53, %v148_v54 }
  0x86   :  { %479 = vmatprep.subr.bf16.mxu0 %v12102_v11  ;;  %v12115_v21 = vcombine.high %v149_v14, %v153_v16  ;;  %10245 = vmatprep.subr.bf16.mxu1 %v12105_v15  ;;  %v12118_v22 = vcombine.high %v150_v17, %v154_v18  ;;  %v157_v23 = vld [vmem:[#allocation2 + $0xc0] sm:$0xff]  ;;  %v158_v25 = vld [vmem:[#allocation2 + $0xc8] sm:$0xff]  ;;  %v12121_v27 = vcombine.low %v149_v14, %v153_v16  ;;  %v152_v58 = vld [vmem:[#allocation2 + $0x98] sm:$0xff] }
  0x87   :  { %v161_v24 = vld [vmem:[#allocation2 + $0xe0] sm:$0xff]  ;;  %v162_v26 = vld [vmem:[#allocation2 + $0xe8] sm:$0xff]  ;;  %v12125_v28 = vcombine.low %v150_v17, %v154_v18  ;;  %v156_v59 = vld [vmem:[#allocation2 + $0xb8] sm:$0xff] }
  0x88   :  { %v12127_v29 = vcombine.high %v157_v23, %v161_v24  ;;  %v165_v30 = vld [vmem:[#allocation2 + $0x100] sm:$0xff]  ;;  %v12130_v31 = vcombine.high %v158_v25, %v162_v26  ;;  %v166_v33 = vld [vmem:[#allocation2 + $0x108] sm:$0xff]  ;;  %v12133_v35 = vcombine.low %v157_v23, %v161_v24  ;;  %v12137_v36 = vcombine.low %v158_v25, %v162_v26  ;;  %v160_v62 = vld [vmem:[#allocation2 + $0xd8] sm:$0xff] }
  0x89   :  { %480 = vmatpush1.bf16.msra.mxu0 %v12109_v19  ;;  %10251 = vmatpush1.bf16.msra.mxu1 %v12113_v20  ;;  %v169_v32 = vld [vmem:[#allocation2 + $0x120] sm:$0xff]  ;;  %v170_v34 = vld [vmem:[#allocation2 + $0x128] sm:$0xff]  ;;  %v164_v63 = vld [vmem:[#allocation2 + $0xf8] sm:$0xff]  ;;  %v12209_v2 = vcombine.high %v152_v58, %v156_v59  ;;  %v12213_v3 = vcombine.low %v152_v58, %v156_v59 }
  0x8a   :  { %481 = vmatprep.subr.bf16.mxu0 %v12115_v21  ;;  %10246 = vmatprep.subr.bf16.mxu1 %v12118_v22  ;;  %v12139_v37 = vcombine.high %v165_v30, %v169_v32  ;;  %v12142_v38 = vcombine.high %v166_v33, %v170_v34  ;;  %v173_v39 = vld [vmem:[#allocation2 + $0x140] sm:$0x33]  ;;  %v174_v40 = vld [vmem:[#allocation2 + $0x148] sm:$0x33]  ;;  %v12145_v41 = vcombine.low %v165_v30, %v169_v32  ;;  %v168_v5 = vld [vmem:[#allocation2 + $0x118] sm:$0xff] }
  0x8b   :  { %v12149_v42 = vcombine.low %v166_v33, %v170_v34  ;;  %v12151_v43 = vcombine.high %v173_v39, %v173_v39  ;;  %v9162_v44 = vcombine.low %v173_v39, %v173_v39  ;;  %v12154_v45 = vcombine.high %v174_v40, %v174_v40  ;;  %v12166_v50 = vld [vmem:[%s15732_s0] sm:$0xff]   ;;  %v12200_v61 = vld [vmem:[%s15732_s0 + $0x8] sm:$0xff]   ;;  %v172_v8 = vld [vmem:[#allocation2 + $0x138] sm:$0xff] }
  0x8c   :  { %v9164_v46 = vcombine.low %v174_v40, %v174_v40  ;;  %v12206_v1 = vld [vmem:[%s15732_s0 + $0x20] sm:$0xff]   ;;  %v12216_v7 = vcombine.high %v160_v62, %v164_v63  ;;  %v12230_v12 = vld [vmem:[%s15732_s0 + $0x10] sm:$0xff]   ;;  %v12232_v13 = vcombine.low %v160_v62, %v164_v63  ;;  %v176_v14 = vld [vmem:[#allocation2 + $0x158] sm:$0x33]  ;;  %v12240_v17 = vcombine.high %v168_v5, %v172_v8 }
  0x8d   :  { %482 = vmatpush1.bf16.msra.mxu0 %v12121_v27  ;;  %10252 = vmatpush1.bf16.msra.mxu1 %v12125_v28  ;;  %v12161_v49 = vsel %vm452_vm0, %v9162_v44, 0  ;;  %v12237_v16 = vld [vmem:[%s15732_s0 + $0x28] sm:$0xff]   ;;  %v12245_v18 = vcombine.low %v168_v5, %v172_v8  ;;  %v12248_v23 = vcombine.high %v176_v14, %v176_v14  ;;  %v9168_v24 = vcombine.low %v176_v14, %v176_v14  ;;  %v135_v25 = vld [vmem:[#allocation2 + $0x10] sm:$0xff]  ;;  %v10669_v59 = vld [vmem:[#allocation6 + $0x3fc] ss:$24 sps:$4 sm:$0xff]  }
  0x8e   :  { %483 = vmatprep.subr.bf16.mxu0 %v12127_v29  ;;  %10247 = vmatprep.subr.bf16.mxu1 %v12130_v31  ;;  %v12171_v51 = vsel %vm452_vm0, %v9164_v46, 0  ;;  %v139_v26 = vld [vmem:[#allocation2 + $0x30] sm:$0xff] }
  0x8f   :  { %v12262_v30 = vld [vmem:[%s15732_s0 + $0x30] ss:$0 sps:$4 sm:$0xff]   ;;  %v12267_v32 = vsel %vm452_vm0, %v9168_v24, 0  ;;  %v12272_v33 = vcombine.high %v135_v25, %v139_v26  ;;  %v12379_v54 = vld [vmem:[%s15732_s0 + $0x34] sm:$0xff]  }
  0x90   :  { %v159_v34 = vld [vmem:[#allocation2 + $0xd0] sm:$0xff] }
  0x91   :  { %484 = vmatpush1.bf16.msra.mxu0 %v12133_v35  ;;  %10253 = vmatpush1.bf16.msra.mxu1 %v12137_v36  ;;  %v167_v40 = vld [vmem:[#allocation2 + $0x110] sm:$0xff] }
  0x92   :  { %485 = vmatprep.subr.bf16.mxu0 %v12139_v37  ;;  %10248 = vmatprep.subr.bf16.mxu1 %v12142_v38  ;;  %v175_v46 = vld [vmem:[#allocation2 + $0x150] sm:$0x33] }
  0x93   :  { %v10667_v58 = vld [vmem:[#allocation6 + $0x3f8] ss:$24 sps:$4 sm:$0xff]  }
  0x95   :  { %486 = vmatpush1.bf16.msra.mxu0 %v12145_v41  ;;  %10254 = vmatpush1.bf16.msra.mxu1 %v12149_v42 }
  0x96   :  { %9170 = vmatprep.subr.msk.bf16.mxu0 %vm452_vm0, %v12151_v43  ;;  %10249 = vmatprep.subr.msk.bf16.mxu1 %vm452_vm0, %v12154_v45 }
  0x99   :  { %488 = vmatpush1.bf16.msra.mxu0 %v12161_v49  ;;  %10255 = vmatpush1.bf16.msra.mxu1 %v12171_v51 }
  0x9a   :  { %576 = vmatprep.subr.bf16.mxu0 %v12098_v9  ;;  %774 = vmatprep.subr.bf16.mxu1 %v12173_v52 }
  0x9c   :  { %9171 = vmatmul.mubr.msk.bf16.vlgmr.msra.gmra.mrb[0].mxu0 %vm430_vm1, %v12166_v50  ;;  %9182 = vmatmul.mubr.msk.bf16.vlgmr.msra.gmra.mrb[0].mxu1 %vm430_vm1, %v12179_v55 }
  0x9d   :  { %519 = vmatprep.mubr.bf16.mxu0 %v11948_v0  ;;  %775 = vmatpush1.bf16.msra.mxu1 %v12182_v56 }
  0x9e   :  { %648 = vmatprep.mubr.bf16.mxu1 %v11948_v0  ;;  %776 = vmatprep.subr.bf16.mxu1 %v12186_v57 }
  0x9f   :  { %577 = vmatpush1.bf16.msra.mxu0 %v12100_v10 }
  0xa0   :  { %578 = vmatprep.subr.bf16.mxu0 %v12105_v15 }
  0xa1   :  { %777 = vmatpush1.bf16.msra.mxu1 %v12194_v60 }
  0xa2   :  { %778 = vmatprep.subr.bf16.mxu1 %v12209_v2 }
  0xa3   :  { %579 = vmatpush1.bf16.msra.mxu0 %v12113_v20 }
  0xa4   :  { %9172 = vmatmul.mubr.msk.bf16.gmra.mrb[4].mxu0 %vm430_vm1, %v12200_v61  ;;  %580 = vmatprep.subr.bf16.mxu0 %v12118_v22 }
  0xa5   :  { %9183 = vmatmul.mubr.msk.bf16.gmra.mrb[4].mxu1 %vm430_vm1, %v12206_v1  ;;  %529 = vmatprep.mubr.bf16.mxu0 %v11948_v0 }
  0xa6   :  { %779 = vmatpush1.bf16.msra.mxu1 %v12213_v3  ;;  %658 = vmatprep.mubr.bf16.mxu1 %v11948_v0 }
  0xa7   :  { %780 = vmatprep.subr.bf16.mxu1 %v12216_v7  ;;  %581 = vmatpush1.bf16.msra.mxu0 %v12125_v28 }
  0xa8   :  { %582 = vmatprep.subr.bf16.mxu0 %v12130_v31 }
  0xaa   :  { %781 = vmatpush1.bf16.msra.mxu1 %v12232_v13 }
  0xab   :  { %782 = vmatprep.subr.bf16.mxu1 %v12240_v17  ;;  %583 = vmatpush1.bf16.msra.mxu0 %v12137_v36 }
  0xac   :  { %9173 = vmatmul.mubr.msk.bf16.gmra.mrb[8].mxu0 %vm430_vm1, %v12230_v12  ;;  %584 = vmatprep.subr.bf16.mxu0 %v12142_v38 }
  0xad   :  { %9184 = vmatmul.mubr.msk.bf16.gmra.mrb[8].mxu1 %vm430_vm1, %v12237_v16  ;;  %539 = vmatprep.mubr.bf16.mxu0 %v11948_v0 }
  0xae   :  { %668 = vmatprep.mubr.bf16.mxu1 %v11948_v0  ;;  %783 = vmatpush1.bf16.msra.mxu1 %v12245_v18 }
  0xaf   :  { %9194 = vmatprep.subr.msk.bf16.mxu1 %vm452_vm0, %v12248_v23  ;;  %585 = vmatpush1.bf16.msra.mxu0 %v12149_v42 }
  0xb0   :  { %9178 = vmatprep.subr.msk.bf16.mxu0 %vm452_vm0, %v12154_v45 }
  0xb2   :  { %785 = vmatpush1.bf16.msra.mxu1 %v12267_v32 }
  0xb3   :  { %1040 = vmatprep.subr.bf16.mxu1 %v12098_v9  ;;  %587 = vmatpush1.bf16.msra.mxu0 %v12171_v51  ;;  %v143_v9 = vld [vmem:[#allocation2 + $0x50] sm:$0xff] }
  0xb4   :  { %9174 = vmatmul.mubr.msk.bf16.gmra.mrb[12].mxu0 %vm430_vm1, %v12179_v55  ;;  %675 = vmatprep.subr.bf16.mxu0 %v12272_v33 }
  0xb5   :  { %9185 = vmatmul.mubr.msk.bf16.gmra.mrb[12].mxu1 %vm430_vm1, %v12262_v30  ;;  %549 = vmatprep.mubr.bf16.mxu0 %v11948_v0 }
  0xb6   :  { %806 = vmatprep.mubr.bf16.mxu1 %v11948_v0 }
  0xbc   :  { %9175 = vmatmul.mubr.msk.bf16.gmra.mrb[16].mxu0 %vm430_vm1, %v12206_v1 }
  0xbd   :  { %9195 = vmatmul.mubr.msk.bf16.vlgmr.msra.gmra.mrb[16].mxu1 %vm430_vm1, %v12166_v50  ;;  %559 = vmatprep.mubr.bf16.mxu0 %v11948_v0 }
  0xbe   :  { %1041 = vmatpush1.bf16.msra.mxu1 %v12100_v10  ;;  %816 = vmatprep.mubr.bf16.mxu1 %v11948_v0  ;;  %v147_v10 = vld [vmem:[#allocation2 + $0x70] sm:$0xff] }
  0xbf   :  { %1042 = vmatprep.subr.bf16.mxu1 %v12105_v15  ;;  %v12313_v15 = vcombine.low %v135_v25, %v139_v26 }
  0xc2   :  { %1043 = vmatpush1.bf16.msra.mxu1 %v12113_v20  ;;  %v151_v20 = vld [vmem:[#allocation2 + $0x90] sm:$0xff] }
  0xc3   :  { %1044 = vmatprep.subr.bf16.mxu1 %v12118_v22  ;;  %v155_v22 = vld [vmem:[#allocation2 + $0xb0] sm:$0xff] }
  0xc4   :  { %9176 = vmatmul.mubr.msk.bf16.gmra.mrb[20].mxu0 %vm430_vm1, %v12237_v16  ;;  %v12332_v39 = vcombine.low %v151_v20, %v155_v22 }
  0xc5   :  { %9196 = vmatmul.mubr.msk.bf16.gmra.mrb[20].mxu1 %vm430_vm1, %v12200_v61  ;;  %569 = vmatprep.mubr.bf16.mxu0 %v11948_v0 }
  0xc6   :  { %826 = vmatprep.mubr.bf16.mxu1 %v11948_v0  ;;  %1045 = vmatpush1.bf16.msra.mxu1 %v12125_v28  ;;  %v12315_v28 = vcombine.high %v143_v9, %v147_v10 }
  0xc7   :  { %1046 = vmatprep.subr.bf16.mxu1 %v12130_v31  ;;  %v12324_v31 = vcombine.low %v143_v9, %v147_v10  ;;  %v10681_v9 = vld [vmem:[#allocation6 + $0x4bc] ss:$24 sps:$4 sm:$0xff]  }
  0xca   :  { %1047 = vmatpush1.bf16.msra.mxu1 %v12137_v36  ;;  %v163_v36 = vld [vmem:[#allocation2 + $0xf0] sm:$0xff] }
  0xcb   :  { %1048 = vmatprep.subr.bf16.mxu1 %v12142_v38  ;;  %v12328_v38 = vcombine.high %v151_v20, %v155_v22  ;;  %v12335_v44 = vcombine.high %v159_v34, %v163_v36 }
  0xcc   :  { %9177 = vmatmul.mubr.msk.bf16.gmra.mrb[24].mxu0 %vm430_vm1, %v12262_v30 }
  0xcd   :  { %9197 = vmatmul.mubr.msk.bf16.gmra.mrb[24].mxu1 %vm430_vm1, %v12230_v12  ;;  %608 = vmatprep.mubr.bf16.mxu0 %v11948_v0 }
  0xce   :  { %836 = vmatprep.mubr.bf16.mxu1 %v11948_v0  ;;  %1049 = vmatpush1.bf16.msra.mxu1 %v12149_v42  ;;  %v171_v42 = vld [vmem:[#allocation2 + $0x130] sm:$0xff] }
  0xcf   :  { %9230 = vmatprep.subr.msk.bf16.mxu1 %vm452_vm0, %v12154_v45  ;;  %v12342_v45 = vcombine.low %v159_v34, %v163_v36  ;;  %v12346_v47 = vcombine.high %v167_v40, %v171_v42  ;;  %v12350_v48 = vcombine.low %v167_v40, %v171_v42  ;;  %v10687_v40 = vld [vmem:[#allocation6 + $0x51c] ss:$24 sps:$4 sm:$0xff]   ;;  %v10685_v42 = vld [vmem:[#allocation6 + $0x518] ss:$24 sps:$4 sm:$0xff]  }
  0xd2   :  { %1051 = vmatpush1.bf16.msra.mxu1 %v12171_v51  ;;  %v12353_v51 = vcombine.high %v175_v46, %v175_v46 }
  0xd3   :  { %1238 = vmatprep.subr.bf16.mxu1 %v12173_v52  ;;  %v9166_v52 = vcombine.low %v175_v46, %v175_v46 }
  0xd4   :  { %9179 = vmatmul.mubr.msk.bf16.vlgmr.msra.gmra.mrb[28].mxu0 %vm430_vm1, %v12166_v50 }
  0xd5   :  { %9198 = vmatmul.mubr.msk.bf16.gmra.mrb[28].mxu1 %vm430_vm1, %v12179_v55  ;;  %676 = vmatpush1.bf16.msra.mxu0 %v12313_v15  ;;  %v12363_v53 = vsel %vm452_vm0, %v9166_v52, 0  ;;  %v10691_v52 = vld [vmem:[#allocation6 + $0x548] ss:$24 sps:$4 sm:$0xff]  }
  0xd6   :  { %677 = vmatprep.subr.bf16.mxu0 %v12315_v28  ;;  %618 = vmatprep.mubr.bf16.mxu0 %v11948_v0 }
  0xd7   :  { %846 = vmatprep.mubr.bf16.mxu1 %v11948_v0 }
  0xd9   :  { %678 = vmatpush1.bf16.msra.mxu0 %v12324_v31 }
  0xda   :  { %679 = vmatprep.subr.bf16.mxu0 %v12328_v38 }
  0xdc   :  { %9180 = vmatmul.mubr.msk.bf16.gmra.mrb[32].mxu0 %vm430_vm1, %v12200_v61 }
  0xdd   :  { %9199 = vmatmul.mubr.msk.bf16.gmra.mrb[32].mxu1 %vm430_vm1, %v12206_v1  ;;  %680 = vmatpush1.bf16.msra.mxu0 %v12332_v39 }
  0xde   :  { %681 = vmatprep.subr.bf16.mxu0 %v12335_v44  ;;  %628 = vmatprep.mubr.bf16.mxu0 %v11948_v0 }
  0xdf   :  { %856 = vmatprep.mubr.bf16.mxu1 %v11948_v0 }
  0xe1   :  { %682 = vmatpush1.bf16.msra.mxu0 %v12342_v45 }
  0xe2   :  { %683 = vmatprep.subr.bf16.mxu0 %v12346_v47 }
  0xe4   :  { %9181 = vmatmul.mubr.msk.bf16.gmra.mrb[36].mxu0 %vm430_vm1, %v12230_v12 }
  0xe5   :  { %9200 = vmatmul.mubr.msk.bf16.gmra.mrb[36].mxu1 %vm430_vm1, %v12237_v16  ;;  %684 = vmatpush1.bf16.msra.mxu0 %v12350_v48 }
  0xe6   :  { %9186 = vmatprep.subr.msk.bf16.mxu0 %vm452_vm0, %v12353_v51  ;;  %707 = vmatprep.mubr.bf16.mxu0 %v11948_v0 }
  0xe7   :  { %866 = vmatprep.mubr.bf16.mxu1 %v11948_v0 }
  0xe9   :  { %686 = vmatpush1.bf16.msra.mxu0 %v12363_v53 }
  0xea   :  { %941 = vmatprep.subr.bf16.mxu0 %v12094_v4  ;;  %v12394_v4 = vld [vmem:[%s15732_s0 + $0x3c] sm:$0xff]  }
  0xec   :  { %9187 = vmatmul.mubr.msk.bf16.vlgmr.msra.gmra.mrb[40].mxu0 %vm430_vm1, %v12166_v50  ;;  %v10661_v50 = vld [vmem:[#allocation6 + $0x398] ss:$24 sps:$4 sm:$0xff]  }
  0xed   :  { %9201 = vmatmul.mubr.msk.bf16.gmra.mrb[40].mxu1 %vm430_vm1, %v12262_v30  ;;  %717 = vmatprep.mubr.bf16.mxu0 %v11948_v0 }
  0xee   :  { %1072 = vmatprep.mubr.bf16.mxu1 %v11948_v0  ;;  %942 = vmatpush1.bf16.msra.mxu0 %v12096_v6  ;;  %v12413_v6 = vld [vmem:[%s15732_s0 + $0x44] sm:$0xff]  }
  0xef   :  { %943 = vmatprep.subr.bf16.mxu0 %v12102_v11  ;;  %v12433_v11 = vld [vmem:[%s15732_s0 + $0x4c] sm:$0xff]  }
  0xf2   :  { %944 = vmatpush1.bf16.msra.mxu0 %v12109_v19  ;;  %v12447_v19 = vld [vmem:[%s15732_s0 + $0x54] sm:$0xff]  }
  0xf3   :  { %945 = vmatprep.subr.bf16.mxu0 %v12115_v21  ;;  %v12458_v21 = vld [vmem:[%s15732_s0 + $0x5c] sm:$0xff]  }
  0xf4   :  { %9188 = vmatmul.mubr.msk.bf16.gmra.mrb[44].mxu0 %vm430_vm1, %v12200_v61  ;;  %v10672_v61 = vld [vmem:[#allocation6 + $0x42c] ss:$24 sps:$4 sm:$0xff]  }
  0xf5   :  { %9231 = vmatmul.mubr.msk.bf16.vlgmr.msra.gmra.mrb[44].mxu1 %vm430_vm1, %v12379_v54  ;;  %727 = vmatprep.mubr.bf16.mxu0 %v11948_v0 }
  0xf6   :  { %1239 = vmatpush1.bf16.msra.mxu1 %v12182_v56  ;;  %1082 = vmatprep.mubr.bf16.mxu1 %v11948_v0  ;;  %v10666_v56 = vld [vmem:[#allocation6 + $0x3cc] ss:$24 sps:$4 sm:$0xff]  }
  0xf7   :  { %1240 = vmatprep.subr.bf16.mxu1 %v12186_v57  ;;  %946 = vmatpush1.bf16.msra.mxu0 %v12121_v27  ;;  %v12469_v27 = vld [vmem:[%s15732_s0 + $0x64] ss:$0 sps:$4 sm:$0xff]  }
  0xf8   :  { %947 = vmatprep.subr.bf16.mxu0 %v12127_v29  ;;  %v10654_v29 = vld [vmem:[#allocation6 + $0x30c] ss:$24 sps:$4 sm:$0xff]   ;;  %v10664_v57 = vld [vmem:[#allocation6 + $0x3c8] ss:$24 sps:$4 sm:$0xff]  }
  0xfa   :  { %1241 = vmatpush1.bf16.msra.mxu1 %v12194_v60 }
  0xfb   :  { %1242 = vmatprep.subr.bf16.mxu1 %v12209_v2  ;;  %948 = vmatpush1.bf16.msra.mxu0 %v12133_v35  ;;  %v10652_v35 = vld [vmem:[#allocation6 + $0x308] ss:$24 sps:$4 sm:$0xff]  }
  0xfc   :  { %9189 = vmatmul.mubr.msk.bf16.gmra.mrb[48].mxu0 %vm430_vm1, %v12230_v12  ;;  %949 = vmatprep.subr.bf16.mxu0 %v12139_v37  ;;  %v10655_v37 = vld [vmem:[#allocation6 + $0x338] ss:$24 sps:$4 sm:$0xff]  }
  0xfd   :  { %9232 = vmatmul.mubr.msk.bf16.gmra.mrb[48].mxu1 %vm430_vm1, %v12394_v4  ;;  %737 = vmatprep.mubr.bf16.mxu0 %v11948_v0  ;;  %v10673_v12 = vld [vmem:[#allocation6 + $0x458] ss:$24 sps:$4 sm:$0xff]  }
  0xfe   :  { %1092 = vmatprep.mubr.bf16.mxu1 %v11948_v0  ;;  %1243 = vmatpush1.bf16.msra.mxu1 %v12213_v3 }
  0xff   :  { %1244 = vmatprep.subr.bf16.mxu1 %v12216_v7  ;;  %950 = vmatpush1.bf16.msra.mxu0 %v12145_v41  ;;  %v10657_v41 = vld [vmem:[#allocation6 + $0x33c] ss:$24 sps:$4 sm:$0xff]  }
 0x100   :  { %9222 = vmatprep.subr.msk.bf16.mxu0 %vm452_vm0, %v12151_v43  ;;  %v10660_v43 = vld [vmem:[#allocation6 + $0x36c] ss:$24 sps:$4 sm:$0xff]  }
 0x102   :  { %1245 = vmatpush1.bf16.msra.mxu1 %v12232_v13  ;;  %v10675_v13 = vld [vmem:[#allocation6 + $0x45c] ss:$24 sps:$4 sm:$0xff]  }
 0x103   :  { %1246 = vmatprep.subr.bf16.mxu1 %v12240_v17  ;;  %952 = vmatpush1.bf16.msra.mxu0 %v12161_v49  ;;  %v10658_v49 = vld [vmem:[#allocation6 + $0x368] ss:$24 sps:$4 sm:$0xff]  }
 0x104   :  { %9190 = vmatmul.mubr.msk.bf16.gmra.mrb[52].mxu0 %vm430_vm1, %v12179_v55  ;;  %1139 = vmatprep.subr.bf16.mxu0 %v12272_v33  ;;  %v10663_v55 = vld [vmem:[#allocation6 + $0x39c] ss:$24 sps:$4 sm:$0xff]   ;;  %v10679_v33 = vld [vmem:[#allocation6 + $0x4b8] ss:$24 sps:$4 sm:$0xff]  }
 0x105   :  { %9233 = vmatmul.mubr.msk.bf16.gmra.mrb[52].mxu1 %vm430_vm1, %v12413_v6  ;;  %747 = vmatprep.mubr.bf16.mxu0 %v11948_v0 }
 0x106   :  { %1102 = vmatprep.mubr.bf16.mxu1 %v11948_v0  ;;  %1247 = vmatpush1.bf16.msra.mxu1 %v12245_v18 }
 0x107   :  { %9246 = vmatprep.subr.msk.bf16.mxu1 %vm452_vm0, %v12248_v23  ;;  %v10676_v23 = vld [vmem:[#allocation6 + $0x488] ss:$24 sps:$4 sm:$0xff]  }
 0x10a   :  { %1249 = vmatpush1.bf16.msra.mxu1 %v12267_v32 }
 0x10b   :  { %4638 = vmatprep.subr.bf16.mxu1 %v10654_v29  ;;  %v10697_v29 = vld [vmem:[#allocation6 + $0x578] ss:$24 sps:$4 sm:$0xff]  }
 0x10c   :  { %9191 = vmatmul.mubr.msk.bf16.gmra.mrb[56].mxu0 %vm430_vm1, %v12206_v1  ;;  %v10670_v1 = vld [vmem:[#allocation6 + $0x428] ss:$24 sps:$4 sm:$0xff]  }
 0x10d   :  { %9234 = vmatmul.mubr.msk.bf16.gmra.mrb[56].mxu1 %vm430_vm1, %v12433_v11  ;;  %757 = vmatprep.mubr.bf16.mxu0 %v11948_v0 }
 0x10e   :  { %1112 = vmatprep.mubr.bf16.mxu1 %v11948_v0 }
 0x114   :  { %9192 = vmatmul.mubr.msk.bf16.gmra.mrb[60].mxu0 %vm430_vm1, %v12237_v16  ;;  %v10678_v16 = vld [vmem:[#allocation6 + $0x48c] ss:$24 sps:$4 sm:$0xff]  }
 0x115   :  { %9235 = vmatmul.mubr.msk.bf16.gmra.mrb[60].mxu1 %vm430_vm1, %v12447_v19  ;;  %767 = vmatprep.mubr.bf16.mxu0 %v11948_v0 }
 0x116   :  { %1122 = vmatprep.mubr.bf16.mxu1 %v11948_v0 }
 0x11c   :  { %9193 = vmatmul.mubr.msk.bf16.gmra.mrb[64].mxu0 %vm430_vm1, %v12262_v30 }
 0x11d   :  { %9236 = vmatmul.mubr.msk.bf16.gmra.mrb[64].mxu1 %vm430_vm1, %v12458_v21  ;;  %973 = vmatprep.mubr.bf16.mxu0 %v11948_v0 }
 0x11e   :  { %1132 = vmatprep.mubr.bf16.mxu1 %v11948_v0 }
 0x124   :  { %9223 = vmatmul.mubr.msk.bf16.vlgmr.msra.gmra.mrb[68].mxu0 %vm430_vm1, %v12379_v54 }
 0x125   :  { %9237 = vmatmul.mubr.msk.bf16.gmra.mrb[68].mxu1 %vm430_vm1, %v12469_v27  ;;  %983 = vmatprep.mubr.bf16.mxu0 %v11948_v0 }
 0x126   :  { %1270 = vmatprep.mubr.bf16.mxu1 %v11948_v0  ;;  %1140 = vmatpush1.bf16.msra.mxu0 %v12313_v15  ;;  %v10684_v15 = vld [vmem:[#allocation6 + $0x4ec] ss:$24 sps:$4 sm:$0xff]  }
 0x127   :  { %1141 = vmatprep.subr.bf16.mxu0 %v12315_v28  ;;  %v10682_v28 = vld [vmem:[#allocation6 + $0x4e8] ss:$24 sps:$4 sm:$0xff]  }
 0x12a   :  { %1142 = vmatpush1.bf16.msra.mxu0 %v12324_v31 }
 0x12b   :  { %1143 = vmatprep.subr.bf16.mxu0 %v12328_v38 }
 0x12c   :  { %9224 = vmatmul.mubr.msk.bf16.gmra.mrb[72].mxu0 %vm430_vm1, %v12394_v4 }
 0x12d   :  { %9247 = vmatmul.mubr.msk.bf16.vlgmr.msra.gmra.mrb[72].mxu1 %vm430_vm1, %v12379_v54  ;;  %993 = vmatprep.mubr.bf16.mxu0 %v11948_v0 }
 0x12e   :  { %1280 = vmatprep.mubr.bf16.mxu1 %v11948_v0  ;;  %1144 = vmatpush1.bf16.msra.mxu0 %v12332_v39 }
 0x12f   :  { %1145 = vmatprep.subr.bf16.mxu0 %v12335_v44  ;;  %4639 = vmatpush1.bf16.msra.mxu1 %v10652_v35  ;;  %v10690_v44 = vld [vmem:[#allocation6 + $0x604] ss:$24 sps:$4 sm:$0xff]  }
 0x130   :  { %4640 = vmatprep.subr.bf16.mxu1 %v10657_v41  ;;  %v10702_v35 = vld [vmem:[#allocation6 + $0x664] ss:$24 sps:$4 sm:$0xff]  }
 0x132   :  { %1146 = vmatpush1.bf16.msra.mxu0 %v12342_v45  ;;  %v10688_v45 = vld [vmem:[#allocation6 + $0x600] ss:$24 sps:$4 sm:$0xff]  }
 0x133   :  { %1147 = vmatprep.subr.bf16.mxu0 %v12346_v47  ;;  %4641 = vmatpush1.bf16.msra.mxu1 %v10655_v37  ;;  %v10693_v47 = vld [vmem:[#allocation6 + $0x54c] ss:$24 sps:$4 sm:$0xff]   ;;  %v10700_v37 = vld [vmem:[#allocation6 + $0x660] ss:$24 sps:$4 sm:$0xff]  }
 0x134   :  { %9225 = vmatmul.mubr.msk.bf16.gmra.mrb[76].mxu0 %vm430_vm1, %v12413_v6  ;;  %4642 = vmatprep.subr.bf16.mxu1 %v10660_v43  ;;  %v10705_v43 = vld [vmem:[#allocation6 + $0x5ac] ss:$24 sps:$4 sm:$0xff]  }
 0x135   :  { %9248 = vmatmul.mubr.msk.bf16.gmra.mrb[76].mxu1 %vm430_vm1, %v12394_v4  ;;  %1003 = vmatprep.mubr.bf16.mxu0 %v11948_v0 }
 0x136   :  { %1290 = vmatprep.mubr.bf16.mxu1 %v11948_v0  ;;  %1148 = vmatpush1.bf16.msra.mxu0 %v12350_v48 }
 0x137   :  { %9238 = vmatprep.subr.msk.bf16.mxu0 %vm452_vm0, %v12353_v51  ;;  %4643 = vmatpush1.bf16.msra.mxu1 %v10658_v49 }
 0x138   :  { %4644 = vmatprep.subr.bf16.mxu1 %v10663_v55  ;;  %v10703_v55 = vld [vmem:[#allocation6 + $0x5a8] ss:$24 sps:$4 sm:$0xff]  }
 0x13a   :  { %1150 = vmatpush1.bf16.msra.mxu0 %v12363_v53 }
 0x13b   :  { %4645 = vmatpush1.bf16.msra.mxu1 %v10661_v50  ;;  %3129 = vmatprep.subr.bf16.mxu0 %v10690_v44 }
 0x13c   :  { %9226 = vmatmul.mubr.msk.bf16.gmra.mrb[80].mxu0 %vm430_vm1, %v12433_v11  ;;  %4646 = vmatprep.subr.bf16.mxu1 %v10666_v56 }
 0x13d   :  { %9249 = vmatmul.mubr.msk.bf16.gmra.mrb[80].mxu1 %vm430_vm1, %v12413_v6  ;;  %1013 = vmatprep.mubr.bf16.mxu0 %v11948_v0 }
 0x13e   :  { %1300 = vmatprep.mubr.bf16.mxu1 %v11948_v0 }
 0x13f   :  { %4647 = vmatpush1.bf16.msra.mxu1 %v10664_v57 }
 0x140   :  { %4648 = vmatprep.subr.bf16.mxu1 %v10669_v59 }
 0x143   :  { %4649 = vmatpush1.bf16.msra.mxu1 %v10667_v58  ;;  %v10708_v58 = vld [vmem:[#allocation6 + $0x694] ss:$24 sps:$4 sm:$0xff]  }
 0x144   :  { %9227 = vmatmul.mubr.msk.bf16.gmra.mrb[84].mxu0 %vm430_vm1, %v12447_v19  ;;  %4650 = vmatprep.subr.bf16.mxu1 %v10672_v61  ;;  %v10706_v61 = vld [vmem:[#allocation6 + $0x690] ss:$24 sps:$4 sm:$0xff]  }
 0x145   :  { %9250 = vmatmul.mubr.msk.bf16.gmra.mrb[84].mxu1 %vm430_vm1, %v12433_v11  ;;  %1023 = vmatprep.mubr.bf16.mxu0 %v11948_v0 }
 0x146   :  { %1310 = vmatprep.mubr.bf16.mxu1 %v11948_v0 }
 0x147   :  { %4651 = vmatpush1.bf16.msra.mxu1 %v10670_v1 }
 0x148   :  { %4652 = vmatprep.subr.bf16.mxu1 %v10675_v13  ;;  %v10709_v13 = vld [vmem:[#allocation6 + $0x5d8] ss:$24 sps:$4 sm:$0xff]  }
 0x14b   :  { %4653 = vmatpush1.bf16.msra.mxu1 %v10673_v12  ;;  %v10711_v12 = vld [vmem:[#allocation6 + $0x5dc] ss:$24 sps:$4 sm:$0xff]  }
 0x14c   :  { %9228 = vmatmul.mubr.msk.bf16.gmra.mrb[88].mxu0 %vm430_vm1, %v12458_v21  ;;  %4654 = vmatprep.subr.bf16.mxu1 %v10678_v16  ;;  %v10714_v16 = vld [vmem:[#allocation6 + $0x6c4] ss:$24 sps:$4 sm:$0xff]  }
 0x14d   :  { %9251 = vmatmul.mubr.msk.bf16.gmra.mrb[88].mxu1 %vm430_vm1, %v12447_v19  ;;  %1033 = vmatprep.mubr.bf16.mxu0 %v11948_v0 }
 0x14e   :  { %1320 = vmatprep.mubr.bf16.mxu1 %v11948_v0 }
 0x14f   :  { %4655 = vmatpush1.bf16.msra.mxu1 %v10676_v23  ;;  %v10712_v23 = vld [vmem:[#allocation6 + $0x6c0] ss:$24 sps:$4 sm:$0xff]  }
 0x150   :  { %4656 = vmatprep.subr.bf16.mxu1 %v10681_v9  ;;  %v10717_v9 = vld [vmem:[#allocation6 + $0xc0c] ss:$24 sps:$4 sm:$0xff]  }
 0x153   :  { %4657 = vmatpush1.bf16.msra.mxu1 %v10679_v33 }
 0x154   :  { %9229 = vmatmul.mubr.msk.bf16.gmra.mrb[92].mxu0 %vm430_vm1, %v12469_v27  ;;  %4658 = vmatprep.subr.bf16.mxu1 %v10684_v15 }
 0x155   :  { %9252 = vmatmul.mubr.msk.bf16.gmra.mrb[92].mxu1 %vm430_vm1, %v12458_v21  ;;  %1171 = vmatprep.mubr.bf16.mxu0 %v11948_v0 }
 0x156   :  { %1330 = vmatprep.mubr.bf16.mxu1 %v11948_v0 }
 0x157   :  { %4659 = vmatpush1.bf16.msra.mxu1 %v10682_v28 }
 0x158   :  { %4660 = vmatprep.subr.bf16.mxu1 %v10687_v40 }
 0x15b   :  { %4661 = vmatpush1.bf16.msra.mxu1 %v10685_v42 }
 0x15c   :  { %9239 = vmatmul.mubr.msk.bf16.vlgmr.msra.gmra.mrb[96].mxu0 %vm430_vm1, %v12379_v54  ;;  %4662 = vmatprep.subr.bf16.mxu1 %v10693_v47  ;;  %v10720_v47 = vld [vmem:[#allocation6 + $0x6f4] ss:$24 sps:$4 sm:$0xff]  }
 0x15d   :  { %1181 = vmatprep.mubr.bf16.mxu0 %v11948_v0  ;;  %9253 = vmatmul.mubr.msk.bf16.gmra.mrb[96].mxu1 %vm430_vm1, %v12469_v27 }
 0x15e   :  { %3130 = vmatpush1.bf16.msra.mxu0 %v10688_v45 }
 0x15f   :  { %4663 = vmatpush1.bf16.msra.mxu1 %v10691_v52  ;;  %v10718_v52 = vld [vmem:[#allocation6 + $0x6f0] ss:$24 sps:$4 sm:$0xff]  }
 0x164   :  { %9240 = vmatmul.mubr.msk.bf16.gmra.mrb[100].mxu0 %vm430_vm1, %v12394_v4  ;;  %v10696_v4 = vld [vmem:[#allocation6 + $0x634] ss:$24 sps:$4 sm:$0xff]  }
 0x165   :  { %1191 = vmatprep.mubr.bf16.mxu0 %v11948_v0  ;;  %3131 = vmatprep.subr.bf16.mxu0 %v10696_v4 }
 0x16c   :  { %9241 = vmatmul.mubr.msk.bf16.gmra.mrb[104].mxu0 %vm430_vm1, %v12413_v6 }
 0x16d   :  { %1201 = vmatprep.mubr.bf16.mxu0 %v11948_v0 }
 0x16f   :  { %v12536_v60 = vpop.f32.mrb[0].mxu0  ;;  %v12538_v62 = vpop.f32.mrb[0].mxu1 }
 0x170   :  { %16131 = vst [vmem:[#allocation17_spill] sm:$0xff] %v12536_v60  ;;  %v12540_v63 = vpop.f32.mrb[1].mxu0  ;;  %v12542_v2 = vpop.f32.mrb[1].mxu1 }
 0x171   :  { %16132 = vst [vmem:[#allocation18_spill] sm:$0xff] %v12540_v63  ;;  %16133 = vst [vmem:[#allocation19_spill] sm:$0xff] %v12542_v2  ;;  %v12544_v3 = vpop.f32.mrb[2].mxu0  ;;  %v12546_v5 = vpop.f32.mrb[2].mxu1  ;;  %v12893_v63 = vld [vmem:[#allocation4] sm:$0xf] }
 0x172   :  { %16134 = vst [vmem:[#allocation20_spill] sm:$0xff] %v12544_v3  ;;  %16135 = vst [vmem:[#allocation21_spill] sm:$0xff] %v12546_v5  ;;  %v12548_v7 = vpop.f32.mrb[3].mxu0  ;;  %v12550_v8 = vpop.f32.mrb[3].mxu1 }
 0x173   :  { %16136 = vst [vmem:[#allocation22_spill] sm:$0xff] %v12548_v7  ;;  %16137 = vst [vmem:[#allocation23_spill] sm:$0xff] %v12550_v8 }
 0x174   :  { %9242 = vmatmul.mubr.msk.bf16.gmra.mrb[108].mxu0 %vm430_vm1, %v12433_v11 }
 0x175   :  { %1211 = vmatprep.mubr.bf16.mxu0 %v11948_v0 }
 0x177   :  { %v12555_v14 = vpop.f32.mrb[4].mxu0 }
 0x178   :  { %16138 = vst [vmem:[#allocation24_spill] sm:$0xff] %v12555_v14  ;;  %v12557_v17 = vpop.f32.mrb[4].mxu1  ;;  %v12559_v18 = vpop.f32.mrb[5].mxu0 }
 0x179   :  { %16139 = vst [vmem:[#allocation25_spill] sm:$0xff] %v12557_v17  ;;  %16140 = vst [vmem:[#allocation26_spill] sm:$0xff] %v12559_v18  ;;  %v12561_v24 = vpop.f32.mrb[5].mxu1  ;;  %v12563_v25 = vpop.f32.mrb[6].mxu0  ;;  %v10774_v17 = vld [vmem:[#allocation6 + $0x8a4] ss:$24 sps:$4 sm:$0xff]  }
 0x17a   :  { %16141 = vst [vmem:[#allocation27_spill] sm:$0xff] %v12561_v24  ;;  %16142 = vst [vmem:[#allocation28_spill] sm:$0xff] %v12563_v25  ;;  %v12565_v26 = vpop.f32.mrb[6].mxu1  ;;  %v12567_v30 = vpop.f32.mrb[7].mxu0  ;;  %v10760_v24 = vld [vmem:[#allocation6 + $0x840] ss:$24 sps:$4 sm:$0xff]  }
 0x17b   :  { %16143 = vst [vmem:[#allocation29_spill] sm:$0xff] %v12565_v26  ;;  %16144 = vst [vmem:[#allocation30_spill] sm:$0xff] %v12567_v30  ;;  %v12569_v32 = vpop.f32.mrb[7].mxu1 }
 0x17c   :  { %16145 = vst [vmem:[#allocation31_spill] sm:$0xff] %v12569_v32  ;;  %9243 = vmatmul.mubr.msk.bf16.gmra.mrb[112].mxu0 %vm430_vm1, %v12447_v19 }
 0x17d   :  { %1221 = vmatprep.mubr.bf16.mxu0 %v11948_v0 }
 0x17f   :  { %v12574_v10 = vpop.f32.mrb[8].mxu0 }
 0x180   :  { %16146 = vst [vmem:[#allocation32_spill] sm:$0xff] %v12574_v10  ;;  %v12576_v20 = vpop.f32.mrb[8].mxu1  ;;  %v12578_v22 = vpop.f32.mrb[9].mxu0 }
 0x181   :  { %16147 = vst [vmem:[#allocation33_spill] sm:$0xff] %v12576_v20  ;;  %16148 = vst [vmem:[#allocation34_spill] sm:$0xff] %v12578_v22  ;;  %v12580_v31 = vpop.f32.mrb[9].mxu1  ;;  %v12582_v34 = vpop.f32.mrb[10].mxu0 }
 0x182   :  { %16149 = vst [vmem:[#allocation35_spill] sm:$0xff] %v12580_v31  ;;  %16150 = vst [vmem:[#allocation36_spill] sm:$0xff] %v12582_v34  ;;  %v12584_v36 = vpop.f32.mrb[10].mxu1  ;;  %v12586_v38 = vpop.f32.mrb[11].mxu0  ;;  %v10772_v31 = vld [vmem:[#allocation6 + $0x8a0] ss:$24 sps:$4 sm:$0xff]  }
 0x183   :  { %16151 = vst [vmem:[#allocation37_spill] sm:$0xff] %v12584_v36  ;;  %16152 = vst [vmem:[#allocation38_spill] sm:$0xff] %v12586_v38  ;;  %v12588_v39 = vpop.f32.mrb[11].mxu1 }
 0x184   :  { %16153 = vst [vmem:[#allocation39_spill] sm:$0xff] %v12588_v39  ;;  %9244 = vmatmul.mubr.msk.bf16.gmra.mrb[116].mxu0 %vm430_vm1, %v12458_v21  ;;  %v10699_v21 = vld [vmem:[#allocation6 + $0x57c] ss:$24 sps:$4 sm:$0xff]  }
 0x185   :  { %1231 = vmatprep.mubr.bf16.mxu0 %v11948_v0  ;;  %v10694_v0 = vld [vmem:[#allocation6 + $0x630] ss:$24 sps:$4 sm:$0xff]   ;;  %4664 = vmatprep.subr.bf16.mxu1 %v10699_v21 }
 0x186   :  { %3132 = vmatpush1.bf16.msra.mxu0 %v10694_v0  ;;  %4665 = vmatpush1.bf16.msra.mxu1 %v10697_v29 }
 0x187   :  { %v12593_v46 = vpop.f32.mrb[12].mxu0  ;;  %3133 = vmatprep.subr.bf16.mxu0 %v10702_v35  ;;  %4666 = vmatprep.subr.bf16.mxu1 %v10705_v43  ;;  %v10732_v43 = vld [vmem:[#allocation6 + $0x754] ss:$24 sps:$4 sm:$0xff]  }
 0x188   :  { %16154 = vst [vmem:[#allocation40_spill] sm:$0xff] %v12593_v46  ;;  %v670_v48 = vpop.f32.mrb[12].mxu1  ;;  %v12595_v51 = vpop.f32.mrb[13].mxu0 }
 0x189   :  { %16155 = vst [vmem:[#allocation41_spill] sm:$0xff] %v12595_v51  ;;  %v671_v53 = vpop.f32.mrb[13].mxu1  ;;  %v12597_v54 = vpop.f32.mrb[14].mxu0 }
 0x18a   :  { %16156 = vst [vmem:[#allocation42_spill] sm:$0xff] %v12597_v54  ;;  %v672_v6 = vpop.f32.mrb[14].mxu1  ;;  %v12599_v11 = vpop.f32.mrb[15].mxu0  ;;  %3134 = vmatpush1.bf16.msra.mxu0 %v10700_v37  ;;  %4667 = vmatpush1.bf16.msra.mxu1 %v10703_v55  ;;  %v10726_v53 = vld [vmem:[#allocation6 + $0x724] ss:$24 sps:$4 sm:$0xff]  }
 0x18b   :  { %16157 = vst [vmem:[#allocation43_spill] sm:$0xff] %v12599_v11  ;;  %v673_v19 = vpop.f32.mrb[15].mxu1  ;;  %3135 = vmatprep.subr.bf16.mxu0 %v10708_v58  ;;  %4668 = vmatprep.subr.bf16.mxu1 %v10711_v12  ;;  %v10724_v6 = vld [vmem:[#allocation6 + $0x720] ss:$24 sps:$4 sm:$0xff]   ;;  %v10730_v58 = vld [vmem:[#allocation6 + $0x750] ss:$24 sps:$4 sm:$0xff]  }
 0x18c   :  { %9245 = vmatmul.mubr.msk.bf16.gmra.mrb[120].mxu0 %vm430_vm1, %v12469_v27 }
 0x18e   :  { %3136 = vmatpush1.bf16.msra.mxu0 %v10706_v61  ;;  %4669 = vmatpush1.bf16.msra.mxu1 %v10709_v13  ;;  %v10738_v61 = vld [vmem:[#allocation6 + $0x784] ss:$24 sps:$4 sm:$0xff]   ;;  %v10736_v13 = vld [vmem:[#allocation6 + $0x780] ss:$24 sps:$4 sm:$0xff]  }
 0x18f   :  { %v12603_v41 = vpop.f32.mrb[16].mxu0  ;;  %3137 = vmatprep.subr.bf16.mxu0 %v10714_v16  ;;  %6096 = vmatprep.subr.bf16.mxu1 %v10717_v9  ;;  %v10748_v16 = vld [vmem:[#allocation6 + $0x7e0] ss:$24 sps:$4 sm:$0xff]  }
 0x190   :  { %16158 = vst [vmem:[#allocation44_spill] sm:$0xff] %v12603_v41  ;;  %v12605_v49 = vpop.f32.mrb[16].mxu1  ;;  %v12607_v50 = vpop.f32.mrb[17].mxu0 }
 0x191   :  { %16159 = vst [vmem:[#allocation45_spill] sm:$0xff] %v12607_v50  ;;  %v12609_v56 = vpop.f32.mrb[17].mxu1  ;;  %v12611_v57 = vpop.f32.mrb[18].mxu0 }
 0x192   :  { %16160 = vst [vmem:[#allocation46_spill] sm:$0xff] %v12611_v57  ;;  %v12613_v59 = vpop.f32.mrb[18].mxu1  ;;  %v12615_v27 = vpop.f32.mrb[19].mxu0  ;;  %3138 = vmatpush1.bf16.msra.mxu0 %v10712_v23 }
 0x193   :  { %16161 = vst [vmem:[#allocation47_spill] sm:$0xff] %v12615_v27  ;;  %v12617_v1 = vpop.f32.mrb[19].mxu1  ;;  %3139 = vmatprep.subr.bf16.mxu0 %v10720_v47 }
 0x196   :  { %3140 = vmatpush1.bf16.msra.mxu0 %v10718_v52 }
 0x197   :  { %v12619_v33 = vpop.f32.mrb[20].mxu0  ;;  %3141 = vmatprep.subr.bf16.mxu0 %v10726_v53 }
 0x198   :  { %16162 = vst [vmem:[#allocation48_spill] sm:$0xff] %v12619_v33  ;;  %v12621_v15 = vpop.f32.mrb[20].mxu1  ;;  %v12623_v28 = vpop.f32.mrb[21].mxu0 }
 0x199   :  { %16163 = vst [vmem:[#allocation49_spill] sm:$0xff] %v12623_v28  ;;  %v12625_v40 = vpop.f32.mrb[21].mxu1  ;;  %v12627_v42 = vpop.f32.mrb[22].mxu0 }
 0x19a   :  { %16164 = vst [vmem:[#allocation50_spill] sm:$0xff] %v12627_v42  ;;  %v12629_v44 = vpop.f32.mrb[22].mxu1  ;;  %v12631_v45 = vpop.f32.mrb[23].mxu0  ;;  %3142 = vmatpush1.bf16.msra.mxu0 %v10724_v6 }
 0x19b   :  { %16165 = vst [vmem:[#allocation51_spill] sm:$0xff] %v12631_v45  ;;  %v12633_v48 = vpop.f32.mrb[23].mxu1  ;;  %3143 = vmatprep.subr.bf16.mxu0 %v10732_v43  ;;  %v10744_v43 = vld [vmem:[#allocation6 + $0x7b4] ss:$24 sps:$4 sm:$0xff]  }
 0x19e   :  { %3144 = vmatpush1.bf16.msra.mxu0 %v10730_v58 }
 0x19f   :  { %v571_v4 = vpop.f32.mrb[24].mxu0  ;;  %3145 = vmatprep.subr.bf16.mxu0 %v10738_v61 }
 0x1a0   :  { %v12635_v0 = vpop.f32.mrb[24].mxu1  ;;  %v572_v19 = vpop.f32.mrb[25].mxu0 }
 0x1a1   :  { %v12637_v21 = vpop.f32.mrb[25].mxu1  ;;  %v573_v29 = vpop.f32.mrb[26].mxu0  ;;  %v10750_v19 = vld [vmem:[#allocation6 + $0x7e4] ss:$24 sps:$4 sm:$0xff]  }
 0x1a2   :  { %v12639_v35 = vpop.f32.mrb[26].mxu1  ;;  %v574_v37 = vpop.f32.mrb[27].mxu0  ;;  %3146 = vmatpush1.bf16.msra.mxu0 %v10736_v13  ;;  %v10742_v13 = vld [vmem:[#allocation6 + $0x7b0] ss:$24 sps:$4 sm:$0xff]  }
 0x1a3   :  { %v12641_v55 = vpop.f32.mrb[27].mxu1  ;;  %3147 = vmatprep.subr.bf16.mxu0 %v10744_v43 }
 0x1a6   :  { %3148 = vmatpush1.bf16.msra.mxu0 %v10742_v13 }
 0x1a7   :  { %v12643_v12 = vpop.f32.mrb[28].mxu0  ;;  %3149 = vmatprep.subr.bf16.mxu0 %v10750_v19 }
 0x1a8   :  { %v12647_v23 = vpop.f32.mrb[28].mxu1  ;;  %v12649_v9 = vpop.f32.mrb[29].mxu0 }
 0x1a9   :  { %v12655_v53 = vpop.f32.mrb[29].mxu1  ;;  %v12657_v4 = vpop.f32.mrb[30].mxu0 }
 0x1aa   :  { %16166 = vst [vmem:[#allocation52_spill] sm:$0xff] %v12655_v53  ;;  %v12663_v29 = vpop.f32.mrb[30].mxu1  ;;  %v12665_v37 = vpop.f32.mrb[31].mxu0  ;;  %3150 = vmatpush1.bf16.msra.mxu0 %v10748_v16  ;;  %v10754_v16 = vld [vmem:[#allocation6 + $0x810] ss:$24 sps:$4 sm:$0xff]  }
 0x1ab   :  { %16167 = vst [vmem:[#allocation53_spill] sm:$0xff] %v12663_v29  ;;  %v12671_v47 = vpop.f32.mrb[31].mxu1  ;;  %v10756_v29 = vld [vmem:[#allocation6 + $0x814] ss:$24 sps:$4 sm:$0xff]   ;;  %v10762_v53 = vld [vmem:[#allocation6 + $0x844] ss:$24 sps:$4 sm:$0xff]  }
 0x1ac   :  { %16168 = vst [vmem:[#allocation54_spill] sm:$0xff] %v12671_v47  ;;  %3151 = vmatprep.subr.bf16.mxu0 %v10756_v29 }
 0x1ae   :  { %3152 = vmatpush1.bf16.msra.mxu0 %v10754_v16 }
 0x1af   :  { %v12675_v52 = vpop.f32.mrb[32].mxu0  ;;  %3153 = vmatprep.subr.bf16.mxu0 %v10762_v53 }
 0x1b0   :  { %v12679_v2 = vpop.f32.mrb[32].mxu1  ;;  %v12681_v58 = vpop.f32.mrb[33].mxu0 }
 0x1b1   :  { %16169 = vst [vmem:[#allocation55_spill] sm:$0xff] %v12679_v2  ;;  %v12687_v43 = vpop.f32.mrb[33].mxu1  ;;  %v12689_v13 = vpop.f32.mrb[34].mxu0 }
 0x1b2   :  { %16170 = vst [vmem:[#allocation56_spill] sm:$0xff] %v12687_v43  ;;  %v12695_v8 = vpop.f32.mrb[34].mxu1  ;;  %v12697_v19 = vpop.f32.mrb[35].mxu0  ;;  %3154 = vmatpush1.bf16.msra.mxu0 %v10760_v24  ;;  %v10766_v24 = vld [vmem:[#allocation6 + $0x870] ss:$24 sps:$4 sm:$0xff]  }
 0x1b3   :  { %16171 = vst [vmem:[#allocation57_spill] sm:$0xff] %v12695_v8  ;;  %v12703_v2 = vpop.f32.mrb[35].mxu1  ;;  %v10768_v8 = vld [vmem:[#allocation6 + $0x874] ss:$24 sps:$4 sm:$0xff]  }
 0x1b4   :  { %16172 = vst [vmem:[#allocation58_spill] sm:$0xff] %v12703_v2  ;;  %3155 = vmatprep.subr.bf16.mxu0 %v10768_v8 }
 0x1b6   :  { %3156 = vmatpush1.bf16.msra.mxu0 %v10766_v24 }
 0x1b7   :  { %v12707_v43 = vpop.f32.mrb[36].mxu0  ;;  %3157 = vmatprep.subr.bf16.mxu0 %v10774_v17  ;;  %v10786_v17 = vld [vmem:[#allocation6 + $0x904] ss:$24 sps:$4 sm:$0xff]  }
 0x1b8   :  { %v12711_v5 = vpop.f32.mrb[36].mxu1  ;;  %v12713_v61 = vpop.f32.mrb[37].mxu0 }
 0x1b9   :  { %16173 = vst [vmem:[#allocation59_spill] sm:$0xff] %v12711_v5  ;;  %v12719_v29 = vpop.f32.mrb[37].mxu1  ;;  %v12721_v16 = vpop.f32.mrb[38].mxu0 }
 0x1ba   :  { %16174 = vst [vmem:[#allocation60_spill] sm:$0xff] %v12719_v29  ;;  %v12727_v32 = vpop.f32.mrb[38].mxu1  ;;  %v12729_v53 = vpop.f32.mrb[39].mxu0  ;;  %3158 = vmatpush1.bf16.msra.mxu0 %v10772_v31 }
 0x1bb   :  { %16175 = vst [vmem:[#allocation61_spill] sm:$0xff] %v12727_v32  ;;  %v12735_v5 = vpop.f32.mrb[39].mxu1 }
 0x1bc   :  { %16176 = vst [vmem:[#allocation62_spill] sm:$0xff] %v12735_v5  ;;  %v10780_v5 = vld [vmem:[#allocation6 + $0x8d4] ss:$24 sps:$4 sm:$0xff]  }
 0x1bd   :  { %3159 = vmatprep.subr.bf16.mxu0 %v10780_v5 }
 0x1bf   :  { %v12739_v29 = vpop.f32.mrb[40].mxu0 }
 0x1c0   :  { %16177 = vst [vmem:[#allocation63_spill] sm:$0xff] %v12739_v29  ;;  %v868_v26 = vpop.f32.mrb[40].mxu1  ;;  %v12743_v6 = vpop.f32.mrb[41].mxu0  ;;  %v10778_v29 = vld [vmem:[#allocation6 + $0x8d0] ss:$24 sps:$4 sm:$0xff]  }
 0x1c1   :  { %16178 = vst [vmem:[#allocation64_spill] sm:$0xff] %v12743_v6  ;;  %v869_v32 = vpop.f32.mrb[41].mxu1  ;;  %v12747_v36 = vpop.f32.mrb[42].mxu0  ;;  %3160 = vmatpush1.bf16.msra.mxu0 %v10778_v29 }
 0x1c2   :  { %16179 = vst [vmem:[#allocation65_spill] sm:$0xff] %v12747_v36  ;;  %v870_v24 = vpop.f32.mrb[42].mxu1  ;;  %v12751_v2 = vpop.f32.mrb[43].mxu0  ;;  %3190 = vmatprep.subr.bf16.mxu0 %v10786_v17 }
 0x1c3   :  { %16180 = vst [vmem:[#allocation66_spill] sm:$0xff] %v12751_v2  ;;  %v871_v20 = vpop.f32.mrb[43].mxu1 }
 0x1c7   :  { %v12755_v47 = vpop.f32.mrb[44].mxu0 }
 0x1c8   :  { %16181 = vst [vmem:[#allocation67_spill] sm:$0xff] %v12755_v47  ;;  %v12759_v31 = vpop.f32.mrb[44].mxu1  ;;  %v12761_v8 = vpop.f32.mrb[45].mxu0 }
 0x1c9   :  { %16182 = vst [vmem:[#allocation68_spill] sm:$0xff] %v12761_v8  ;;  %v12765_v36 = vpop.f32.mrb[45].mxu1  ;;  %v12767_v20 = vpop.f32.mrb[46].mxu0 }
 0x1ca   :  { %16183 = vst [vmem:[#allocation69_spill] sm:$0xff] %v12767_v20  ;;  %v12771_v29 = vpop.f32.mrb[46].mxu1  ;;  %v12773_v26 = vpop.f32.mrb[47].mxu0 }
 0x1cb   :  { %16184 = vst [vmem:[#allocation70_spill] sm:$0xff] %v12773_v26  ;;  %v12777_v47 = vpop.f32.mrb[47].mxu1 }
 0x1cf   :  { %v12779_v17 = vpop.f32.mrb[48].mxu0 }
 0x1d0   :  { %16185 = vst [vmem:[#allocation71_spill] sm:$0xff] %v12779_v17  ;;  %v12783_v8 = vpop.f32.mrb[48].mxu1  ;;  %v12785_v18 = vpop.f32.mrb[49].mxu0 }
 0x1d1   :  { %16186 = vst [vmem:[#allocation72_spill] sm:$0xff] %v12785_v18  ;;  %v12789_v20 = vpop.f32.mrb[49].mxu1  ;;  %v12791_v25 = vpop.f32.mrb[50].mxu0 }
 0x1d2   :  { %16187 = vst [vmem:[#allocation73_spill] sm:$0xff] %v12791_v25  ;;  %v12795_v26 = vpop.f32.mrb[50].mxu1  ;;  %v12797_v30 = vpop.f32.mrb[51].mxu0 }
 0x1d3   :  { %16188 = vst [vmem:[#allocation74_spill] sm:$0xff] %v12797_v30  ;;  %v12801_v17 = vpop.f32.mrb[51].mxu1 }
 0x1d7   :  { %v12803_v10 = vpop.f32.mrb[52].mxu0 }
 0x1d8   :  { %16189 = vst [vmem:[#allocation75_spill] sm:$0xff] %v12803_v10  ;;  %v12807_v18 = vpop.f32.mrb[52].mxu1  ;;  %v12809_v22 = vpop.f32.mrb[53].mxu0 }
 0x1d9   :  { %16190 = vst [vmem:[#allocation76_spill] sm:$0xff] %v12809_v22  ;;  %v12813_v25 = vpop.f32.mrb[53].mxu1  ;;  %v12815_v34 = vpop.f32.mrb[54].mxu0 }
 0x1da   :  { %16191 = vst [vmem:[#allocation77_spill] sm:$0xff] %v12815_v34  ;;  %v12819_v30 = vpop.f32.mrb[54].mxu1  ;;  %v12821_v38 = vpop.f32.mrb[55].mxu0 }
 0x1db   :  { %16192 = vst [vmem:[#allocation78_spill] sm:$0xff] %v12821_v38  ;;  %v12825_v10 = vpop.f32.mrb[55].mxu1 }
 0x1df   :  { %v12827_v46 = vpop.f32.mrb[56].mxu0 }
 0x1e0   :  { %16193 = vst [vmem:[#allocation79_spill] sm:$0xff] %v12827_v46  ;;  %v12831_v22 = vpop.f32.mrb[56].mxu1  ;;  %v12833_v51 = vpop.f32.mrb[57].mxu0 }
 0x1e1   :  { %16194 = vst [vmem:[#allocation80_spill] sm:$0xff] %v12833_v51  ;;  %v12837_v34 = vpop.f32.mrb[57].mxu1  ;;  %v12839_v54 = vpop.f32.mrb[58].mxu0 }
 0x1e2   :  { %16195 = vst [vmem:[#allocation81_spill] sm:$0xff] %v12839_v54  ;;  %v12843_v38 = vpop.f32.mrb[58].mxu1  ;;  %v12845_v11 = vpop.f32.mrb[59].mxu0 }
 0x1e3   :  { %16196 = vst [vmem:[#allocation82_spill] sm:$0xff] %v12845_v11  ;;  %v12849_v46 = vpop.f32.mrb[59].mxu1 }
 0x1e7   :  { %v12851_v41 = vpop.f32.mrb[60].mxu0 }
 0x1e8   :  { %16197 = vst [vmem:[#allocation83_spill] sm:$0xff] %v12851_v41  ;;  %v12855_v51 = vpop.f32.mrb[60].mxu1  ;;  %v12857_v50 = vpop.f32.mrb[61].mxu0 }
 0x1e9   :  { %16198 = vst [vmem:[#allocation84_spill] sm:$0xff] %v12857_v50  ;;  %v12861_v54 = vpop.f32.mrb[61].mxu1  ;;  %v12863_v57 = vpop.f32.mrb[62].mxu0 }
 0x1ea   :  { %16199 = vst [vmem:[#allocation85_spill] sm:$0xff] %v12863_v57  ;;  %v12867_v11 = vpop.f32.mrb[62].mxu1  ;;  %v12869_v27 = vpop.f32.mrb[63].mxu0  ;;  %v1483_v57 = vlaneseq }
 0x1eb   :  { %16200 = vst [vmem:[#allocation86_spill] sm:$0xff] %v12869_v27  ;;  %v12873_v41 = vpop.f32.mrb[63].mxu1 }
 0x1ec   :  { %v12887_v24 = vshrl.u32 %v1483_v57, 7 }
 0x1ee   :  { %16204 = vst [vmem:[#allocation90_spill] sm:$0xff] %v12887_v24  ;;  %v1497_v60 = vsub.s32 3, %v12887_v24 }
 0x1ef   :  { %v769_v33 = vpop.f32.mrb[64].mxu0 }
 0x1f0   :  { %v12875_v14 = vpop.f32.mrb[64].mxu1  ;;  %v770_v5 = vpop.f32.mrb[65].mxu0 }
 0x1f1   :  { %v12877_v50 = vpop.f32.mrb[65].mxu1  ;;  %v771_v28 = vpop.f32.mrb[66].mxu0 }
 0x1f2   :  { %v12879_v2 = vpop.f32.mrb[66].mxu1  ;;  %v772_v7 = vpop.f32.mrb[67].mxu0 }
 0x1f3   :  { %v12881_v32 = vpop.f32.mrb[67].mxu1  ;;  %v15814_v7 = vsub.s32 2, %v12887_v24 }
 0x1f4   :  { %16201 = vst [vmem:[#allocation87_spill] sm:$0xff] %v12881_v32 }
 0x1f7   :  { %v12883_v42 = vpop.f32.mrb[68].mxu0 }
 0x1f8   :  { %16202 = vst [vmem:[#allocation88_spill] sm:$0xff] %v12883_v42  ;;  %v1134_v3 = vpop.f32.mrb[68].mxu1  ;;  %v12885_v6 = vpop.f32.mrb[69].mxu0 }
 0x1f9   :  { %16203 = vst [vmem:[#allocation89_spill] sm:$0xff] %v12885_v6  ;;  %v1135_v33 = vpop.f32.mrb[69].mxu1  ;;  %v12889_v27 = vpop.f32.mrb[70].mxu0 }
 0x1fa   :  { %16205 = vst [vmem:[#allocation91_spill] sm:$0xff] %v12889_v27  ;;  %v1136_v5 = vpop.f32.mrb[70].mxu1  ;;  %v12891_v45 = vpop.f32.mrb[71].mxu0  ;;  %v12905_v33 = vrot.slane %v12893_v63, %v15814_v7  ;;  %v12911_v27 = vrot.slane %v12893_v63, %v1497_v60  ;;  %v16212_v7 = vmax.f32 %v12649_v9, %v12609_v56  ;;  %v16213_v60 = vmax.f32 %v12657_v4, %v12613_v59 }
 0x1fb   :  { %16206 = vst [vmem:[#allocation92_spill] sm:$0xff] %v12891_v45  ;;  %v1137_v28 = vpop.f32.mrb[71].mxu1 }
 0x1ff   :  { %v12897_v39 = vpop.f32.mrb[72].mxu0 }
 0x200   :  { %16207 = vst [vmem:[#allocation93_spill] sm:$0xff] %v12897_v39  ;;  %v1272_v3 = vpop.f32.mrb[72].mxu1  ;;  %v12899_v42 = vpop.f32.mrb[73].mxu0 }
 0x201   :  { %16208 = vst [vmem:[#allocation94_spill] sm:$0xff] %v12899_v42  ;;  %v1387_v57 = vmax.f32 %v12759_v31, %v1272_v3  ;;  %v1274_v5 = vpop.f32.mrb[73].mxu1  ;;  %v12907_v28 = vpop.f32.mrb[74].mxu0  ;;  %v16211_v42 = vmax.f32 %v12643_v12, %v12605_v49  ;;  %v16214_v49 = vmax.f32 %v12665_v37, %v12617_v1 }
 0x202   :  { %16209 = vst [vmem:[#allocation95_spill] sm:$0xff] %v12907_v28  ;;  %v1388_v45 = vmax.f32 %v12765_v36, %v1274_v5  ;;  %v1276_v6 = vpop.f32.mrb[74].mxu1  ;;  %v12913_v39 = vpop.f32.mrb[75].mxu0 }
 0x203   :  { %16210 = vst [vmem:[#allocation96_spill] sm:$0xff] %v12913_v39  ;;  %v1435_v31 = vmax.f32 %v16211_v42, %v1387_v57  ;;  %v1391_v3 = vmax.f32 %v12771_v29, %v1276_v6  ;;  %v1278_v24 = vpop.f32.mrb[75].mxu1 }
 0x204   :  { %v1436_v32 = vmax.f32 %v16212_v7, %v1388_v45  ;;  %v1392_v28 = vmax.f32 %v12777_v47, %v1278_v24 }
 0x205   :  { %v1505_v36 = vadd.f32 %v12905_v33, %v1435_v31  ;;  %v1439_v5 = vmax.f32 %v16213_v60, %v1391_v3  ;;  %v16215_v31 = vmax.f32 %v12675_v52, %v12621_v15  ;;  %v16218_v15 = vmax.f32 %v12697_v19, %v12633_v48 }
 0x206   :  { %v1506_v39 = vadd.f32 %v12911_v27, %v1436_v32  ;;  %v1440_v42 = vmax.f32 %v16214_v49, %v1392_v28 }
 0x207   :  { %v1509_v12 = vadd.f32 %v12905_v33, %v1439_v5  ;;  %v12932_v6 = vpop.f32.mrb[76].mxu0  ;;  %v1553_v47 = vmax.f32 %v1505_v36, 0.0 }
 0x208   :  { %v1510_v56 = vadd.f32 %v12911_v27, %v1440_v42  ;;  %v1282_v45 = vpop.f32.mrb[76].mxu1  ;;  %v12935_v9 = vpop.f32.mrb[77].mxu0  ;;  %v1554_v32 = vmax.f32 %v1506_v39, 0.0  ;;  %v16217_v42 = vmax.f32 %v12689_v13, %v12629_v44 }
 0x209   :  { %v1557_v24 = vmax.f32 %v1509_v12, 0.0  ;;  %v1395_v59 = vmax.f32 %v12783_v8, %v1282_v45  ;;  %v1284_v4 = vpop.f32.mrb[77].mxu1  ;;  %v12938_v29 = vpop.f32.mrb[78].mxu0  ;;  %v16216_v8 = vmax.f32 %v12681_v58, %v12625_v40 }
 0x20a   :  { %v1558_v7 = vmax.f32 %v1510_v56, 0.0  ;;  %v1396_v1 = vmax.f32 %v12789_v20, %v1284_v4  ;;  %v1286_v37 = vpop.f32.mrb[78].mxu1  ;;  %v12941_v57 = vpop.f32.mrb[79].mxu0 }
 0x20b   :  { %v1601_v28 = vpack.c.bf16 %v1557_v24, %v1553_v47  ;;  %v1443_v3 = vmax.f32 %v16215_v31, %v1395_v59  ;;  %v1399_v36 = vmax.f32 %v12795_v26, %v1286_v37  ;;  %v1288_v60 = vpop.f32.mrb[79].mxu1  ;;  %v16219_v31 = vmax.f32 %v12707_v43, %v12635_v0 }
 0x20c   :  { %v1444_v5 = vmax.f32 %v16216_v8, %v1396_v1  ;;  %v1400_v39 = vmax.f32 %v12801_v17, %v1288_v60  ;;  %v1602_v49 = vpack.c.bf16 %v1558_v7, %v1554_v32  ;;  %v16220_v8 = vmax.f32 %v12713_v61, %v12637_v21 }
 0x20d   :  { %v1513_v20 = vadd.f32 %v12905_v33, %v1443_v3  ;;  %v1447_v12 = vmax.f32 %v16217_v42, %v1399_v36  ;;  %v1678_v1 = vrot.slane %v1601_v28, 4  ;;  %v16221_v42 = vmax.f32 %v12721_v16, %v12639_v35  ;;  %v10715_v35 = vld [vmem:[#allocation6 + $0xc08] ss:$24 sps:$4 sm:$0xff]  }
 0x20e   :  { %v1514_v56 = vadd.f32 %v12911_v27, %v1444_v5  ;;  %v1448_v52 = vmax.f32 %v16218_v15, %v1400_v39  ;;  %v1679_v39 = vrot.slane %v1602_v49, 4 }
 0x20f   :  { %v1517_v26 = vadd.f32 %v12905_v33, %v1447_v12  ;;  %v12960_v45 = vpop.f32.mrb[80].mxu0  ;;  %v1561_v47 = vmax.f32 %v1513_v20, 0.0 }
 0x210   :  { %v1518_v40 = vadd.f32 %v12911_v27, %v1448_v52  ;;  %v1292_v58 = vpop.f32.mrb[80].mxu1  ;;  %v12963_v17 = vpop.f32.mrb[81].mxu0  ;;  %v1562_v4 = vmax.f32 %v1514_v56, 0.0  ;;  %v16223_v56 = vmax.f32 %v12729_v53, %v12641_v55  ;;  %v10723_v53 = vld [vmem:[#allocation6 + $0xc3c] ss:$24 sps:$4 sm:$0xff]  }
 0x211   :  { %v1565_v24 = vmax.f32 %v1517_v26, 0.0  ;;  %v1403_v44 = vmax.f32 %v12807_v18, %v1292_v58  ;;  %v1294_v13 = vpop.f32.mrb[81].mxu1  ;;  %v12966_v59 = vpop.f32.mrb[82].mxu0 }
 0x212   :  { %v1566_v32 = vmax.f32 %v1518_v40, 0.0  ;;  %v1404_v48 = vmax.f32 %v12813_v25, %v1294_v13  ;;  %v1296_v19 = vpop.f32.mrb[82].mxu1  ;;  %v12969_v7 = vpop.f32.mrb[83].mxu0 }
 0x213   :  { %v1605_v37 = vpack.c.bf16 %v1565_v24, %v1561_v47  ;;  %v1451_v3 = vmax.f32 %v16219_v31, %v1403_v44  ;;  %v1407_v36 = vmax.f32 %v12819_v30, %v1296_v19  ;;  %v1298_v18 = vpop.f32.mrb[83].mxu1 }
 0x214   :  { %v12975_v60 = vpack.c.bf16 %v1566_v32, %v1562_v4  ;;  %v1452_v5 = vmax.f32 %v16220_v8, %v1404_v48  ;;  %v1408_v25 = vmax.f32 %v12825_v10, %v1298_v18  ;;  %v16228_v8 = vld [vmem:[#allocation19_spill] sm:$0xff] }
 0x215   :  { %v1521_v20 = vadd.f32 %v12905_v33, %v1451_v3  ;;  %v1455_v12 = vmax.f32 %v16221_v42, %v1407_v36  ;;  %v1629_v0 = vrot.slane %v1605_v37, 4  ;;  %v12986_v43 = vsel %vm1639_vm2, %v1678_v1, %v1605_v37  ;;  %v10721_v36 = vld [vmem:[#allocation6 + $0xc38] ss:$24 sps:$4 sm:$0xff]  }
 0x216   :  { %16222 = vst [vmem:[#allocation97_spill] sm:$0xff] %v12986_v43  ;;  %v1522_v30 = vadd.f32 %v12911_v27, %v1452_v5  ;;  %v1456_v21 = vmax.f32 %v16223_v56, %v1408_v25  ;;  %v1630_v61 = vrot.slane %v12975_v60, 4  ;;  %v12995_v10 = vsel %vm1639_vm2, %v1679_v39, %v12975_v60  ;;  %v16229_v5 = vld [vmem:[#allocation52_spill] sm:$0xff] }
 0x217   :  { %16224 = vst [vmem:[#allocation98_spill] sm:$0xff] %v12995_v10  ;;  %v1525_v15 = vadd.f32 %v12905_v33, %v1455_v12  ;;  %v12999_v16 = vsel %vm1639_vm2, %v1601_v28, %v1629_v0  ;;  %v13001_v52 = vpop.f32.mrb[84].mxu0  ;;  %v1569_v47 = vmax.f32 %v1521_v20, 0.0  ;;  %v16227_v1 = vmax.f32 %v12538_v62, %v12647_v23  ;;  %v10729_v20 = vld [vmem:[#allocation6 + $0xc6c] ss:$24 sps:$4 sm:$0xff]  }
 0x218   :  { %16225 = vst [vmem:[#allocation99_spill] sm:$0xff] %v12999_v16  ;;  %v1526_v26 = vadd.f32 %v12911_v27, %v1456_v21  ;;  %v1302_v40 = vpop.f32.mrb[84].mxu1  ;;  %v13005_v55 = vsel %vm1639_vm2, %v1602_v49, %v1630_v61  ;;  %v13007_v58 = vpop.f32.mrb[85].mxu0  ;;  %v1570_v4 = vmax.f32 %v1522_v30, 0.0  ;;  %v16230_v25 = vmax.f32 %v16228_v8, %v16229_v5  ;;  %v16231_v30 = vld [vmem:[#allocation21_spill] sm:$0xff] }
 0x219   :  { %16226 = vst [vmem:[#allocation100_spill] sm:$0xff] %v13005_v55  ;;  %v1573_v24 = vmax.f32 %v1525_v15, 0.0  ;;  %v1411_v44 = vmax.f32 %v12831_v22, %v1302_v40  ;;  %v1304_v13 = vpop.f32.mrb[85].mxu1  ;;  %4670 = vmatprep.mubr.bf16.mxu1 %v13005_v55  ;;  %v13011_v28 = vpop.f32.mrb[86].mxu0  ;;  %v16232_v62 = vld [vmem:[#allocation53_spill] sm:$0xff] }
 0x21a   :  { %v1574_v32 = vmax.f32 %v1526_v26, 0.0  ;;  %v1412_v48 = vmax.f32 %v12837_v34, %v1304_v13  ;;  %v1306_v19 = vpop.f32.mrb[86].mxu1  ;;  %4671 = vmatmul.mubr.bf16.vlgmr.msra.gmra.mrb[100].mxu1 %v12999_v16  ;;  %v13015_v49 = vpop.f32.mrb[87].mxu0  ;;  %v16233_v23 = vmax.f32 %v16231_v30, %v16232_v62  ;;  %v16236_v26 = vld [vmem:[#allocation54_spill] sm:$0xff]  ;;  %v16243_v30 = vld [vmem:[#allocation55_spill] sm:$0xff] }
 0x21b   :  { %v1459_v31 = vmax.f32 %v16227_v1, %v1411_v44  ;;  %v1415_v22 = vmax.f32 %v12843_v38, %v1306_v19  ;;  %6097 = vmatpush1.bf16.msra.mxu1 %v10715_v35  ;;  %v1308_v3 = vpop.f32.mrb[87].mxu1  ;;  %v1609_v18 = vpack.c.bf16 %v1573_v24, %v1569_v47  ;;  %v16235_v35 = vld [vmem:[#allocation23_spill] sm:$0xff]  ;;  %v10727_v44 = vld [vmem:[#allocation6 + $0xc68] ss:$24 sps:$4 sm:$0xff]  }
 0x21c   :  { %v1460_v39 = vmax.f32 %v16230_v25, %v1412_v48  ;;  %v1416_v34 = vmax.f32 %v12849_v46, %v1308_v3  ;;  %6098 = vmatprep.subr.bf16.mxu1 %v10723_v53  ;;  %v1610_v42 = vpack.c.bf16 %v1574_v32, %v1570_v4  ;;  %v16237_v40 = vmax.f32 %v16235_v35, %v16236_v26  ;;  %v10735_v48 = vld [vmem:[#allocation6 + $0xc9c] ss:$24 sps:$4 sm:$0xff]   ;;  %v16247_v35 = vld [vmem:[#allocation56_spill] sm:$0xff] }
 0x21d   :  { %v1529_v12 = vadd.f32 %v12905_v33, %v1459_v31  ;;  %v1463_v56 = vmax.f32 %v16233_v23, %v1415_v22  ;;  %v1686_v38 = vrot.slane %v1609_v18, 4  ;;  %v13030_v21 = vsel %vm1639_vm2, %v1629_v0, %v1609_v18  ;;  %v10733_v23 = vld [vmem:[#allocation6 + $0xc98] ss:$24 sps:$4 sm:$0xff]  }
 0x21e   :  { %16234 = vst [vmem:[#allocation19_spill] sm:$0xff] %v13030_v21  ;;  %v1530_v15 = vadd.f32 %v12911_v27, %v1460_v39  ;;  %v1464_v47 = vmax.f32 %v16237_v40, %v1416_v34  ;;  %v1687_v46 = vrot.slane %v1610_v42, 4  ;;  %v13037_v53 = vsel %vm1639_vm2, %v1630_v61, %v1610_v42  ;;  %v10793_v21 = vld [vmem:[#allocation6 + $0xe78] ss:$24 sps:$4 sm:$0xff]  }
 0x21f   :  { %16238 = vst [vmem:[#allocation52_spill] sm:$0xff] %v13037_v53  ;;  %v1533_v24 = vadd.f32 %v12905_v33, %v1463_v56  ;;  %6099 = vmatpush1.bf16.msra.mxu1 %v10721_v36  ;;  %v13040_v13 = vpop.f32.mrb[88].mxu0  ;;  %v13043_v4 = vsel %vm1639_vm2, %v1605_v37, %v1686_v38  ;;  %v1577_v1 = vmax.f32 %v1529_v12, 0.0  ;;  %v16331_v53 = vld [vmem:[#allocation42_spill] sm:$0xff]  ;;  %v13453_v55 = vld [vmem:[#allocation6 + $0xba0] ss:$24 sps:$4 sm:$0xff]  }
 0x220   :  { %16239 = vst [vmem:[#allocation21_spill] sm:$0xff] %v13043_v4  ;;  %v1534_v0 = vadd.f32 %v12911_v27, %v1464_v47  ;;  %v1312_v32 = vpop.f32.mrb[88].mxu1  ;;  %6100 = vmatprep.subr.bf16.mxu1 %v10729_v20  ;;  %v13046_v19 = vpop.f32.mrb[89].mxu0  ;;  %v13050_v61 = vsel %vm1639_vm2, %v12975_v60, %v1687_v46  ;;  %v1578_v37 = vmax.f32 %v1530_v15, 0.0  ;;  %v16242_v20 = vld [vmem:[#allocation25_spill] sm:$0xff]  ;;  %v16246_v15 = vld [vmem:[#allocation27_spill] sm:$0xff] }
 0x221   :  { %16240 = vst [vmem:[#allocation53_spill] sm:$0xff] %v13050_v61  ;;  %v1581_v31 = vmax.f32 %v1533_v24, 0.0  ;;  %v1419_v22 = vmax.f32 %v12855_v51, %v1312_v32  ;;  %v1314_v3 = vpop.f32.mrb[89].mxu1  ;;  %v13053_v36 = vpop.f32.mrb[90].mxu0  ;;  %v16244_v60 = vmax.f32 %v16242_v20, %v16243_v30  ;;  %v16248_v26 = vmax.f32 %v16246_v15, %v16247_v35  ;;  %v10741_v47 = vld [vmem:[#allocation6 + $0xccc] ss:$24 sps:$4 sm:$0xff]  }
 0x222   :  { %v1582_v8 = vmax.f32 %v1534_v0, 0.0  ;;  %v1420_v5 = vmax.f32 %v12861_v54, %v1314_v3  ;;  %v1316_v25 = vpop.f32.mrb[90].mxu1  ;;  %v13056_v39 = vpop.f32.mrb[91].mxu0  ;;  %v16249_v0 = vld [vmem:[#allocation29_spill] sm:$0xff]  ;;  %v16253_v3 = vld [vmem:[#allocation31_spill] sm:$0xff] }
 0x223   :  { %v13058_v34 = vpack.c.bf16 %v1581_v31, %v1577_v1  ;;  %v1467_v62 = vmax.f32 %v16244_v60, %v1419_v22  ;;  %v1423_v12 = vmax.f32 %v12867_v11, %v1316_v25  ;;  %6101 = vmatpush1.bf16.msra.mxu1 %v10727_v44  ;;  %v1318_v51 = vpop.f32.mrb[91].mxu1  ;;  %v16250_v32 = vld [vmem:[#allocation57_spill] sm:$0xff] }
 0x224   :  { %v13064_v56 = vpack.c.bf16 %v1582_v8, %v1578_v37  ;;  %v1468_v54 = vmax.f32 %v16248_v26, %v1420_v5  ;;  %v1424_v40 = vmax.f32 %v12873_v41, %v1318_v51  ;;  %6102 = vmatprep.subr.bf16.mxu1 %v10735_v48  ;;  %v16251_v1 = vmax.f32 %v16249_v0, %v16250_v32  ;;  %v16254_v37 = vld [vmem:[#allocation58_spill] sm:$0xff]  ;;  %v10739_v20 = vld [vmem:[#allocation6 + $0xcc8] ss:$24 sps:$4 sm:$0xff]  }
 0x225   :  { %16241 = vst [vmem:[#allocation23_spill] sm:$0xff] %v13058_v34  ;;  %v1537_v24 = vadd.f32 %v12905_v33, %v1467_v62  ;;  %v15817_v11 = vrot.slane %v13058_v34, 4  ;;  %v13077_v44 = vsel %vm1639_vm2, %v1686_v38, %v13058_v34  ;;  %v16255_v8 = vmax.f32 %v16253_v3, %v16254_v37  ;;  %v10747_v51 = vld [vmem:[#allocation6 + $0xcfc] ss:$24 sps:$4 sm:$0xff]  }
 0x226   :  { %16245 = vst [vmem:[#allocation54_spill] sm:$0xff] %v13064_v56  ;;  %v1471_v31 = vmax.f32 %v16251_v1, %v1423_v12  ;;  %16252 = vst [vmem:[#allocation25_spill] sm:$0xff] %v13077_v44  ;;  %v1538_v22 = vadd.f32 %v12911_v27, %v1468_v54  ;;  %v15818_v48 = vrot.slane %v13064_v56, 4  ;;  %v13086_v5 = vsel %vm1639_vm2, %v1687_v46, %v13064_v56 }
 0x227   :  { %v1472_v41 = vmax.f32 %v16255_v8, %v1424_v40  ;;  %16256 = vst [vmem:[#allocation55_spill] sm:$0xff] %v13086_v5  ;;  %6103 = vmatpush1.bf16.msra.mxu1 %v10733_v23  ;;  %v13092_v38 = vsel %vm1639_vm2, %v1609_v18, %v15817_v11  ;;  %v1035_v30 = vpop.f32.mrb[92].mxu0  ;;  %v1585_v15 = vmax.f32 %v1537_v24, 0.0  ;;  %v10745_v8 = vld [vmem:[#allocation6 + $0xcf8] ss:$24 sps:$4 sm:$0xff]  }
 0x228   :  { %v1541_v25 = vadd.f32 %v12905_v33, %v1471_v31  ;;  %16257 = vst [vmem:[#allocation27_spill] sm:$0xff] %v13092_v38  ;;  %v1322_v62 = vpop.f32.mrb[92].mxu1  ;;  %v13098_v12 = vsel %vm1639_vm2, %v1610_v42, %v15818_v48  ;;  %6104 = vmatprep.subr.bf16.mxu1 %v10741_v47  ;;  %v1036_v46 = vpop.f32.mrb[93].mxu0  ;;  %v1586_v54 = vmax.f32 %v1538_v22, 0.0  ;;  %v16260_v47 = vld [vmem:[#allocation33_spill] sm:$0xff]  ;;  %v16261_v31 = vld [vmem:[#allocation59_spill] sm:$0xff] }
 0x229   :  { %v1542_v60 = vadd.f32 %v12911_v27, %v1472_v41  ;;  %16258 = vst [vmem:[#allocation56_spill] sm:$0xff] %v13098_v12  ;;  %v1427_v35 = vmax.f32 %v12875_v14, %v1322_v62  ;;  %v1324_v26 = vpop.f32.mrb[93].mxu1  ;;  %4680 = vmatprep.mubr.bf16.mxu1 %v13098_v12  ;;  %v1037_v18 = vpop.f32.mrb[94].mxu0  ;;  %v16262_v24 = vmax.f32 %v16260_v47, %v16261_v31  ;;  %v16264_v22 = vld [vmem:[#allocation35_spill] sm:$0xff]  ;;  %v16268_v46 = vld [vmem:[#allocation90_spill] sm:$0xff]  ;;  %v16300_v48 = vld [vmem:[#allocation68_spill] sm:$0xff] }
 0x22a   :  { %v1589_v23 = vmax.f32 %v1541_v25, 0.0  ;;  %v1428_v0 = vmax.f32 %v12877_v50, %v1324_v26  ;;  %v1326_v32 = vpop.f32.mrb[94].mxu1  ;;  %4681 = vmatmul.mubr.bf16.gmra.mrb[104].mxu1 %v13092_v38  ;;  %v1038_v42 = vpop.f32.mrb[95].mxu0  ;;  %v16265_v25 = vld [vmem:[#allocation60_spill] sm:$0xff]  ;;  %v16270_v18 = vld [vmem:[#allocation61_spill] sm:$0xff] }
 0x22b   :  { %v1590_v40 = vmax.f32 %v1542_v60, 0.0  ;;  %v1475_v3 = vmax.f32 %v16262_v24, %v1427_v35  ;;  %v1431_v14 = vmax.f32 %v12879_v2, %v1326_v32  ;;  %6105 = vmatpush1.bf16.msra.mxu1 %v10739_v20  ;;  %v1328_v37 = vpop.f32.mrb[95].mxu1  ;;  %v16266_v50 = vmax.f32 %v16264_v22, %v16265_v25  ;;  %v16267_v60 = vld [vmem:[#allocation87_spill] sm:$0xff]  ;;  %v16269_v35 = vld [vmem:[#allocation37_spill] sm:$0xff]  ;;  %v16273_v42 = vld [vmem:[#allocation62_spill] sm:$0xff] }
 0x22c   :  { %v13104_v1 = vpack.c.bf16 %v1589_v23, %v1585_v15  ;;  %v1432_v62 = vmax.f32 %v16267_v60, %v1328_v37  ;;  %6106 = vmatprep.subr.bf16.mxu1 %v10747_v51  ;;  %v15816_v15 = vsub.s32 0, %v16268_v46  ;;  %v10753_v23 = vld [vmem:[#allocation6 + $0xd2c] ss:$24 sps:$4 sm:$0xff]   ;;  %v16271_v2 = vmax.f32 %v16269_v35, %v16270_v18  ;;  %v10751_v24 = vld [vmem:[#allocation6 + $0xd28] ss:$24 sps:$4 sm:$0xff]  }
 0x22d   :  { %v13110_v41 = vpack.c.bf16 %v1590_v40, %v1586_v54  ;;  %v1476_v30 = vmax.f32 %v16266_v50, %v1428_v0  ;;  %v1545_v26 = vadd.f32 %v12905_v33, %v1475_v3  ;;  %v15815_v32 = vsub.s32 1, %v16268_v46  ;;  %v16272_v40 = vld [vmem:[#allocation39_spill] sm:$0xff]  ;;  %v16275_v37 = vld [vmem:[#allocation88_spill] sm:$0xff]  ;;  %v16350_v12 = vld [vmem:[#allocation81_spill] sm:$0xff] }
 0x22e   :  { %16259 = vst [vmem:[#allocation29_spill] sm:$0xff] %v13104_v1  ;;  %v1479_v20 = vmax.f32 %v16271_v2, %v1431_v14  ;;  %v16274_v47 = vmax.f32 %v16272_v40, %v16273_v42  ;;  %v13133_v14 = vrot.slane %v12893_v63, %v15816_v15  ;;  %v10759_v50 = vld [vmem:[#allocation6 + $0xd5c] ss:$24 sps:$4 sm:$0xff]   ;;  %v16277_v2 = vld [vmem:[#allocation17_spill] sm:$0xff]  ;;  %v10805_v38 = vld [vmem:[#allocation6 + $0xed8] ss:$24 sps:$4 sm:$0xff]  }
 0x22f   :  { %16263 = vst [vmem:[#allocation57_spill] sm:$0xff] %v13110_v41  ;;  %v1546_v54 = vadd.f32 %v12911_v27, %v1476_v30  ;;  %4690 = vmatprep.mubr.bf16.mxu1 %v13110_v41  ;;  %6107 = vmatpush1.bf16.msra.mxu1 %v10745_v8  ;;  %v1173_v31 = vpop.f32.mrb[96].mxu0  ;;  %v1593_v30 = vmax.f32 %v1545_v26, 0.0 }
 0x230   :  { %v1480_v0 = vmax.f32 %v16274_v47, %v1432_v62  ;;  %v1549_v51 = vadd.f32 %v12905_v33, %v1479_v20  ;;  %v1385_v22 = vmax.f32 %v16275_v37, %v1173_v31  ;;  %v1175_v25 = vpop.f32.mrb[97].mxu0  ;;  %6108 = vmatprep.subr.bf16.mxu1 %v10753_v23  ;;  %v16276_v62 = vld [vmem:[#allocation89_spill] sm:$0xff]  ;;  %v13139_v33 = vrot.slane %v12893_v63, %v15815_v32  ;;  %v16278_v20 = vld [vmem:[#allocation63_spill] sm:$0xff]  ;;  %v1332_v26 = vpop.f32.mrb[96].mxu1  ;;  %v16282_v31 = vld [vmem:[#allocation18_spill] sm:$0xff] }
 0x231   :  { %v1386_v35 = vmax.f32 %v16276_v62, %v1175_v25  ;;  %v1594_v8 = vmax.f32 %v1546_v54, 0.0  ;;  %v16279_v40 = vmax.f32 %v16277_v2, %v16278_v20  ;;  %v16280_v47 = vld [vmem:[#allocation91_spill] sm:$0xff]  ;;  %v16283_v37 = vld [vmem:[#allocation64_spill] sm:$0xff]  ;;  %v1333_v32 = vpop.f32.mrb[97].mxu1  ;;  %v16288_v2 = vld [vmem:[#allocation65_spill] sm:$0xff] }
 0x232   :  { %v1550_v3 = vadd.f32 %v12911_v27, %v1480_v0  ;;  %v1597_v60 = vmax.f32 %v1549_v51, 0.0  ;;  %v1177_v27 = vpop.f32.mrb[98].mxu0  ;;  %4691 = vmatmul.mubr.bf16.gmra.mrb[108].mxu1 %v13104_v1  ;;  %v16284_v25 = vmax.f32 %v16282_v31, %v16283_v37  ;;  %v16285_v62 = vld [vmem:[#allocation92_spill] sm:$0xff]  ;;  %v16290_v26 = vld [vmem:[#allocation22_spill] sm:$0xff] }
 0x233   :  { %v1433_v42 = vmax.f32 %v16279_v40, %v1385_v22  ;;  %v1389_v0 = vmax.f32 %v16280_v47, %v1177_v27  ;;  %v1179_v23 = vpop.f32.mrb[99].mxu0  ;;  %6109 = vmatpush1.bf16.msra.mxu1 %v10751_v24  ;;  %v16287_v27 = vld [vmem:[#allocation20_spill] sm:$0xff] }
 0x234   :  { %v1598_v18 = vmax.f32 %v1550_v3, 0.0  ;;  %v13146_v51 = vpack.c.bf16 %v1597_v60, %v1593_v30  ;;  %v1434_v63 = vmax.f32 %v16284_v25, %v1386_v35  ;;  %v1390_v54 = vmax.f32 %v16285_v62, %v1179_v23  ;;  %v10757_v3 = vld [vmem:[#allocation6 + $0xd58] ss:$24 sps:$4 sm:$0xff]   ;;  %6110 = vmatprep.subr.bf16.mxu1 %v10759_v50  ;;  %v10765_v30 = vld [vmem:[#allocation6 + $0xd8c] ss:$24 sps:$4 sm:$0xff]   ;;  %v1334_v60 = vpop.f32.mrb[98].mxu1 }
 0x235   :  { %v1503_v22 = vadd.f32 %v13133_v14, %v1433_v42  ;;  %v16289_v20 = vmax.f32 %v16287_v27, %v16288_v2  ;;  %v16291_v35 = vld [vmem:[#allocation66_spill] sm:$0xff]  ;;  %v1335_v23 = vpop.f32.mrb[99].mxu1  ;;  %v10763_v42 = vld [vmem:[#allocation6 + $0xd88] ss:$24 sps:$4 sm:$0xff]  }
 0x236   :  { %16281 = vst [vmem:[#allocation31_spill] sm:$0xff] %v13146_v51  ;;  %v13152_v15 = vpack.c.bf16 %v1598_v18, %v1594_v8  ;;  %v1504_v47 = vadd.f32 %v13139_v33, %v1434_v63  ;;  %v16292_v24 = vmax.f32 %v16290_v26, %v16291_v35  ;;  %v10771_v27 = vld [vmem:[#allocation6 + $0xdbc] ss:$24 sps:$4 sm:$0xff]   ;;  %v16295_v35 = vld [vmem:[#allocation24_spill] sm:$0xff] }
 0x237   :  { %v1437_v40 = vmax.f32 %v16289_v20, %v1389_v0  ;;  %6111 = vmatpush1.bf16.msra.mxu1 %v10757_v3  ;;  %v1183_v18 = vpop.f32.mrb[100].mxu0  ;;  %v1551_v37 = vmax.f32 %v1503_v22, 0.0  ;;  %v16293_v0 = vld [vmem:[#allocation93_spill] sm:$0xff]  ;;  %v16294_v20 = vld [vmem:[#allocation94_spill] sm:$0xff]  ;;  %v16298_v3 = vld [vmem:[#allocation95_spill] sm:$0xff] }
 0x238   :  { %16286 = vst [vmem:[#allocation58_spill] sm:$0xff] %v13152_v15  ;;  %v1438_v31 = vmax.f32 %v16292_v24, %v1390_v54  ;;  %v1393_v50 = vmax.f32 %v16293_v0, %v1183_v18  ;;  %v1185_v62 = vpop.f32.mrb[101].mxu0  ;;  %6112 = vmatprep.subr.bf16.mxu1 %v10765_v30  ;;  %v1552_v63 = vmax.f32 %v1504_v47, 0.0  ;;  %v16302_v30 = vld [vmem:[#allocation96_spill] sm:$0xff] }
 0x239   :  { %v1507_v32 = vadd.f32 %v13133_v14, %v1437_v40  ;;  %v1394_v60 = vmax.f32 %v16294_v20, %v1185_v62  ;;  %v1187_v54 = vpop.f32.mrb[102].mxu0  ;;  %v16296_v40 = vld [vmem:[#allocation67_spill] sm:$0xff]  ;;  %v16303_v20 = vld [vmem:[#allocation28_spill] sm:$0xff] }
 0x23a   :  { %v1508_v8 = vadd.f32 %v13139_v33, %v1438_v31  ;;  %v16297_v24 = vmax.f32 %v16295_v35, %v16296_v40  ;;  %v1397_v23 = vmax.f32 %v16298_v3, %v1187_v54  ;;  %v1189_v11 = vpop.f32.mrb[103].mxu0  ;;  %v16306_v35 = vld [vmem:[#allocation30_spill] sm:$0xff] }
 0x23b   :  { %v1555_v25 = vmax.f32 %v1507_v32, 0.0  ;;  %v16299_v32 = vld [vmem:[#allocation26_spill] sm:$0xff]  ;;  %6113 = vmatpush1.bf16.msra.mxu1 %v10763_v42  ;;  %v1398_v47 = vmax.f32 %v16302_v30, %v1189_v11 }
 0x23c   :  { %v1556_v2 = vmax.f32 %v1508_v8, 0.0  ;;  %v1441_v31 = vmax.f32 %v16297_v24, %v1393_v50  ;;  %v16301_v18 = vmax.f32 %v16299_v32, %v16300_v48  ;;  %v10769_v8 = vld [vmem:[#allocation6 + $0xdb8] ss:$24 sps:$4 sm:$0xff]   ;;  %6114 = vmatprep.subr.bf16.mxu1 %v10771_v27  ;;  %v10777_v50 = vld [vmem:[#allocation6 + $0xdec] ss:$24 sps:$4 sm:$0xff]  }
 0x23d   :  { %v1599_v26 = vpack.c.bf16 %v1555_v25, %v1551_v37  ;;  %v16304_v37 = vld [vmem:[#allocation69_spill] sm:$0xff]  ;;  %v10783_v27 = vld [vmem:[#allocation6 + $0xe1c] ss:$24 sps:$4 sm:$0xff]  }
 0x23e   :  { %v1600_v22 = vpack.c.bf16 %v1556_v2, %v1552_v63  ;;  %v1442_v0 = vmax.f32 %v16301_v18, %v1394_v60  ;;  %v1511_v62 = vadd.f32 %v13133_v14, %v1441_v31  ;;  %v16305_v25 = vmax.f32 %v16303_v20, %v16304_v37  ;;  %v16307_v63 = vld [vmem:[#allocation70_spill] sm:$0xff]  ;;  %v10775_v60 = vld [vmem:[#allocation6 + $0xde8] ss:$24 sps:$4 sm:$0xff]   ;;  %v16310_v37 = vld [vmem:[#allocation71_spill] sm:$0xff] }
 0x23f   :  { %v16308_v2 = vmax.f32 %v16306_v35, %v16307_v63  ;;  %6115 = vmatpush1.bf16.msra.mxu1 %v10769_v8  ;;  %v1193_v11 = vpop.f32.mrb[104].mxu0 }
 0x240   :  { %v1445_v46 = vmax.f32 %v16305_v25, %v1397_v23  ;;  %v1512_v54 = vadd.f32 %v13139_v33, %v1442_v0  ;;  %v1559_v24 = vmax.f32 %v1511_v62, 0.0  ;;  %v1401_v3 = vmax.f32 %v12932_v6, %v1193_v11  ;;  %v1195_v23 = vpop.f32.mrb[105].mxu0  ;;  %6116 = vmatprep.subr.bf16.mxu1 %v10777_v50  ;;  %v16312_v50 = vld [vmem:[#allocation34_spill] sm:$0xff]  ;;  %v16315_v11 = vld [vmem:[#allocation36_spill] sm:$0xff] }
 0x241   :  { %v1446_v40 = vmax.f32 %v16308_v2, %v1398_v47  ;;  %v1402_v0 = vmax.f32 %v12935_v9, %v1195_v23  ;;  %v1197_v30 = vpop.f32.mrb[106].mxu0  ;;  %v1676_v47 = vrot.slane %v1599_v26, 4  ;;  %v1677_v63 = vrot.slane %v1600_v22, 4  ;;  %v16313_v2 = vld [vmem:[#allocation72_spill] sm:$0xff] }
 0x242   :  { %v1515_v48 = vadd.f32 %v13133_v14, %v1445_v46  ;;  %v1560_v32 = vmax.f32 %v1512_v54, 0.0  ;;  %v16309_v46 = vld [vmem:[#allocation32_spill] sm:$0xff]  ;;  %v1405_v62 = vmax.f32 %v12938_v29, %v1197_v30  ;;  %v1199_v35 = vpop.f32.mrb[107].mxu0  ;;  %v16314_v54 = vmax.f32 %v16312_v50, %v16313_v2 }
 0x243   :  { %v1516_v42 = vadd.f32 %v13139_v33, %v1446_v40  ;;  %v16311_v8 = vmax.f32 %v16309_v46, %v16310_v37  ;;  %6117 = vmatpush1.bf16.msra.mxu1 %v10775_v60  ;;  %v1406_v9 = vmax.f32 %v12941_v57, %v1199_v35  ;;  %v13202_v29 = vld [vmem:[#allocation6 + $0x900] ss:$24 sps:$4 sm:$0xff]   ;;  %v16319_v57 = vld [vmem:[#allocation38_spill] sm:$0xff] }
 0x244   :  { %v1563_v31 = vmax.f32 %v1515_v48, 0.0  ;;  %v1450_v40 = vmax.f32 %v16314_v54, %v1402_v0  ;;  %v10781_v48 = vld [vmem:[#allocation6 + $0xe18] ss:$24 sps:$4 sm:$0xff]   ;;  %6118 = vmatprep.subr.bf16.mxu1 %v10783_v27  ;;  %v13217_v27 = vld [vmem:[#allocation6 + $0x934] ss:$24 sps:$4 sm:$0xff]  }
 0x245   :  { %v1564_v18 = vmax.f32 %v1516_v42, 0.0  ;;  %v1449_v25 = vmax.f32 %v16311_v8, %v1401_v3  ;;  %v16320_v0 = vld [vmem:[#allocation74_spill] sm:$0xff]  ;;  %v10787_v50 = vld [vmem:[#allocation6 + $0xe48] ss:$24 sps:$4 sm:$0xff]  }
 0x246   :  { %v13186_v20 = vpack.c.bf16 %v1563_v31, %v1559_v24  ;;  %v16316_v24 = vld [vmem:[#allocation73_spill] sm:$0xff]  ;;  %v1520_v60 = vadd.f32 %v13139_v33, %v1450_v40  ;;  %v16321_v30 = vmax.f32 %v16319_v57, %v16320_v0  ;;  %v13236_v57 = vld [vmem:[#allocation6 + $0x964] ss:$24 sps:$4 sm:$0xff]  }
 0x247   :  { %v13192_v6 = vpack.c.bf16 %v1564_v18, %v1560_v32  ;;  %v1519_v42 = vadd.f32 %v13133_v14, %v1449_v25  ;;  %v16317_v31 = vmax.f32 %v16315_v11, %v16316_v24  ;;  %v10789_v32 = vld [vmem:[#allocation6 + $0xe4c] ss:$24 sps:$4 sm:$0xff]   ;;  %6119 = vmatpush1.bf16.msra.mxu1 %v10781_v48  ;;  %v1203_v35 = vpop.f32.mrb[108].mxu0  ;;  %v10795_v11 = vld [vmem:[#allocation6 + $0xe7c] ss:$24 sps:$4 sm:$0xff]  }
 0x248   :  { %v13206_v23 = vsel %vm1639_vm2, %v1676_v47, %v13186_v20  ;;  %v1627_v18 = vrot.slane %v13186_v20, 4  ;;  %v1454_v46 = vmax.f32 %v16321_v30, %v1406_v9  ;;  %v1409_v9 = vmax.f32 %v12960_v45, %v1203_v35  ;;  %6120 = vmatprep.subr.bf16.mxu1 %v10789_v32  ;;  %v16326_v0 = vld [vmem:[#allocation75_spill] sm:$0xff] }
 0x249   :  { %v1453_v3 = vmax.f32 %v16317_v31, %v1405_v62  ;;  %16318 = vst [vmem:[#allocation33_spill] sm:$0xff] %v13206_v23  ;;  %v13215_v37 = vsel %vm1639_vm2, %v1677_v63, %v13192_v6  ;;  %v1628_v8 = vrot.slane %v13192_v6, 4  ;;  %v13227_v63 = vld [vmem:[#allocation6 + $0x930] ss:$24 sps:$4 sm:$0xff]   ;;  %v1567_v54 = vmax.f32 %v1519_v42, 0.0  ;;  %v16325_v42 = vld [vmem:[#allocation40_spill] sm:$0xff] }
 0x24a   :  { %16322 = vst [vmem:[#allocation59_spill] sm:$0xff] %v13215_v37  ;;  %3161 = vmatprep.mubr.bf16.mxu0 %v13215_v37  ;;  %v13223_v25 = vsel %vm1639_vm2, %v1599_v26, %v1627_v18  ;;  %v1524_v62 = vadd.f32 %v13139_v33, %v1454_v46  ;;  %v1205_v26 = vpop.f32.mrb[109].mxu0  ;;  %v1568_v24 = vmax.f32 %v1520_v60, 0.0  ;;  %v16327_v30 = vmax.f32 %v16325_v42, %v16326_v0  ;;  %v16328_v60 = vld [vmem:[#allocation41_spill] sm:$0xff] }
 0x24b   :  { %v1523_v47 = vadd.f32 %v13133_v14, %v1453_v3  ;;  %16323 = vst [vmem:[#allocation35_spill] sm:$0xff] %v13223_v25  ;;  %3162 = vmatmul.mubr.bf16.vlgmr.msra.gmra.mrb[124].mxu0 %v13206_v23  ;;  %v13230_v2 = vsel %vm1639_vm2, %v1600_v22, %v1628_v8  ;;  %v1410_v31 = vmax.f32 %v12963_v17, %v1205_v26  ;;  %v1207_v3 = vpop.f32.mrb[110].mxu0  ;;  %v16332_v42 = vld [vmem:[#allocation77_spill] sm:$0xff]  ;;  %v13468_v25 = vld [vmem:[#allocation6 + $0x63c] ss:$24 sps:$4 sm:$0xff]  }
 0x24c   :  { %16324 = vst [vmem:[#allocation60_spill] sm:$0xff] %v13230_v2  ;;  %3191 = vmatpush1.bf16.msra.mxu0 %v13202_v29  ;;  %v1572_v48 = vmax.f32 %v1524_v62, 0.0  ;;  %v1457_v45 = vmax.f32 %v16327_v30, %v1409_v9  ;;  %v1413_v46 = vmax.f32 %v12966_v59, %v1207_v3  ;;  %v16329_v62 = vld [vmem:[#allocation76_spill] sm:$0xff]  ;;  %6121 = vmatpush1.bf16.msra.mxu1 %v10787_v50  ;;  %v16336_v3 = vld [vmem:[#allocation78_spill] sm:$0xff] }
 0x24d   :  { %v1571_v40 = vmax.f32 %v1523_v47, 0.0  ;;  %3192 = vmatprep.subr.bf16.mxu0 %v13217_v27  ;;  %v1209_v47 = vpop.f32.mrb[111].mxu0  ;;  %v16330_v35 = vmax.f32 %v16328_v60, %v16329_v62  ;;  %v16333_v9 = vmax.f32 %v16331_v53, %v16332_v42  ;;  %6122 = vmatprep.subr.bf16.mxu1 %v10795_v11  ;;  %v13256_v59 = vld [vmem:[#allocation6 + $0x960] ss:$24 sps:$4 sm:$0xff]   ;;  %v13268_v53 = vld [vmem:[#allocation6 + $0x994] ss:$24 sps:$4 sm:$0xff]  }
 0x24e   :  { %v13244_v32 = vpack.c.bf16 %v1572_v48, %v1568_v24  ;;  %v1414_v26 = vmax.f32 %v12969_v7, %v1209_v47  ;;  %v10801_v24 = vld [vmem:[#allocation6 + $0xeac] ss:$24 sps:$4 sm:$0xff]   ;;  %v10799_v62 = vld [vmem:[#allocation6 + $0xea8] ss:$24 sps:$4 sm:$0xff]   ;;  %v10891_v2 = vld [vmem:[#allocation6 + $0x117c] ss:$24 sps:$4 sm:$0xff]  }
 0x24f   :  { %v13238_v22 = vpack.c.bf16 %v1571_v40, %v1567_v54  ;;  %v1458_v17 = vmax.f32 %v16330_v35, %v1410_v31  ;;  %v1527_v40 = vadd.f32 %v13133_v14, %v1457_v45  ;;  %v1461_v0 = vmax.f32 %v16333_v9, %v1413_v46  ;;  %v16335_v31 = vld [vmem:[#allocation43_spill] sm:$0xff]  ;;  %v1213_v60 = vpop.f32.mrb[112].mxu0 }
 0x250   :  { %3193 = vmatpush1.bf16.msra.mxu0 %v13227_v63  ;;  %v1685_v7 = vrot.slane %v13244_v32, 4  ;;  %v16337_v30 = vmax.f32 %v16335_v31, %v16336_v3  ;;  %v13272_v11 = vsel %vm1639_vm2, %v1628_v8, %v13244_v32  ;;  %6123 = vmatpush1.bf16.msra.mxu1 %v10793_v21  ;;  %v1417_v42 = vmax.f32 %v13001_v52, %v1213_v60  ;;  %v1215_v9 = vpop.f32.mrb[113].mxu0  ;;  %v16343_v52 = vld [vmem:[#allocation79_spill] sm:$0xff] }
 0x251   :  { %v1684_v54 = vrot.slane %v13238_v22, 4  ;;  %v13260_v50 = vsel %vm1639_vm2, %v1627_v18, %v13238_v22  ;;  %v1528_v48 = vadd.f32 %v13139_v33, %v1458_v17  ;;  %3194 = vmatprep.subr.bf16.mxu0 %v13236_v57  ;;  %16338 = vst [vmem:[#allocation37_spill] sm:$0xff] %v13272_v11  ;;  %v1531_v46 = vadd.f32 %v13133_v14, %v1461_v0  ;;  %v13284_v17 = vld [vmem:[#allocation6 + $0x990] ss:$24 sps:$4 sm:$0xff]   ;;  %v1217_v3 = vpop.f32.mrb[114].mxu0 }
 0x252   :  { %16334 = vst [vmem:[#allocation87_spill] sm:$0xff] %v13260_v50  ;;  %v1462_v45 = vmax.f32 %v16337_v30, %v1414_v26  ;;  %v13282_v35 = vsel %vm1639_vm2, %v13192_v6, %v1685_v7  ;;  %v1575_v26 = vmax.f32 %v1527_v40, 0.0  ;;  %6124 = vmatprep.subr.bf16.mxu1 %v10801_v24  ;;  %v1418_v21 = vmax.f32 %v13007_v58, %v1215_v9  ;;  %v13291_v6 = vld [vmem:[#allocation6 + $0x9c4] ss:$24 sps:$4 sm:$0xff]   ;;  %v1219_v60 = vpop.f32.mrb[115].mxu0 }
 0x253   :  { %v13277_v18 = vsel %vm1639_vm2, %v13186_v20, %v1684_v54  ;;  %16340 = vst [vmem:[#allocation39_spill] sm:$0xff] %v13282_v35  ;;  %v1579_v8 = vmax.f32 %v1531_v46, 0.0  ;;  %v10807_v20 = vld [vmem:[#allocation6 + $0xedc] ss:$24 sps:$4 sm:$0xff]   ;;  %v1576_v0 = vmax.f32 %v1528_v48, 0.0  ;;  %6128 = vmatprep.mubr.bf16.mxu1 %v13282_v35  ;;  %v16342_v30 = vld [vmem:[#allocation44_spill] sm:$0xff]  ;;  %v1421_v24 = vmax.f32 %v13011_v28, %v1217_v3 }
 0x254   :  { %16339 = vst [vmem:[#allocation61_spill] sm:$0xff] %v13277_v18  ;;  %v1532_v47 = vadd.f32 %v13139_v33, %v1462_v45  ;;  %3195 = vmatpush1.bf16.msra.mxu0 %v13256_v59  ;;  %v16344_v45 = vmax.f32 %v16342_v30, %v16343_v52  ;;  %v16347_v58 = vld [vmem:[#allocation80_spill] sm:$0xff]  ;;  %6125 = vmatpush1.bf16.msra.mxu1 %v10799_v62 }
 0x255   :  { %3196 = vmatprep.subr.bf16.mxu0 %v13268_v53  ;;  %v13293_v40 = vpack.c.bf16 %v1579_v8, %v1575_v26  ;;  %v1422_v11 = vmax.f32 %v13015_v49, %v1219_v60  ;;  %v16349_v8 = vld [vmem:[#allocation46_spill] sm:$0xff]  ;;  %6126 = vmatprep.subr.bf16.mxu1 %v10807_v20  ;;  %v13310_v28 = vld [vmem:[#allocation6 + $0x9c0] ss:$24 sps:$4 sm:$0xff]  }
 0x256   :  { %v1580_v31 = vmax.f32 %v1532_v47, 0.0  ;;  %v1465_v46 = vmax.f32 %v16344_v45, %v1417_v42  ;;  %v16346_v47 = vld [vmem:[#allocation45_spill] sm:$0xff]  ;;  %v16351_v16 = vmax.f32 %v16349_v8, %v16350_v12 }
 0x257   :  { %16341 = vst [vmem:[#allocation62_spill] sm:$0xff] %v13293_v40  ;;  %v16348_v9 = vmax.f32 %v16346_v47, %v16347_v58  ;;  %v13314_v42 = vsel %vm1639_vm2, %v1684_v54, %v13293_v40  ;;  %v15830_v62 = vrot.slane %v13293_v40, 4  ;;  %v13326_v12 = vld [vmem:[#allocation6 + $0x9f4] ss:$24 sps:$4 sm:$0xff]   ;;  %v10811_v45 = vld [vmem:[#allocation6 + $0xf08] ss:$24 sps:$4 sm:$0xff]  }
 0x258   :  { %v13299_v48 = vpack.c.bf16 %v1580_v31, %v1576_v0  ;;  %v1535_v26 = vadd.f32 %v13133_v14, %v1465_v46  ;;  %v1469_v30 = vmax.f32 %v16351_v16, %v1421_v24  ;;  %3197 = vmatpush1.bf16.msra.mxu0 %v13284_v17  ;;  %16352 = vst [vmem:[#allocation89_spill] sm:$0xff] %v13314_v42  ;;  %v10813_v0 = vld [vmem:[#allocation6 + $0xf0c] ss:$24 sps:$4 sm:$0xff]   ;;  %v16353_v31 = vld [vmem:[#allocation47_spill] sm:$0xff]  ;;  %v13339_v46 = vld [vmem:[#allocation6 + $0x9f0] ss:$24 sps:$4 sm:$0xff]  }
 0x259   :  { %v1466_v50 = vmax.f32 %v16348_v9, %v1418_v21  ;;  %v16354_v21 = vld [vmem:[#allocation82_spill] sm:$0xff]  ;;  %3198 = vmatprep.subr.bf16.mxu0 %v13291_v6  ;;  %6127 = vmatpush1.bf16.msra.mxu1 %v10805_v38 }
 0x25a   :  { %16345 = vst [vmem:[#allocation88_spill] sm:$0xff] %v13299_v48  ;;  %v16355_v3 = vmax.f32 %v16353_v31, %v16354_v21  ;;  %v13323_v16 = vsel %vm1639_vm2, %v1685_v7, %v13299_v48  ;;  %v15831_v54 = vrot.slane %v13299_v48, 4  ;;  %v1539_v20 = vadd.f32 %v13133_v14, %v1469_v30  ;;  %v1223_v7 = vpop.f32.mrb[116].mxu0  ;;  %6157 = vmatprep.subr.bf16.mxu1 %v10813_v0  ;;  %v10819_v38 = vld [vmem:[#allocation6 + $0xf3c] ss:$24 sps:$4 sm:$0xff]  }
 0x25b   :  { %v1536_v49 = vadd.f32 %v13139_v33, %v1466_v50  ;;  %16356 = vst [vmem:[#allocation17_spill] sm:$0xff] %v13323_v16  ;;  %3171 = vmatprep.mubr.bf16.mxu0 %v13323_v16  ;;  %v13335_v50 = vsel %vm1639_vm2, %v13238_v22, %v15830_v62  ;;  %v1583_v60 = vmax.f32 %v1535_v26, 0.0  ;;  %v1425_v22 = vmax.f32 %v13040_v13, %v1223_v7  ;;  %v1225_v58 = vpop.f32.mrb[117].mxu0  ;;  %v13351_v21 = vld [vmem:[#allocation6 + $0xa24] ss:$24 sps:$4 sm:$0xff]  }
 0x25c   :  { %v1470_v52 = vmax.f32 %v16355_v3, %v1422_v11  ;;  %16357 = vst [vmem:[#allocation63_spill] sm:$0xff] %v13335_v50  ;;  %3172 = vmatmul.mubr.bf16.gmra.mrb[128].mxu0 %v13314_v42  ;;  %v13345_v24 = vsel %vm1639_vm2, %v13244_v32, %v15831_v54  ;;  %v1587_v47 = vmax.f32 %v1539_v20, 0.0  ;;  %v1426_v30 = vmax.f32 %v13046_v19, %v1225_v58  ;;  %v1227_v31 = vpop.f32.mrb[118].mxu0  ;;  %v16360_v26 = vld [vmem:[#allocation48_spill] sm:$0xff]  ;;  %v16361_v3 = vld [vmem:[#allocation83_spill] sm:$0xff]  ;;  %v16367_v54 = vld [vmem:[#allocation50_spill] sm:$0xff] }
 0x25d   :  { %16358 = vst [vmem:[#allocation91_spill] sm:$0xff] %v13345_v24  ;;  %3199 = vmatpush1.bf16.msra.mxu0 %v13310_v28  ;;  %v1584_v9 = vmax.f32 %v1536_v49, 0.0  ;;  %6129 = vmatmul.mubr.bf16.vlgmr.msra.gmra.mrb[100].mxu1 %v13277_v18  ;;  %v1429_v0 = vmax.f32 %v13053_v36, %v1227_v31  ;;  %v1229_v20 = vpop.f32.mrb[119].mxu0  ;;  %v16365_v19 = vld [vmem:[#allocation84_spill] sm:$0xff]  ;;  %v10879_v50 = vld [vmem:[#allocation6 + $0x111c] ss:$24 sps:$4 sm:$0xff]  }
 0x25e   :  { %v1540_v11 = vadd.f32 %v13139_v33, %v1470_v52  ;;  %3200 = vmatprep.subr.bf16.mxu0 %v13326_v12  ;;  %v13353_v32 = vpack.c.bf16 %v1587_v47, %v1583_v60  ;;  %v16362_v52 = vmax.f32 %v16360_v26, %v16361_v3  ;;  %6158 = vmatpush1.bf16.msra.mxu1 %v10811_v45  ;;  %v10817_v60 = vld [vmem:[#allocation6 + $0xf38] ss:$24 sps:$4 sm:$0xff]   ;;  %v16368_v26 = vld [vmem:[#allocation85_spill] sm:$0xff] }
 0x25f   :  { %v1430_v62 = vmax.f32 %v13056_v39, %v1229_v20  ;;  %6159 = vmatprep.subr.bf16.mxu1 %v10819_v38  ;;  %v13371_v36 = vld [vmem:[#allocation6 + $0xa20] ss:$24 sps:$4 sm:$0xff]  }
 0x260   :  { %v1588_v8 = vmax.f32 %v1540_v11, 0.0  ;;  %16359 = vst [vmem:[#allocation18_spill] sm:$0xff] %v13353_v32  ;;  %v1473_v13 = vmax.f32 %v16362_v52, %v1425_v22  ;;  %v16364_v11 = vld [vmem:[#allocation49_spill] sm:$0xff]  ;;  %v16369_v22 = vmax.f32 %v16367_v54, %v16368_v26  ;;  %v16372_v45 = vld [vmem:[#allocation51_spill] sm:$0xff] }
 0x261   :  { %v16366_v7 = vmax.f32 %v16364_v11, %v16365_v19  ;;  %3201 = vmatpush1.bf16.msra.mxu0 %v13339_v46  ;;  %v10825_v54 = vld [vmem:[#allocation6 + $0xf6c] ss:$24 sps:$4 sm:$0xff]   ;;  %v10823_v20 = vld [vmem:[#allocation6 + $0xf68] ss:$24 sps:$4 sm:$0xff]  }
 0x262   :  { %v13360_v49 = vpack.c.bf16 %v1588_v8, %v1584_v9  ;;  %v1543_v47 = vadd.f32 %v13133_v14, %v1473_v13  ;;  %v1477_v3 = vmax.f32 %v16369_v22, %v1429_v0  ;;  %v13374_v9 = vrot.slane %v13353_v32, 4  ;;  %3202 = vmatprep.subr.bf16.mxu0 %v13351_v21  ;;  %6160 = vmatpush1.bf16.msra.mxu1 %v10817_v60  ;;  %v13392_v11 = vld [vmem:[#allocation6 + $0xa50] ss:$24 sps:$4 sm:$0xff]   ;;  %v13394_v19 = vld [vmem:[#allocation6 + $0xa54] ss:$24 sps:$4 sm:$0xff]  }
 0x263   :  { %v1474_v58 = vmax.f32 %v16366_v7, %v1426_v30  ;;  %v16373_v30 = vld [vmem:[#allocation86_spill] sm:$0xff]  ;;  %6161 = vmatprep.subr.bf16.mxu1 %v10825_v54  ;;  %v13404_v22 = vld [vmem:[#allocation6 + $0xa84] ss:$24 sps:$4 sm:$0xff]   ;;  %v13465_v24 = vld [vmem:[#allocation6 + $0x608] ss:$24 sps:$4 sm:$0xff]  }
 0x264   :  { %16363 = vst [vmem:[#allocation64_spill] sm:$0xff] %v13360_v49  ;;  %16370 = vst [vmem:[#allocation92_spill] sm:$0xff] %v13374_v9  ;;  %v13377_v8 = vrot.slane %v13360_v49, 4  ;;  %v16374_v31 = vmax.f32 %v16372_v45, %v16373_v30  ;;  %v1547_v13 = vadd.f32 %v13133_v14, %v1477_v3  ;;  %v10831_v14 = vld [vmem:[#allocation6 + $0xf9c] ss:$24 sps:$4 sm:$0xff]   ;;  %v13402_v26 = vsel %vm1639_vm2, %v13293_v40, %v13374_v9 }
 0x265   :  { %v1544_v39 = vadd.f32 %v13139_v33, %v1474_v58  ;;  %3203 = vmatpush1.bf16.msra.mxu0 %v13371_v36  ;;  %16376 = vst [vmem:[#allocation22_spill] sm:$0xff] %v13402_v26  ;;  %v10829_v30 = vld [vmem:[#allocation6 + $0xf98] ss:$24 sps:$4 sm:$0xff]   ;;  %v10837_v54 = vld [vmem:[#allocation6 + $0xfcc] ss:$24 sps:$4 sm:$0xff]   ;;  %16382 = vst [vmem:[#allocation95_spill] sm:$0xff] %v13465_v24 }
 0x266   :  { %16371 = vst [vmem:[#allocation20_spill] sm:$0xff] %v13377_v8  ;;  %v1478_v52 = vmax.f32 %v16374_v31, %v1430_v62  ;;  %3181 = vmatprep.mubr.bf16.mxu0 %v13377_v8  ;;  %v13390_v0 = vsel %vm1639_vm2, %v13299_v48, %v13377_v8  ;;  %v1591_v62 = vmax.f32 %v1543_v47, 0.0  ;;  %v1595_v7 = vmax.f32 %v1547_v13, 0.0  ;;  %6162 = vmatpush1.bf16.msra.mxu1 %v10823_v20  ;;  %v13418_v13 = vld [vmem:[#allocation6 + $0xab4] ss:$24 sps:$4 sm:$0xff]  }
 0x267   :  { %16375 = vst [vmem:[#allocation65_spill] sm:$0xff] %v13390_v0  ;;  %6138 = vmatprep.mubr.bf16.mxu1 %v13390_v0  ;;  %v1592_v58 = vmax.f32 %v1544_v39, 0.0  ;;  %3182 = vmatmul.mubr.bf16.gmra.mrb[132].mxu0 %v13374_v9  ;;  %v13421_v20 = vld [vmem:[#allocation6 + $0xab0] ss:$24 sps:$4 sm:$0xff]   ;;  %v10867_v48 = vld [vmem:[#allocation6 + $0x10bc] ss:$24 sps:$4 sm:$0xff]  }
 0x268   :  { %v1548_v38 = vadd.f32 %v13139_v33, %v1478_v52  ;;  %v1233_v33 = vpop.f32.mrb[120].mxu0  ;;  %v13406_v3 = vpack.c.bf16 %v1595_v7, %v1591_v62  ;;  %3222 = vmatprep.mubr.bf16.mxu0 %v12995_v10  ;;  %6139 = vmatmul.mubr.bf16.gmra.mrb[104].mxu1 %v13402_v26  ;;  %v13414_v52 = vld [vmem:[#allocation6 + $0xa80] ss:$24 sps:$4 sm:$0xff]   ;;  %v10843_v62 = vld [vmem:[#allocation6 + $0xffc] ss:$24 sps:$4 sm:$0xff]  }
 0x269   :  { %v1234_v47 = vpop.f32.mrb[121].mxu0  ;;  %3204 = vmatprep.subr.bf16.mxu0 %v13394_v19  ;;  %6163 = vmatprep.subr.bf16.mxu1 %v10831_v14  ;;  %v13424_v7 = vld [vmem:[#allocation6 + $0xae4] ss:$24 sps:$4 sm:$0xff]   ;;  %v10841_v14 = vld [vmem:[#allocation6 + $0xff8] ss:$24 sps:$4 sm:$0xff]  }
 0x26a   :  { %v1596_v60 = vmax.f32 %v1548_v38, 0.0  ;;  %16377 = vst [vmem:[#allocation66_spill] sm:$0xff] %v13406_v3  ;;  %v1235_v45 = vpop.f32.mrb[122].mxu0  ;;  %3205 = vmatpush1.bf16.msra.mxu0 %v13392_v11  ;;  %6164 = vmatpush1.bf16.msra.mxu1 %v10829_v30  ;;  %v10835_v38 = vld [vmem:[#allocation6 + $0xfc8] ss:$24 sps:$4 sm:$0xff]  }
 0x26b   :  { %v1236_v31 = vpop.f32.mrb[123].mxu0  ;;  %3206 = vmatprep.subr.bf16.mxu0 %v13404_v22  ;;  %6165 = vmatprep.subr.bf16.mxu1 %v10837_v54  ;;  %v13429_v33 = vld [vmem:[#allocation6 + $0xae0] ss:$24 sps:$4 sm:$0xff]   ;;  %v13435_v45 = vld [vmem:[#allocation6 + $0xb10] ss:$24 sps:$4 sm:$0xff]  }
 0x26c   :  { %v13410_v39 = vpack.c.bf16 %v1596_v60, %v1592_v58  ;;  %v10849_v58 = vld [vmem:[#allocation6 + $0x102c] ss:$24 sps:$4 sm:$0xff]   ;;  %v10847_v47 = vld [vmem:[#allocation6 + $0x1028] ss:$24 sps:$4 sm:$0xff]   ;;  %v10855_v30 = vld [vmem:[#allocation6 + $0x105c] ss:$24 sps:$4 sm:$0xff]  }
 0x26d   :  { %v13432_v60 = vld [vmem:[#allocation6 + $0xb14] ss:$24 sps:$4 sm:$0xff]   ;;  %v13438_v31 = vld [vmem:[#allocation6 + $0xb44] ss:$24 sps:$4 sm:$0xff]   ;;  %v10853_v54 = vld [vmem:[#allocation6 + $0x1058] ss:$24 sps:$4 sm:$0xff]  }
 0x26e   :  { %16378 = vst [vmem:[#allocation93_spill] sm:$0xff] %v13410_v39  ;;  %6148 = vmatprep.mubr.bf16.mxu1 %v13410_v39  ;;  %3207 = vmatpush1.bf16.msra.mxu0 %v13414_v52  ;;  %v13447_v40 = vld [vmem:[#allocation6 + $0xb70] ss:$24 sps:$4 sm:$0xff]   ;;  %v10873_v32 = vld [vmem:[#allocation6 + $0x10ec] ss:$24 sps:$4 sm:$0xff]  }
 0x26f   :  { %3208 = vmatprep.subr.bf16.mxu0 %v13418_v13  ;;  %6166 = vmatpush1.bf16.msra.mxu1 %v10835_v38  ;;  %v13441_v38 = vld [vmem:[#allocation6 + $0xb40] ss:$24 sps:$4 sm:$0xff]   ;;  %v13459_v49 = vld [vmem:[#allocation6 + $0xbd0] ss:$24 sps:$4 sm:$0xff]  }
 0x270   :  { %6149 = vmatmul.mubr.bf16.gmra.mrb[108].mxu1 %v13406_v3  ;;  %6167 = vmatprep.subr.bf16.mxu1 %v10843_v62  ;;  %v10861_v62 = vld [vmem:[#allocation6 + $0x108c] ss:$24 sps:$4 sm:$0xff]   ;;  %16380 = vst [vmem:[#allocation24_spill] sm:$0xff] %v13459_v49 }
 0x271   :  { %6189 = vmatprep.mubr.bf16.mxu1 %v13050_v61 }
 0x272   :  { %3209 = vmatpush1.bf16.msra.mxu0 %v13421_v20 }
 0x273   :  { %3210 = vmatprep.subr.bf16.mxu0 %v13424_v7  ;;  %6168 = vmatpush1.bf16.msra.mxu1 %v10841_v14  ;;  %v13444_v14 = vld [vmem:[#allocation6 + $0xb74] ss:$24 sps:$4 sm:$0xff]  }
 0x274   :  { %6169 = vmatprep.subr.bf16.mxu1 %v10849_v58  ;;  %v10859_v58 = vld [vmem:[#allocation6 + $0x1088] ss:$24 sps:$4 sm:$0xff]  }
 0x276   :  { %3211 = vmatpush1.bf16.msra.mxu0 %v13429_v33 }
 0x277   :  { %3212 = vmatprep.subr.bf16.mxu0 %v13432_v60  ;;  %6170 = vmatpush1.bf16.msra.mxu1 %v10847_v47  ;;  %v13450_v47 = vld [vmem:[#allocation6 + $0xba4] ss:$24 sps:$4 sm:$0xff]  }
 0x278   :  { %6171 = vmatprep.subr.bf16.mxu1 %v10855_v30  ;;  %v10865_v30 = vld [vmem:[#allocation6 + $0x10b8] ss:$24 sps:$4 sm:$0xff]  }
 0x27a   :  { %3213 = vmatpush1.bf16.msra.mxu0 %v13435_v45 }
 0x27b   :  { %3214 = vmatprep.subr.bf16.mxu0 %v13438_v31  ;;  %6172 = vmatpush1.bf16.msra.mxu1 %v10853_v54  ;;  %v13456_v54 = vld [vmem:[#allocation6 + $0xbd4] ss:$24 sps:$4 sm:$0xff]  }
 0x27c   :  { %6173 = vmatprep.subr.bf16.mxu1 %v10861_v62  ;;  %16379 = vst [vmem:[#allocation94_spill] sm:$0xff] %v13456_v54  ;;  %v10871_v62 = vld [vmem:[#allocation6 + $0x10e8] ss:$24 sps:$4 sm:$0xff]  }
 0x27e   :  { %3215 = vmatpush1.bf16.msra.mxu0 %v13441_v38 }
 0x27f   :  { %3216 = vmatprep.subr.bf16.mxu0 %v13444_v14  ;;  %6174 = vmatpush1.bf16.msra.mxu1 %v10859_v58  ;;  %v13462_v58 = vld [vmem:[#allocation6 + $0x60c] ss:$24 sps:$4 sm:$0xff]  }
 0x280   :  { %6175 = vmatprep.subr.bf16.mxu1 %v10867_v48  ;;  %16381 = vst [vmem:[#allocation67_spill] sm:$0xff] %v13462_v58  ;;  %v10877_v48 = vld [vmem:[#allocation6 + $0x1118] ss:$24 sps:$4 sm:$0xff]  }
 0x282   :  { %3217 = vmatpush1.bf16.msra.mxu0 %v13447_v40 }
 0x283   :  { %3218 = vmatprep.subr.bf16.mxu0 %v13450_v47  ;;  %6176 = vmatpush1.bf16.msra.mxu1 %v10865_v30  ;;  %v10885_v30 = vld [vmem:[#allocation6 + $0x114c] ss:$24 sps:$4 sm:$0xff]  }
 0x284   :  { %6177 = vmatprep.subr.bf16.mxu1 %v10873_v32  ;;  %v10883_v32 = vld [vmem:[#allocation6 + $0x1148] ss:$24 sps:$4 sm:$0xff]  }
 0x286   :  { %3219 = vmatpush1.bf16.msra.mxu0 %v13453_v55 }
 0x287   :  { %3220 = vmatprep.subr.bf16.mxu0 %v13456_v54  ;;  %6178 = vmatpush1.bf16.msra.mxu1 %v10871_v62  ;;  %v13473_v62 = vld [vmem:[#allocation6 + $0x638] ss:$24 sps:$4 sm:$0xff]   ;;  %v13482_v54 = vld [vmem:[#allocation6 + $0x69c] ss:$24 sps:$4 sm:$0xff]  }
 0x288   :  { %6179 = vmatprep.subr.bf16.mxu1 %v10879_v50  ;;  %16383 = vst [vmem:[#allocation26_spill] sm:$0xff] %v13473_v62  ;;  %v13476_v50 = vld [vmem:[#allocation6 + $0x66c] ss:$24 sps:$4 sm:$0xff]  }
 0x289   :  { %16384 = vst [vmem:[#allocation68_spill] sm:$0xff] %v13476_v50 }
 0x28a   :  { %3221 = vmatpush1.bf16.msra.mxu0 %v13459_v49  ;;  %v10897_v49 = vld [vmem:[#allocation6 + $0x11ac] ss:$24 sps:$4 sm:$0xff]  }
 0x28b   :  { %3251 = vmatprep.subr.bf16.mxu0 %v13462_v58  ;;  %6180 = vmatpush1.bf16.msra.mxu1 %v10877_v48  ;;  %v10889_v58 = vld [vmem:[#allocation6 + $0x1178] ss:$24 sps:$4 sm:$0xff]   ;;  %v13479_v48 = vld [vmem:[#allocation6 + $0x668] ss:$24 sps:$4 sm:$0xff]  }
 0x28c   :  { %6181 = vmatprep.subr.bf16.mxu1 %v10885_v30  ;;  %16385 = vst [vmem:[#allocation96_spill] sm:$0xff] %v13479_v48  ;;  %v10895_v30 = vld [vmem:[#allocation6 + $0x11a8] ss:$24 sps:$4 sm:$0xff]  }
 0x28d   :  { %3223 = vmatmul.mubr.bf16.vlgmr.msra.gmra.mrb[124].mxu0 %v12986_v43 }
 0x28e   :  { %3232 = vmatprep.mubr.bf16.mxu0 %v13086_v5  ;;  %3252 = vmatpush1.bf16.msra.mxu0 %v13465_v24  ;;  %v13485_v24 = vrot.slane %v13110_v41, 4  ;;  %v13499_v41 = vrot.slane %v13104_v1, 4  ;;  %v11645_v1 = vld [vmem:[#allocation6 + $0x600] ss:$24 sps:$4 sm:$0xff]  }
 0x28f   :  { %3253 = vmatprep.subr.bf16.mxu0 %v13468_v25  ;;  %6182 = vmatpush1.bf16.msra.mxu1 %v10883_v32  ;;  %v13490_v32 = vld [vmem:[#allocation6 + $0x698] ss:$24 sps:$4 sm:$0xff]  }
 0x290   :  { %6183 = vmatprep.subr.bf16.mxu1 %v10891_v2  ;;  %16386 = vst [vmem:[#allocation28_spill] sm:$0xff] %v13485_v24  ;;  %16387 = vst [vmem:[#allocation69_spill] sm:$0xff] %v13490_v32  ;;  %v10903_v2 = vld [vmem:[#allocation6 + $0x11dc] ss:$24 sps:$4 sm:$0xff]  }
 0x291   :  { %16390 = vst [vmem:[#allocation32_spill] sm:$0xff] %v13499_v41 }
 0x292   :  { %3254 = vmatpush1.bf16.msra.mxu0 %v13473_v62  ;;  %v10901_v62 = vld [vmem:[#allocation6 + $0x11d8] ss:$24 sps:$4 sm:$0xff]  }
 0x293   :  { %3255 = vmatprep.subr.bf16.mxu0 %v13476_v50  ;;  %6184 = vmatpush1.bf16.msra.mxu1 %v10889_v58  ;;  %v13493_v50 = vld [vmem:[#allocation6 + $0x6cc] ss:$24 sps:$4 sm:$0xff]   ;;  %v13496_v58 = vld [vmem:[#allocation6 + $0x6c8] ss:$24 sps:$4 sm:$0xff]  }
 0x294   :  { %6185 = vmatprep.subr.bf16.mxu1 %v10897_v49  ;;  %16388 = vst [vmem:[#allocation30_spill] sm:$0xff] %v13493_v50  ;;  %16389 = vst [vmem:[#allocation70_spill] sm:$0xff] %v13496_v58  ;;  %v13507_v49 = vld [vmem:[#allocation6 + $0x6f8] ss:$24 sps:$4 sm:$0xff]  }
 0x295   :  { %3233 = vmatmul.mubr.bf16.gmra.mrb[128].mxu0 %v13077_v44  ;;  %16392 = vst [vmem:[#allocation34_spill] sm:$0xff] %v13507_v49 }
 0x296   :  { %3242 = vmatprep.mubr.bf16.mxu0 %v13485_v24  ;;  %3256 = vmatpush1.bf16.msra.mxu0 %v13479_v48  ;;  %v13502_v48 = vld [vmem:[#allocation6 + $0x6fc] ss:$24 sps:$4 sm:$0xff]  }
 0x297   :  { %3257 = vmatprep.subr.bf16.mxu0 %v13482_v54  ;;  %6186 = vmatpush1.bf16.msra.mxu1 %v10895_v30  ;;  %16391 = vst [vmem:[#allocation71_spill] sm:$0xff] %v13502_v48  ;;  %v11644_v30 = vld [vmem:[#allocation6 + $0x604] ss:$24 sps:$4 sm:$0xff]  }
 0x298   :  { %6187 = vmatprep.subr.bf16.mxu1 %v10903_v2  ;;  %v13510_v2 = vld [vmem:[#allocation6 + $0x72c] ss:$24 sps:$4 sm:$0xff]  }
 0x299   :  { %16393 = vst [vmem:[#allocation72_spill] sm:$0xff] %v13510_v2 }
 0x29a   :  { %3258 = vmatpush1.bf16.msra.mxu0 %v13490_v32  ;;  %v13526_v32 = vld [vmem:[#allocation6 + $0x758] ss:$24 sps:$4 sm:$0xff]  }
 0x29b   :  { %3259 = vmatprep.subr.bf16.mxu0 %v13493_v50  ;;  %6188 = vmatpush1.bf16.msra.mxu1 %v10901_v62  ;;  %v13516_v62 = vsel %vm1639_vm2, %v13064_v56, %v13485_v24  ;;  %v11647_v50 = vld [vmem:[#allocation6 + $0x630] ss:$24 sps:$4 sm:$0xff]   ;;  %v11648_v56 = vld [vmem:[#allocation6 + $0x664] ss:$24 sps:$4 sm:$0xff]   ;;  %16397 = vst [vmem:[#allocation74_spill] sm:$0xff] %v13526_v32 }
 0x29c   :  { %6370 = vmatprep.subr.bf16.mxu1 %v11644_v30  ;;  %16394 = vst [vmem:[#allocation36_spill] sm:$0xff] %v13516_v62  ;;  %v13520_v30 = vld [vmem:[#allocation6 + $0x728] ss:$24 sps:$4 sm:$0xff]  }
 0x29d   :  { %3243 = vmatmul.mubr.bf16.gmra.mrb[132].mxu0 %v13499_v41  ;;  %16395 = vst [vmem:[#allocation73_spill] sm:$0xff] %v13520_v30 }
 0x29e   :  { %3260 = vmatpush1.bf16.msra.mxu0 %v13496_v58  ;;  %3283 = vmatprep.mubr.bf16.mxu0 %v13215_v37  ;;  %v11646_v58 = vld [vmem:[#allocation6 + $0x634] ss:$24 sps:$4 sm:$0xff]  }
 0x29f   :  { %3261 = vmatprep.subr.bf16.mxu0 %v13502_v48  ;;  %6190 = vmatmul.mubr.bf16.vlgmr.msra.gmra.mrb[100].mxu1 %v13043_v4  ;;  %v13523_v48 = vld [vmem:[#allocation6 + $0x75c] ss:$24 sps:$4 sm:$0xff]  }
 0x2a0   :  { %6199 = vmatprep.mubr.bf16.mxu1 %v13516_v62  ;;  %6371 = vmatpush1.bf16.msra.mxu1 %v11645_v1  ;;  %16396 = vst [vmem:[#allocation38_spill] sm:$0xff] %v13523_v48  ;;  %v13531_v1 = vsel %vm1639_vm2, %v13058_v34, %v13499_v41  ;;  %v13542_v34 = vld [vmem:[#allocation6 + $0x7bc] ss:$24 sps:$4 sm:$0xff]  }
 0x2a1   :  { %6372 = vmatprep.subr.bf16.mxu1 %v11646_v58  ;;  %16398 = vst [vmem:[#allocation40_spill] sm:$0xff] %v13531_v1  ;;  %v13534_v58 = vld [vmem:[#allocation6 + $0x78c] ss:$24 sps:$4 sm:$0xff]   ;;  %16401 = vst [vmem:[#allocation76_spill] sm:$0xff] %v13542_v34 }
 0x2a2   :  { %3262 = vmatpush1.bf16.msra.mxu0 %v13507_v49  ;;  %16399 = vst [vmem:[#allocation75_spill] sm:$0xff] %v13534_v58  ;;  %v13545_v49 = vld [vmem:[#allocation6 + $0x7b8] ss:$24 sps:$4 sm:$0xff]  }
 0x2a3   :  { %3263 = vmatprep.subr.bf16.mxu0 %v13510_v2  ;;  %v11651_v2 = vld [vmem:[#allocation6 + $0x690] ss:$24 sps:$4 sm:$0xff]   ;;  %16402 = vst [vmem:[#allocation42_spill] sm:$0xff] %v13545_v49 }
 0x2a4   :  { %6373 = vmatpush1.bf16.msra.mxu1 %v11647_v50  ;;  %v11649_v50 = vld [vmem:[#allocation6 + $0x660] ss:$24 sps:$4 sm:$0xff]  }
 0x2a5   :  { %6374 = vmatprep.subr.bf16.mxu1 %v11648_v56  ;;  %v11650_v56 = vld [vmem:[#allocation6 + $0x694] ss:$24 sps:$4 sm:$0xff]  }
 0x2a6   :  { %3264 = vmatpush1.bf16.msra.mxu0 %v13520_v30  ;;  %v13539_v30 = vld [vmem:[#allocation6 + $0x788] ss:$24 sps:$4 sm:$0xff]  }
 0x2a7   :  { %3265 = vmatprep.subr.bf16.mxu0 %v13523_v48  ;;  %6200 = vmatmul.mubr.bf16.gmra.mrb[104].mxu1 %v13531_v1  ;;  %16400 = vst [vmem:[#allocation41_spill] sm:$0xff] %v13539_v30  ;;  %v11652_v48 = vld [vmem:[#allocation6 + $0x6c4] ss:$24 sps:$4 sm:$0xff]  }
 0x2a8   :  { %6209 = vmatprep.mubr.bf16.mxu1 %v13152_v15  ;;  %6375 = vmatpush1.bf16.msra.mxu1 %v11649_v50  ;;  %v13548_v50 = vld [vmem:[#allocation6 + $0x7ec] ss:$24 sps:$4 sm:$0xff]  }
 0x2a9   :  { %6376 = vmatprep.subr.bf16.mxu1 %v11650_v56  ;;  %16403 = vst [vmem:[#allocation77_spill] sm:$0xff] %v13548_v50  ;;  %v11653_v56 = vld [vmem:[#allocation6 + $0x6c0] ss:$24 sps:$4 sm:$0xff]  }
 0x2aa   :  { %3266 = vmatpush1.bf16.msra.mxu0 %v13526_v32  ;;  %v13559_v32 = vld [vmem:[#allocation6 + $0x818] ss:$24 sps:$4 sm:$0xff]  }
 0x2ab   :  { %3267 = vmatprep.subr.bf16.mxu0 %v13534_v58  ;;  %v11654_v58 = vld [vmem:[#allocation6 + $0x6f4] ss:$24 sps:$4 sm:$0xff]   ;;  %16406 = vst [vmem:[#allocation44_spill] sm:$0xff] %v13559_v32 }
 0x2ac   :  { %6377 = vmatpush1.bf16.msra.mxu1 %v11651_v2  ;;  %v13553_v2 = vld [vmem:[#allocation6 + $0x7e8] ss:$24 sps:$4 sm:$0xff]  }
 0x2ad   :  { %6378 = vmatprep.subr.bf16.mxu1 %v11652_v48  ;;  %16404 = vst [vmem:[#allocation43_spill] sm:$0xff] %v13553_v2  ;;  %v13556_v48 = vld [vmem:[#allocation6 + $0x81c] ss:$24 sps:$4 sm:$0xff]  }
 0x2ae   :  { %3268 = vmatpush1.bf16.msra.mxu0 %v13539_v30  ;;  %16405 = vst [vmem:[#allocation78_spill] sm:$0xff] %v13556_v48  ;;  %v11655_v30 = vld [vmem:[#allocation6 + $0x6f0] ss:$24 sps:$4 sm:$0xff]  }
 0x2af   :  { %3269 = vmatprep.subr.bf16.mxu0 %v13542_v34  ;;  %6210 = vmatmul.mubr.bf16.gmra.mrb[108].mxu1 %v13146_v51  ;;  %v11656_v34 = vld [vmem:[#allocation6 + $0x724] ss:$24 sps:$4 sm:$0xff]  }
 0x2b0   :  { %6379 = vmatpush1.bf16.msra.mxu1 %v11653_v56  ;;  %6402 = vmatprep.mubr.bf16.mxu1 %v13282_v35  ;;  %v13562_v56 = vld [vmem:[#allocation6 + $0x84c] ss:$24 sps:$4 sm:$0xff]  }
 0x2b1   :  { %6380 = vmatprep.subr.bf16.mxu1 %v11654_v58  ;;  %16407 = vst [vmem:[#allocation79_spill] sm:$0xff] %v13562_v56  ;;  %v11658_v58 = vld [vmem:[#allocation6 + $0x754] ss:$24 sps:$4 sm:$0xff]  }
 0x2b2   :  { %3270 = vmatpush1.bf16.msra.mxu0 %v13545_v49  ;;  %v11657_v49 = vld [vmem:[#allocation6 + $0x720] ss:$24 sps:$4 sm:$0xff]  }
 0x2b3   :  { %3271 = vmatprep.subr.bf16.mxu0 %v13548_v50  ;;  %v13565_v50 = vld [vmem:[#allocation6 + $0x848] ss:$24 sps:$4 sm:$0xff]  }
 0x2b4   :  { %6381 = vmatpush1.bf16.msra.mxu1 %v11655_v30  ;;  %16408 = vst [vmem:[#allocation45_spill] sm:$0xff] %v13565_v50  ;;  %v13568_v30 = vld [vmem:[#allocation6 + $0x87c] ss:$24 sps:$4 sm:$0xff]  }
 0x2b5   :  { %6382 = vmatprep.subr.bf16.mxu1 %v11656_v34  ;;  %16409 = vst [vmem:[#allocation80_spill] sm:$0xff] %v13568_v30  ;;  %v11660_v34 = vld [vmem:[#allocation6 + $0x784] ss:$24 sps:$4 sm:$0xff]  }
 0x2b6   :  { %3272 = vmatpush1.bf16.msra.mxu0 %v13553_v2  ;;  %v11659_v2 = vld [vmem:[#allocation6 + $0x750] ss:$24 sps:$4 sm:$0xff]  }
 0x2b7   :  { %3273 = vmatprep.subr.bf16.mxu0 %v13556_v48  ;;  %v13571_v48 = vld [vmem:[#allocation6 + $0x878] ss:$24 sps:$4 sm:$0xff]  }
 0x2b8   :  { %6383 = vmatpush1.bf16.msra.mxu1 %v11657_v49  ;;  %16410 = vst [vmem:[#allocation46_spill] sm:$0xff] %v13571_v48  ;;  %v13574_v49 = vld [vmem:[#allocation6 + $0x8ac] ss:$24 sps:$4 sm:$0xff]  }
 0x2b9   :  { %6384 = vmatprep.subr.bf16.mxu1 %v11658_v58  ;;  %16411 = vst [vmem:[#allocation81_spill] sm:$0xff] %v13574_v49  ;;  %v11662_v58 = vld [vmem:[#allocation6 + $0x7b4] ss:$24 sps:$4 sm:$0xff]  }
 0x2ba   :  { %3274 = vmatpush1.bf16.msra.mxu0 %v13559_v32  ;;  %v11661_v32 = vld [vmem:[#allocation6 + $0x780] ss:$24 sps:$4 sm:$0xff]  }
 0x2bb   :  { %3275 = vmatprep.subr.bf16.mxu0 %v13562_v56  ;;  %v13577_v56 = vld [vmem:[#allocation6 + $0x8a8] ss:$24 sps:$4 sm:$0xff]  }
 0x2bc   :  { %6385 = vmatpush1.bf16.msra.mxu1 %v11659_v2  ;;  %16412 = vst [vmem:[#allocation47_spill] sm:$0xff] %v13577_v56  ;;  %v13580_v2 = vld [vmem:[#allocation6 + $0x8dc] ss:$24 sps:$4 sm:$0xff]  }
 0x2bd   :  { %6386 = vmatprep.subr.bf16.mxu1 %v11660_v34  ;;  %16413 = vst [vmem:[#allocation82_spill] sm:$0xff] %v13580_v2  ;;  %v11664_v34 = vld [vmem:[#allocation6 + $0x7e4] ss:$24 sps:$4 sm:$0xff]  }
 0x2be   :  { %3276 = vmatpush1.bf16.msra.mxu0 %v13565_v50  ;;  %v11663_v50 = vld [vmem:[#allocation6 + $0x7b0] ss:$24 sps:$4 sm:$0xff]  }
 0x2bf   :  { %3277 = vmatprep.subr.bf16.mxu0 %v13568_v30  ;;  %v13583_v30 = vld [vmem:[#allocation6 + $0x8d8] ss:$24 sps:$4 sm:$0xff]  }
 0x2c0   :  { %6387 = vmatpush1.bf16.msra.mxu1 %v11661_v32  ;;  %16414 = vst [vmem:[#allocation48_spill] sm:$0xff] %v13583_v30  ;;  %v13586_v32 = vld [vmem:[#allocation6 + $0x90c] ss:$24 sps:$4 sm:$0xff]  }
 0x2c1   :  { %6388 = vmatprep.subr.bf16.mxu1 %v11662_v58  ;;  %16415 = vst [vmem:[#allocation83_spill] sm:$0xff] %v13586_v32  ;;  %v11666_v58 = vld [vmem:[#allocation6 + $0x814] ss:$24 sps:$4 sm:$0xff]  }
 0x2c2   :  { %3278 = vmatpush1.bf16.msra.mxu0 %v13571_v48  ;;  %v11665_v48 = vld [vmem:[#allocation6 + $0x7e0] ss:$24 sps:$4 sm:$0xff]  }
 0x2c3   :  { %3279 = vmatprep.subr.bf16.mxu0 %v13574_v49  ;;  %v13589_v49 = vld [vmem:[#allocation6 + $0x908] ss:$24 sps:$4 sm:$0xff]  }
 0x2c4   :  { %6389 = vmatpush1.bf16.msra.mxu1 %v11663_v50  ;;  %16416 = vst [vmem:[#allocation49_spill] sm:$0xff] %v13589_v49  ;;  %v13592_v50 = vld [vmem:[#allocation6 + $0x93c] ss:$24 sps:$4 sm:$0xff]  }
 0x2c5   :  { %6390 = vmatprep.subr.bf16.mxu1 %v11664_v34  ;;  %16417 = vst [vmem:[#allocation84_spill] sm:$0xff] %v13592_v50  ;;  %v13597_v34 = vld [vmem:[#allocation6 + $0x938] ss:$24 sps:$4 sm:$0xff]  }
 0x2c6   :  { %3280 = vmatpush1.bf16.msra.mxu0 %v13577_v56  ;;  %v11667_v56 = vld [vmem:[#allocation6 + $0x810] ss:$24 sps:$4 sm:$0xff]   ;;  %16418 = vst [vmem:[#allocation50_spill] sm:$0xff] %v13597_v34 }
 0x2c7   :  { %3281 = vmatprep.subr.bf16.mxu0 %v13580_v2  ;;  %v13606_v2 = vld [vmem:[#allocation6 + $0x99c] ss:$24 sps:$4 sm:$0xff]  }
 0x2c8   :  { %6391 = vmatpush1.bf16.msra.mxu1 %v11665_v48  ;;  %v11668_v48 = vld [vmem:[#allocation6 + $0x844] ss:$24 sps:$4 sm:$0xff]  }
 0x2c9   :  { %6392 = vmatprep.subr.bf16.mxu1 %v11666_v58  ;;  %v13600_v58 = vld [vmem:[#allocation6 + $0x96c] ss:$24 sps:$4 sm:$0xff]  }
 0x2ca   :  { %3282 = vmatpush1.bf16.msra.mxu0 %v13583_v30  ;;  %16419 = vst [vmem:[#allocation85_spill] sm:$0xff] %v13600_v58  ;;  %v11669_v30 = vld [vmem:[#allocation6 + $0x840] ss:$24 sps:$4 sm:$0xff]  }
 0x2cb   :  { %3312 = vmatprep.subr.bf16.mxu0 %v13586_v32  ;;  %v11670_v32 = vld [vmem:[#allocation6 + $0x874] ss:$24 sps:$4 sm:$0xff]  }
 0x2cc   :  { %6393 = vmatpush1.bf16.msra.mxu1 %v11667_v56  ;;  %v13603_v56 = vld [vmem:[#allocation6 + $0x968] ss:$24 sps:$4 sm:$0xff]  }
 0x2cd   :  { %3284 = vmatmul.mubr.bf16.vlgmr.msra.gmra.mrb[136].mxu0 %v13206_v23  ;;  %6394 = vmatprep.subr.bf16.mxu1 %v11668_v48  ;;  %16420 = vst [vmem:[#allocation51_spill] sm:$0xff] %v13603_v56  ;;  %v13611_v48 = vld [vmem:[#allocation6 + $0x998] ss:$24 sps:$4 sm:$0xff]  }
 0x2ce   :  { %3293 = vmatprep.mubr.bf16.mxu0 %v13323_v16  ;;  %3313 = vmatpush1.bf16.msra.mxu0 %v13589_v49  ;;  %v11671_v49 = vld [vmem:[#allocation6 + $0x870] ss:$24 sps:$4 sm:$0xff]  }
 0x2cf   :  { %3314 = vmatprep.subr.bf16.mxu0 %v13592_v50  ;;  %v13620_v50 = vld [vmem:[#allocation6 + $0x9fc] ss:$24 sps:$4 sm:$0xff]  }
 0x2d0   :  { %6395 = vmatpush1.bf16.msra.mxu1 %v11669_v30  ;;  %v11672_v30 = vld [vmem:[#allocation6 + $0x8a4] ss:$24 sps:$4 sm:$0xff]  }
 0x2d1   :  { %6396 = vmatprep.subr.bf16.mxu1 %v11670_v32  ;;  %v13614_v32 = vld [vmem:[#allocation6 + $0x9cc] ss:$24 sps:$4 sm:$0xff]  }
 0x2d2   :  { %3315 = vmatpush1.bf16.msra.mxu0 %v13597_v34  ;;  %v11673_v34 = vld [vmem:[#allocation6 + $0x8a0] ss:$24 sps:$4 sm:$0xff]  }
 0x2d3   :  { %3316 = vmatprep.subr.bf16.mxu0 %v13600_v58  ;;  %v11674_v58 = vld [vmem:[#allocation6 + $0x8d4] ss:$24 sps:$4 sm:$0xff]  }
 0x2d4   :  { %6397 = vmatpush1.bf16.msra.mxu1 %v11671_v49  ;;  %v13617_v49 = vld [vmem:[#allocation6 + $0x9c8] ss:$24 sps:$4 sm:$0xff]  }
 0x2d5   :  { %3294 = vmatmul.mubr.bf16.gmra.mrb[140].mxu0 %v13314_v42  ;;  %6398 = vmatprep.subr.bf16.mxu1 %v11672_v30  ;;  %16421 = vst [vmem:[#allocation86_spill] sm:$0xff] %v13617_v49  ;;  %v13625_v30 = vld [vmem:[#allocation6 + $0x9f8] ss:$24 sps:$4 sm:$0xff]  }
 0x2d6   :  { %3303 = vmatprep.mubr.bf16.mxu0 %v13377_v8  ;;  %3317 = vmatpush1.bf16.msra.mxu0 %v13603_v56  ;;  %v11675_v56 = vld [vmem:[#allocation6 + $0x8d0] ss:$24 sps:$4 sm:$0xff]  }
 0x2d7   :  { %3318 = vmatprep.subr.bf16.mxu0 %v13606_v2 }
 0x2d8   :  { %6399 = vmatpush1.bf16.msra.mxu1 %v11673_v34  ;;  %v11676_v34 = vld [vmem:[#allocation6 + $0x904] ss:$24 sps:$4 sm:$0xff]  }
 0x2d9   :  { %6400 = vmatprep.subr.bf16.mxu1 %v11674_v58  ;;  %v13628_v58 = vld [vmem:[#allocation6 + $0xa2c] ss:$24 sps:$4 sm:$0xff]  }
 0x2da   :  { %3319 = vmatpush1.bf16.msra.mxu0 %v13611_v48 }
 0x2db   :  { %3320 = vmatprep.subr.bf16.mxu0 %v13614_v32 }
 0x2dc   :  { %6401 = vmatpush1.bf16.msra.mxu1 %v11675_v56  ;;  %v13635_v56 = vld [vmem:[#allocation6 + $0xa28] ss:$24 sps:$4 sm:$0xff]  }
 0x2dd   :  { %3304 = vmatmul.mubr.bf16.gmra.mrb[144].mxu0 %v13374_v9  ;;  %6431 = vmatprep.subr.bf16.mxu1 %v11676_v34  ;;  %v13643_v34 = vld [vmem:[#allocation6 + $0xa58] ss:$24 sps:$4 sm:$0xff]  }
 0x2de   :  { %3321 = vmatpush1.bf16.msra.mxu0 %v13617_v49  ;;  %3344 = vmatprep.mubr.bf16.mxu0 %v12995_v10  ;;  %v13638_v49 = vld [vmem:[#allocation6 + $0xa5c] ss:$24 sps:$4 sm:$0xff]  }
 0x2df   :  { %3322 = vmatprep.subr.bf16.mxu0 %v13620_v50  ;;  %6403 = vmatmul.mubr.bf16.vlgmr.msra.gmra.mrb[112].mxu1 %v13277_v18 }
 0x2e0   :  { %6412 = vmatprep.mubr.bf16.mxu1 %v13390_v0  ;;  %6432 = vmatpush1.bf16.msra.mxu1 %v13202_v29  ;;  %v13646_v29 = vld [vmem:[#allocation6 + $0xa8c] ss:$24 sps:$4 sm:$0xff]  }
 0x2e1   :  { %6433 = vmatprep.subr.bf16.mxu1 %v13217_v27  ;;  %v13653_v27 = vld [vmem:[#allocation6 + $0xa88] ss:$24 sps:$4 sm:$0xff]  }
 0x2e2   :  { %3323 = vmatpush1.bf16.msra.mxu0 %v13625_v30 }
 0x2e3   :  { %3324 = vmatprep.subr.bf16.mxu0 %v13628_v58 }
 0x2e4   :  { %6434 = vmatpush1.bf16.msra.mxu1 %v13227_v63  ;;  %v13656_v63 = vld [vmem:[#allocation6 + $0xabc] ss:$24 sps:$4 sm:$0xff]  }
 0x2e5   :  { %6435 = vmatprep.subr.bf16.mxu1 %v13236_v57  ;;  %v13661_v57 = vld [vmem:[#allocation6 + $0xab8] ss:$24 sps:$4 sm:$0xff]  }
 0x2e6   :  { %3325 = vmatpush1.bf16.msra.mxu0 %v13635_v56 }
 0x2e7   :  { %3326 = vmatprep.subr.bf16.mxu0 %v13638_v49  ;;  %6413 = vmatmul.mubr.bf16.gmra.mrb[116].mxu1 %v13402_v26 }
 0x2e8   :  { %6422 = vmatprep.mubr.bf16.mxu1 %v13410_v39  ;;  %6436 = vmatpush1.bf16.msra.mxu1 %v13256_v59  ;;  %v13664_v59 = vld [vmem:[#allocation6 + $0xaec] ss:$24 sps:$4 sm:$0xff]  }
 0x2e9   :  { %6437 = vmatprep.subr.bf16.mxu1 %v13268_v53  ;;  %v13671_v53 = vld [vmem:[#allocation6 + $0xae8] ss:$24 sps:$4 sm:$0xff]  }
 0x2ea   :  { %3327 = vmatpush1.bf16.msra.mxu0 %v13643_v34 }
 0x2eb   :  { %3328 = vmatprep.subr.bf16.mxu0 %v13646_v29 }
 0x2ec   :  { %6438 = vmatpush1.bf16.msra.mxu1 %v13284_v17  ;;  %v13674_v17 = vld [vmem:[#allocation6 + $0xb1c] ss:$24 sps:$4 sm:$0xff]  }
 0x2ed   :  { %6439 = vmatprep.subr.bf16.mxu1 %v13291_v6  ;;  %v13679_v6 = vld [vmem:[#allocation6 + $0xb18] ss:$24 sps:$4 sm:$0xff]  }
 0x2ee   :  { %3329 = vmatpush1.bf16.msra.mxu0 %v13653_v27 }
 0x2ef   :  { %3330 = vmatprep.subr.bf16.mxu0 %v13656_v63  ;;  %6423 = vmatmul.mubr.bf16.gmra.mrb[120].mxu1 %v13406_v3 }
 0x2f0   :  { %6440 = vmatpush1.bf16.msra.mxu1 %v13310_v28  ;;  %6463 = vmatprep.mubr.bf16.mxu1 %v13050_v61  ;;  %v13682_v28 = vld [vmem:[#allocation6 + $0xb4c] ss:$24 sps:$4 sm:$0xff]  }
 0x2f1   :  { %6441 = vmatprep.subr.bf16.mxu1 %v13326_v12  ;;  %v13687_v12 = vld [vmem:[#allocation6 + $0xb48] ss:$24 sps:$4 sm:$0xff]  }
 0x2f2   :  { %3331 = vmatpush1.bf16.msra.mxu0 %v13661_v57 }
 0x2f3   :  { %3332 = vmatprep.subr.bf16.mxu0 %v13664_v59 }
 0x2f4   :  { %6442 = vmatpush1.bf16.msra.mxu1 %v13339_v46  ;;  %v13690_v46 = vld [vmem:[#allocation6 + $0xb7c] ss:$24 sps:$4 sm:$0xff]  }
 0x2f5   :  { %6443 = vmatprep.subr.bf16.mxu1 %v13351_v21  ;;  %v13695_v21 = vld [vmem:[#allocation6 + $0xb78] ss:$24 sps:$4 sm:$0xff]  }
 0x2f6   :  { %3333 = vmatpush1.bf16.msra.mxu0 %v13671_v53 }
 0x2f7   :  { %3334 = vmatprep.subr.bf16.mxu0 %v13674_v17 }
 0x2f8   :  { %6444 = vmatpush1.bf16.msra.mxu1 %v13371_v36  ;;  %v13698_v36 = vld [vmem:[#allocation6 + $0xbac] ss:$24 sps:$4 sm:$0xff]  }
 0x2f9   :  { %6445 = vmatprep.subr.bf16.mxu1 %v13394_v19  ;;  %v13703_v19 = vld [vmem:[#allocation6 + $0xba8] ss:$24 sps:$4 sm:$0xff]  }
 0x2fa   :  { %3335 = vmatpush1.bf16.msra.mxu0 %v13679_v6 }
 0x2fb   :  { %3336 = vmatprep.subr.bf16.mxu0 %v13682_v28 }
 0x2fc   :  { %6446 = vmatpush1.bf16.msra.mxu1 %v13392_v11  ;;  %v13706_v11 = vld [vmem:[#allocation6 + $0xbdc] ss:$24 sps:$4 sm:$0xff]  }
 0x2fd   :  { %6447 = vmatprep.subr.bf16.mxu1 %v13404_v22  ;;  %v13711_v22 = vld [vmem:[#allocation6 + $0xbd8] ss:$24 sps:$4 sm:$0xff]  }
 0x2fe   :  { %3337 = vmatpush1.bf16.msra.mxu0 %v13687_v12 }
 0x2ff   :  { %3338 = vmatprep.subr.bf16.mxu0 %v13690_v46 }
 0x300   :  { %6448 = vmatpush1.bf16.msra.mxu1 %v13414_v52  ;;  %v13714_v52 = vld [vmem:[#allocation6 + $0x614] ss:$24 sps:$4 sm:$0xff]  }
 0x301   :  { %6449 = vmatprep.subr.bf16.mxu1 %v13418_v13  ;;  %v13719_v13 = vld [vmem:[#allocation6 + $0x610] ss:$24 sps:$4 sm:$0xff]  }
 0x302   :  { %3339 = vmatpush1.bf16.msra.mxu0 %v13695_v21 }
 0x303   :  { %3340 = vmatprep.subr.bf16.mxu0 %v13698_v36 }
 0x304   :  { %6450 = vmatpush1.bf16.msra.mxu1 %v13421_v20  ;;  %v13722_v20 = vld [vmem:[#allocation6 + $0x644] ss:$24 sps:$4 sm:$0xff]  }
 0x305   :  { %6451 = vmatprep.subr.bf16.mxu1 %v13424_v7  ;;  %v13728_v7 = vld [vmem:[#allocation6 + $0x640] ss:$24 sps:$4 sm:$0xff]  }
 0x306   :  { %3341 = vmatpush1.bf16.msra.mxu0 %v13703_v19 }
 0x307   :  { %3342 = vmatprep.subr.bf16.mxu0 %v13706_v11 }
 0x308   :  { %6452 = vmatpush1.bf16.msra.mxu1 %v13429_v33  ;;  %v13732_v33 = vld [vmem:[#allocation6 + $0x674] ss:$24 sps:$4 sm:$0xff]  }
 0x309   :  { %6453 = vmatprep.subr.bf16.mxu1 %v13432_v60  ;;  %16422 = vst [vmem:[#allocation101_spill] sm:$0xff] %v13732_v33  ;;  %v13737_v60 = vld [vmem:[#allocation6 + $0x670] ss:$24 sps:$4 sm:$0xff]  }
 0x30a   :  { %3343 = vmatpush1.bf16.msra.mxu0 %v13711_v22  ;;  %16423 = vst [vmem:[#allocation102_spill] sm:$0xff] %v13737_v60 }
 0x30b   :  { %3373 = vmatprep.subr.bf16.mxu0 %v13714_v52 }
 0x30c   :  { %6454 = vmatpush1.bf16.msra.mxu1 %v13435_v45  ;;  %v13740_v45 = vld [vmem:[#allocation6 + $0x6a4] ss:$24 sps:$4 sm:$0xff]  }
 0x30d   :  { %3345 = vmatmul.mubr.bf16.vlgmr.msra.gmra.mrb[136].mxu0 %v12986_v43  ;;  %6455 = vmatprep.subr.bf16.mxu1 %v13438_v31  ;;  %v13746_v31 = vld [vmem:[#allocation6 + $0x6a0] ss:$24 sps:$4 sm:$0xff]  }
 0x30e   :  { %3354 = vmatprep.mubr.bf16.mxu0 %v13086_v5  ;;  %3374 = vmatpush1.bf16.msra.mxu0 %v13719_v13 }
 0x30f   :  { %3375 = vmatprep.subr.bf16.mxu0 %v13722_v20 }
 0x310   :  { %6456 = vmatpush1.bf16.msra.mxu1 %v13441_v38  ;;  %v13750_v38 = vld [vmem:[#allocation6 + $0x6d4] ss:$24 sps:$4 sm:$0xff]  }
 0x311   :  { %6457 = vmatprep.subr.bf16.mxu1 %v13444_v14  ;;  %16424 = vst [vmem:[#allocation103_spill] sm:$0xff] %v13750_v38  ;;  %v16425_v14 = vld [vmem:[#allocation94_spill] sm:$0xff] }
 0x312   :  { %3376 = vmatpush1.bf16.msra.mxu0 %v13728_v7 }
 0x313   :  { %3377 = vmatprep.subr.bf16.mxu0 %v13732_v33  ;;  %v13758_v33 = vld [vmem:[#allocation6 + $0x704] ss:$24 sps:$4 sm:$0xff]  }
 0x314   :  { %6458 = vmatpush1.bf16.msra.mxu1 %v13447_v40  ;;  %v13755_v40 = vld [vmem:[#allocation6 + $0x6d0] ss:$24 sps:$4 sm:$0xff]   ;;  %16427 = vst [vmem:[#allocation104_spill] sm:$0xff] %v13758_v33 }
 0x315   :  { %3355 = vmatmul.mubr.bf16.gmra.mrb[140].mxu0 %v13077_v44  ;;  %6459 = vmatprep.subr.bf16.mxu1 %v13450_v47  ;;  %16426 = vst [vmem:[#allocation94_spill] sm:$0xff] %v13755_v40  ;;  %v13764_v47 = vld [vmem:[#allocation6 + $0x700] ss:$24 sps:$4 sm:$0xff]  }
 0x316   :  { %3364 = vmatprep.mubr.bf16.mxu0 %v13485_v24  ;;  %3378 = vmatpush1.bf16.msra.mxu0 %v13737_v60  ;;  %v16428_v60 = vld [vmem:[#allocation24_spill] sm:$0xff] }
 0x317   :  { %3379 = vmatprep.subr.bf16.mxu0 %v13740_v45 }
 0x318   :  { %6460 = vmatpush1.bf16.msra.mxu1 %v13453_v55  ;;  %v16429_v55 = vld [vmem:[#allocation67_spill] sm:$0xff] }
 0x319   :  { %6461 = vmatprep.subr.bf16.mxu1 %v16425_v14  ;;  %v13768_v14 = vld [vmem:[#allocation6 + $0x734] ss:$24 sps:$4 sm:$0xff]  }
 0x31a   :  { %3380 = vmatpush1.bf16.msra.mxu0 %v13746_v31  ;;  %16430 = vst [vmem:[#allocation24_spill] sm:$0xff] %v13768_v14 }
 0x31b   :  { %3381 = vmatprep.subr.bf16.mxu0 %v13750_v38  ;;  %v16431_v38 = vld [vmem:[#allocation95_spill] sm:$0xff] }
 0x31c   :  { %6462 = vmatpush1.bf16.msra.mxu1 %v16428_v60  ;;  %v13775_v60 = vld [vmem:[#allocation6 + $0x730] ss:$24 sps:$4 sm:$0xff]  }
 0x31d   :  { %3365 = vmatmul.mubr.bf16.gmra.mrb[144].mxu0 %v13499_v41  ;;  %6492 = vmatprep.subr.bf16.mxu1 %v16429_v55  ;;  %16432 = vst [vmem:[#allocation67_spill] sm:$0xff] %v13775_v60  ;;  %v16434_v55 = vld [vmem:[#allocation26_spill] sm:$0xff] }
 0x31e   :  { %3382 = vmatpush1.bf16.msra.mxu0 %v13755_v40  ;;  %3405 = vmatprep.mubr.bf16.mxu0 %v13215_v37  ;;  %v13778_v37 = vld [vmem:[#allocation6 + $0x764] ss:$24 sps:$4 sm:$0xff]   ;;  %v13783_v40 = vld [vmem:[#allocation6 + $0x760] ss:$24 sps:$4 sm:$0xff]  }
 0x31f   :  { %3383 = vmatprep.subr.bf16.mxu0 %v13758_v33  ;;  %6464 = vmatmul.mubr.bf16.vlgmr.msra.gmra.mrb[112].mxu1 %v13043_v4  ;;  %16433 = vst [vmem:[#allocation95_spill] sm:$0xff] %v13778_v37  ;;  %v16435_v33 = vld [vmem:[#allocation68_spill] sm:$0xff]  ;;  %16436 = vst [vmem:[#allocation26_spill] sm:$0xff] %v13783_v40 }
 0x320   :  { %6473 = vmatprep.mubr.bf16.mxu1 %v13516_v62  ;;  %6493 = vmatpush1.bf16.msra.mxu1 %v16431_v38  ;;  %v13786_v38 = vld [vmem:[#allocation6 + $0x794] ss:$24 sps:$4 sm:$0xff]  }
 0x321   :  { %6494 = vmatprep.subr.bf16.mxu1 %v13468_v25  ;;  %16437 = vst [vmem:[#allocation68_spill] sm:$0xff] %v13786_v38  ;;  %v16438_v25 = vld [vmem:[#allocation96_spill] sm:$0xff] }
 0x322   :  { %3384 = vmatpush1.bf16.msra.mxu0 %v13764_v47 }
 0x323   :  { %3385 = vmatprep.subr.bf16.mxu0 %v13768_v14  ;;  %v13801_v14 = vld [vmem:[#allocation6 + $0x7c0] ss:$24 sps:$4 sm:$0xff]  }
 0x324   :  { %6495 = vmatpush1.bf16.msra.mxu1 %v16434_v55  ;;  %v13793_v55 = vld [vmem:[#allocation6 + $0x790] ss:$24 sps:$4 sm:$0xff]  }
 0x325   :  { %6496 = vmatprep.subr.bf16.mxu1 %v16435_v33  ;;  %16439 = vst [vmem:[#allocation96_spill] sm:$0xff] %v13793_v55  ;;  %v13796_v33 = vld [vmem:[#allocation6 + $0x7c4] ss:$24 sps:$4 sm:$0xff]  }
 0x326   :  { %3386 = vmatpush1.bf16.msra.mxu0 %v13775_v60  ;;  %16440 = vst [vmem:[#allocation105_spill] sm:$0xff] %v13796_v33  ;;  %v16441_v60 = vld [vmem:[#allocation69_spill] sm:$0xff] }
 0x327   :  { %3387 = vmatprep.subr.bf16.mxu0 %v13778_v37  ;;  %6474 = vmatmul.mubr.bf16.gmra.mrb[116].mxu1 %v13531_v1  ;;  %v16442_v37 = vld [vmem:[#allocation30_spill] sm:$0xff]  ;;  %16443 = vst [vmem:[#allocation69_spill] sm:$0xff] %v13801_v14 }
 0x328   :  { %6483 = vmatprep.mubr.bf16.mxu1 %v13152_v15  ;;  %6497 = vmatpush1.bf16.msra.mxu1 %v16438_v25  ;;  %v13804_v25 = vld [vmem:[#allocation6 + $0x7f4] ss:$24 sps:$4 sm:$0xff]  }
 0x329   :  { %6498 = vmatprep.subr.bf16.mxu1 %v13482_v54  ;;  %16444 = vst [vmem:[#allocation30_spill] sm:$0xff] %v13804_v25  ;;  %v16445_v54 = vld [vmem:[#allocation70_spill] sm:$0xff] }
 0x32a   :  { %3388 = vmatpush1.bf16.msra.mxu0 %v13783_v40  ;;  %v13819_v40 = vld [vmem:[#allocation6 + $0x820] ss:$24 sps:$4 sm:$0xff]  }
 0x32b   :  { %3389 = vmatprep.subr.bf16.mxu0 %v13786_v38  ;;  %v16446_v38 = vld [vmem:[#allocation71_spill] sm:$0xff] }
 0x32c   :  { %6499 = vmatpush1.bf16.msra.mxu1 %v16441_v60  ;;  %v13811_v60 = vld [vmem:[#allocation6 + $0x7f0] ss:$24 sps:$4 sm:$0xff]  }
 0x32d   :  { %6500 = vmatprep.subr.bf16.mxu1 %v16442_v37  ;;  %16447 = vst [vmem:[#allocation70_spill] sm:$0xff] %v13811_v60  ;;  %v13814_v37 = vld [vmem:[#allocation6 + $0x824] ss:$24 sps:$4 sm:$0xff]  }
 0x32e   :  { %3390 = vmatpush1.bf16.msra.mxu0 %v13793_v55  ;;  %16448 = vst [vmem:[#allocation71_spill] sm:$0xff] %v13814_v37  ;;  %v16449_v55 = vld [vmem:[#allocation34_spill] sm:$0xff] }
 0x32f   :  { %3391 = vmatprep.subr.bf16.mxu0 %v13796_v33  ;;  %6484 = vmatmul.mubr.bf16.gmra.mrb[120].mxu1 %v13146_v51  ;;  %v16450_v33 = vld [vmem:[#allocation72_spill] sm:$0xff]  ;;  %16451 = vst [vmem:[#allocation34_spill] sm:$0xff] %v13819_v40 }
 0x330   :  { %6501 = vmatpush1.bf16.msra.mxu1 %v16445_v54  ;;  %6524 = vmatprep.mubr.bf16.mxu1 %v13282_v35  ;;  %v13822_v54 = vld [vmem:[#allocation6 + $0x854] ss:$24 sps:$4 sm:$0xff]  }
 0x331   :  { %6502 = vmatprep.subr.bf16.mxu1 %v16446_v38  ;;  %16452 = vst [vmem:[#allocation72_spill] sm:$0xff] %v13822_v54  ;;  %v16454_v38 = vld [vmem:[#allocation38_spill] sm:$0xff] }
 0x332   :  { %3392 = vmatpush1.bf16.msra.mxu0 %v13801_v14  ;;  %v16453_v14 = vld [vmem:[#allocation73_spill] sm:$0xff] }
 0x333   :  { %3393 = vmatprep.subr.bf16.mxu0 %v13804_v25  ;;  %v13827_v25 = vld [vmem:[#allocation6 + $0x850] ss:$24 sps:$4 sm:$0xff]  }
 0x334   :  { %6503 = vmatpush1.bf16.msra.mxu1 %v16449_v55  ;;  %16455 = vst [vmem:[#allocation73_spill] sm:$0xff] %v13827_v25  ;;  %v13830_v55 = vld [vmem:[#allocation6 + $0x884] ss:$24 sps:$4 sm:$0xff]  }
 0x335   :  { %6504 = vmatprep.subr.bf16.mxu1 %v16450_v33  ;;  %16456 = vst [vmem:[#allocation38_spill] sm:$0xff] %v13830_v55  ;;  %v16458_v33 = vld [vmem:[#allocation75_spill] sm:$0xff] }
 0x336   :  { %3394 = vmatpush1.bf16.msra.mxu0 %v13811_v60  ;;  %v16457_v60 = vld [vmem:[#allocation74_spill] sm:$0xff] }
 0x337   :  { %3395 = vmatprep.subr.bf16.mxu0 %v13814_v37  ;;  %v13835_v37 = vld [vmem:[#allocation6 + $0x880] ss:$24 sps:$4 sm:$0xff]  }
 0x338   :  { %6505 = vmatpush1.bf16.msra.mxu1 %v16453_v14  ;;  %16459 = vst [vmem:[#allocation74_spill] sm:$0xff] %v13835_v37  ;;  %v13838_v14 = vld [vmem:[#allocation6 + $0x8b4] ss:$24 sps:$4 sm:$0xff]  }
 0x339   :  { %6506 = vmatprep.subr.bf16.mxu1 %v16454_v38  ;;  %16460 = vst [vmem:[#allocation75_spill] sm:$0xff] %v13838_v14  ;;  %v16462_v38 = vld [vmem:[#allocation76_spill] sm:$0xff] }
 0x33a   :  { %3396 = vmatpush1.bf16.msra.mxu0 %v13819_v40  ;;  %v16461_v40 = vld [vmem:[#allocation41_spill] sm:$0xff] }
 0x33b   :  { %3397 = vmatprep.subr.bf16.mxu0 %v13822_v54  ;;  %v13843_v54 = vld [vmem:[#allocation6 + $0x8b0] ss:$24 sps:$4 sm:$0xff]  }
 0x33c   :  { %6507 = vmatpush1.bf16.msra.mxu1 %v16457_v60  ;;  %16463 = vst [vmem:[#allocation41_spill] sm:$0xff] %v13843_v54  ;;  %v13846_v60 = vld [vmem:[#allocation6 + $0x8e4] ss:$24 sps:$4 sm:$0xff]  }
 0x33d   :  { %6508 = vmatprep.subr.bf16.mxu1 %v16458_v33  ;;  %v16465_v33 = vld [vmem:[#allocation77_spill] sm:$0xff] }
 0x33e   :  { %3398 = vmatpush1.bf16.msra.mxu0 %v13827_v25  ;;  %v16464_v25 = vld [vmem:[#allocation42_spill] sm:$0xff] }
 0x33f   :  { %3399 = vmatprep.subr.bf16.mxu0 %v13830_v55  ;;  %v13851_v55 = vld [vmem:[#allocation6 + $0x8e0] ss:$24 sps:$4 sm:$0xff]  }
 0x340   :  { %6509 = vmatpush1.bf16.msra.mxu1 %v16461_v40  ;;  %16466 = vst [vmem:[#allocation76_spill] sm:$0xff] %v13851_v55  ;;  %v13854_v40 = vld [vmem:[#allocation6 + $0x914] ss:$24 sps:$4 sm:$0xff]  }
 0x341   :  { %6510 = vmatprep.subr.bf16.mxu1 %v16462_v38  ;;  %16467 = vst [vmem:[#allocation42_spill] sm:$0xff] %v13854_v40  ;;  %v16469_v38 = vld [vmem:[#allocation78_spill] sm:$0xff] }
 0x342   :  { %3400 = vmatpush1.bf16.msra.mxu0 %v13835_v37  ;;  %v16468_v37 = vld [vmem:[#allocation43_spill] sm:$0xff] }
 0x343   :  { %3401 = vmatprep.subr.bf16.mxu0 %v13838_v14  ;;  %v13859_v14 = vld [vmem:[#allocation6 + $0x910] ss:$24 sps:$4 sm:$0xff]  }
 0x344   :  { %6511 = vmatpush1.bf16.msra.mxu1 %v16464_v25  ;;  %v13862_v25 = vld [vmem:[#allocation6 + $0x944] ss:$24 sps:$4 sm:$0xff]  }
 0x345   :  { %6512 = vmatprep.subr.bf16.mxu1 %v16465_v33  ;;  %v13868_v33 = vld [vmem:[#allocation6 + $0x940] ss:$24 sps:$4 sm:$0xff]  }
 0x346   :  { %3402 = vmatpush1.bf16.msra.mxu0 %v13843_v54  ;;  %v16470_v54 = vld [vmem:[#allocation44_spill] sm:$0xff]  ;;  %16471 = vst [vmem:[#allocation77_spill] sm:$0xff] %v13868_v33 }
 0x347   :  { %3403 = vmatprep.subr.bf16.mxu0 %v13846_v60 }
 0x348   :  { %6513 = vmatpush1.bf16.msra.mxu1 %v16468_v37  ;;  %v16472_v37 = vld [vmem:[#allocation79_spill] sm:$0xff] }
 0x349   :  { %6514 = vmatprep.subr.bf16.mxu1 %v16469_v38  ;;  %v13872_v38 = vld [vmem:[#allocation6 + $0x974] ss:$24 sps:$4 sm:$0xff]  }
 0x34a   :  { %3404 = vmatpush1.bf16.msra.mxu0 %v13851_v55  ;;  %16473 = vst [vmem:[#allocation43_spill] sm:$0xff] %v13872_v38  ;;  %v16474_v55 = vld [vmem:[#allocation45_spill] sm:$0xff] }
 0x34b   :  { %3434 = vmatprep.subr.bf16.mxu0 %v13854_v40  ;;  %v16475_v40 = vld [vmem:[#allocation80_spill] sm:$0xff] }
 0x34c   :  { %6515 = vmatpush1.bf16.msra.mxu1 %v16470_v54  ;;  %v13877_v54 = vld [vmem:[#allocation6 + $0x970] ss:$24 sps:$4 sm:$0xff]  }
 0x34d   :  { %3406 = vmatmul.mubr.bf16.vlgmr.msra.gmra.mrb[148].mxu0 %v13206_v23  ;;  %6516 = vmatprep.subr.bf16.mxu1 %v16472_v37  ;;  %v16476_v23 = vld [vmem:[#allocation46_spill] sm:$0xff]  ;;  %v13886_v37 = vld [vmem:[#allocation6 + $0x9a0] ss:$24 sps:$4 sm:$0xff]  }
 0x34e   :  { %3415 = vmatprep.mubr.bf16.mxu0 %v13323_v16  ;;  %3435 = vmatpush1.bf16.msra.mxu0 %v13859_v14  ;;  %v13880_v16 = vld [vmem:[#allocation6 + $0x9a4] ss:$24 sps:$4 sm:$0xff]  }
 0x34f   :  { %3436 = vmatprep.subr.bf16.mxu0 %v13862_v25 }
 0x350   :  { %6517 = vmatpush1.bf16.msra.mxu1 %v16474_v55  ;;  %v16477_v55 = vld [vmem:[#allocation81_spill] sm:$0xff] }
 0x351   :  { %6518 = vmatprep.subr.bf16.mxu1 %v16475_v40  ;;  %v13890_v40 = vld [vmem:[#allocation6 + $0x9d4] ss:$24 sps:$4 sm:$0xff]  }
 0x352   :  { %3437 = vmatpush1.bf16.msra.mxu0 %v13868_v33  ;;  %16478 = vst [vmem:[#allocation78_spill] sm:$0xff] %v13890_v40  ;;  %v16479_v33 = vld [vmem:[#allocation47_spill] sm:$0xff] }
 0x353   :  { %3438 = vmatprep.subr.bf16.mxu0 %v13872_v38  ;;  %v16480_v38 = vld [vmem:[#allocation82_spill] sm:$0xff] }
 0x354   :  { %6519 = vmatpush1.bf16.msra.mxu1 %v16476_v23  ;;  %v13895_v23 = vld [vmem:[#allocation6 + $0x9d0] ss:$24 sps:$4 sm:$0xff]  }
 0x355   :  { %3416 = vmatmul.mubr.bf16.gmra.mrb[152].mxu0 %v13314_v42  ;;  %6520 = vmatprep.subr.bf16.mxu1 %v16477_v55  ;;  %16481 = vst [vmem:[#allocation44_spill] sm:$0xff] %v13895_v23  ;;  %v16483_v42 = vld [vmem:[#allocation48_spill] sm:$0xff] }
 0x356   :  { %3425 = vmatprep.mubr.bf16.mxu0 %v13377_v8  ;;  %3439 = vmatpush1.bf16.msra.mxu0 %v13877_v54  ;;  %v13898_v8 = vld [vmem:[#allocation6 + $0xa04] ss:$24 sps:$4 sm:$0xff]   ;;  %v13904_v55 = vld [vmem:[#allocation6 + $0xa00] ss:$24 sps:$4 sm:$0xff]  }
 0x357   :  { %3440 = vmatprep.subr.bf16.mxu0 %v13880_v16  ;;  %16482 = vst [vmem:[#allocation79_spill] sm:$0xff] %v13898_v8 }
 0x358   :  { %6521 = vmatpush1.bf16.msra.mxu1 %v16479_v33  ;;  %v16484_v33 = vld [vmem:[#allocation83_spill] sm:$0xff] }
 0x359   :  { %6522 = vmatprep.subr.bf16.mxu1 %v16480_v38  ;;  %v13908_v38 = vld [vmem:[#allocation6 + $0xa34] ss:$24 sps:$4 sm:$0xff]  }
 0x35a   :  { %3441 = vmatpush1.bf16.msra.mxu0 %v13886_v37 }
 0x35b   :  { %3442 = vmatprep.subr.bf16.mxu0 %v13890_v40  ;;  %v16485_v40 = vld [vmem:[#allocation49_spill] sm:$0xff] }
 0x35c   :  { %6523 = vmatpush1.bf16.msra.mxu1 %v16483_v42  ;;  %v16486_v42 = vld [vmem:[#allocation84_spill] sm:$0xff] }
 0x35d   :  { %3426 = vmatmul.mubr.bf16.gmra.mrb[156].mxu0 %v13374_v9  ;;  %6553 = vmatprep.subr.bf16.mxu1 %v16484_v33  ;;  %v13915_v9 = vld [vmem:[#allocation6 + $0xa30] ss:$24 sps:$4 sm:$0xff]  }
 0x35e   :  { %3443 = vmatpush1.bf16.msra.mxu0 %v13895_v23  ;;  %3466 = vmatprep.mubr.bf16.mxu0 %v12995_v10  ;;  %v13918_v10 = vld [vmem:[#allocation6 + $0xa64] ss:$24 sps:$4 sm:$0xff]   ;;  %v16488_v33 = vld [vmem:[#allocation50_spill] sm:$0xff]  ;;  %v13923_v23 = vld [vmem:[#allocation6 + $0xa60] ss:$24 sps:$4 sm:$0xff]  }
 0x35f   :  { %3444 = vmatprep.subr.bf16.mxu0 %v13898_v8  ;;  %6525 = vmatmul.mubr.bf16.vlgmr.msra.gmra.mrb[124].mxu1 %v13277_v18  ;;  %16487 = vst [vmem:[#allocation45_spill] sm:$0xff] %v13918_v10  ;;  %v16489_v8 = vld [vmem:[#allocation85_spill] sm:$0xff] }
 0x360   :  { %6534 = vmatprep.mubr.bf16.mxu1 %v13390_v0  ;;  %6554 = vmatpush1.bf16.msra.mxu1 %v16485_v40  ;;  %v13926_v40 = vld [vmem:[#allocation6 + $0xa94] ss:$24 sps:$4 sm:$0xff]  }
 0x361   :  { %6555 = vmatprep.subr.bf16.mxu1 %v16486_v42  ;;  %16490 = vst [vmem:[#allocation80_spill] sm:$0xff] %v13926_v40  ;;  %v16491_v42 = vld [vmem:[#allocation51_spill] sm:$0xff] }
 0x362   :  { %3445 = vmatpush1.bf16.msra.mxu0 %v13904_v55 }
 0x363   :  { %3446 = vmatprep.subr.bf16.mxu0 %v13908_v38 }
 0x364   :  { %6556 = vmatpush1.bf16.msra.mxu1 %v16488_v33  ;;  %v13933_v33 = vld [vmem:[#allocation6 + $0xa90] ss:$24 sps:$4 sm:$0xff]  }
 0x365   :  { %6557 = vmatprep.subr.bf16.mxu1 %v16489_v8  ;;  %16492 = vst [vmem:[#allocation46_spill] sm:$0xff] %v13933_v33  ;;  %v13936_v8 = vld [vmem:[#allocation6 + $0xac4] ss:$24 sps:$4 sm:$0xff]  }
 0x366   :  { %3447 = vmatpush1.bf16.msra.mxu0 %v13915_v9  ;;  %16493 = vst [vmem:[#allocation81_spill] sm:$0xff] %v13936_v8 }
 0x367   :  { %3448 = vmatprep.subr.bf16.mxu0 %v13918_v10  ;;  %6535 = vmatmul.mubr.bf16.gmra.mrb[128].mxu1 %v13402_v26  ;;  %v13941_v10 = vld [vmem:[#allocation6 + $0xac0] ss:$24 sps:$4 sm:$0xff]  }
 0x368   :  { %6544 = vmatprep.mubr.bf16.mxu1 %v13410_v39  ;;  %6558 = vmatpush1.bf16.msra.mxu1 %v16491_v42  ;;  %v13944_v42 = vld [vmem:[#allocation6 + $0xaf4] ss:$24 sps:$4 sm:$0xff]  }
 0x369   :  { %6559 = vmatprep.subr.bf16.mxu1 %v13606_v2  ;;  %v16494_v2 = vld [vmem:[#allocation86_spill] sm:$0xff] }
 0x36a   :  { %3449 = vmatpush1.bf16.msra.mxu0 %v13923_v23 }
 0x36b   :  { %3450 = vmatprep.subr.bf16.mxu0 %v13926_v40 }
 0x36c   :  { %6560 = vmatpush1.bf16.msra.mxu1 %v13611_v48  ;;  %v13951_v48 = vld [vmem:[#allocation6 + $0xaf0] ss:$24 sps:$4 sm:$0xff]  }
 0x36d   :  { %6561 = vmatprep.subr.bf16.mxu1 %v13614_v32  ;;  %v13956_v32 = vld [vmem:[#allocation6 + $0xb24] ss:$24 sps:$4 sm:$0xff]  }
 0x36e   :  { %3451 = vmatpush1.bf16.msra.mxu0 %v13933_v33  ;;  %16496 = vst [vmem:[#allocation82_spill] sm:$0xff] %v13956_v32 }
 0x36f   :  { %3452 = vmatprep.subr.bf16.mxu0 %v13936_v8  ;;  %6545 = vmatmul.mubr.bf16.gmra.mrb[132].mxu1 %v13406_v3 }
 0x370   :  { %6562 = vmatpush1.bf16.msra.mxu1 %v16494_v2  ;;  %6585 = vmatprep.mubr.bf16.mxu1 %v13050_v61 }
 0x371   :  { %6563 = vmatprep.subr.bf16.mxu1 %v13620_v50  ;;  %v13967_v50 = vld [vmem:[#allocation6 + $0xb20] ss:$24 sps:$4 sm:$0xff]  }
 0x372   :  { %3453 = vmatpush1.bf16.msra.mxu0 %v13941_v10  ;;  %v13953_v33 = vpop.f32.mrb[100].mxu1 }
 0x373   :  { %16495 = vst [vmem:[#allocation47_spill] sm:$0xff] %v13953_v33  ;;  %3454 = vmatprep.subr.bf16.mxu0 %v13944_v42  ;;  %v13958_v8 = vpop.f32.mrb[101].mxu1  ;;  %v13970_v33 = vld [vmem:[#allocation6 + $0xb54] ss:$24 sps:$4 sm:$0xff]  }
 0x374   :  { %16497 = vst [vmem:[#allocation48_spill] sm:$0xff] %v13958_v8  ;;  %v13960_v40 = vpop.f32.mrb[102].mxu1  ;;  %6564 = vmatpush1.bf16.msra.mxu1 %v13625_v30 }
 0x375   :  { %16498 = vst [vmem:[#allocation83_spill] sm:$0xff] %v13960_v40  ;;  %v13963_v2 = vpop.f32.mrb[103].mxu1  ;;  %6565 = vmatprep.subr.bf16.mxu1 %v13628_v58  ;;  %v13975_v40 = vld [vmem:[#allocation6 + $0xb50] ss:$24 sps:$4 sm:$0xff]  }
 0x376   :  { %16499 = vst [vmem:[#allocation49_spill] sm:$0xff] %v13963_v2  ;;  %3455 = vmatpush1.bf16.msra.mxu0 %v13951_v48  ;;  %v13980_v2 = vld [vmem:[#allocation6 + $0xb84] ss:$24 sps:$4 sm:$0xff]  }
 0x377   :  { %3456 = vmatprep.subr.bf16.mxu0 %v13956_v32 }
 0x378   :  { %6566 = vmatpush1.bf16.msra.mxu1 %v13635_v56  ;;  %v13994_v56 = vld [vmem:[#allocation6 + $0xbb4] ss:$24 sps:$4 sm:$0xff]  }
 0x379   :  { %6567 = vmatprep.subr.bf16.mxu1 %v13638_v49  ;;  %v13991_v49 = vld [vmem:[#allocation6 + $0xb80] ss:$24 sps:$4 sm:$0xff]  }
 0x37a   :  { %3457 = vmatpush1.bf16.msra.mxu0 %v13967_v50  ;;  %v13977_v30 = vpop.f32.mrb[104].mxu1 }
 0x37b   :  { %16500 = vst [vmem:[#allocation84_spill] sm:$0xff] %v13977_v30  ;;  %3458 = vmatprep.subr.bf16.mxu0 %v13970_v33  ;;  %v13982_v58 = vpop.f32.mrb[105].mxu1 }
 0x37c   :  { %16501 = vst [vmem:[#allocation50_spill] sm:$0xff] %v13982_v58  ;;  %v13984_v8 = vpop.f32.mrb[106].mxu1  ;;  %6568 = vmatpush1.bf16.msra.mxu1 %v13643_v34 }
 0x37d   :  { %16502 = vst [vmem:[#allocation85_spill] sm:$0xff] %v13984_v8  ;;  %v13987_v32 = vpop.f32.mrb[107].mxu1  ;;  %6569 = vmatprep.subr.bf16.mxu1 %v13646_v29  ;;  %v13999_v8 = vld [vmem:[#allocation6 + $0xbb0] ss:$24 sps:$4 sm:$0xff]  }
 0x37e   :  { %16503 = vst [vmem:[#allocation51_spill] sm:$0xff] %v13987_v32  ;;  %3459 = vmatpush1.bf16.msra.mxu0 %v13975_v40  ;;  %v14004_v32 = vld [vmem:[#allocation6 + $0xbe4] ss:$24 sps:$4 sm:$0xff]  }
 0x37f   :  { %3460 = vmatprep.subr.bf16.mxu0 %v13980_v2 }
 0x380   :  { %6570 = vmatpush1.bf16.msra.mxu1 %v13653_v27  ;;  %v14011_v27 = vld [vmem:[#allocation6 + $0xbe0] ss:$24 sps:$4 sm:$0xff]  }
 0x381   :  { %6571 = vmatprep.subr.bf16.mxu1 %v13656_v63  ;;  %v14014_v63 = vld [vmem:[#allocation6 + $0x4] ss:$24 sps:$4 sm:$0xff]  }
 0x382   :  { %3461 = vmatpush1.bf16.msra.mxu0 %v13991_v49  ;;  %v14001_v34 = vpop.f32.mrb[108].mxu1 }
 0x383   :  { %16504 = vst [vmem:[#allocation86_spill] sm:$0xff] %v14001_v34  ;;  %3462 = vmatprep.subr.bf16.mxu0 %v13994_v56  ;;  %v14006_v29 = vpop.f32.mrb[109].mxu1  ;;  %v16509_v34 = vld [vmem:[#allocation103_spill] sm:$0xff] }
 0x384   :  { %16505 = vst [vmem:[#allocation106_spill] sm:$0xff] %v14006_v29  ;;  %v6215_v58 = vpop.f32.mrb[110].mxu1  ;;  %6572 = vmatpush1.bf16.msra.mxu1 %v13661_v57  ;;  %v14022_v57 = vld [vmem:[#allocation6 + $0x34] ss:$24 sps:$4 sm:$0xff]   ;;  %v14083_v29 = vld [vmem:[#allocation6 + $0x150] ss:$24 sps:$4 sm:$0xff]  }
 0x385   :  { %v6216_v30 = vpop.f32.mrb[111].mxu1  ;;  %6573 = vmatprep.subr.bf16.mxu1 %v13664_v59  ;;  %v14019_v58 = vld [vmem:[#allocation6] ss:$24 sps:$4 sm:$0xff]   ;;  %v14028_v59 = vld [vmem:[#allocation6 + $0x30] ss:$24 sps:$4 sm:$0xff]  }
 0x386   :  { %3463 = vmatpush1.bf16.msra.mxu0 %v13999_v8  ;;  %v14064_v30 = vld [vmem:[#allocation6 + $0xf0] ss:$24 sps:$4 sm:$0xff]  }
 0x387   :  { %3464 = vmatprep.subr.bf16.mxu0 %v14004_v32 }
 0x388   :  { %6574 = vmatpush1.bf16.msra.mxu1 %v13671_v53  ;;  %v14032_v53 = vld [vmem:[#allocation6 + $0x64] ss:$24 sps:$4 sm:$0xff]  }
 0x389   :  { %6575 = vmatprep.subr.bf16.mxu1 %v13674_v17  ;;  %v14037_v17 = vld [vmem:[#allocation6 + $0x60] ss:$24 sps:$4 sm:$0xff]  }
 0x38a   :  { %3465 = vmatpush1.bf16.msra.mxu0 %v14011_v27 }
 0x38b   :  { %4455 = vmatprep.subr.bf16.mxu0 %v14014_v63 }
 0x38c   :  { %6576 = vmatpush1.bf16.msra.mxu1 %v13679_v6  ;;  %v14040_v6 = vld [vmem:[#allocation6 + $0x94] ss:$24 sps:$4 sm:$0xff]  }
 0x38d   :  { %3467 = vmatmul.mubr.bf16.vlgmr.msra.gmra.mrb[148].mxu0 %v12986_v43  ;;  %6577 = vmatprep.subr.bf16.mxu1 %v13682_v28  ;;  %v14046_v28 = vld [vmem:[#allocation6 + $0x90] ss:$24 sps:$4 sm:$0xff]   ;;  %v14127_v43 = vld [vmem:[#allocation6 + $0x240] ss:$24 sps:$4 sm:$0xff]  }
 0x38e   :  { %3476 = vmatprep.mubr.bf16.mxu0 %v13086_v5  ;;  %4456 = vmatpush1.bf16.msra.mxu0 %v14019_v58  ;;  %v14119_v5 = vld [vmem:[#allocation6 + $0x210] ss:$24 sps:$4 sm:$0xff]  }
 0x38f   :  { %4457 = vmatprep.subr.bf16.mxu0 %v14022_v57  ;;  %16516 = vst [vmem:[#allocation103_spill] sm:$0xff] %v14119_v5 }
 0x390   :  { %6578 = vmatpush1.bf16.msra.mxu1 %v13687_v12  ;;  %v14050_v12 = vld [vmem:[#allocation6 + $0xc4] ss:$24 sps:$4 sm:$0xff]  }
 0x391   :  { %6579 = vmatprep.subr.bf16.mxu1 %v13690_v46  ;;  %v14055_v46 = vld [vmem:[#allocation6 + $0xc0] ss:$24 sps:$4 sm:$0xff]  }
 0x392   :  { %4458 = vmatpush1.bf16.msra.mxu0 %v14028_v59 }
 0x393   :  { %4459 = vmatprep.subr.bf16.mxu0 %v14032_v53 }
 0x394   :  { %6580 = vmatpush1.bf16.msra.mxu1 %v13695_v21  ;;  %v14058_v21 = vld [vmem:[#allocation6 + $0xf4] ss:$24 sps:$4 sm:$0xff]  }
 0x395   :  { %3477 = vmatmul.mubr.bf16.gmra.mrb[152].mxu0 %v13077_v44  ;;  %6581 = vmatprep.subr.bf16.mxu1 %v13698_v36  ;;  %v16506_v36 = vld [vmem:[#allocation60_spill] sm:$0xff] }
 0x396   :  { %3486 = vmatprep.mubr.bf16.mxu0 %v13485_v24  ;;  %4460 = vmatpush1.bf16.msra.mxu0 %v14037_v17  ;;  %v16512_v24 = vld [vmem:[#allocation104_spill] sm:$0xff] }
 0x397   :  { %4461 = vmatprep.subr.bf16.mxu0 %v14040_v6  ;;  %v16515_v44 = vld [vmem:[#allocation24_spill] sm:$0xff]  ;;  %16520 = vst [vmem:[#allocation104_spill] sm:$0xff] %v14127_v43 }
 0x398   :  { %6582 = vmatpush1.bf16.msra.mxu1 %v13703_v19  ;;  %v14068_v19 = vld [vmem:[#allocation6 + $0x124] ss:$24 sps:$4 sm:$0xff]  }
 0x399   :  { %6583 = vmatprep.subr.bf16.mxu1 %v13706_v11  ;;  %v14075_v11 = vld [vmem:[#allocation6 + $0x120] ss:$24 sps:$4 sm:$0xff]  }
 0x39a   :  { %4462 = vmatpush1.bf16.msra.mxu0 %v14046_v28 }
 0x39b   :  { %4463 = vmatprep.subr.bf16.mxu0 %v14050_v12 }
 0x39c   :  { %6584 = vmatpush1.bf16.msra.mxu1 %v13711_v22  ;;  %v14078_v22 = vld [vmem:[#allocation6 + $0x154] ss:$24 sps:$4 sm:$0xff]  }
 0x39d   :  { %3487 = vmatmul.mubr.bf16.gmra.mrb[156].mxu0 %v13499_v41  ;;  %6614 = vmatprep.subr.bf16.mxu1 %v13714_v52  ;;  %v16507_v52 = vld [vmem:[#allocation101_spill] sm:$0xff] }
 0x39e   :  { %4464 = vmatpush1.bf16.msra.mxu0 %v14055_v46  ;;  %4487 = vmatprep.mubr.bf16.mxu0 %v16506_v36  ;;  %v14101_v41 = vld [vmem:[#allocation6 + $0x1b0] ss:$24 sps:$4 sm:$0xff]  }
 0x39f   :  { %4465 = vmatprep.subr.bf16.mxu0 %v14058_v21  ;;  %6586 = vmatmul.mubr.bf16.vlgmr.msra.gmra.mrb[124].mxu1 %v13043_v4 }
 0x3a0   :  { %6595 = vmatprep.mubr.bf16.mxu1 %v13516_v62  ;;  %6615 = vmatpush1.bf16.msra.mxu1 %v13719_v13  ;;  %v14086_v13 = vld [vmem:[#allocation6 + $0x184] ss:$24 sps:$4 sm:$0xff]  }
 0x3a1   :  { %6616 = vmatprep.subr.bf16.mxu1 %v13722_v20  ;;  %v16508_v20 = vld [vmem:[#allocation102_spill] sm:$0xff] }
 0x3a2   :  { %4466 = vmatpush1.bf16.msra.mxu0 %v14064_v30 }
 0x3a3   :  { %4467 = vmatprep.subr.bf16.mxu0 %v14068_v19 }
 0x3a4   :  { %6617 = vmatpush1.bf16.msra.mxu1 %v13728_v7  ;;  %v14093_v7 = vld [vmem:[#allocation6 + $0x180] ss:$24 sps:$4 sm:$0xff]  }
 0x3a5   :  { %6618 = vmatprep.subr.bf16.mxu1 %v16507_v52  ;;  %v14096_v52 = vld [vmem:[#allocation6 + $0x1b4] ss:$24 sps:$4 sm:$0xff]  }
 0x3a6   :  { %4468 = vmatpush1.bf16.msra.mxu0 %v14075_v11 }
 0x3a7   :  { %4469 = vmatprep.subr.bf16.mxu0 %v14078_v22  ;;  %6596 = vmatmul.mubr.bf16.gmra.mrb[128].mxu1 %v13531_v1 }
 0x3a8   :  { %6605 = vmatprep.mubr.bf16.mxu1 %v13152_v15  ;;  %6619 = vmatpush1.bf16.msra.mxu1 %v16508_v20  ;;  %v14104_v20 = vld [vmem:[#allocation6 + $0x1e4] ss:$24 sps:$4 sm:$0xff]  }
 0x3a9   :  { %6620 = vmatprep.subr.bf16.mxu1 %v13740_v45  ;;  %16510 = vst [vmem:[#allocation60_spill] sm:$0xff] %v14104_v20  ;;  %v16511_v45 = vld [vmem:[#allocation94_spill] sm:$0xff] }
 0x3aa   :  { %4470 = vmatpush1.bf16.msra.mxu0 %v14083_v29 }
 0x3ab   :  { %4471 = vmatprep.subr.bf16.mxu0 %v14086_v13 }
 0x3ac   :  { %6621 = vmatpush1.bf16.msra.mxu1 %v13746_v31  ;;  %v14111_v31 = vld [vmem:[#allocation6 + $0x1e0] ss:$24 sps:$4 sm:$0xff]  }
 0x3ad   :  { %6622 = vmatprep.subr.bf16.mxu1 %v16509_v34  ;;  %16513 = vst [vmem:[#allocation101_spill] sm:$0xff] %v14111_v31  ;;  %v14114_v34 = vld [vmem:[#allocation6 + $0x214] ss:$24 sps:$4 sm:$0xff]  }
 0x3ae   :  { %4472 = vmatpush1.bf16.msra.mxu0 %v14093_v7  ;;  %16514 = vst [vmem:[#allocation102_spill] sm:$0xff] %v14114_v34 }
 0x3af   :  { %4473 = vmatprep.subr.bf16.mxu0 %v14096_v52  ;;  %6606 = vmatmul.mubr.bf16.gmra.mrb[132].mxu1 %v13146_v51 }
 0x3b0   :  { %6623 = vmatpush1.bf16.msra.mxu1 %v16511_v45  ;;  %6646 = vmatprep.mubr.bf16.mxu1 %v13282_v35  ;;  %v14122_v45 = vld [vmem:[#allocation6 + $0x244] ss:$24 sps:$4 sm:$0xff]  }
 0x3b1   :  { %6624 = vmatprep.subr.bf16.mxu1 %v16512_v24  ;;  %16517 = vst [vmem:[#allocation94_spill] sm:$0xff] %v14122_v45  ;;  %v16518_v35 = vld [vmem:[#allocation67_spill] sm:$0xff] }
 0x3b2   :  { %4474 = vmatpush1.bf16.msra.mxu0 %v14101_v41  ;;  %v16519_v24 = vld [vmem:[#allocation95_spill] sm:$0xff] }
 0x3b3   :  { %4475 = vmatprep.subr.bf16.mxu0 %v14104_v20  ;;  %v16540_v20 = vld [vmem:[#allocation91_spill] sm:$0xff] }
 0x3b4   :  { %6625 = vmatpush1.bf16.msra.mxu1 %v13764_v47  ;;  %v14130_v47 = vld [vmem:[#allocation6 + $0x274] ss:$24 sps:$4 sm:$0xff]  }
 0x3b5   :  { %6626 = vmatprep.subr.bf16.mxu1 %v16515_v44  ;;  %16521 = vst [vmem:[#allocation24_spill] sm:$0xff] %v14130_v47  ;;  %v16523_v44 = vld [vmem:[#allocation68_spill] sm:$0xff] }
 0x3b6   :  { %4476 = vmatpush1.bf16.msra.mxu0 %v14111_v31  ;;  %v16522_v31 = vld [vmem:[#allocation26_spill] sm:$0xff] }
 0x3b7   :  { %4477 = vmatprep.subr.bf16.mxu0 %v14114_v34  ;;  %v14135_v34 = vld [vmem:[#allocation6 + $0x270] ss:$24 sps:$4 sm:$0xff]  }
 0x3b8   :  { %6627 = vmatpush1.bf16.msra.mxu1 %v16518_v35  ;;  %16524 = vst [vmem:[#allocation67_spill] sm:$0xff] %v14135_v34  ;;  %v14138_v35 = vld [vmem:[#allocation6 + $0x2a4] ss:$24 sps:$4 sm:$0xff]  }
 0x3b9   :  { %6628 = vmatprep.subr.bf16.mxu1 %v16519_v24  ;;  %16525 = vst [vmem:[#allocation95_spill] sm:$0xff] %v14138_v35  ;;  %v16527_v24 = vld [vmem:[#allocation105_spill] sm:$0xff] }
 0x3ba   :  { %4478 = vmatpush1.bf16.msra.mxu0 %v14119_v5  ;;  %v16526_v5 = vld [vmem:[#allocation96_spill] sm:$0xff] }
 0x3bb   :  { %4479 = vmatprep.subr.bf16.mxu0 %v14122_v45  ;;  %v14143_v45 = vld [vmem:[#allocation6 + $0x2a0] ss:$24 sps:$4 sm:$0xff]  }
 0x3bc   :  { %6629 = vmatpush1.bf16.msra.mxu1 %v16522_v31  ;;  %16528 = vst [vmem:[#allocation26_spill] sm:$0xff] %v14143_v45  ;;  %v14146_v31 = vld [vmem:[#allocation6 + $0x2d4] ss:$24 sps:$4 sm:$0xff]  }
 0x3bd   :  { %6630 = vmatprep.subr.bf16.mxu1 %v16523_v44  ;;  %16529 = vst [vmem:[#allocation68_spill] sm:$0xff] %v14146_v31  ;;  %v16531_v44 = vld [vmem:[#allocation30_spill] sm:$0xff] }
 0x3be   :  { %4480 = vmatpush1.bf16.msra.mxu0 %v14127_v43  ;;  %v16530_v43 = vld [vmem:[#allocation69_spill] sm:$0xff] }
 0x3bf   :  { %4481 = vmatprep.subr.bf16.mxu0 %v14130_v47  ;;  %v14151_v47 = vld [vmem:[#allocation6 + $0x2d0] ss:$24 sps:$4 sm:$0xff]  }
 0x3c0   :  { %6631 = vmatpush1.bf16.msra.mxu1 %v16526_v5  ;;  %16532 = vst [vmem:[#allocation96_spill] sm:$0xff] %v14151_v47  ;;  %v14154_v5 = vld [vmem:[#allocation6 + $0x304] ss:$24 sps:$4 sm:$0xff]  }
 0x3c1   :  { %6632 = vmatprep.subr.bf16.mxu1 %v16527_v24  ;;  %16533 = vst [vmem:[#allocation105_spill] sm:$0xff] %v14154_v5  ;;  %v16535_v24 = vld [vmem:[#allocation71_spill] sm:$0xff] }
 0x3c2   :  { %4482 = vmatpush1.bf16.msra.mxu0 %v14135_v34  ;;  %v16534_v34 = vld [vmem:[#allocation70_spill] sm:$0xff] }
 0x3c3   :  { %4483 = vmatprep.subr.bf16.mxu0 %v14138_v35  ;;  %v14159_v35 = vld [vmem:[#allocation6 + $0x300] ss:$24 sps:$4 sm:$0xff]  }
 0x3c4   :  { %6633 = vmatpush1.bf16.msra.mxu1 %v16530_v43  ;;  %16536 = vst [vmem:[#allocation69_spill] sm:$0xff] %v14159_v35  ;;  %v14162_v43 = vld [vmem:[#allocation6 + $0x334] ss:$24 sps:$4 sm:$0xff]  }
 0x3c5   :  { %6634 = vmatprep.subr.bf16.mxu1 %v16531_v44  ;;  %16537 = vst [vmem:[#allocation30_spill] sm:$0xff] %v14162_v43  ;;  %v16539_v44 = vld [vmem:[#allocation35_spill] sm:$0xff] }
 0x3c6   :  { %4484 = vmatpush1.bf16.msra.mxu0 %v14143_v45  ;;  %v16538_v45 = vld [vmem:[#allocation34_spill] sm:$0xff] }
 0x3c7   :  { %4485 = vmatprep.subr.bf16.mxu0 %v14146_v31  ;;  %v14168_v31 = vld [vmem:[#allocation6 + $0x330] ss:$24 sps:$4 sm:$0xff]  }
 0x3c8   :  { %6635 = vmatpush1.bf16.msra.mxu1 %v16534_v34  ;;  %16541 = vst [vmem:[#allocation70_spill] sm:$0xff] %v14168_v31  ;;  %v16542_v34 = vld [vmem:[#allocation72_spill] sm:$0xff] }
 0x3c9   :  { %6636 = vmatprep.subr.bf16.mxu1 %v16535_v24  ;;  %v14172_v24 = vld [vmem:[#allocation6 + $0x364] ss:$24 sps:$4 sm:$0xff]  }
 0x3ca   :  { %4486 = vmatpush1.bf16.msra.mxu0 %v14151_v47  ;;  %16543 = vst [vmem:[#allocation71_spill] sm:$0xff] %v14172_v24  ;;  %v16544_v47 = vld [vmem:[#allocation73_spill] sm:$0xff] }
 0x3cb   :  { %4516 = vmatprep.subr.bf16.mxu0 %v14154_v5  ;;  %v16545_v5 = vld [vmem:[#allocation38_spill] sm:$0xff] }
 0x3cc   :  { %6637 = vmatpush1.bf16.msra.mxu1 %v16538_v45  ;;  %v14177_v45 = vld [vmem:[#allocation6 + $0x360] ss:$24 sps:$4 sm:$0xff]  }
 0x3cd   :  { %4488 = vmatmul.mubr.bf16.vlgmr.msra.gmra.mrb[124].mxu0 %v16539_v44  ;;  %6638 = vmatprep.subr.bf16.mxu1 %v16542_v34  ;;  %16546 = vst [vmem:[#allocation34_spill] sm:$0xff] %v14177_v45  ;;  %v16549_v44 = vld [vmem:[#allocation63_spill] sm:$0xff]  ;;  %v16550_v34 = vld [vmem:[#allocation64_spill] sm:$0xff] }
 0x3ce   :  { %4497 = vmatprep.mubr.bf16.mxu0 %v16540_v20  ;;  %4517 = vmatpush1.bf16.msra.mxu0 %v14159_v35  ;;  %v14180_v20 = vld [vmem:[#allocation6 + $0x394] ss:$24 sps:$4 sm:$0xff]  }
 0x3cf   :  { %4518 = vmatprep.subr.bf16.mxu0 %v14162_v43  ;;  %16547 = vst [vmem:[#allocation72_spill] sm:$0xff] %v14180_v20  ;;  %v16548_v35 = vld [vmem:[#allocation74_spill] sm:$0xff] }
 0x3d0   :  { %6639 = vmatpush1.bf16.msra.mxu1 %v16544_v47  ;;  %v14186_v43 = vld [vmem:[#allocation6 + $0x390] ss:$24 sps:$4 sm:$0xff]   ;;  %v16551_v47 = vld [vmem:[#allocation75_spill] sm:$0xff] }
 0x3d1   :  { %6640 = vmatprep.subr.bf16.mxu1 %v16545_v5  ;;  %v14190_v5 = vld [vmem:[#allocation6 + $0x3c4] ss:$24 sps:$4 sm:$0xff]  }
 0x3d2   :  { %4519 = vmatpush1.bf16.msra.mxu0 %v14168_v31  ;;  %v16552_v31 = vld [vmem:[#allocation41_spill] sm:$0xff] }
 0x3d3   :  { %4520 = vmatprep.subr.bf16.mxu0 %v14172_v24  ;;  %v14198_v24 = vld [vmem:[#allocation6 + $0x3f4] ss:$24 sps:$4 sm:$0xff]  }
 0x3d4   :  { %6641 = vmatpush1.bf16.msra.mxu1 %v16548_v35  ;;  %v14195_v35 = vld [vmem:[#allocation6 + $0x3c0] ss:$24 sps:$4 sm:$0xff]   ;;  %16553 = vst [vmem:[#allocation73_spill] sm:$0xff] %v14198_v24 }
 0x3d5   :  { %4498 = vmatmul.mubr.bf16.gmra.mrb[128].mxu0 %v16549_v44  ;;  %6642 = vmatprep.subr.bf16.mxu1 %v16551_v47  ;;  %v16556_v47 = vld [vmem:[#allocation100_spill] sm:$0xff] }
 0x3d6   :  { %4507 = vmatprep.mubr.bf16.mxu0 %v16550_v34  ;;  %4521 = vmatpush1.bf16.msra.mxu0 %v14177_v45  ;;  %v16554_v45 = vld [vmem:[#allocation76_spill] sm:$0xff]  ;;  %v16555_v34 = vld [vmem:[#allocation18_spill] sm:$0xff] }
 0x3d7   :  { %4522 = vmatprep.subr.bf16.mxu0 %v14180_v20  ;;  %v14204_v20 = vld [vmem:[#allocation6 + $0x3f0] ss:$24 sps:$4 sm:$0xff]  }
 0x3d8   :  { %6643 = vmatpush1.bf16.msra.mxu1 %v16552_v31  ;;  %v16557_v31 = vld [vmem:[#allocation42_spill] sm:$0xff] }
 0x3d9   :  { %6644 = vmatprep.subr.bf16.mxu1 %v13846_v60  ;;  %v14208_v60 = vld [vmem:[#allocation6 + $0x424] ss:$24 sps:$4 sm:$0xff]  }
 0x3da   :  { %4523 = vmatpush1.bf16.msra.mxu0 %v14186_v43 }
 0x3db   :  { %4524 = vmatprep.subr.bf16.mxu0 %v14190_v5 }
 0x3dc   :  { %6645 = vmatpush1.bf16.msra.mxu1 %v16554_v45  ;;  %v14215_v45 = vld [vmem:[#allocation6 + $0x420] ss:$24 sps:$4 sm:$0xff]  }
 0x3dd   :  { %4508 = vmatmul.mubr.bf16.gmra.mrb[132].mxu0 %v16555_v34  ;;  %6675 = vmatprep.subr.bf16.mxu1 %v16557_v31  ;;  %v16558_v31 = vld [vmem:[#allocation77_spill] sm:$0xff] }
 0x3de   :  { %4525 = vmatpush1.bf16.msra.mxu0 %v14195_v35  ;;  %4548 = vmatprep.mubr.bf16.mxu0 %v16556_v47  ;;  %v14218_v47 = vld [vmem:[#allocation6 + $0x454] ss:$24 sps:$4 sm:$0xff]  }
 0x3df   :  { %4526 = vmatprep.subr.bf16.mxu0 %v14198_v24  ;;  %6647 = vmatmul.mubr.bf16.vlgmr.msra.gmra.mrb[136].mxu1 %v13277_v18  ;;  %v16559_v24 = vld [vmem:[#allocation43_spill] sm:$0xff]  ;;  %v14223_v18 = vld [vmem:[#allocation6 + $0x450] ss:$24 sps:$4 sm:$0xff]  }
 0x3e0   :  { %6656 = vmatprep.mubr.bf16.mxu1 %v13390_v0  ;;  %6676 = vmatpush1.bf16.msra.mxu1 %v13859_v14  ;;  %v14226_v14 = vld [vmem:[#allocation6 + $0x484] ss:$24 sps:$4 sm:$0xff]   ;;  %v14275_v0 = vld [vmem:[#allocation6 + $0x570] ss:$24 sps:$4 sm:$0xff]  }
 0x3e1   :  { %6677 = vmatprep.subr.bf16.mxu1 %v13862_v25  ;;  %v14233_v25 = vld [vmem:[#allocation6 + $0x480] ss:$24 sps:$4 sm:$0xff]  }
 0x3e2   :  { %4527 = vmatpush1.bf16.msra.mxu0 %v14204_v20 }
 0x3e3   :  { %4528 = vmatprep.subr.bf16.mxu0 %v14208_v60 }
 0x3e4   :  { %6678 = vmatpush1.bf16.msra.mxu1 %v16558_v31  ;;  %v16560_v31 = vld [vmem:[#allocation78_spill] sm:$0xff] }
 0x3e5   :  { %6679 = vmatprep.subr.bf16.mxu1 %v16559_v24  ;;  %v14236_v24 = vld [vmem:[#allocation6 + $0x4b4] ss:$24 sps:$4 sm:$0xff]  }
 0x3e6   :  { %4529 = vmatpush1.bf16.msra.mxu0 %v14215_v45 }
 0x3e7   :  { %4530 = vmatprep.subr.bf16.mxu0 %v14218_v47  ;;  %6657 = vmatmul.mubr.bf16.gmra.mrb[140].mxu1 %v13402_v26  ;;  %v14241_v26 = vld [vmem:[#allocation6 + $0x4b0] ss:$24 sps:$4 sm:$0xff]  }
 0x3e8   :  { %6666 = vmatprep.mubr.bf16.mxu1 %v13410_v39  ;;  %6680 = vmatpush1.bf16.msra.mxu1 %v13877_v54  ;;  %v14244_v54 = vld [vmem:[#allocation6 + $0x4e4] ss:$24 sps:$4 sm:$0xff]  }
 0x3e9   :  { %6681 = vmatprep.subr.bf16.mxu1 %v13880_v16  ;;  %v16561_v16 = vld [vmem:[#allocation44_spill] sm:$0xff]  ;;  %v16562_v39 = vld [vmem:[#allocation79_spill] sm:$0xff] }
 0x3ea   :  { %4531 = vmatpush1.bf16.msra.mxu0 %v14223_v18 }
 0x3eb   :  { %4532 = vmatprep.subr.bf16.mxu0 %v14226_v14 }
 0x3ec   :  { %6682 = vmatpush1.bf16.msra.mxu1 %v13886_v37  ;;  %v14251_v37 = vld [vmem:[#allocation6 + $0x4e0] ss:$24 sps:$4 sm:$0xff]  }
 0x3ed   :  { %6683 = vmatprep.subr.bf16.mxu1 %v16560_v31  ;;  %v14254_v31 = vld [vmem:[#allocation6 + $0x514] ss:$24 sps:$4 sm:$0xff]  }
 0x3ee   :  { %4533 = vmatpush1.bf16.msra.mxu0 %v14233_v25 }
 0x3ef   :  { %4534 = vmatprep.subr.bf16.mxu0 %v14236_v24  ;;  %6667 = vmatmul.mubr.bf16.gmra.mrb[144].mxu1 %v13406_v3  ;;  %v14259_v3 = vld [vmem:[#allocation6 + $0x510] ss:$24 sps:$4 sm:$0xff]  }
 0x3f0   :  { %6684 = vmatpush1.bf16.msra.mxu1 %v16561_v16  ;;  %6707 = vmatprep.mubr.bf16.mxu1 %v13050_v61  ;;  %16563 = vst [vmem:[#allocation38_spill] sm:$0xff] %v14259_v3  ;;  %v14262_v16 = vld [vmem:[#allocation6 + $0x544] ss:$24 sps:$4 sm:$0xff]   ;;  %v14267_v61 = vld [vmem:[#allocation6 + $0x540] ss:$24 sps:$4 sm:$0xff]  }
 0x3f1   :  { %6685 = vmatprep.subr.bf16.mxu1 %v16562_v39  ;;  %16564 = vst [vmem:[#allocation74_spill] sm:$0xff] %v14262_v16  ;;  %v16565_v39 = vld [vmem:[#allocation45_spill] sm:$0xff] }
 0x3f2   :  { %4535 = vmatpush1.bf16.msra.mxu0 %v14241_v26 }
 0x3f3   :  { %4536 = vmatprep.subr.bf16.mxu0 %v14244_v54 }
 0x3f4   :  { %6686 = vmatpush1.bf16.msra.mxu1 %v13904_v55  ;;  %v14270_v55 = vld [vmem:[#allocation6 + $0x574] ss:$24 sps:$4 sm:$0xff]  }
 0x3f5   :  { %6687 = vmatprep.subr.bf16.mxu1 %v13908_v38  ;;  %v16566_v38 = vld [vmem:[#allocation80_spill] sm:$0xff] }
 0x3f6   :  { %4537 = vmatpush1.bf16.msra.mxu0 %v14251_v37 }
 0x3f7   :  { %4538 = vmatprep.subr.bf16.mxu0 %v14254_v31 }
 0x3f8   :  { %6688 = vmatpush1.bf16.msra.mxu1 %v13915_v9  ;;  %v14278_v9 = vld [vmem:[#allocation6 + $0x5a4] ss:$24 sps:$4 sm:$0xff]  }
 0x3f9   :  { %6689 = vmatprep.subr.bf16.mxu1 %v16565_v39  ;;  %16567 = vst [vmem:[#allocation63_spill] sm:$0xff] %v14278_v9  ;;  %v16569_v39 = vld [vmem:[#allocation81_spill] sm:$0xff] }
 0x3fa   :  { %4539 = vmatpush1.bf16.msra.mxu0 %v14259_v3  ;;  %v16568_v3 = vld [vmem:[#allocation46_spill] sm:$0xff] }
 0x3fb   :  { %4540 = vmatprep.subr.bf16.mxu0 %v14262_v16  ;;  %v14283_v16 = vld [vmem:[#allocation6 + $0x5a0] ss:$24 sps:$4 sm:$0xff]  }
 0x3fc   :  { %6690 = vmatpush1.bf16.msra.mxu1 %v13923_v23  ;;  %16570 = vst [vmem:[#allocation75_spill] sm:$0xff] %v14283_v16  ;;  %v14286_v23 = vld [vmem:[#allocation6 + $0x5d4] ss:$24 sps:$4 sm:$0xff]  }
 0x3fd   :  { %6691 = vmatprep.subr.bf16.mxu1 %v16566_v38  ;;  %16571 = vst [vmem:[#allocation41_spill] sm:$0xff] %v14286_v23  ;;  %v14291_v38 = vld [vmem:[#allocation6 + $0x5d0] ss:$24 sps:$4 sm:$0xff]  }
 0x3fe   :  { %4541 = vmatpush1.bf16.msra.mxu0 %v14267_v61 }
 0x3ff   :  { %4542 = vmatprep.subr.bf16.mxu0 %v14270_v55 }
 0x400   :  { %6692 = vmatpush1.bf16.msra.mxu1 %v16568_v3  ;;  %v14294_v3 = vld [vmem:[#allocation6 + $0xc] ss:$24 sps:$4 sm:$0xff]  }
 0x401   :  { %6693 = vmatprep.subr.bf16.mxu1 %v16569_v39  ;;  %v16572_v39 = vld [vmem:[#allocation82_spill] sm:$0xff] }
 0x402   :  { %4543 = vmatpush1.bf16.msra.mxu0 %v14275_v0 }
 0x403   :  { %4544 = vmatprep.subr.bf16.mxu0 %v14278_v9  ;;  %v14299_v9 = vld [vmem:[#allocation6 + $0x8] ss:$24 sps:$4 sm:$0xff]  }
 0x404   :  { %6694 = vmatpush1.bf16.msra.mxu1 %v13941_v10  ;;  %v14302_v10 = vld [vmem:[#allocation6 + $0x3c] ss:$24 sps:$4 sm:$0xff]  }
 0x405   :  { %6695 = vmatprep.subr.bf16.mxu1 %v13944_v42  ;;  %v16573_v42 = vld [vmem:[#allocation99_spill] sm:$0xff] }
 0x406   :  { %4545 = vmatpush1.bf16.msra.mxu0 %v14283_v16  ;;  %v16574_v16 = vld [vmem:[#allocation56_spill] sm:$0xff] }
 0x407   :  { %4546 = vmatprep.subr.bf16.mxu0 %v14286_v23  ;;  %v14308_v23 = vld [vmem:[#allocation6 + $0x38] ss:$24 sps:$4 sm:$0xff]  }
 0x408   :  { %6696 = vmatpush1.bf16.msra.mxu1 %v13951_v48  ;;  %v14312_v48 = vld [vmem:[#allocation6 + $0x6c] ss:$24 sps:$4 sm:$0xff]  }
 0x409   :  { %6697 = vmatprep.subr.bf16.mxu1 %v16572_v39  ;;  %v14320_v39 = vld [vmem:[#allocation6 + $0x9c] ss:$24 sps:$4 sm:$0xff]  }
 0x40a   :  { %4547 = vmatpush1.bf16.msra.mxu0 %v14291_v38 }
 0x40b   :  { %4577 = vmatprep.subr.bf16.mxu0 %v14294_v3 }
 0x40c   :  { %6698 = vmatpush1.bf16.msra.mxu1 %v13967_v50  ;;  %v14317_v50 = vld [vmem:[#allocation6 + $0x68] ss:$24 sps:$4 sm:$0xff]  }
 0x40d   :  { %4549 = vmatmul.mubr.bf16.vlgmr.msra.gmra.mrb[124].mxu0 %v16573_v42  ;;  %6699 = vmatprep.subr.bf16.mxu1 %v13970_v33  ;;  %v16576_v33 = vld [vmem:[#allocation57_spill] sm:$0xff]  ;;  %v14326_v42 = vld [vmem:[#allocation6 + $0x98] ss:$24 sps:$4 sm:$0xff]  }
 0x40e   :  { %4558 = vmatprep.mubr.bf16.mxu0 %v16574_v16  ;;  %4578 = vmatpush1.bf16.msra.mxu0 %v14299_v9  ;;  %v16575_v16 = vld [vmem:[#allocation27_spill] sm:$0xff] }
 0x40f   :  { %4579 = vmatprep.subr.bf16.mxu0 %v14302_v10 }
 0x410   :  { %6700 = vmatpush1.bf16.msra.mxu1 %v13975_v40  ;;  %v14330_v40 = vld [vmem:[#allocation6 + $0xcc] ss:$24 sps:$4 sm:$0xff]  }
 0x411   :  { %6701 = vmatprep.subr.bf16.mxu1 %v13980_v2  ;;  %v14335_v2 = vld [vmem:[#allocation6 + $0xc8] ss:$24 sps:$4 sm:$0xff]  }
 0x412   :  { %4580 = vmatpush1.bf16.msra.mxu0 %v14308_v23 }
 0x413   :  { %4581 = vmatprep.subr.bf16.mxu0 %v14312_v48 }
 0x414   :  { %6702 = vmatpush1.bf16.msra.mxu1 %v13991_v49  ;;  %v14338_v49 = vld [vmem:[#allocation6 + $0xfc] ss:$24 sps:$4 sm:$0xff]  }
 0x415   :  { %4559 = vmatmul.mubr.bf16.gmra.mrb[128].mxu0 %v16575_v16  ;;  %6703 = vmatprep.subr.bf16.mxu1 %v13994_v56  ;;  %v14344_v56 = vld [vmem:[#allocation6 + $0xf8] ss:$24 sps:$4 sm:$0xff]  }
 0x416   :  { %4568 = vmatprep.mubr.bf16.mxu0 %v16576_v33  ;;  %4582 = vmatpush1.bf16.msra.mxu0 %v14317_v50  ;;  %v16577_v33 = vld [vmem:[#allocation29_spill] sm:$0xff] }
 0x417   :  { %4583 = vmatprep.subr.bf16.mxu0 %v14320_v39 }
 0x418   :  { %6704 = vmatpush1.bf16.msra.mxu1 %v13999_v8  ;;  %v14348_v8 = vld [vmem:[#allocation6 + $0x12c] ss:$24 sps:$4 sm:$0xff]  }
 0x419   :  { %6705 = vmatprep.subr.bf16.mxu1 %v14004_v32  ;;  %v14355_v32 = vld [vmem:[#allocation6 + $0x128] ss:$24 sps:$4 sm:$0xff]  }
 0x41a   :  { %4584 = vmatpush1.bf16.msra.mxu0 %v14326_v42 }
 0x41b   :  { %4585 = vmatprep.subr.bf16.mxu0 %v14330_v40 }
 0x41c   :  { %6706 = vmatpush1.bf16.msra.mxu1 %v14011_v27  ;;  %v14358_v27 = vld [vmem:[#allocation6 + $0x15c] ss:$24 sps:$4 sm:$0xff]  }
 0x41d   :  { %4569 = vmatmul.mubr.bf16.gmra.mrb[132].mxu0 %v16577_v33  ;;  %6736 = vmatprep.subr.bf16.mxu1 %v14014_v63  ;;  %v14363_v63 = vld [vmem:[#allocation6 + $0x158] ss:$24 sps:$4 sm:$0xff]  }
 0x41e   :  { %4586 = vmatpush1.bf16.msra.mxu0 %v14335_v2  ;;  %4609 = vmatprep.mubr.bf16.mxu0 %v16506_v36  ;;  %v16591_v33 = vld [vmem:[#allocation91_spill] sm:$0xff] }
 0x41f   :  { %4587 = vmatprep.subr.bf16.mxu0 %v14338_v49  ;;  %6708 = vmatmul.mubr.bf16.vlgmr.msra.gmra.mrb[136].mxu1 %v13043_v4  ;;  %v16589_v4 = vld [vmem:[#allocation103_spill] sm:$0xff] }
 0x420   :  { %6717 = vmatprep.mubr.bf16.mxu1 %v13516_v62  ;;  %6737 = vmatpush1.bf16.msra.mxu1 %v14019_v58  ;;  %v14366_v58 = vld [vmem:[#allocation6 + $0x18c] ss:$24 sps:$4 sm:$0xff]   ;;  %v14439_v62 = vld [vmem:[#allocation6 + $0x10] ss:$24 sps:$4 sm:$0xff]  }
 0x421   :  { %6738 = vmatprep.subr.bf16.mxu1 %v14022_v57  ;;  %v14373_v57 = vld [vmem:[#allocation6 + $0x188] ss:$24 sps:$4 sm:$0xff]   ;;  %16587 = vst [vmem:[#allocation44_spill] sm:$0xff] %v14439_v62 }
 0x422   :  { %4588 = vmatpush1.bf16.msra.mxu0 %v14344_v56 }
 0x423   :  { %4589 = vmatprep.subr.bf16.mxu0 %v14348_v8 }
 0x424   :  { %6739 = vmatpush1.bf16.msra.mxu1 %v14028_v59  ;;  %v14376_v59 = vld [vmem:[#allocation6 + $0x1bc] ss:$24 sps:$4 sm:$0xff]  }
 0x425   :  { %6740 = vmatprep.subr.bf16.mxu1 %v14032_v53  ;;  %v14381_v53 = vld [vmem:[#allocation6 + $0x1b8] ss:$24 sps:$4 sm:$0xff]  }
 0x426   :  { %4590 = vmatpush1.bf16.msra.mxu0 %v14355_v32 }
 0x427   :  { %4591 = vmatprep.subr.bf16.mxu0 %v14358_v27  ;;  %6718 = vmatmul.mubr.bf16.gmra.mrb[140].mxu1 %v13531_v1  ;;  %v16585_v1 = vld [vmem:[#allocation101_spill] sm:$0xff] }
 0x428   :  { %6727 = vmatprep.mubr.bf16.mxu1 %v13152_v15  ;;  %6741 = vmatpush1.bf16.msra.mxu1 %v14037_v17  ;;  %v14384_v17 = vld [vmem:[#allocation6 + $0x1ec] ss:$24 sps:$4 sm:$0xff]   ;;  %v14431_v15 = vld [vmem:[#allocation6 + $0x2d8] ss:$24 sps:$4 sm:$0xff]  }
 0x429   :  { %6742 = vmatprep.subr.bf16.mxu1 %v14040_v6  ;;  %v16578_v6 = vld [vmem:[#allocation59_spill] sm:$0xff]  ;;  %16583 = vst [vmem:[#allocation43_spill] sm:$0xff] %v14431_v15 }
 0x42a   :  { %4592 = vmatpush1.bf16.msra.mxu0 %v14363_v63 }
 0x42b   :  { %4593 = vmatprep.subr.bf16.mxu0 %v14366_v58 }
 0x42c   :  { %6743 = vmatpush1.bf16.msra.mxu1 %v14046_v28  ;;  %v14391_v28 = vld [vmem:[#allocation6 + $0x1e8] ss:$24 sps:$4 sm:$0xff]  }
 0x42d   :  { %6744 = vmatprep.subr.bf16.mxu1 %v14050_v12  ;;  %v14394_v12 = vld [vmem:[#allocation6 + $0x21c] ss:$24 sps:$4 sm:$0xff]  }
 0x42e   :  { %4594 = vmatpush1.bf16.msra.mxu0 %v14373_v57 }
 0x42f   :  { %4595 = vmatprep.subr.bf16.mxu0 %v14376_v59  ;;  %6728 = vmatmul.mubr.bf16.gmra.mrb[144].mxu1 %v13146_v51  ;;  %v14399_v51 = vld [vmem:[#allocation6 + $0x218] ss:$24 sps:$4 sm:$0xff]  }
 0x430   :  { %6745 = vmatpush1.bf16.msra.mxu1 %v14055_v46  ;;  %6768 = vmatprep.mubr.bf16.mxu1 %v16578_v6  ;;  %v14402_v46 = vld [vmem:[#allocation6 + $0x24c] ss:$24 sps:$4 sm:$0xff]  }
 0x431   :  { %6746 = vmatprep.subr.bf16.mxu1 %v14058_v21  ;;  %v14407_v21 = vld [vmem:[#allocation6 + $0x248] ss:$24 sps:$4 sm:$0xff]  }
 0x432   :  { %4596 = vmatpush1.bf16.msra.mxu0 %v14381_v53 }
 0x433   :  { %4597 = vmatprep.subr.bf16.mxu0 %v14384_v17 }
 0x434   :  { %6747 = vmatpush1.bf16.msra.mxu1 %v14064_v30  ;;  %v14410_v30 = vld [vmem:[#allocation6 + $0x27c] ss:$24 sps:$4 sm:$0xff]  }
 0x435   :  { %6748 = vmatprep.subr.bf16.mxu1 %v14068_v19  ;;  %v14415_v19 = vld [vmem:[#allocation6 + $0x278] ss:$24 sps:$4 sm:$0xff]  }
 0x436   :  { %4598 = vmatpush1.bf16.msra.mxu0 %v14391_v28 }
 0x437   :  { %4599 = vmatprep.subr.bf16.mxu0 %v14394_v12 }
 0x438   :  { %6749 = vmatpush1.bf16.msra.mxu1 %v14075_v11  ;;  %v14418_v11 = vld [vmem:[#allocation6 + $0x2ac] ss:$24 sps:$4 sm:$0xff]  }
 0x439   :  { %6750 = vmatprep.subr.bf16.mxu1 %v14078_v22  ;;  %16579 = vst [vmem:[#allocation76_spill] sm:$0xff] %v14418_v11  ;;  %v14423_v22 = vld [vmem:[#allocation6 + $0x2a8] ss:$24 sps:$4 sm:$0xff]  }
 0x43a   :  { %4600 = vmatpush1.bf16.msra.mxu0 %v14399_v51  ;;  %16580 = vst [vmem:[#allocation42_spill] sm:$0xff] %v14423_v22 }
 0x43b   :  { %4601 = vmatprep.subr.bf16.mxu0 %v14402_v46 }
 0x43c   :  { %6751 = vmatpush1.bf16.msra.mxu1 %v14083_v29  ;;  %v14426_v29 = vld [vmem:[#allocation6 + $0x2dc] ss:$24 sps:$4 sm:$0xff]  }
 0x43d   :  { %6752 = vmatprep.subr.bf16.mxu1 %v14086_v13  ;;  %16581 = vst [vmem:[#allocation77_spill] sm:$0xff] %v14426_v29  ;;  %v16582_v13 = vld [vmem:[#allocation60_spill] sm:$0xff] }
 0x43e   :  { %4602 = vmatpush1.bf16.msra.mxu0 %v14407_v21 }
 0x43f   :  { %4603 = vmatprep.subr.bf16.mxu0 %v14410_v30 }
 0x440   :  { %6753 = vmatpush1.bf16.msra.mxu1 %v14093_v7  ;;  %v14434_v7 = vld [vmem:[#allocation6 + $0x14] ss:$24 sps:$4 sm:$0xff]  }
 0x441   :  { %6754 = vmatprep.subr.bf16.mxu1 %v14096_v52  ;;  %16584 = vst [vmem:[#allocation78_spill] sm:$0xff] %v14434_v7  ;;  %v16586_v52 = vld [vmem:[#allocation102_spill] sm:$0xff] }
 0x442   :  { %4604 = vmatpush1.bf16.msra.mxu0 %v14415_v19 }
 0x443   :  { %4605 = vmatprep.subr.bf16.mxu0 %v14418_v11  ;;  %v14478_v11 = vld [vmem:[#allocation6 + $0x104] ss:$24 sps:$4 sm:$0xff]  }
 0x444   :  { %6755 = vmatpush1.bf16.msra.mxu1 %v14101_v41  ;;  %v14442_v41 = vld [vmem:[#allocation6 + $0x44] ss:$24 sps:$4 sm:$0xff]   ;;  %16607 = vst [vmem:[#allocation60_spill] sm:$0xff] %v14478_v11 }
 0x445   :  { %6756 = vmatprep.subr.bf16.mxu1 %v16582_v13  ;;  %16588 = vst [vmem:[#allocation79_spill] sm:$0xff] %v14442_v41  ;;  %v16590_v13 = vld [vmem:[#allocation35_spill] sm:$0xff] }
 0x446   :  { %4606 = vmatpush1.bf16.msra.mxu0 %v14423_v22  ;;  %v14460_v22 = vld [vmem:[#allocation6 + $0xa4] ss:$24 sps:$4 sm:$0xff]  }
 0x447   :  { %4607 = vmatprep.subr.bf16.mxu0 %v14426_v29  ;;  %v14448_v29 = vld [vmem:[#allocation6 + $0x40] ss:$24 sps:$4 sm:$0xff]   ;;  %16598 = vst [vmem:[#allocation81_spill] sm:$0xff] %v14460_v22 }
 0x448   :  { %6757 = vmatpush1.bf16.msra.mxu1 %v16585_v1  ;;  %16592 = vst [vmem:[#allocation45_spill] sm:$0xff] %v14448_v29  ;;  %v16593_v1 = vld [vmem:[#allocation94_spill] sm:$0xff] }
 0x449   :  { %6758 = vmatprep.subr.bf16.mxu1 %v16586_v52  ;;  %v14452_v52 = vld [vmem:[#allocation6 + $0x74] ss:$24 sps:$4 sm:$0xff]  }
 0x44a   :  { %4608 = vmatpush1.bf16.msra.mxu0 %v14431_v15  ;;  %16594 = vst [vmem:[#allocation80_spill] sm:$0xff] %v14452_v52  ;;  %v16595_v15 = vld [vmem:[#allocation104_spill] sm:$0xff] }
 0x44b   :  { %4699 = vmatprep.subr.bf16.mxu0 %v14434_v7  ;;  %v16596_v7 = vld [vmem:[#allocation24_spill] sm:$0xff] }
 0x44c   :  { %6759 = vmatpush1.bf16.msra.mxu1 %v16589_v4  ;;  %v14457_v4 = vld [vmem:[#allocation6 + $0x70] ss:$24 sps:$4 sm:$0xff]  }
 0x44d   :  { %4610 = vmatmul.mubr.bf16.vlgmr.msra.gmra.mrb[136].mxu0 %v16590_v13  ;;  %6760 = vmatprep.subr.bf16.mxu1 %v16593_v1  ;;  %16597 = vst [vmem:[#allocation46_spill] sm:$0xff] %v14457_v4  ;;  %v16600_v1 = vld [vmem:[#allocation64_spill] sm:$0xff] }
 0x44e   :  { %4619 = vmatprep.mubr.bf16.mxu0 %v16591_v33  ;;  %4700 = vmatpush1.bf16.msra.mxu0 %v14439_v62  ;;  %v16599_v62 = vld [vmem:[#allocation67_spill] sm:$0xff] }
 0x44f   :  { %4701 = vmatprep.subr.bf16.mxu0 %v14442_v41  ;;  %v14466_v41 = vld [vmem:[#allocation6 + $0xa0] ss:$24 sps:$4 sm:$0xff]  }
 0x450   :  { %6761 = vmatpush1.bf16.msra.mxu1 %v16595_v15  ;;  %16601 = vst [vmem:[#allocation82_spill] sm:$0xff] %v14466_v41  ;;  %v16602_v15 = vld [vmem:[#allocation95_spill] sm:$0xff] }
 0x451   :  { %6762 = vmatprep.subr.bf16.mxu1 %v16596_v7  ;;  %v14470_v7 = vld [vmem:[#allocation6 + $0xd4] ss:$24 sps:$4 sm:$0xff]  }
 0x452   :  { %4702 = vmatpush1.bf16.msra.mxu0 %v14448_v29  ;;  %16603 = vst [vmem:[#allocation27_spill] sm:$0xff] %v14470_v7  ;;  %v16604_v29 = vld [vmem:[#allocation26_spill] sm:$0xff] }
 0x453   :  { %4703 = vmatprep.subr.bf16.mxu0 %v14452_v52  ;;  %v16605_v52 = vld [vmem:[#allocation68_spill] sm:$0xff] }
 0x454   :  { %6763 = vmatpush1.bf16.msra.mxu1 %v16599_v62  ;;  %v14475_v62 = vld [vmem:[#allocation6 + $0xd0] ss:$24 sps:$4 sm:$0xff]  }
 0x455   :  { %4620 = vmatmul.mubr.bf16.gmra.mrb[140].mxu0 %v16549_v44  ;;  %6764 = vmatprep.subr.bf16.mxu1 %v16602_v15  ;;  %16606 = vst [vmem:[#allocation59_spill] sm:$0xff] %v14475_v62  ;;  %v14484_v15 = vld [vmem:[#allocation6 + $0x100] ss:$24 sps:$4 sm:$0xff]  }
 0x456   :  { %4629 = vmatprep.mubr.bf16.mxu0 %v16600_v1  ;;  %4704 = vmatpush1.bf16.msra.mxu0 %v14457_v4  ;;  %v16608_v4 = vld [vmem:[#allocation96_spill] sm:$0xff]  ;;  %16609 = vst [vmem:[#allocation101_spill] sm:$0xff] %v14484_v15 }
 0x457   :  { %4705 = vmatprep.subr.bf16.mxu0 %v14460_v22  ;;  %v16614_v22 = vld [vmem:[#allocation69_spill] sm:$0xff] }
 0x458   :  { %6765 = vmatpush1.bf16.msra.mxu1 %v16604_v29  ;;  %v16610_v29 = vld [vmem:[#allocation105_spill] sm:$0xff] }
 0x459   :  { %6766 = vmatprep.subr.bf16.mxu1 %v16605_v52  ;;  %v14488_v52 = vld [vmem:[#allocation6 + $0x134] ss:$24 sps:$4 sm:$0xff]  }
 0x45a   :  { %4706 = vmatpush1.bf16.msra.mxu0 %v14466_v41  ;;  %16611 = vst [vmem:[#allocation102_spill] sm:$0xff] %v14488_v52  ;;  %v16612_v41 = vld [vmem:[#allocation33_spill] sm:$0xff] }
 0x45b   :  { %4707 = vmatprep.subr.bf16.mxu0 %v14470_v7  ;;  %v16613_v7 = vld [vmem:[#allocation17_spill] sm:$0xff] }
 0x45c   :  { %6767 = vmatpush1.bf16.msra.mxu1 %v16608_v4  ;;  %v16615_v4 = vld [vmem:[#allocation30_spill] sm:$0xff] }
 0x45d   :  { %4630 = vmatmul.mubr.bf16.gmra.mrb[144].mxu0 %v16555_v34  ;;  %6797 = vmatprep.subr.bf16.mxu1 %v16610_v29  ;;  %v16617_v29 = vld [vmem:[#allocation70_spill] sm:$0xff] }
 0x45e   :  { %4708 = vmatpush1.bf16.msra.mxu0 %v14475_v62  ;;  %4731 = vmatprep.mubr.bf16.mxu0 %v16506_v36  ;;  %v14495_v62 = vld [vmem:[#allocation6 + $0x130] ss:$24 sps:$4 sm:$0xff]   ;;  %v14498_v36 = vld [vmem:[#allocation6 + $0x164] ss:$24 sps:$4 sm:$0xff]  }
 0x45f   :  { %4709 = vmatprep.subr.bf16.mxu0 %v14478_v11  ;;  %6769 = vmatmul.mubr.bf16.vlgmr.msra.gmra.mrb[112].mxu1 %v16612_v41  ;;  %16616 = vst [vmem:[#allocation103_spill] sm:$0xff] %v14498_v36  ;;  %v16618_v11 = vld [vmem:[#allocation71_spill] sm:$0xff] }
 0x460   :  { %6778 = vmatprep.mubr.bf16.mxu1 %v16613_v7  ;;  %6798 = vmatpush1.bf16.msra.mxu1 %v16614_v22  ;;  %v14503_v41 = vld [vmem:[#allocation6 + $0x160] ss:$24 sps:$4 sm:$0xff]   ;;  %v14506_v22 = vld [vmem:[#allocation6 + $0x194] ss:$24 sps:$4 sm:$0xff]  }
 0x461   :  { %6799 = vmatprep.subr.bf16.mxu1 %v16615_v4  ;;  %16619 = vst [vmem:[#allocation35_spill] sm:$0xff] %v14503_v41  ;;  %16620 = vst [vmem:[#allocation91_spill] sm:$0xff] %v14506_v22  ;;  %v16622_v4 = vld [vmem:[#allocation20_spill] sm:$0xff]  ;;  %v16623_v7 = vld [vmem:[#allocation34_spill] sm:$0xff] }
 0x462   :  { %4710 = vmatpush1.bf16.msra.mxu0 %v14484_v15  ;;  %v16621_v15 = vld [vmem:[#allocation89_spill] sm:$0xff] }
 0x463   :  { %4711 = vmatprep.subr.bf16.mxu0 %v14488_v52  ;;  %v16624_v52 = vld [vmem:[#allocation72_spill] sm:$0xff] }
 0x464   :  { %6800 = vmatpush1.bf16.msra.mxu1 %v16617_v29  ;;  %v14513_v29 = vld [vmem:[#allocation6 + $0x190] ss:$24 sps:$4 sm:$0xff]  }
 0x465   :  { %6801 = vmatprep.subr.bf16.mxu1 %v16618_v11  ;;  %v14516_v11 = vld [vmem:[#allocation6 + $0x1c4] ss:$24 sps:$4 sm:$0xff]  }
 0x466   :  { %4712 = vmatpush1.bf16.msra.mxu0 %v14495_v62  ;;  %16625 = vst [vmem:[#allocation94_spill] sm:$0xff] %v14516_v11 }
 0x467   :  { %4713 = vmatprep.subr.bf16.mxu0 %v14498_v36  ;;  %6779 = vmatmul.mubr.bf16.gmra.mrb[116].mxu1 %v16621_v15  ;;  %v14521_v36 = vld [vmem:[#allocation6 + $0x1c0] ss:$24 sps:$4 sm:$0xff]  }
 0x468   :  { %6788 = vmatprep.mubr.bf16.mxu1 %v16622_v4  ;;  %6802 = vmatpush1.bf16.msra.mxu1 %v16623_v7  ;;  %v14524_v7 = vld [vmem:[#allocation6 + $0x1f4] ss:$24 sps:$4 sm:$0xff]  }
 0x469   :  { %6803 = vmatprep.subr.bf16.mxu1 %v16624_v52  ;;  %v16627_v52 = vld [vmem:[#allocation98_spill] sm:$0xff] }
 0x46a   :  { %4714 = vmatpush1.bf16.msra.mxu0 %v14503_v41  ;;  %v16626_v41 = vld [vmem:[#allocation92_spill] sm:$0xff] }
 0x46b   :  { %4715 = vmatprep.subr.bf16.mxu0 %v14506_v22  ;;  %v16628_v22 = vld [vmem:[#allocation73_spill] sm:$0xff] }
 0x46c   :  { %6804 = vmatpush1.bf16.msra.mxu1 %v14186_v43  ;;  %v14531_v43 = vld [vmem:[#allocation6 + $0x1f0] ss:$24 sps:$4 sm:$0xff]  }
 0x46d   :  { %6805 = vmatprep.subr.bf16.mxu1 %v14190_v5  ;;  %v14534_v5 = vld [vmem:[#allocation6 + $0x224] ss:$24 sps:$4 sm:$0xff]  }
 0x46e   :  { %4716 = vmatpush1.bf16.msra.mxu0 %v14513_v29 }
 0x46f   :  { %4717 = vmatprep.subr.bf16.mxu0 %v14516_v11  ;;  %6789 = vmatmul.mubr.bf16.gmra.mrb[120].mxu1 %v16626_v41  ;;  %v14539_v11 = vld [vmem:[#allocation6 + $0x220] ss:$24 sps:$4 sm:$0xff]  }
 0x470   :  { %6806 = vmatpush1.bf16.msra.mxu1 %v14195_v35  ;;  %6829 = vmatprep.mubr.bf16.mxu1 %v16627_v52  ;;  %v14542_v35 = vld [vmem:[#allocation6 + $0x254] ss:$24 sps:$4 sm:$0xff]  }
 0x471   :  { %6807 = vmatprep.subr.bf16.mxu1 %v16628_v22  ;;  %v14547_v22 = vld [vmem:[#allocation6 + $0x250] ss:$24 sps:$4 sm:$0xff]  }
 0x472   :  { %4718 = vmatpush1.bf16.msra.mxu0 %v14521_v36 }
 0x473   :  { %4719 = vmatprep.subr.bf16.mxu0 %v14524_v7 }
 0x474   :  { %6808 = vmatpush1.bf16.msra.mxu1 %v14204_v20  ;;  %v14550_v20 = vld [vmem:[#allocation6 + $0x284] ss:$24 sps:$4 sm:$0xff]  }
 0x475   :  { %6809 = vmatprep.subr.bf16.mxu1 %v14208_v60  ;;  %v14555_v60 = vld [vmem:[#allocation6 + $0x280] ss:$24 sps:$4 sm:$0xff]  }
 0x476   :  { %4720 = vmatpush1.bf16.msra.mxu0 %v14531_v43 }
 0x477   :  { %4721 = vmatprep.subr.bf16.mxu0 %v14534_v5 }
 0x478   :  { %6810 = vmatpush1.bf16.msra.mxu1 %v14215_v45  ;;  %v14558_v45 = vld [vmem:[#allocation6 + $0x2b4] ss:$24 sps:$4 sm:$0xff]  }
 0x479   :  { %6811 = vmatprep.subr.bf16.mxu1 %v14218_v47  ;;  %v14563_v47 = vld [vmem:[#allocation6 + $0x2b0] ss:$24 sps:$4 sm:$0xff]  }
 0x47a   :  { %4722 = vmatpush1.bf16.msra.mxu0 %v14539_v11  ;;  %16629 = vst [vmem:[#allocation104_spill] sm:$0xff] %v14563_v47 }
 0x47b   :  { %4723 = vmatprep.subr.bf16.mxu0 %v14542_v35 }
 0x47c   :  { %6812 = vmatpush1.bf16.msra.mxu1 %v14223_v18  ;;  %v14566_v18 = vld [vmem:[#allocation6 + $0x2e4] ss:$24 sps:$4 sm:$0xff]  }
 0x47d   :  { %6813 = vmatprep.subr.bf16.mxu1 %v14226_v14  ;;  %v14571_v14 = vld [vmem:[#allocation6 + $0x2e0] ss:$24 sps:$4 sm:$0xff]  }
 0x47e   :  { %4724 = vmatpush1.bf16.msra.mxu0 %v14547_v22 }
 0x47f   :  { %4725 = vmatprep.subr.bf16.mxu0 %v14550_v20 }
 0x480   :  { %6814 = vmatpush1.bf16.msra.mxu1 %v14233_v25  ;;  %v14574_v25 = vld [vmem:[#allocation6 + $0x314] ss:$24 sps:$4 sm:$0xff]  }
 0x481   :  { %6815 = vmatprep.subr.bf16.mxu1 %v14236_v24  ;;  %v14579_v24 = vld [vmem:[#allocation6 + $0x310] ss:$24 sps:$4 sm:$0xff]  }
 0x482   :  { %4726 = vmatpush1.bf16.msra.mxu0 %v14555_v60 }
 0x483   :  { %4727 = vmatprep.subr.bf16.mxu0 %v14558_v45 }
 0x484   :  { %6816 = vmatpush1.bf16.msra.mxu1 %v14241_v26  ;;  %v14582_v26 = vld [vmem:[#allocation6 + $0x344] ss:$24 sps:$4 sm:$0xff]  }
 0x485   :  { %6817 = vmatprep.subr.bf16.mxu1 %v14244_v54  ;;  %v14588_v54 = vld [vmem:[#allocation6 + $0x340] ss:$24 sps:$4 sm:$0xff]  }
 0x486   :  { %4728 = vmatpush1.bf16.msra.mxu0 %v14563_v47  ;;  %v16630_v47 = vld [vmem:[#allocation38_spill] sm:$0xff] }
 0x487   :  { %4729 = vmatprep.subr.bf16.mxu0 %v14566_v18 }
 0x488   :  { %6818 = vmatpush1.bf16.msra.mxu1 %v14251_v37  ;;  %v16631_v37 = vld [vmem:[#allocation74_spill] sm:$0xff] }
 0x489   :  { %6819 = vmatprep.subr.bf16.mxu1 %v14254_v31  ;;  %v14592_v31 = vld [vmem:[#allocation6 + $0x374] ss:$24 sps:$4 sm:$0xff]  }
 0x48a   :  { %4730 = vmatpush1.bf16.msra.mxu0 %v14571_v14  ;;  %16632 = vst [vmem:[#allocation24_spill] sm:$0xff] %v14592_v31 }
 0x48b   :  { %4760 = vmatprep.subr.bf16.mxu0 %v14574_v25 }
 0x48c   :  { %6820 = vmatpush1.bf16.msra.mxu1 %v16630_v47  ;;  %v14597_v47 = vld [vmem:[#allocation6 + $0x370] ss:$24 sps:$4 sm:$0xff]  }
 0x48d   :  { %4732 = vmatmul.mubr.bf16.vlgmr.msra.gmra.mrb[148].mxu0 %v16590_v13  ;;  %6821 = vmatprep.subr.bf16.mxu1 %v16631_v37  ;;  %v14606_v13 = vld [vmem:[#allocation6 + $0x3a0] ss:$24 sps:$4 sm:$0xff]  }
 0x48e   :  { %4741 = vmatprep.mubr.bf16.mxu0 %v16591_v33  ;;  %4761 = vmatpush1.bf16.msra.mxu0 %v14579_v24  ;;  %v14600_v33 = vld [vmem:[#allocation6 + $0x3a4] ss:$24 sps:$4 sm:$0xff]  }
 0x48f   :  { %4762 = vmatprep.subr.bf16.mxu0 %v14582_v26  ;;  %v16635_v37 = vld [vmem:[#allocation75_spill] sm:$0xff] }
 0x490   :  { %6822 = vmatpush1.bf16.msra.mxu1 %v14267_v61  ;;  %v16633_v61 = vld [vmem:[#allocation63_spill] sm:$0xff] }
 0x491   :  { %6823 = vmatprep.subr.bf16.mxu1 %v14270_v55  ;;  %v14610_v55 = vld [vmem:[#allocation6 + $0x3d4] ss:$24 sps:$4 sm:$0xff]  }
 0x492   :  { %4763 = vmatpush1.bf16.msra.mxu0 %v14588_v54  ;;  %16634 = vst [vmem:[#allocation67_spill] sm:$0xff] %v14610_v55 }
 0x493   :  { %4764 = vmatprep.subr.bf16.mxu0 %v14592_v31  ;;  %v16636_v31 = vld [vmem:[#allocation41_spill] sm:$0xff] }
 0x494   :  { %6824 = vmatpush1.bf16.msra.mxu1 %v14275_v0  ;;  %v14615_v0 = vld [vmem:[#allocation6 + $0x3d0] ss:$24 sps:$4 sm:$0xff]  }
 0x495   :  { %4742 = vmatmul.mubr.bf16.gmra.mrb[152].mxu0 %v16549_v44  ;;  %6825 = vmatprep.subr.bf16.mxu1 %v16633_v61  ;;  %v14618_v44 = vld [vmem:[#allocation6 + $0x404] ss:$24 sps:$4 sm:$0xff]  }
 0x496   :  { %4751 = vmatprep.mubr.bf16.mxu0 %v16600_v1  ;;  %4765 = vmatpush1.bf16.msra.mxu0 %v14597_v47  ;;  %v16637_v61 = vld [vmem:[#allocation100_spill] sm:$0xff] }
 0x497   :  { %4766 = vmatprep.subr.bf16.mxu0 %v14600_v33  ;;  %v14624_v1 = vld [vmem:[#allocation6 + $0x400] ss:$24 sps:$4 sm:$0xff]  }
 0x498   :  { %6826 = vmatpush1.bf16.msra.mxu1 %v16635_v37  ;;  %v16638_v37 = vld [vmem:[#allocation97_spill] sm:$0xff] }
 0x499   :  { %6827 = vmatprep.subr.bf16.mxu1 %v16636_v31  ;;  %v14628_v31 = vld [vmem:[#allocation6 + $0x434] ss:$24 sps:$4 sm:$0xff]  }
 0x49a   :  { %4767 = vmatpush1.bf16.msra.mxu0 %v14606_v13 }
 0x49b   :  { %4768 = vmatprep.subr.bf16.mxu0 %v14610_v55  ;;  %v16639_v55 = vld [vmem:[#allocation55_spill] sm:$0xff] }
 0x49c   :  { %6828 = vmatpush1.bf16.msra.mxu1 %v14291_v38  ;;  %v14635_v38 = vld [vmem:[#allocation6 + $0x430] ss:$24 sps:$4 sm:$0xff]  }
 0x49d   :  { %4752 = vmatmul.mubr.bf16.gmra.mrb[156].mxu0 %v16555_v34  ;;  %6858 = vmatprep.subr.bf16.mxu1 %v14294_v3  ;;  %v14643_v3 = vld [vmem:[#allocation6 + $0x460] ss:$24 sps:$4 sm:$0xff]   ;;  %v16642_v34 = vld [vmem:[#allocation25_spill] sm:$0xff] }
 0x49e   :  { %4769 = vmatpush1.bf16.msra.mxu0 %v14615_v0  ;;  %4792 = vmatprep.mubr.bf16.mxu0 %v16637_v61  ;;  %v14638_v61 = vld [vmem:[#allocation6 + $0x464] ss:$24 sps:$4 sm:$0xff]   ;;  %16641 = vst [vmem:[#allocation26_spill] sm:$0xff] %v14643_v3 }
 0x49f   :  { %4770 = vmatprep.subr.bf16.mxu0 %v14618_v44  ;;  %6830 = vmatmul.mubr.bf16.vlgmr.msra.gmra.mrb[112].mxu1 %v16638_v37  ;;  %16640 = vst [vmem:[#allocation95_spill] sm:$0xff] %v14638_v61 }
 0x4a0   :  { %6839 = vmatprep.mubr.bf16.mxu1 %v16639_v55  ;;  %6859 = vmatpush1.bf16.msra.mxu1 %v14299_v9  ;;  %v14646_v9 = vld [vmem:[#allocation6 + $0x494] ss:$24 sps:$4 sm:$0xff]  }
 0x4a1   :  { %6860 = vmatprep.subr.bf16.mxu1 %v14302_v10  ;;  %v16643_v10 = vld [vmem:[#allocation28_spill] sm:$0xff] }
 0x4a2   :  { %4771 = vmatpush1.bf16.msra.mxu0 %v14624_v1 }
 0x4a3   :  { %4772 = vmatprep.subr.bf16.mxu0 %v14628_v31 }
 0x4a4   :  { %6861 = vmatpush1.bf16.msra.mxu1 %v14308_v23  ;;  %v14653_v23 = vld [vmem:[#allocation6 + $0x490] ss:$24 sps:$4 sm:$0xff]  }
 0x4a5   :  { %6862 = vmatprep.subr.bf16.mxu1 %v14312_v48  ;;  %v14656_v48 = vld [vmem:[#allocation6 + $0x4c4] ss:$24 sps:$4 sm:$0xff]  }
 0x4a6   :  { %4773 = vmatpush1.bf16.msra.mxu0 %v14635_v38 }
 0x4a7   :  { %4774 = vmatprep.subr.bf16.mxu0 %v14638_v61  ;;  %6840 = vmatmul.mubr.bf16.gmra.mrb[116].mxu1 %v16642_v34  ;;  %v14661_v61 = vld [vmem:[#allocation6 + $0x4c0] ss:$24 sps:$4 sm:$0xff]  }
 0x4a8   :  { %6849 = vmatprep.mubr.bf16.mxu1 %v16643_v10  ;;  %6863 = vmatpush1.bf16.msra.mxu1 %v14317_v50  ;;  %v14664_v50 = vld [vmem:[#allocation6 + $0x4f4] ss:$24 sps:$4 sm:$0xff]  }
 0x4a9   :  { %6864 = vmatprep.subr.bf16.mxu1 %v14320_v39  ;;  %v14674_v39 = vld [vmem:[#allocation6 + $0x524] ss:$24 sps:$4 sm:$0xff]  }
 0x4aa   :  { %4775 = vmatpush1.bf16.msra.mxu0 %v14643_v3  ;;  %v16644_v3 = vld [vmem:[#allocation32_spill] sm:$0xff] }
 0x4ab   :  { %4776 = vmatprep.subr.bf16.mxu0 %v14646_v9 }
 0x4ac   :  { %6865 = vmatpush1.bf16.msra.mxu1 %v14326_v42  ;;  %v14671_v42 = vld [vmem:[#allocation6 + $0x4f0] ss:$24 sps:$4 sm:$0xff]  }
 0x4ad   :  { %6866 = vmatprep.subr.bf16.mxu1 %v14330_v40  ;;  %v14679_v40 = vld [vmem:[#allocation6 + $0x520] ss:$24 sps:$4 sm:$0xff]  }
 0x4ae   :  { %4777 = vmatpush1.bf16.msra.mxu0 %v14653_v23 }
 0x4af   :  { %4778 = vmatprep.subr.bf16.mxu0 %v14656_v48  ;;  %6850 = vmatmul.mubr.bf16.gmra.mrb[120].mxu1 %v16644_v3 }
 0x4b0   :  { %6867 = vmatpush1.bf16.msra.mxu1 %v14335_v2  ;;  %6890 = vmatprep.mubr.bf16.mxu1 %v16578_v6  ;;  %v14682_v2 = vld [vmem:[#allocation6 + $0x554] ss:$24 sps:$4 sm:$0xff]  }
 0x4b1   :  { %6868 = vmatprep.subr.bf16.mxu1 %v14338_v49  ;;  %v14687_v49 = vld [vmem:[#allocation6 + $0x550] ss:$24 sps:$4 sm:$0xff]  }
 0x4b2   :  { %4779 = vmatpush1.bf16.msra.mxu0 %v14661_v61 }
 0x4b3   :  { %4780 = vmatprep.subr.bf16.mxu0 %v14664_v50 }
 0x4b4   :  { %6869 = vmatpush1.bf16.msra.mxu1 %v14344_v56  ;;  %v14690_v56 = vld [vmem:[#allocation6 + $0x584] ss:$24 sps:$4 sm:$0xff]  }
 0x4b5   :  { %6870 = vmatprep.subr.bf16.mxu1 %v14348_v8  ;;  %16645 = vst [vmem:[#allocation68_spill] sm:$0xff] %v14690_v56  ;;  %v14695_v8 = vld [vmem:[#allocation6 + $0x580] ss:$24 sps:$4 sm:$0xff]  }
 0x4b6   :  { %4781 = vmatpush1.bf16.msra.mxu0 %v14671_v42  ;;  %16646 = vst [vmem:[#allocation96_spill] sm:$0xff] %v14695_v8 }
 0x4b7   :  { %4782 = vmatprep.subr.bf16.mxu0 %v14674_v39 }
 0x4b8   :  { %6871 = vmatpush1.bf16.msra.mxu1 %v14355_v32  ;;  %v14698_v32 = vld [vmem:[#allocation6 + $0x5b4] ss:$24 sps:$4 sm:$0xff]  }
 0x4b9   :  { %6872 = vmatprep.subr.bf16.mxu1 %v14358_v27  ;;  %16647 = vst [vmem:[#allocation105_spill] sm:$0xff] %v14698_v32  ;;  %v14703_v27 = vld [vmem:[#allocation6 + $0x5b0] ss:$24 sps:$4 sm:$0xff]  }
 0x4ba   :  { %4783 = vmatpush1.bf16.msra.mxu0 %v14679_v40  ;;  %16648 = vst [vmem:[#allocation69_spill] sm:$0xff] %v14703_v27 }
 0x4bb   :  { %4784 = vmatprep.subr.bf16.mxu0 %v14682_v2 }
 0x4bc   :  { %6873 = vmatpush1.bf16.msra.mxu1 %v14363_v63  ;;  %v14706_v63 = vld [vmem:[#allocation6 + $0x5e4] ss:$24 sps:$4 sm:$0xff]  }
 0x4bd   :  { %6874 = vmatprep.subr.bf16.mxu1 %v14366_v58  ;;  %16649 = vst [vmem:[#allocation30_spill] sm:$0xff] %v14706_v63  ;;  %v14711_v58 = vld [vmem:[#allocation6 + $0x5e0] ss:$24 sps:$4 sm:$0xff]  }
 0x4be   :  { %4785 = vmatpush1.bf16.msra.mxu0 %v14687_v49  ;;  %16650 = vst [vmem:[#allocation70_spill] sm:$0xff] %v14711_v58 }
 0x4bf   :  { %4786 = vmatprep.subr.bf16.mxu0 %v14690_v56 }
 0x4c0   :  { %6875 = vmatpush1.bf16.msra.mxu1 %v14373_v57  ;;  %v14714_v57 = vld [vmem:[#allocation6 + $0xc04] ss:$24 sps:$4 sm:$0xff]  }
 0x4c1   :  { %6876 = vmatprep.subr.bf16.mxu1 %v14376_v59  ;;  %16651 = vst [vmem:[#allocation71_spill] sm:$0xff] %v14714_v57  ;;  %v14719_v59 = vld [vmem:[#allocation6 + $0xc00] ss:$24 sps:$4 sm:$0xff]  }
 0x4c2   :  { %4787 = vmatpush1.bf16.msra.mxu0 %v14695_v8  ;;  %16652 = vst [vmem:[#allocation89_spill] sm:$0xff] %v14719_v59 }
 0x4c3   :  { %4788 = vmatprep.subr.bf16.mxu0 %v14698_v32  ;;  %v14867_v32 = vld [vmem:[#allocation6 + $0xff4] ss:$24 sps:$4 sm:$0xff]  }
 0x4c4   :  { %6877 = vmatpush1.bf16.msra.mxu1 %v14381_v53  ;;  %v14722_v53 = vld [vmem:[#allocation6 + $0xc34] ss:$24 sps:$4 sm:$0xff]   ;;  %16708 = vst [vmem:[#allocation120_spill] sm:$0xff] %v14867_v32 }
 0x4c5   :  { %6878 = vmatprep.subr.bf16.mxu1 %v14384_v17  ;;  %16653 = vst [vmem:[#allocation20_spill] sm:$0xff] %v14722_v53  ;;  %v16654_v17 = vld [vmem:[#allocation99_spill] sm:$0xff] }
 0x4c6   :  { %4789 = vmatpush1.bf16.msra.mxu0 %v14703_v27  ;;  %v16655_v27 = vld [vmem:[#allocation56_spill] sm:$0xff] }
 0x4c7   :  { %4790 = vmatprep.subr.bf16.mxu0 %v14706_v63  ;;  %v14728_v63 = vld [vmem:[#allocation6 + $0xc30] ss:$24 sps:$4 sm:$0xff]  }
 0x4c8   :  { %6879 = vmatpush1.bf16.msra.mxu1 %v14391_v28  ;;  %16656 = vst [vmem:[#allocation34_spill] sm:$0xff] %v14728_v63  ;;  %v14732_v28 = vld [vmem:[#allocation6 + $0xc64] ss:$24 sps:$4 sm:$0xff]  }
 0x4c9   :  { %6880 = vmatprep.subr.bf16.mxu1 %v14394_v12  ;;  %16657 = vst [vmem:[#allocation72_spill] sm:$0xff] %v14732_v28  ;;  %v14740_v12 = vld [vmem:[#allocation6 + $0xc94] ss:$24 sps:$4 sm:$0xff]  }
 0x4ca   :  { %4791 = vmatpush1.bf16.msra.mxu0 %v14711_v58  ;;  %16659 = vst [vmem:[#allocation98_spill] sm:$0xff] %v14740_v12  ;;  %v16703_v58 = vld [vmem:[#allocation22_spill] sm:$0xff] }
 0x4cb   :  { %5974 = vmatprep.subr.bf16.mxu0 %v14714_v57  ;;  %v14853_v57 = vld [vmem:[#allocation6 + $0xf94] ss:$24 sps:$4 sm:$0xff]  }
 0x4cc   :  { %6881 = vmatpush1.bf16.msra.mxu1 %v14399_v51  ;;  %v14737_v51 = vld [vmem:[#allocation6 + $0xc60] ss:$24 sps:$4 sm:$0xff]   ;;  %16702 = vst [vmem:[#allocation116_spill] sm:$0xff] %v14853_v57 }
 0x4cd   :  { %4793 = vmatmul.mubr.bf16.vlgmr.msra.gmra.mrb[148].mxu0 %v16654_v17  ;;  %6882 = vmatprep.subr.bf16.mxu1 %v14402_v46  ;;  %16658 = vst [vmem:[#allocation92_spill] sm:$0xff] %v14737_v51  ;;  %v16660_v46 = vld [vmem:[#allocation57_spill] sm:$0xff]  ;;  %v16664_v17 = vld [vmem:[#allocation42_spill] sm:$0xff] }
 0x4ce   :  { %4802 = vmatprep.mubr.bf16.mxu0 %v16655_v27  ;;  %5975 = vmatpush1.bf16.msra.mxu0 %v14719_v59  ;;  %v14746_v27 = vld [vmem:[#allocation6 + $0xc90] ss:$24 sps:$4 sm:$0xff]  }
 0x4cf   :  { %5976 = vmatprep.subr.bf16.mxu0 %v14722_v53  ;;  %16661 = vst [vmem:[#allocation73_spill] sm:$0xff] %v14746_v27  ;;  %v14778_v53 = vld [vmem:[#allocation6 + $0xd50] ss:$24 sps:$4 sm:$0xff]  }
 0x4d0   :  { %6883 = vmatpush1.bf16.msra.mxu1 %v14407_v21  ;;  %v16662_v21 = vld [vmem:[#allocation76_spill] sm:$0xff]  ;;  %16677 = vst [vmem:[#allocation25_spill] sm:$0xff] %v14778_v53  ;;  %v16698_v59 = vld [vmem:[#allocation65_spill] sm:$0xff] }
 0x4d1   :  { %6884 = vmatprep.subr.bf16.mxu1 %v14410_v30  ;;  %v14750_v30 = vld [vmem:[#allocation6 + $0xcc4] ss:$24 sps:$4 sm:$0xff]  }
 0x4d2   :  { %5977 = vmatpush1.bf16.msra.mxu0 %v14728_v63  ;;  %16663 = vst [vmem:[#allocation38_spill] sm:$0xff] %v14750_v30  ;;  %v11678_v63 = vld [vmem:[#allocation6 + $0x308] ss:$24 sps:$4 sm:$0xff]  }
 0x4d3   :  { %5978 = vmatprep.subr.bf16.mxu0 %v14732_v28  ;;  %v16665_v28 = vld [vmem:[#allocation77_spill] sm:$0xff] }
 0x4d4   :  { %6885 = vmatpush1.bf16.msra.mxu1 %v14415_v19  ;;  %v14755_v19 = vld [vmem:[#allocation6 + $0xcc0] ss:$24 sps:$4 sm:$0xff]  }
 0x4d5   :  { %4803 = vmatmul.mubr.bf16.gmra.mrb[152].mxu0 %v16575_v16  ;;  %6886 = vmatprep.subr.bf16.mxu1 %v16662_v21  ;;  %16666 = vst [vmem:[#allocation74_spill] sm:$0xff] %v14755_v19  ;;  %v14758_v16 = vld [vmem:[#allocation6 + $0xcf4] ss:$24 sps:$4 sm:$0xff]   ;;  %v16670_v21 = vld [vmem:[#allocation39_spill] sm:$0xff] }
 0x4d6   :  { %4812 = vmatprep.mubr.bf16.mxu0 %v16660_v46  ;;  %5979 = vmatpush1.bf16.msra.mxu0 %v14737_v51  ;;  %16667 = vst [vmem:[#allocation63_spill] sm:$0xff] %v14758_v16  ;;  %v16668_v46 = vld [vmem:[#allocation43_spill] sm:$0xff]  ;;  %v16669_v51 = vld [vmem:[#allocation29_spill] sm:$0xff] }
 0x4d7   :  { %5980 = vmatprep.subr.bf16.mxu0 %v14740_v12  ;;  %v14764_v12 = vld [vmem:[#allocation6 + $0xcf0] ss:$24 sps:$4 sm:$0xff]  }
 0x4d8   :  { %6887 = vmatpush1.bf16.msra.mxu1 %v16664_v17  ;;  %16671 = vst [vmem:[#allocation75_spill] sm:$0xff] %v14764_v12  ;;  %v11677_v17 = vld [vmem:[#allocation6 + $0x30c] ss:$24 sps:$4 sm:$0xff]  }
 0x4d9   :  { %6888 = vmatprep.subr.bf16.mxu1 %v16665_v28  ;;  %v14767_v28 = vld [vmem:[#allocation6 + $0xd24] ss:$24 sps:$4 sm:$0xff]  }
 0x4da   :  { %5981 = vmatpush1.bf16.msra.mxu0 %v14746_v27  ;;  %16672 = vst [vmem:[#allocation41_spill] sm:$0xff] %v14767_v28  ;;  %v16673_v27 = vld [vmem:[#allocation33_spill] sm:$0xff] }
 0x4db   :  { %5982 = vmatprep.subr.bf16.mxu0 %v14750_v30  ;;  %v16674_v30 = vld [vmem:[#allocation17_spill] sm:$0xff] }
 0x4dc   :  { %6889 = vmatpush1.bf16.msra.mxu1 %v16668_v46  ;;  %v11679_v46 = vld [vmem:[#allocation6 + $0x33c] ss:$24 sps:$4 sm:$0xff]  }
 0x4dd   :  { %4813 = vmatmul.mubr.bf16.gmra.mrb[156].mxu0 %v16669_v51  ;;  %6919 = vmatprep.subr.bf16.mxu1 %v11677_v17  ;;  %v14772_v51 = vld [vmem:[#allocation6 + $0xd20] ss:$24 sps:$4 sm:$0xff]  }
 0x4de   :  { %5983 = vmatpush1.bf16.msra.mxu0 %v14755_v19  ;;  %6006 = vmatprep.mubr.bf16.mxu0 %v16670_v21  ;;  %16675 = vst [vmem:[#allocation100_spill] sm:$0xff] %v14772_v51  ;;  %v14775_v19 = vld [vmem:[#allocation6 + $0xd54] ss:$24 sps:$4 sm:$0xff]   ;;  %v11680_v17 = vld [vmem:[#allocation6 + $0x338] ss:$24 sps:$4 sm:$0xff]  }
 0x4df   :  { %5984 = vmatprep.subr.bf16.mxu0 %v14758_v16  ;;  %6891 = vmatmul.mubr.bf16.vlgmr.msra.gmra.mrb[124].mxu1 %v16673_v27  ;;  %16676 = vst [vmem:[#allocation55_spill] sm:$0xff] %v14775_v19  ;;  %v11681_v16 = vld [vmem:[#allocation6 + $0x36c] ss:$24 sps:$4 sm:$0xff]  }
 0x4e0   :  { %6900 = vmatprep.mubr.bf16.mxu1 %v16674_v30  ;;  %6920 = vmatpush1.bf16.msra.mxu1 %v11678_v63  ;;  %v14781_v63 = vld [vmem:[#allocation6 + $0xd84] ss:$24 sps:$4 sm:$0xff]  }
 0x4e1   :  { %6921 = vmatprep.subr.bf16.mxu1 %v11679_v46  ;;  %16678 = vst [vmem:[#allocation28_spill] sm:$0xff] %v14781_v63  ;;  %v11682_v46 = vld [vmem:[#allocation6 + $0x368] ss:$24 sps:$4 sm:$0xff]  }
 0x4e2   :  { %5985 = vmatpush1.bf16.msra.mxu0 %v14764_v12  ;;  %v14792_v12 = vld [vmem:[#allocation6 + $0xdb0] ss:$24 sps:$4 sm:$0xff]  }
 0x4e3   :  { %5986 = vmatprep.subr.bf16.mxu0 %v14767_v28  ;;  %v11683_v28 = vld [vmem:[#allocation6 + $0x39c] ss:$24 sps:$4 sm:$0xff]   ;;  %16681 = vst [vmem:[#allocation56_spill] sm:$0xff] %v14792_v12 }
 0x4e4   :  { %6922 = vmatpush1.bf16.msra.mxu1 %v11680_v17  ;;  %v14786_v17 = vld [vmem:[#allocation6 + $0xd80] ss:$24 sps:$4 sm:$0xff]  }
 0x4e5   :  { %6923 = vmatprep.subr.bf16.mxu1 %v11681_v16  ;;  %16679 = vst [vmem:[#allocation32_spill] sm:$0xff] %v14786_v17  ;;  %v14789_v16 = vld [vmem:[#allocation6 + $0xdb4] ss:$24 sps:$4 sm:$0xff]  }
 0x4e6   :  { %5987 = vmatpush1.bf16.msra.mxu0 %v14772_v51  ;;  %16680 = vst [vmem:[#allocation99_spill] sm:$0xff] %v14789_v16  ;;  %v11684_v51 = vld [vmem:[#allocation6 + $0x398] ss:$24 sps:$4 sm:$0xff]  }
 0x4e7   :  { %5988 = vmatprep.subr.bf16.mxu0 %v14775_v19  ;;  %6901 = vmatmul.mubr.bf16.gmra.mrb[128].mxu1 %v16621_v15  ;;  %v11685_v19 = vld [vmem:[#allocation6 + $0x3cc] ss:$24 sps:$4 sm:$0xff]  }
 0x4e8   :  { %6910 = vmatprep.mubr.bf16.mxu1 %v16622_v4  ;;  %6924 = vmatpush1.bf16.msra.mxu1 %v11682_v46  ;;  %v14795_v46 = vld [vmem:[#allocation6 + $0xde4] ss:$24 sps:$4 sm:$0xff]  }
 0x4e9   :  { %6925 = vmatprep.subr.bf16.mxu1 %v11683_v28  ;;  %16682 = vst [vmem:[#allocation76_spill] sm:$0xff] %v14795_v46  ;;  %v11686_v28 = vld [vmem:[#allocation6 + $0x3c8] ss:$24 sps:$4 sm:$0xff]  }
 0x4ea   :  { %5989 = vmatpush1.bf16.msra.mxu0 %v14778_v53  ;;  %v14806_v53 = vld [vmem:[#allocation6 + $0xe10] ss:$24 sps:$4 sm:$0xff]  }
 0x4eb   :  { %5990 = vmatprep.subr.bf16.mxu0 %v14781_v63  ;;  %v11687_v63 = vld [vmem:[#allocation6 + $0x3fc] ss:$24 sps:$4 sm:$0xff]   ;;  %16685 = vst [vmem:[#allocation43_spill] sm:$0xff] %v14806_v53 }
 0x4ec   :  { %6926 = vmatpush1.bf16.msra.mxu1 %v11684_v51  ;;  %v14800_v51 = vld [vmem:[#allocation6 + $0xde0] ss:$24 sps:$4 sm:$0xff]  }
 0x4ed   :  { %6927 = vmatprep.subr.bf16.mxu1 %v11685_v19  ;;  %16683 = vst [vmem:[#allocation42_spill] sm:$0xff] %v14800_v51  ;;  %v14803_v19 = vld [vmem:[#allocation6 + $0xe14] ss:$24 sps:$4 sm:$0xff]  }
 0x4ee   :  { %5991 = vmatpush1.bf16.msra.mxu0 %v14786_v17  ;;  %16684 = vst [vmem:[#allocation77_spill] sm:$0xff] %v14803_v19  ;;  %v11688_v17 = vld [vmem:[#allocation6 + $0x3f8] ss:$24 sps:$4 sm:$0xff]  }
 0x4ef   :  { %5992 = vmatprep.subr.bf16.mxu0 %v14789_v16  ;;  %6911 = vmatmul.mubr.bf16.gmra.mrb[132].mxu1 %v16626_v41  ;;  %v11689_v16 = vld [vmem:[#allocation6 + $0x42c] ss:$24 sps:$4 sm:$0xff]  }
 0x4f0   :  { %6928 = vmatpush1.bf16.msra.mxu1 %v11686_v28  ;;  %6951 = vmatprep.mubr.bf16.mxu1 %v16627_v52  ;;  %v14809_v28 = vld [vmem:[#allocation6 + $0xe44] ss:$24 sps:$4 sm:$0xff]  }
 0x4f1   :  { %6929 = vmatprep.subr.bf16.mxu1 %v11687_v63  ;;  %16686 = vst [vmem:[#allocation39_spill] sm:$0xff] %v14809_v28  ;;  %v11691_v63 = vld [vmem:[#allocation6 + $0x45c] ss:$24 sps:$4 sm:$0xff]  }
 0x4f2   :  { %5993 = vmatpush1.bf16.msra.mxu0 %v14792_v12  ;;  %v11690_v12 = vld [vmem:[#allocation6 + $0x428] ss:$24 sps:$4 sm:$0xff]  }
 0x4f3   :  { %5994 = vmatprep.subr.bf16.mxu0 %v14795_v46  ;;  %v14812_v46 = vld [vmem:[#allocation6 + $0xe40] ss:$24 sps:$4 sm:$0xff]  }
 0x4f4   :  { %6930 = vmatpush1.bf16.msra.mxu1 %v11688_v17  ;;  %16687 = vst [vmem:[#allocation33_spill] sm:$0xff] %v14812_v46  ;;  %v14815_v17 = vld [vmem:[#allocation6 + $0xe74] ss:$24 sps:$4 sm:$0xff]  }
 0x4f5   :  { %6931 = vmatprep.subr.bf16.mxu1 %v11689_v16  ;;  %16688 = vst [vmem:[#allocation17_spill] sm:$0xff] %v14815_v17  ;;  %v11693_v16 = vld [vmem:[#allocation6 + $0x48c] ss:$24 sps:$4 sm:$0xff]  }
 0x4f6   :  { %5995 = vmatpush1.bf16.msra.mxu0 %v14800_v51  ;;  %v11692_v51 = vld [vmem:[#allocation6 + $0x458] ss:$24 sps:$4 sm:$0xff]  }
 0x4f7   :  { %5996 = vmatprep.subr.bf16.mxu0 %v14803_v19  ;;  %v14818_v19 = vld [vmem:[#allocation6 + $0xe70] ss:$24 sps:$4 sm:$0xff]  }
 0x4f8   :  { %6932 = vmatpush1.bf16.msra.mxu1 %v11690_v12  ;;  %16689 = vst [vmem:[#allocation107_spill] sm:$0xff] %v14818_v19  ;;  %v14821_v12 = vld [vmem:[#allocation6 + $0xea4] ss:$24 sps:$4 sm:$0xff]  }
 0x4f9   :  { %6933 = vmatprep.subr.bf16.mxu1 %v11691_v63  ;;  %16690 = vst [vmem:[#allocation108_spill] sm:$0xff] %v14821_v12  ;;  %v11695_v63 = vld [vmem:[#allocation6 + $0x4bc] ss:$24 sps:$4 sm:$0xff]  }
 0x4fa   :  { %5997 = vmatpush1.bf16.msra.mxu0 %v14806_v53  ;;  %v11694_v53 = vld [vmem:[#allocation6 + $0x488] ss:$24 sps:$4 sm:$0xff]  }
 0x4fb   :  { %5998 = vmatprep.subr.bf16.mxu0 %v14809_v28  ;;  %v14824_v28 = vld [vmem:[#allocation6 + $0xea0] ss:$24 sps:$4 sm:$0xff]  }
 0x4fc   :  { %6934 = vmatpush1.bf16.msra.mxu1 %v11692_v51  ;;  %16691 = vst [vmem:[#allocation109_spill] sm:$0xff] %v14824_v28  ;;  %v14827_v51 = vld [vmem:[#allocation6 + $0xed4] ss:$24 sps:$4 sm:$0xff]  }
 0x4fd   :  { %6935 = vmatprep.subr.bf16.mxu1 %v11693_v16  ;;  %16692 = vst [vmem:[#allocation110_spill] sm:$0xff] %v14827_v51  ;;  %v11697_v16 = vld [vmem:[#allocation6 + $0x4ec] ss:$24 sps:$4 sm:$0xff]  }
 0x4fe   :  { %5999 = vmatpush1.bf16.msra.mxu0 %v14812_v46  ;;  %v11696_v46 = vld [vmem:[#allocation6 + $0x4b8] ss:$24 sps:$4 sm:$0xff]  }
 0x4ff   :  { %6000 = vmatprep.subr.bf16.mxu0 %v14815_v17  ;;  %v14830_v17 = vld [vmem:[#allocation6 + $0xed0] ss:$24 sps:$4 sm:$0xff]  }
 0x500   :  { %6936 = vmatpush1.bf16.msra.mxu1 %v11694_v53  ;;  %16693 = vst [vmem:[#allocation111_spill] sm:$0xff] %v14830_v17  ;;  %v14833_v53 = vld [vmem:[#allocation6 + $0xf04] ss:$24 sps:$4 sm:$0xff]  }
 0x501   :  { %6937 = vmatprep.subr.bf16.mxu1 %v11695_v63  ;;  %16694 = vst [vmem:[#allocation112_spill] sm:$0xff] %v14833_v53  ;;  %v11699_v63 = vld [vmem:[#allocation6 + $0x51c] ss:$24 sps:$4 sm:$0xff]  }
 0x502   :  { %6001 = vmatpush1.bf16.msra.mxu0 %v14818_v19  ;;  %v11698_v19 = vld [vmem:[#allocation6 + $0x4e8] ss:$24 sps:$4 sm:$0xff]  }
 0x503   :  { %6002 = vmatprep.subr.bf16.mxu0 %v14821_v12  ;;  %v14836_v12 = vld [vmem:[#allocation6 + $0xf00] ss:$24 sps:$4 sm:$0xff]  }
 0x504   :  { %6938 = vmatpush1.bf16.msra.mxu1 %v11696_v46  ;;  %16695 = vst [vmem:[#allocation113_spill] sm:$0xff] %v14836_v12  ;;  %v14839_v46 = vld [vmem:[#allocation6 + $0xf34] ss:$24 sps:$4 sm:$0xff]  }
 0x505   :  { %6939 = vmatprep.subr.bf16.mxu1 %v11697_v16  ;;  %16696 = vst [vmem:[#allocation114_spill] sm:$0xff] %v14839_v46  ;;  %v16697_v16 = vld [vmem:[#allocation61_spill] sm:$0xff] }
 0x506   :  { %6003 = vmatpush1.bf16.msra.mxu0 %v14824_v28  ;;  %v11700_v28 = vld [vmem:[#allocation6 + $0x518] ss:$24 sps:$4 sm:$0xff]  }
 0x507   :  { %6004 = vmatprep.subr.bf16.mxu0 %v14827_v51  ;;  %v14844_v51 = vld [vmem:[#allocation6 + $0xf30] ss:$24 sps:$4 sm:$0xff]  }
 0x508   :  { %6940 = vmatpush1.bf16.msra.mxu1 %v11698_v19  ;;  %16699 = vst [vmem:[#allocation61_spill] sm:$0xff] %v14844_v51  ;;  %v11701_v19 = vld [vmem:[#allocation6 + $0x54c] ss:$24 sps:$4 sm:$0xff]  }
 0x509   :  { %6941 = vmatprep.subr.bf16.mxu1 %v11699_v63  ;;  %v14847_v63 = vld [vmem:[#allocation6 + $0xf64] ss:$24 sps:$4 sm:$0xff]  }
 0x50a   :  { %6005 = vmatpush1.bf16.msra.mxu0 %v14830_v17  ;;  %16700 = vst [vmem:[#allocation65_spill] sm:$0xff] %v14847_v63  ;;  %v11702_v17 = vld [vmem:[#allocation6 + $0x548] ss:$24 sps:$4 sm:$0xff]  }
 0x50b   :  { %6035 = vmatprep.subr.bf16.mxu0 %v14833_v53  ;;  %v11703_v53 = vld [vmem:[#allocation6 + $0x57c] ss:$24 sps:$4 sm:$0xff]  }
 0x50c   :  { %6942 = vmatpush1.bf16.msra.mxu1 %v11700_v28  ;;  %v14850_v28 = vld [vmem:[#allocation6 + $0xf60] ss:$24 sps:$4 sm:$0xff]  }
 0x50d   :  { %6007 = vmatmul.mubr.bf16.vlgmr.msra.gmra.mrb[124].mxu0 %v16697_v16  ;;  %6943 = vmatprep.subr.bf16.mxu1 %v11701_v19  ;;  %16701 = vst [vmem:[#allocation115_spill] sm:$0xff] %v14850_v28  ;;  %v16704_v19 = vld [vmem:[#allocation93_spill] sm:$0xff] }
 0x50e   :  { %6016 = vmatprep.mubr.bf16.mxu0 %v16698_v59  ;;  %6036 = vmatpush1.bf16.msra.mxu0 %v14836_v12  ;;  %v11704_v12 = vld [vmem:[#allocation6 + $0x578] ss:$24 sps:$4 sm:$0xff]  }
 0x50f   :  { %6037 = vmatprep.subr.bf16.mxu0 %v14839_v46  ;;  %v14858_v46 = vld [vmem:[#allocation6 + $0xf90] ss:$24 sps:$4 sm:$0xff]  }
 0x510   :  { %6944 = vmatpush1.bf16.msra.mxu1 %v11702_v17  ;;  %16705 = vst [vmem:[#allocation117_spill] sm:$0xff] %v14858_v46  ;;  %v11705_v17 = vld [vmem:[#allocation6 + $0x5ac] ss:$24 sps:$4 sm:$0xff]  }
 0x511   :  { %6945 = vmatprep.subr.bf16.mxu1 %v11703_v53  ;;  %v14861_v53 = vld [vmem:[#allocation6 + $0xfc4] ss:$24 sps:$4 sm:$0xff]  }
 0x512   :  { %6038 = vmatpush1.bf16.msra.mxu0 %v14844_v51  ;;  %16706 = vst [vmem:[#allocation118_spill] sm:$0xff] %v14861_v53  ;;  %v11706_v51 = vld [vmem:[#allocation6 + $0x5a8] ss:$24 sps:$4 sm:$0xff]  }
 0x513   :  { %6039 = vmatprep.subr.bf16.mxu0 %v14847_v63  ;;  %v11707_v63 = vld [vmem:[#allocation6 + $0x5dc] ss:$24 sps:$4 sm:$0xff]  }
 0x514   :  { %6946 = vmatpush1.bf16.msra.mxu1 %v11704_v12  ;;  %v14864_v12 = vld [vmem:[#allocation6 + $0xfc0] ss:$24 sps:$4 sm:$0xff]  }
 0x515   :  { %6017 = vmatmul.mubr.bf16.gmra.mrb[128].mxu0 %v16703_v58  ;;  %6947 = vmatprep.subr.bf16.mxu1 %v11705_v17  ;;  %16707 = vst [vmem:[#allocation119_spill] sm:$0xff] %v14864_v12  ;;  %v16710_v17 = vld [vmem:[#allocation53_spill] sm:$0xff] }
 0x516   :  { %6026 = vmatprep.mubr.bf16.mxu0 %v16704_v19  ;;  %6040 = vmatpush1.bf16.msra.mxu0 %v14850_v28  ;;  %v11708_v28 = vld [vmem:[#allocation6 + $0x5d8] ss:$24 sps:$4 sm:$0xff]  }
 0x517   :  { %6041 = vmatprep.subr.bf16.mxu0 %v14853_v57  ;;  %v16709_v19 = vld [vmem:[#allocation66_spill] sm:$0xff] }
 0x518   :  { %6948 = vmatpush1.bf16.msra.mxu1 %v11706_v51  ;;  %v14872_v57 = vld [vmem:[#allocation6 + $0xff0] ss:$24 sps:$4 sm:$0xff]  }
 0x519   :  { %6949 = vmatprep.subr.bf16.mxu1 %v11707_v63  ;;  %16711 = vst [vmem:[#allocation121_spill] sm:$0xff] %v14872_v57  ;;  %v16712_v51 = vld [vmem:[#allocation78_spill] sm:$0xff]  ;;  %v14876_v63 = vld [vmem:[#allocation6 + $0x1024] ss:$24 sps:$4 sm:$0xff]  }
 0x51a   :  { %6042 = vmatpush1.bf16.msra.mxu0 %v14858_v46  ;;  %16713 = vst [vmem:[#allocation78_spill] sm:$0xff] %v14876_v63  ;;  %v16714_v46 = vld [vmem:[#allocation47_spill] sm:$0xff] }
 0x51b   :  { %6043 = vmatprep.subr.bf16.mxu0 %v14861_v53 }
 0x51c   :  { %6950 = vmatpush1.bf16.msra.mxu1 %v11708_v28  ;;  %v16716_v28 = vld [vmem:[#allocation44_spill] sm:$0xff] }
 0x51d   :  { %6027 = vmatmul.mubr.bf16.gmra.mrb[132].mxu0 %v16709_v19  ;;  %6980 = vmatprep.subr.bf16.mxu1 %v16712_v51  ;;  %v16719_v51 = vld [vmem:[#allocation79_spill] sm:$0xff] }
 0x51e   :  { %6044 = vmatpush1.bf16.msra.mxu0 %v14864_v12  ;;  %6067 = vmatprep.mubr.bf16.mxu0 %v16710_v17  ;;  %v16717_v17 = vld [vmem:[#allocation48_spill] sm:$0xff] }
 0x51f   :  { %6045 = vmatprep.subr.bf16.mxu0 %v14867_v32  ;;  %6952 = vmatmul.mubr.bf16.vlgmr.msra.gmra.mrb[124].mxu1 %v16638_v37  ;;  %v14889_v32 = vld [vmem:[#allocation6 + $0x1020] ss:$24 sps:$4 sm:$0xff]  }
 0x520   :  { %v4611_v53 = vpop.f32.mrb[136].mxu0  ;;  %6961 = vmatprep.mubr.bf16.mxu1 %v16639_v55  ;;  %6981 = vmatpush1.bf16.msra.mxu1 %v16716_v28  ;;  %16720 = vst [vmem:[#allocation48_spill] sm:$0xff] %v14889_v32  ;;  %v16721_v37 = vld [vmem:[#allocation83_spill] sm:$0xff]  ;;  %v16724_v28 = vld [vmem:[#allocation49_spill] sm:$0xff] }
 0x521   :  { %v14880_v58 = vadd.f32 %v16714_v46, %v4611_v53  ;;  %v4613_v12 = vpop.f32.mrb[137].mxu0  ;;  %6982 = vmatprep.subr.bf16.mxu1 %v16719_v51  ;;  %v14895_v53 = vld [vmem:[#allocation6 + $0x1054] ss:$24 sps:$4 sm:$0xff]   ;;  %v14903_v51 = vld [vmem:[#allocation6 + $0x1050] ss:$24 sps:$4 sm:$0xff]  }
 0x522   :  { %v14885_v19 = vadd.f32 %v16717_v17, %v4613_v12  ;;  %v4615_v8 = vpop.f32.mrb[138].mxu0  ;;  %6046 = vmatpush1.bf16.msra.mxu0 %v14872_v57  ;;  %16723 = vst [vmem:[#allocation83_spill] sm:$0xff] %v14895_v53  ;;  %v16726_v12 = vld [vmem:[#allocation45_spill] sm:$0xff]  ;;  %v16727_v17 = vld [vmem:[#allocation80_spill] sm:$0xff] }
 0x523   :  { %16715 = vst [vmem:[#allocation47_spill] sm:$0xff] %v14880_v58  ;;  %v14892_v56 = vadd.f32 %v16721_v37, %v4615_v8  ;;  %v4617_v46 = vpop.f32.mrb[139].mxu0  ;;  %6047 = vmatprep.subr.bf16.mxu0 %v14876_v63  ;;  %v14906_v37 = vld [vmem:[#allocation6 + $0x1084] ss:$24 sps:$4 sm:$0xff]   ;;  %v16736_v63 = vld [vmem:[#allocation85_spill] sm:$0xff] }
 0x524   :  { %16718 = vst [vmem:[#allocation44_spill] sm:$0xff] %v14885_v19  ;;  %v14898_v58 = vadd.f32 %v16724_v28, %v4617_v46  ;;  %6983 = vmatpush1.bf16.msra.mxu1 %v16726_v12  ;;  %16728 = vst [vmem:[#allocation45_spill] sm:$0xff] %v14906_v37  ;;  %v16731_v46 = vld [vmem:[#allocation46_spill] sm:$0xff] }
 0x525   :  { %16722 = vst [vmem:[#allocation79_spill] sm:$0xff] %v14892_v56  ;;  %6984 = vmatprep.subr.bf16.mxu1 %v16727_v17  ;;  %v16729_v56 = vld [vmem:[#allocation84_spill] sm:$0xff]  ;;  %v16732_v12 = vld [vmem:[#allocation50_spill] sm:$0xff] }
 0x526   :  { %16725 = vst [vmem:[#allocation49_spill] sm:$0xff] %v14898_v58  ;;  %6048 = vmatpush1.bf16.msra.mxu0 %v14889_v32  ;;  %v14919_v32 = vld [vmem:[#allocation6 + $0x1080] ss:$24 sps:$4 sm:$0xff]  }
 0x527   :  { %6049 = vmatprep.subr.bf16.mxu0 %v14895_v53  ;;  %6962 = vmatmul.mubr.bf16.gmra.mrb[128].mxu1 %v16642_v34  ;;  %v16734_v53 = vld [vmem:[#allocation81_spill] sm:$0xff]  ;;  %16735 = vst [vmem:[#allocation46_spill] sm:$0xff] %v14919_v32 }
 0x528   :  { %v4621_v8 = vpop.f32.mrb[140].mxu0  ;;  %6971 = vmatprep.mubr.bf16.mxu1 %v16643_v10  ;;  %6985 = vmatpush1.bf16.msra.mxu1 %v16731_v46  ;;  %v16739_v46 = vld [vmem:[#allocation51_spill] sm:$0xff] }
 0x529   :  { %v14910_v19 = vadd.f32 %v16729_v56, %v4621_v8  ;;  %v4623_v28 = vpop.f32.mrb[141].mxu0  ;;  %6986 = vmatprep.subr.bf16.mxu1 %v16734_v53  ;;  %v14925_v8 = vld [vmem:[#allocation6 + $0x10b4] ss:$24 sps:$4 sm:$0xff]   ;;  %v14933_v53 = vld [vmem:[#allocation6 + $0x10b0] ss:$24 sps:$4 sm:$0xff]  }
 0x52a   :  { %v14915_v58 = vadd.f32 %v16732_v12, %v4623_v28  ;;  %v4625_v17 = vpop.f32.mrb[142].mxu0  ;;  %6050 = vmatpush1.bf16.msra.mxu0 %v14903_v51  ;;  %16738 = vst [vmem:[#allocation81_spill] sm:$0xff] %v14925_v8  ;;  %v16741_v28 = vld [vmem:[#allocation82_spill] sm:$0xff]  ;;  %v16742_v12 = vld [vmem:[#allocation27_spill] sm:$0xff] }
 0x52b   :  { %16730 = vst [vmem:[#allocation80_spill] sm:$0xff] %v14910_v19  ;;  %v14922_v57 = vadd.f32 %v16736_v63, %v4625_v17  ;;  %v4627_v56 = vpop.f32.mrb[143].mxu0  ;;  %6051 = vmatprep.subr.bf16.mxu0 %v14906_v37  ;;  %v14936_v63 = vld [vmem:[#allocation6 + $0x10e4] ss:$24 sps:$4 sm:$0xff]  }
 0x52c   :  { %16733 = vst [vmem:[#allocation84_spill] sm:$0xff] %v14915_v58  ;;  %v14928_v19 = vadd.f32 %v16739_v46, %v4627_v56  ;;  %6987 = vmatpush1.bf16.msra.mxu1 %v16741_v28  ;;  %v16745_v56 = vld [vmem:[#allocation59_spill] sm:$0xff]  ;;  %v16746_v28 = vld [vmem:[#allocation106_spill] sm:$0xff] }
 0x52d   :  { %16737 = vst [vmem:[#allocation50_spill] sm:$0xff] %v14922_v57  ;;  %6988 = vmatprep.subr.bf16.mxu1 %v16742_v12  ;;  %v16743_v57 = vld [vmem:[#allocation86_spill] sm:$0xff] }
 0x52e   :  { %16740 = vst [vmem:[#allocation85_spill] sm:$0xff] %v14928_v19  ;;  %6052 = vmatpush1.bf16.msra.mxu0 %v14919_v32  ;;  %v14949_v32 = vld [vmem:[#allocation6 + $0x10e0] ss:$24 sps:$4 sm:$0xff]  }
 0x52f   :  { %6053 = vmatprep.subr.bf16.mxu0 %v14925_v8  ;;  %6972 = vmatmul.mubr.bf16.gmra.mrb[132].mxu1 %v16644_v3  ;;  %v16748_v8 = vld [vmem:[#allocation60_spill] sm:$0xff] }
 0x530   :  { %v4631_v17 = vpop.f32.mrb[144].mxu0  ;;  %6989 = vmatpush1.bf16.msra.mxu1 %v16745_v56  ;;  %7012 = vmatprep.mubr.bf16.mxu1 %v16578_v6  ;;  %v16750_v6 = vld [vmem:[#allocation102_spill] sm:$0xff] }
 0x531   :  { %v14940_v58 = vadd.f32 %v16743_v57, %v4631_v17  ;;  %v4633_v46 = vpop.f32.mrb[145].mxu0  ;;  %6990 = vmatprep.subr.bf16.mxu1 %v16748_v8  ;;  %v14952_v57 = vld [vmem:[#allocation6 + $0x1114] ss:$24 sps:$4 sm:$0xff]   ;;  %v14957_v56 = vld [vmem:[#allocation6 + $0x1110] ss:$24 sps:$4 sm:$0xff]  }
 0x532   :  { %v14945_v19 = vadd.f32 %v16746_v28, %v4633_v46  ;;  %v4635_v12 = vpop.f32.mrb[146].mxu0  ;;  %6054 = vmatpush1.bf16.msra.mxu0 %v14933_v53  ;;  %v16749_v17 = vld [vmem:[#allocation101_spill] sm:$0xff]  ;;  %v14960_v46 = vld [vmem:[#allocation6 + $0x1144] ss:$24 sps:$4 sm:$0xff]   ;;  %v14965_v8 = vld [vmem:[#allocation6 + $0x1140] ss:$24 sps:$4 sm:$0xff]  }
 0x533   :  { %16744 = vst [vmem:[#allocation51_spill] sm:$0xff] %v14940_v58  ;;  %v4636_v37 = vpop.f32.mrb[147].mxu0  ;;  %6055 = vmatprep.subr.bf16.mxu0 %v14936_v63  ;;  %v14968_v28 = vld [vmem:[#allocation6 + $0x1174] ss:$24 sps:$4 sm:$0xff]   ;;  %v16752_v12 = vld [vmem:[#allocation35_spill] sm:$0xff] }
 0x534   :  { %16747 = vst [vmem:[#allocation82_spill] sm:$0xff] %v14945_v19  ;;  %6991 = vmatpush1.bf16.msra.mxu1 %v16749_v17  ;;  %v16751_v37 = vld [vmem:[#allocation103_spill] sm:$0xff]  ;;  %v16759_v19 = vld [vmem:[#allocation36_spill] sm:$0xff] }
 0x535   :  { %6992 = vmatprep.subr.bf16.mxu1 %v16750_v6  ;;  %v16753_v17 = vld [vmem:[#allocation91_spill] sm:$0xff]  ;;  %v14973_v6 = vld [vmem:[#allocation6 + $0x1170] ss:$24 sps:$4 sm:$0xff]  }
 0x536   :  { %6056 = vmatpush1.bf16.msra.mxu0 %v14949_v32  ;;  %v14981_v58 = vld [vmem:[#allocation6 + $0x11a0] ss:$24 sps:$4 sm:$0xff]  }
 0x537   :  { %6057 = vmatprep.subr.bf16.mxu0 %v14952_v57 }
 0x538   :  { %6993 = vmatpush1.bf16.msra.mxu1 %v14495_v62  ;;  %v14976_v62 = vld [vmem:[#allocation6 + $0x11a4] ss:$24 sps:$4 sm:$0xff]  }
 0x539   :  { %6994 = vmatprep.subr.bf16.mxu1 %v16751_v37  ;;  %v16754_v37 = vld [vmem:[#allocation94_spill] sm:$0xff] }
 0x53a   :  { %6058 = vmatpush1.bf16.msra.mxu0 %v14957_v56 }
 0x53b   :  { %6059 = vmatprep.subr.bf16.mxu0 %v14960_v46 }
 0x53c   :  { %6995 = vmatpush1.bf16.msra.mxu1 %v16752_v12  ;;  %v14984_v12 = vld [vmem:[#allocation6 + $0x11d4] ss:$24 sps:$4 sm:$0xff]  }
 0x53d   :  { %6996 = vmatprep.subr.bf16.mxu1 %v16753_v17  ;;  %16755 = vst [vmem:[#allocation27_spill] sm:$0xff] %v14984_v12  ;;  %v14989_v17 = vld [vmem:[#allocation6 + $0x11d0] ss:$24 sps:$4 sm:$0xff]  }
 0x53e   :  { %6060 = vmatpush1.bf16.msra.mxu0 %v14965_v8 }
 0x53f   :  { %6061 = vmatprep.subr.bf16.mxu0 %v14968_v28 }
 0x540   :  { %6997 = vmatpush1.bf16.msra.mxu1 %v14513_v29  ;;  %v14992_v29 = vld [vmem:[#allocation6 + $0xc14] ss:$24 sps:$4 sm:$0xff]  }
 0x541   :  { %6998 = vmatprep.subr.bf16.mxu1 %v16754_v37  ;;  %v14997_v37 = vld [vmem:[#allocation6 + $0xc10] ss:$24 sps:$4 sm:$0xff]  }
 0x542   :  { %6062 = vmatpush1.bf16.msra.mxu0 %v14973_v6  ;;  %16756 = vst [vmem:[#allocation86_spill] sm:$0xff] %v14997_v37 }
 0x543   :  { %6063 = vmatprep.subr.bf16.mxu0 %v14976_v62 }
 0x544   :  { %6999 = vmatpush1.bf16.msra.mxu1 %v14521_v36  ;;  %v15000_v36 = vld [vmem:[#allocation6 + $0xc44] ss:$24 sps:$4 sm:$0xff]  }
 0x545   :  { %7000 = vmatprep.subr.bf16.mxu1 %v14524_v7  ;;  %16757 = vst [vmem:[#allocation59_spill] sm:$0xff] %v15000_v36  ;;  %v16758_v7 = vld [vmem:[#allocation21_spill] sm:$0xff] }
 0x546   :  { %6064 = vmatpush1.bf16.msra.mxu0 %v14981_v58 }
 0x547   :  { %6065 = vmatprep.subr.bf16.mxu0 %v14984_v12  ;;  %v15006_v12 = vld [vmem:[#allocation6 + $0xc40] ss:$24 sps:$4 sm:$0xff]  }
 0x548   :  { %7001 = vmatpush1.bf16.msra.mxu1 %v14531_v43  ;;  %v15010_v43 = vld [vmem:[#allocation6 + $0xc74] ss:$24 sps:$4 sm:$0xff]  }
 0x549   :  { %7002 = vmatprep.subr.bf16.mxu1 %v14534_v5  ;;  %16760 = vst [vmem:[#allocation106_spill] sm:$0xff] %v15010_v43  ;;  %v15018_v5 = vld [vmem:[#allocation6 + $0xca4] ss:$24 sps:$4 sm:$0xff]  }
 0x54a   :  { %6066 = vmatpush1.bf16.msra.mxu0 %v14989_v17 }
 0x54b   :  { %6218 = vmatprep.subr.bf16.mxu0 %v14992_v29 }
 0x54c   :  { %7003 = vmatpush1.bf16.msra.mxu1 %v14539_v11  ;;  %v15015_v11 = vld [vmem:[#allocation6 + $0xc70] ss:$24 sps:$4 sm:$0xff]  }
 0x54d   :  { %6068 = vmatmul.mubr.bf16.vlgmr.msra.gmra.mrb[124].mxu0 %v16758_v7  ;;  %7004 = vmatprep.subr.bf16.mxu1 %v14542_v35  ;;  %16761 = vst [vmem:[#allocation60_spill] sm:$0xff] %v15015_v11  ;;  %v16763_v35 = vld [vmem:[#allocation58_spill] sm:$0xff] }
 0x54e   :  { %6077 = vmatprep.mubr.bf16.mxu0 %v16759_v19  ;;  %6219 = vmatpush1.bf16.msra.mxu0 %v14997_v37  ;;  %v16762_v37 = vld [vmem:[#allocation40_spill] sm:$0xff] }
 0x54f   :  { %6220 = vmatprep.subr.bf16.mxu0 %v15000_v36  ;;  %v15024_v36 = vld [vmem:[#allocation6 + $0xca0] ss:$24 sps:$4 sm:$0xff]  }
 0x550   :  { %7005 = vmatpush1.bf16.msra.mxu1 %v14547_v22  ;;  %v15028_v22 = vld [vmem:[#allocation6 + $0xcd4] ss:$24 sps:$4 sm:$0xff]  }
 0x551   :  { %7006 = vmatprep.subr.bf16.mxu1 %v14550_v20  ;;  %v16764_v20 = vld [vmem:[#allocation104_spill] sm:$0xff] }
 0x552   :  { %6221 = vmatpush1.bf16.msra.mxu0 %v15006_v12 }
 0x553   :  { %6222 = vmatprep.subr.bf16.mxu0 %v15010_v43  ;;  %v15036_v43 = vld [vmem:[#allocation6 + $0xd04] ss:$24 sps:$4 sm:$0xff]  }
 0x554   :  { %7007 = vmatpush1.bf16.msra.mxu1 %v14555_v60  ;;  %v15033_v60 = vld [vmem:[#allocation6 + $0xcd0] ss:$24 sps:$4 sm:$0xff]  }
 0x555   :  { %6078 = vmatmul.mubr.bf16.gmra.mrb[128].mxu0 %v16762_v37  ;;  %7008 = vmatprep.subr.bf16.mxu1 %v14558_v45  ;;  %v15042_v45 = vld [vmem:[#allocation6 + $0xd00] ss:$24 sps:$4 sm:$0xff]  }
 0x556   :  { %6087 = vmatprep.mubr.bf16.mxu0 %v16763_v35  ;;  %6223 = vmatpush1.bf16.msra.mxu0 %v15015_v11  ;;  %v16765_v11 = vld [vmem:[#allocation31_spill] sm:$0xff] }
 0x557   :  { %6224 = vmatprep.subr.bf16.mxu0 %v15018_v5 }
 0x558   :  { %7009 = vmatpush1.bf16.msra.mxu1 %v16764_v20  ;;  %v15121_v20 = vld [vmem:[#allocation6 + $0xeb0] ss:$24 sps:$4 sm:$0xff]  }
 0x559   :  { %7010 = vmatprep.subr.bf16.mxu1 %v14566_v18  ;;  %v15046_v18 = vld [vmem:[#allocation6 + $0xd34] ss:$24 sps:$4 sm:$0xff]  }
 0x55a   :  { %6225 = vmatpush1.bf16.msra.mxu0 %v15024_v36 }
 0x55b   :  { %6226 = vmatprep.subr.bf16.mxu0 %v15028_v22 }
 0x55c   :  { %7011 = vmatpush1.bf16.msra.mxu1 %v14571_v14  ;;  %v15053_v14 = vld [vmem:[#allocation6 + $0xd30] ss:$24 sps:$4 sm:$0xff]  }
 0x55d   :  { %6088 = vmatmul.mubr.bf16.gmra.mrb[132].mxu0 %v16765_v11  ;;  %7041 = vmatprep.subr.bf16.mxu1 %v14574_v25  ;;  %v16766_v25 = vld [vmem:[#allocation24_spill] sm:$0xff] }
 0x55e   :  { %6227 = vmatpush1.bf16.msra.mxu0 %v15033_v60  ;;  %6250 = vmatprep.mubr.bf16.mxu0 %v16670_v21  ;;  %v15056_v21 = vld [vmem:[#allocation6 + $0xd64] ss:$24 sps:$4 sm:$0xff]  }
 0x55f   :  { %6228 = vmatprep.subr.bf16.mxu0 %v15036_v43  ;;  %7013 = vmatmul.mubr.bf16.vlgmr.msra.gmra.mrb[136].mxu1 %v16673_v27  ;;  %v15061_v27 = vld [vmem:[#allocation6 + $0xd60] ss:$24 sps:$4 sm:$0xff]  }
 0x560   :  { %7022 = vmatprep.mubr.bf16.mxu1 %v16674_v30  ;;  %7042 = vmatpush1.bf16.msra.mxu1 %v14579_v24  ;;  %v15064_v24 = vld [vmem:[#allocation6 + $0xd94] ss:$24 sps:$4 sm:$0xff]   ;;  %v16767_v30 = vld [vmem:[#allocation67_spill] sm:$0xff] }
 0x561   :  { %7043 = vmatprep.subr.bf16.mxu1 %v14582_v26  ;;  %v15071_v26 = vld [vmem:[#allocation6 + $0xd90] ss:$24 sps:$4 sm:$0xff]  }
 0x562   :  { %6229 = vmatpush1.bf16.msra.mxu0 %v15042_v45 }
 0x563   :  { %6230 = vmatprep.subr.bf16.mxu0 %v15046_v18 }
 0x564   :  { %7044 = vmatpush1.bf16.msra.mxu1 %v14588_v54  ;;  %v15074_v54 = vld [vmem:[#allocation6 + $0xdc4] ss:$24 sps:$4 sm:$0xff]  }
 0x565   :  { %7045 = vmatprep.subr.bf16.mxu1 %v16766_v25  ;;  %v15124_v25 = vld [vmem:[#allocation6 + $0xee4] ss:$24 sps:$4 sm:$0xff]  }
 0x566   :  { %6231 = vmatpush1.bf16.msra.mxu0 %v15053_v14 }
 0x567   :  { %6232 = vmatprep.subr.bf16.mxu0 %v15056_v21  ;;  %7023 = vmatmul.mubr.bf16.gmra.mrb[140].mxu1 %v16621_v15  ;;  %v15079_v15 = vld [vmem:[#allocation6 + $0xdc0] ss:$24 sps:$4 sm:$0xff]  }
 0x568   :  { %7032 = vmatprep.mubr.bf16.mxu1 %v16622_v4  ;;  %7046 = vmatpush1.bf16.msra.mxu1 %v14597_v47  ;;  %v15082_v4 = vld [vmem:[#allocation6 + $0xdf4] ss:$24 sps:$4 sm:$0xff]   ;;  %v15089_v47 = vld [vmem:[#allocation6 + $0xdf0] ss:$24 sps:$4 sm:$0xff]  }
 0x569   :  { %7047 = vmatprep.subr.bf16.mxu1 %v14600_v33  ;;  %v15092_v33 = vld [vmem:[#allocation6 + $0xe24] ss:$24 sps:$4 sm:$0xff]  }
 0x56a   :  { %6233 = vmatpush1.bf16.msra.mxu0 %v15061_v27 }
 0x56b   :  { %6234 = vmatprep.subr.bf16.mxu0 %v15064_v24 }
 0x56c   :  { %7048 = vmatpush1.bf16.msra.mxu1 %v14606_v13  ;;  %v16768_v13 = vld [vmem:[#allocation95_spill] sm:$0xff] }
 0x56d   :  { %7049 = vmatprep.subr.bf16.mxu1 %v16767_v30  ;;  %v16776_v30 = vld [vmem:[#allocation22_spill] sm:$0xff] }
 0x56e   :  { %6235 = vmatpush1.bf16.msra.mxu0 %v15071_v26 }
 0x56f   :  { %6236 = vmatprep.subr.bf16.mxu0 %v15074_v54  ;;  %7033 = vmatmul.mubr.bf16.gmra.mrb[144].mxu1 %v16626_v41  ;;  %v15097_v41 = vld [vmem:[#allocation6 + $0xe20] ss:$24 sps:$4 sm:$0xff]  }
 0x570   :  { %7050 = vmatpush1.bf16.msra.mxu1 %v14615_v0  ;;  %7073 = vmatprep.mubr.bf16.mxu1 %v16627_v52  ;;  %v15100_v52 = vld [vmem:[#allocation6 + $0xe54] ss:$24 sps:$4 sm:$0xff]   ;;  %v15105_v0 = vld [vmem:[#allocation6 + $0xe50] ss:$24 sps:$4 sm:$0xff]  }
 0x571   :  { %7051 = vmatprep.subr.bf16.mxu1 %v14618_v44  ;;  %v16769_v44 = vld [vmem:[#allocation26_spill] sm:$0xff] }
 0x572   :  { %6237 = vmatpush1.bf16.msra.mxu0 %v15079_v15 }
 0x573   :  { %6238 = vmatprep.subr.bf16.mxu0 %v15082_v4 }
 0x574   :  { %7052 = vmatpush1.bf16.msra.mxu1 %v14624_v1  ;;  %v15108_v1 = vld [vmem:[#allocation6 + $0xe84] ss:$24 sps:$4 sm:$0xff]  }
 0x575   :  { %7053 = vmatprep.subr.bf16.mxu1 %v14628_v31  ;;  %v15113_v31 = vld [vmem:[#allocation6 + $0xe80] ss:$24 sps:$4 sm:$0xff]  }
 0x576   :  { %6239 = vmatpush1.bf16.msra.mxu0 %v15089_v47 }
 0x577   :  { %6240 = vmatprep.subr.bf16.mxu0 %v15092_v33 }
 0x578   :  { %7054 = vmatpush1.bf16.msra.mxu1 %v14635_v38  ;;  %v15116_v38 = vld [vmem:[#allocation6 + $0xeb4] ss:$24 sps:$4 sm:$0xff]  }
 0x579   :  { %7055 = vmatprep.subr.bf16.mxu1 %v16768_v13  ;;  %v15164_v13 = vld [vmem:[#allocation6 + $0xfa0] ss:$24 sps:$4 sm:$0xff]  }
 0x57a   :  { %6241 = vmatpush1.bf16.msra.mxu0 %v15097_v41  ;;  %16778 = vst [vmem:[#allocation91_spill] sm:$0xff] %v15164_v13 }
 0x57b   :  { %6242 = vmatprep.subr.bf16.mxu0 %v15100_v52 }
 0x57c   :  { %7056 = vmatpush1.bf16.msra.mxu1 %v16769_v44  ;;  %v15168_v44 = vld [vmem:[#allocation6 + $0xfd4] ss:$24 sps:$4 sm:$0xff]  }
 0x57d   :  { %7057 = vmatprep.subr.bf16.mxu1 %v14646_v9  ;;  %v15129_v9 = vld [vmem:[#allocation6 + $0xee0] ss:$24 sps:$4 sm:$0xff]   ;;  %16780 = vst [vmem:[#allocation94_spill] sm:$0xff] %v15168_v44 }
 0x57e   :  { %6243 = vmatpush1.bf16.msra.mxu0 %v15105_v0 }
 0x57f   :  { %6244 = vmatprep.subr.bf16.mxu0 %v15108_v1 }
 0x580   :  { %7058 = vmatpush1.bf16.msra.mxu1 %v14653_v23  ;;  %v15132_v23 = vld [vmem:[#allocation6 + $0xf14] ss:$24 sps:$4 sm:$0xff]  }
 0x581   :  { %7059 = vmatprep.subr.bf16.mxu1 %v14656_v48  ;;  %v15137_v48 = vld [vmem:[#allocation6 + $0xf10] ss:$24 sps:$4 sm:$0xff]  }
 0x582   :  { %6245 = vmatpush1.bf16.msra.mxu0 %v15113_v31 }
 0x583   :  { %6246 = vmatprep.subr.bf16.mxu0 %v15116_v38 }
 0x584   :  { %7060 = vmatpush1.bf16.msra.mxu1 %v14661_v61  ;;  %v15140_v61 = vld [vmem:[#allocation6 + $0xf44] ss:$24 sps:$4 sm:$0xff]  }
 0x585   :  { %7061 = vmatprep.subr.bf16.mxu1 %v14664_v50  ;;  %v15146_v50 = vld [vmem:[#allocation6 + $0xf40] ss:$24 sps:$4 sm:$0xff]  }
 0x586   :  { %6247 = vmatpush1.bf16.msra.mxu0 %v15121_v20  ;;  %16770 = vst [vmem:[#allocation101_spill] sm:$0xff] %v15146_v50 }
 0x587   :  { %6248 = vmatprep.subr.bf16.mxu0 %v15124_v25 }
 0x588   :  { %7062 = vmatpush1.bf16.msra.mxu1 %v14671_v42  ;;  %v15150_v42 = vld [vmem:[#allocation6 + $0xf74] ss:$24 sps:$4 sm:$0xff]  }
 0x589   :  { %7063 = vmatprep.subr.bf16.mxu1 %v14674_v39  ;;  %16771 = vst [vmem:[#allocation102_spill] sm:$0xff] %v15150_v42  ;;  %v16772_v39 = vld [vmem:[#allocation68_spill] sm:$0xff] }
 0x58a   :  { %6249 = vmatpush1.bf16.msra.mxu0 %v15129_v9 }
 0x58b   :  { %6279 = vmatprep.subr.bf16.mxu0 %v15132_v23 }
 0x58c   :  { %7064 = vmatpush1.bf16.msra.mxu1 %v14679_v40  ;;  %v15155_v40 = vld [vmem:[#allocation6 + $0xf70] ss:$24 sps:$4 sm:$0xff]  }
 0x58d   :  { %6251 = vmatmul.mubr.bf16.vlgmr.msra.gmra.mrb[148].mxu0 %v16697_v16  ;;  %7065 = vmatprep.subr.bf16.mxu1 %v14682_v2  ;;  %16773 = vst [vmem:[#allocation103_spill] sm:$0xff] %v15155_v40  ;;  %v16775_v16 = vld [vmem:[#allocation96_spill] sm:$0xff]  ;;  %v16777_v2 = vld [vmem:[#allocation93_spill] sm:$0xff] }
 0x58e   :  { %6260 = vmatprep.mubr.bf16.mxu0 %v16698_v59  ;;  %6280 = vmatpush1.bf16.msra.mxu0 %v15137_v48  ;;  %v15158_v59 = vld [vmem:[#allocation6 + $0xfa4] ss:$24 sps:$4 sm:$0xff]  }
 0x58f   :  { %6281 = vmatprep.subr.bf16.mxu0 %v15140_v61  ;;  %16774 = vst [vmem:[#allocation35_spill] sm:$0xff] %v15158_v59 }
 0x590   :  { %7066 = vmatpush1.bf16.msra.mxu1 %v14687_v49  ;;  %v16779_v49 = vld [vmem:[#allocation105_spill] sm:$0xff] }
 0x591   :  { %7067 = vmatprep.subr.bf16.mxu1 %v16772_v39  ;;  %v16781_v39 = vld [vmem:[#allocation69_spill] sm:$0xff] }
 0x592   :  { %6282 = vmatpush1.bf16.msra.mxu0 %v15146_v50  ;;  %v16786_v50 = vld [vmem:[#allocation66_spill] sm:$0xff] }
 0x593   :  { %6283 = vmatprep.subr.bf16.mxu0 %v15150_v42  ;;  %v16782_v42 = vld [vmem:[#allocation30_spill] sm:$0xff] }
 0x594   :  { %7068 = vmatpush1.bf16.msra.mxu1 %v16775_v16  ;;  %v15173_v16 = vld [vmem:[#allocation6 + $0xfd0] ss:$24 sps:$4 sm:$0xff]  }
 0x595   :  { %6261 = vmatmul.mubr.bf16.gmra.mrb[152].mxu0 %v16776_v30  ;;  %7069 = vmatprep.subr.bf16.mxu1 %v16779_v49  ;;  %16783 = vst [vmem:[#allocation21_spill] sm:$0xff] %v15173_v16  ;;  %v15176_v30 = vld [vmem:[#allocation6 + $0x1004] ss:$24 sps:$4 sm:$0xff]   ;;  %v16787_v49 = vld [vmem:[#allocation53_spill] sm:$0xff] }
 0x596   :  { %6270 = vmatprep.mubr.bf16.mxu0 %v16777_v2  ;;  %6284 = vmatpush1.bf16.msra.mxu0 %v15155_v40  ;;  %16784 = vst [vmem:[#allocation36_spill] sm:$0xff] %v15176_v30  ;;  %v16785_v40 = vld [vmem:[#allocation70_spill] sm:$0xff] }
 0x597   :  { %6285 = vmatprep.subr.bf16.mxu0 %v15158_v59  ;;  %v15182_v59 = vld [vmem:[#allocation6 + $0x1000] ss:$24 sps:$4 sm:$0xff]  }
 0x598   :  { %7070 = vmatpush1.bf16.msra.mxu1 %v16781_v39  ;;  %v16788_v39 = vld [vmem:[#allocation71_spill] sm:$0xff] }
 0x599   :  { %7071 = vmatprep.subr.bf16.mxu1 %v16782_v42  ;;  %v15186_v42 = vld [vmem:[#allocation6 + $0x1034] ss:$24 sps:$4 sm:$0xff]  }
 0x59a   :  { %6286 = vmatpush1.bf16.msra.mxu0 %v15164_v13  ;;  %v16789_v13 = vld [vmem:[#allocation97_spill] sm:$0xff] }
 0x59b   :  { %6287 = vmatprep.subr.bf16.mxu0 %v15168_v44  ;;  %v16790_v44 = vld [vmem:[#allocation89_spill] sm:$0xff] }
 0x59c   :  { %7072 = vmatpush1.bf16.msra.mxu1 %v16785_v40  ;;  %v16791_v40 = vld [vmem:[#allocation20_spill] sm:$0xff] }
 0x59d   :  { %6271 = vmatmul.mubr.bf16.gmra.mrb[156].mxu0 %v16786_v50  ;;  %7102 = vmatprep.subr.bf16.mxu1 %v16788_v39  ;;  %v16794_v39 = vld [vmem:[#allocation34_spill] sm:$0xff] }
 0x59e   :  { %6288 = vmatpush1.bf16.msra.mxu0 %v15173_v16  ;;  %6311 = vmatprep.mubr.bf16.mxu0 %v16787_v49  ;;  %v15193_v16 = vld [vmem:[#allocation6 + $0x1030] ss:$24 sps:$4 sm:$0xff]   ;;  %v15196_v49 = vld [vmem:[#allocation6 + $0x1064] ss:$24 sps:$4 sm:$0xff]  }
 0x59f   :  { %6289 = vmatprep.subr.bf16.mxu0 %v15176_v30  ;;  %7074 = vmatmul.mubr.bf16.vlgmr.msra.gmra.mrb[136].mxu1 %v16789_v13  ;;  %16792 = vst [vmem:[#allocation40_spill] sm:$0xff] %v15193_v16  ;;  %16793 = vst [vmem:[#allocation58_spill] sm:$0xff] %v15196_v49  ;;  %v16795_v30 = vld [vmem:[#allocation72_spill] sm:$0xff] }
 0x5a0   :  { %7083 = vmatprep.mubr.bf16.mxu1 %v16639_v55  ;;  %7103 = vmatpush1.bf16.msra.mxu1 %v16790_v44  ;;  %v15201_v13 = vld [vmem:[#allocation6 + $0x1060] ss:$24 sps:$4 sm:$0xff]   ;;  %v15204_v55 = vld [vmem:[#allocation6 + $0x1094] ss:$24 sps:$4 sm:$0xff]  }
 0x5a1   :  { %7104 = vmatprep.subr.bf16.mxu1 %v16791_v40  ;;  %16796 = vst [vmem:[#allocation104_spill] sm:$0xff] %v15201_v13  ;;  %16797 = vst [vmem:[#allocation31_spill] sm:$0xff] %v15204_v55  ;;  %v16798_v44 = vld [vmem:[#allocation92_spill] sm:$0xff]  ;;  %v16799_v40 = vld [vmem:[#allocation98_spill] sm:$0xff] }
 0x5a2   :  { %6290 = vmatpush1.bf16.msra.mxu0 %v15182_v59 }
 0x5a3   :  { %6291 = vmatprep.subr.bf16.mxu0 %v15186_v42 }
 0x5a4   :  { %7105 = vmatpush1.bf16.msra.mxu1 %v16794_v39  ;;  %v15211_v39 = vld [vmem:[#allocation6 + $0x1090] ss:$24 sps:$4 sm:$0xff]  }
 0x5a5   :  { %7106 = vmatprep.subr.bf16.mxu1 %v16795_v30  ;;  %16800 = vst [vmem:[#allocation24_spill] sm:$0xff] %v15211_v39  ;;  %v15214_v30 = vld [vmem:[#allocation6 + $0x10c4] ss:$24 sps:$4 sm:$0xff]  }
 0x5a6   :  { %6292 = vmatpush1.bf16.msra.mxu0 %v15193_v16  ;;  %16801 = vst [vmem:[#allocation67_spill] sm:$0xff] %v15214_v30  ;;  %v16802_v16 = vld [vmem:[#allocation73_spill] sm:$0xff] }
 0x5a7   :  { %6293 = vmatprep.subr.bf16.mxu0 %v15196_v49  ;;  %7084 = vmatmul.mubr.bf16.gmra.mrb[140].mxu1 %v16642_v34  ;;  %v16803_v49 = vld [vmem:[#allocation38_spill] sm:$0xff]  ;;  %v15219_v34 = vld [vmem:[#allocation6 + $0x10c0] ss:$24 sps:$4 sm:$0xff]  }
 0x5a8   :  { %7093 = vmatprep.mubr.bf16.mxu1 %v16643_v10  ;;  %7107 = vmatpush1.bf16.msra.mxu1 %v16798_v44  ;;  %16804 = vst [vmem:[#allocation95_spill] sm:$0xff] %v15219_v34  ;;  %v15222_v10 = vld [vmem:[#allocation6 + $0x10f4] ss:$24 sps:$4 sm:$0xff]  }
 0x5a9   :  { %7108 = vmatprep.subr.bf16.mxu1 %v16799_v40  ;;  %16805 = vst [vmem:[#allocation26_spill] sm:$0xff] %v15222_v10  ;;  %v16806_v44 = vld [vmem:[#allocation74_spill] sm:$0xff]  ;;  %v16807_v40 = vld [vmem:[#allocation37_spill] sm:$0xff] }
 0x5aa   :  { %6294 = vmatpush1.bf16.msra.mxu0 %v15201_v13 }
 0x5ab   :  { %6295 = vmatprep.subr.bf16.mxu0 %v15204_v55  ;;  %v16808_v55 = vld [vmem:[#allocation63_spill] sm:$0xff] }
 0x5ac   :  { %7109 = vmatpush1.bf16.msra.mxu1 %v16802_v16  ;;  %v15229_v16 = vld [vmem:[#allocation6 + $0x10f0] ss:$24 sps:$4 sm:$0xff]  }
 0x5ad   :  { %7110 = vmatprep.subr.bf16.mxu1 %v16803_v49  ;;  %16809 = vst [vmem:[#allocation68_spill] sm:$0xff] %v15229_v16  ;;  %v15232_v49 = vld [vmem:[#allocation6 + $0x1124] ss:$24 sps:$4 sm:$0xff]  }
 0x5ae   :  { %6296 = vmatpush1.bf16.msra.mxu0 %v15211_v39  ;;  %16810 = vst [vmem:[#allocation96_spill] sm:$0xff] %v15232_v49  ;;  %v16811_v39 = vld [vmem:[#allocation75_spill] sm:$0xff] }
 0x5af   :  { %6297 = vmatprep.subr.bf16.mxu0 %v15214_v30  ;;  %7094 = vmatmul.mubr.bf16.gmra.mrb[144].mxu1 %v16644_v3  ;;  %v16812_v30 = vld [vmem:[#allocation41_spill] sm:$0xff]  ;;  %v15237_v3 = vld [vmem:[#allocation6 + $0x1120] ss:$24 sps:$4 sm:$0xff]  }
 0x5b0   :  { %7111 = vmatpush1.bf16.msra.mxu1 %v16806_v44  ;;  %7134 = vmatprep.mubr.bf16.mxu1 %v16807_v40  ;;  %16813 = vst [vmem:[#allocation22_spill] sm:$0xff] %v15237_v3  ;;  %v15240_v44 = vld [vmem:[#allocation6 + $0x1154] ss:$24 sps:$4 sm:$0xff]  }
 0x5b1   :  { %7112 = vmatprep.subr.bf16.mxu1 %v16808_v55  ;;  %16814 = vst [vmem:[#allocation93_spill] sm:$0xff] %v15240_v44  ;;  %v16816_v55 = vld [vmem:[#allocation55_spill] sm:$0xff] }
 0x5b2   :  { %6298 = vmatpush1.bf16.msra.mxu0 %v15219_v34  ;;  %v16815_v34 = vld [vmem:[#allocation100_spill] sm:$0xff] }
 0x5b3   :  { %6299 = vmatprep.subr.bf16.mxu0 %v15222_v10  ;;  %v15245_v10 = vld [vmem:[#allocation6 + $0x1150] ss:$24 sps:$4 sm:$0xff]  }
 0x5b4   :  { %7113 = vmatpush1.bf16.msra.mxu1 %v16811_v39  ;;  %16817 = vst [vmem:[#allocation105_spill] sm:$0xff] %v15245_v10  ;;  %v15248_v39 = vld [vmem:[#allocation6 + $0x1184] ss:$24 sps:$4 sm:$0xff]  }
 0x5b5   :  { %7114 = vmatprep.subr.bf16.mxu1 %v16812_v30  ;;  %16818 = vst [vmem:[#allocation69_spill] sm:$0xff] %v15248_v39  ;;  %v16820_v30 = vld [vmem:[#allocation28_spill] sm:$0xff] }
 0x5b6   :  { %6300 = vmatpush1.bf16.msra.mxu0 %v15229_v16  ;;  %v16819_v16 = vld [vmem:[#allocation25_spill] sm:$0xff] }
 0x5b7   :  { %6301 = vmatprep.subr.bf16.mxu0 %v15232_v49  ;;  %v15253_v49 = vld [vmem:[#allocation6 + $0x1180] ss:$24 sps:$4 sm:$0xff]  }
 0x5b8   :  { %7115 = vmatpush1.bf16.msra.mxu1 %v16815_v34  ;;  %16821 = vst [vmem:[#allocation30_spill] sm:$0xff] %v15253_v49  ;;  %v15256_v34 = vld [vmem:[#allocation6 + $0x11b4] ss:$24 sps:$4 sm:$0xff]  }
 0x5b9   :  { %7116 = vmatprep.subr.bf16.mxu1 %v16816_v55  ;;  %16822 = vst [vmem:[#allocation70_spill] sm:$0xff] %v15256_v34  ;;  %v16824_v55 = vld [vmem:[#allocation99_spill] sm:$0xff] }
 0x5ba   :  { %6302 = vmatpush1.bf16.msra.mxu0 %v15237_v3  ;;  %v16823_v3 = vld [vmem:[#allocation32_spill] sm:$0xff] }
 0x5bb   :  { %6303 = vmatprep.subr.bf16.mxu0 %v15240_v44  ;;  %v15261_v44 = vld [vmem:[#allocation6 + $0x11b0] ss:$24 sps:$4 sm:$0xff]  }
 0x5bc   :  { %7117 = vmatpush1.bf16.msra.mxu1 %v16819_v16  ;;  %16825 = vst [vmem:[#allocation66_spill] sm:$0xff] %v15261_v44  ;;  %v15264_v16 = vld [vmem:[#allocation6 + $0x11e4] ss:$24 sps:$4 sm:$0xff]  }
 0x5bd   :  { %7118 = vmatprep.subr.bf16.mxu1 %v16820_v30  ;;  %16826 = vst [vmem:[#allocation53_spill] sm:$0xff] %v15264_v16  ;;  %v16828_v30 = vld [vmem:[#allocation76_spill] sm:$0xff] }
 0x5be   :  { %6304 = vmatpush1.bf16.msra.mxu0 %v15245_v10  ;;  %v16827_v10 = vld [vmem:[#allocation56_spill] sm:$0xff] }
 0x5bf   :  { %6305 = vmatprep.subr.bf16.mxu0 %v15248_v39  ;;  %v15269_v39 = vld [vmem:[#allocation6 + $0x11e0] ss:$24 sps:$4 sm:$0xff]  }
 0x5c0   :  { %7119 = vmatpush1.bf16.msra.mxu1 %v16823_v3  ;;  %16829 = vst [vmem:[#allocation71_spill] sm:$0xff] %v15269_v39  ;;  %v16830_v3 = vld [vmem:[#allocation42_spill] sm:$0xff] }
 0x5c1   :  { %7120 = vmatprep.subr.bf16.mxu1 %v16824_v55  ;;  %v16831_v55 = vld [vmem:[#allocation77_spill] sm:$0xff] }
 0x5c2   :  { %6306 = vmatpush1.bf16.msra.mxu0 %v15253_v49  ;;  %v16832_v49 = vld [vmem:[#allocation43_spill] sm:$0xff] }
 0x5c3   :  { %6307 = vmatprep.subr.bf16.mxu0 %v15256_v34  ;;  %v16836_v34 = vld [vmem:[#allocation107_spill] sm:$0xff] }
 0x5c4   :  { %7121 = vmatpush1.bf16.msra.mxu1 %v16827_v10  ;;  %v16833_v10 = vld [vmem:[#allocation39_spill] sm:$0xff] }
 0x5c5   :  { %7122 = vmatprep.subr.bf16.mxu1 %v16828_v30  ;;  %v16835_v30 = vld [vmem:[#allocation17_spill] sm:$0xff] }
 0x5c6   :  { %6308 = vmatpush1.bf16.msra.mxu0 %v15261_v44  ;;  %v16834_v44 = vld [vmem:[#allocation33_spill] sm:$0xff] }
 0x5c7   :  { %6309 = vmatprep.subr.bf16.mxu0 %v15264_v16 }
 0x5c8   :  { %7123 = vmatpush1.bf16.msra.mxu1 %v16830_v3  ;;  %v16837_v3 = vld [vmem:[#allocation108_spill] sm:$0xff] }
 0x5c9   :  { %7124 = vmatprep.subr.bf16.mxu1 %v16831_v55  ;;  %v16838_v55 = vld [vmem:[#allocation109_spill] sm:$0xff] }
 0x5ca   :  { %6310 = vmatpush1.bf16.msra.mxu0 %v15269_v39  ;;  %v16850_v39 = vld [vmem:[#allocation18_spill] sm:$0xff] }
 0x5cc   :  { %7125 = vmatpush1.bf16.msra.mxu1 %v16832_v49  ;;  %v16839_v49 = vld [vmem:[#allocation110_spill] sm:$0xff] }
 0x5cd   :  { %6312 = vmatmul.mubr.bf16.vlgmr.msra.gmra.mrb[148].mxu0 %v16758_v7  ;;  %7126 = vmatprep.subr.bf16.mxu1 %v16833_v10  ;;  %v16840_v7 = vld [vmem:[#allocation111_spill] sm:$0xff]  ;;  %v16843_v10 = vld [vmem:[#allocation64_spill] sm:$0xff] }
 0x5ce   :  { %6321 = vmatprep.mubr.bf16.mxu0 %v16759_v19  ;;  %v16841_v19 = vld [vmem:[#allocation112_spill] sm:$0xff] }
 0x5d0   :  { %7127 = vmatpush1.bf16.msra.mxu1 %v16834_v44  ;;  %v16842_v44 = vld [vmem:[#allocation87_spill] sm:$0xff] }
 0x5d1   :  { %7128 = vmatprep.subr.bf16.mxu1 %v16835_v30 }
 0x5d4   :  { %7129 = vmatpush1.bf16.msra.mxu1 %v16836_v34  ;;  %v16844_v34 = vld [vmem:[#allocation88_spill] sm:$0xff] }
 0x5d5   :  { %6322 = vmatmul.mubr.bf16.gmra.mrb[152].mxu0 %v16762_v37  ;;  %7130 = vmatprep.subr.bf16.mxu1 %v16837_v3  ;;  %v16845_v30 = vrot.slane %v16844_v34, 4  ;;  %v16846_v3 = vld [vmem:[#allocation113_spill] sm:$0xff]  ;;  %v15309_v34 = vrot.slane %v16777_v2, 4  ;;  %v16858_v2 = vld [vmem:[#allocation52_spill] sm:$0xff] }
 0x5d6   :  { %6331 = vmatprep.mubr.bf16.mxu0 %v16763_v35 }
 0x5d7   :  { %v15295_v37 = vsel %vm1639_vm2, %v16845_v30, %v16843_v10  ;;  %v16853_v10 = vld [vmem:[#allocation115_spill] sm:$0xff]  ;;  %v16854_v30 = vld [vmem:[#allocation116_spill] sm:$0xff] }
 0x5d8   :  { %7131 = vmatpush1.bf16.msra.mxu1 %v16838_v55  ;;  %v16847_v55 = vld [vmem:[#allocation114_spill] sm:$0xff] }
 0x5d9   :  { %7132 = vmatprep.subr.bf16.mxu1 %v16839_v49  ;;  %v16848_v49 = vld [vmem:[#allocation61_spill] sm:$0xff] }
 0x5dc   :  { %7133 = vmatpush1.bf16.msra.mxu1 %v16840_v7  ;;  %v16849_v7 = vld [vmem:[#allocation65_spill] sm:$0xff] }
 0x5dd   :  { %6332 = vmatmul.mubr.bf16.gmra.mrb[156].mxu0 %v16765_v11  ;;  %7163 = vmatprep.subr.bf16.mxu1 %v16841_v19  ;;  %v16851_v19 = vld [vmem:[#allocation62_spill] sm:$0xff] }
 0x5de   :  { %v16852_v16 = vrot.slane %v16851_v19, 4  ;;  %v16861_v19 = vld [vmem:[#allocation78_spill] sm:$0xff] }
 0x5df   :  { %7135 = vmatmul.mubr.bf16.vlgmr.msra.gmra.mrb[112].mxu1 %v16842_v44 }
 0x5e0   :  { %7144 = vmatprep.mubr.bf16.mxu1 %v15295_v37  ;;  %7164 = vmatpush1.bf16.msra.mxu1 %v16846_v3  ;;  %v15306_v13 = vsel %vm1639_vm2, %v16852_v16, %v16850_v39  ;;  %v16855_v3 = vld [vmem:[#allocation117_spill] sm:$0xff]  ;;  %v16857_v39 = vld [vmem:[#allocation119_spill] sm:$0xff]  ;;  %v16859_v16 = vld [vmem:[#allocation120_spill] sm:$0xff] }
 0x5e1   :  { %7165 = vmatprep.subr.bf16.mxu1 %v16847_v55  ;;  %v15317_v55 = vrot.slane %v16786_v50, 4  ;;  %v16864_v50 = vld [vmem:[#allocation45_spill] sm:$0xff] }
 0x5e4   :  { %7166 = vmatpush1.bf16.msra.mxu1 %v16848_v49  ;;  %v16856_v49 = vld [vmem:[#allocation118_spill] sm:$0xff] }
 0x5e5   :  { %7167 = vmatprep.subr.bf16.mxu1 %v16849_v7  ;;  %v16860_v7 = vld [vmem:[#allocation121_spill] sm:$0xff] }
 0x5e7   :  { %7145 = vmatmul.mubr.bf16.gmra.mrb[116].mxu1 %v15306_v13 }
 0x5e8   :  { %7154 = vmatprep.mubr.bf16.mxu1 %v15309_v34  ;;  %7168 = vmatpush1.bf16.msra.mxu1 %v16853_v10  ;;  %v16862_v10 = vld [vmem:[#allocation48_spill] sm:$0xff] }
 0x5e9   :  { %7169 = vmatprep.subr.bf16.mxu1 %v16854_v30  ;;  %v16863_v30 = vld [vmem:[#allocation83_spill] sm:$0xff] }
 0x5ec   :  { %7170 = vmatpush1.bf16.msra.mxu1 %v16855_v3  ;;  %v16865_v3 = vld [vmem:[#allocation46_spill] sm:$0xff] }
 0x5ed   :  { %7171 = vmatprep.subr.bf16.mxu1 %v16856_v49  ;;  %v16866_v49 = vld [vmem:[#allocation81_spill] sm:$0xff] }
 0x5ef   :  { %7155 = vmatmul.mubr.bf16.gmra.mrb[120].mxu1 %v15317_v55 }
 0x5f0   :  { %7172 = vmatpush1.bf16.msra.mxu1 %v16857_v39  ;;  %7195 = vmatprep.mubr.bf16.mxu1 %v16858_v2  ;;  %v11711_v39 = vld [vmem:[#allocation6 + $0xc3c] ss:$24 sps:$4 sm:$0xff]  }
 0x5f1   :  { %7173 = vmatprep.subr.bf16.mxu1 %v16859_v16  ;;  %v11723_v16 = vld [vmem:[#allocation6 + $0xd5c] ss:$24 sps:$4 sm:$0xff]  }
 0x5f4   :  { %7174 = vmatpush1.bf16.msra.mxu1 %v16860_v7  ;;  %v15389_v7 = vrot.slane %v16765_v11, 4 }
 0x5f5   :  { %7175 = vmatprep.subr.bf16.mxu1 %v16861_v19 }
 0x5f8   :  { %7176 = vmatpush1.bf16.msra.mxu1 %v16862_v10  ;;  %v11712_v10 = vld [vmem:[#allocation6 + $0xc38] ss:$24 sps:$4 sm:$0xff]  }
 0x5f9   :  { %7177 = vmatprep.subr.bf16.mxu1 %v16863_v30  ;;  %v11713_v30 = vld [vmem:[#allocation6 + $0xc6c] ss:$24 sps:$4 sm:$0xff]  }
 0x5fc   :  { %7178 = vmatpush1.bf16.msra.mxu1 %v14903_v51  ;;  %v16867_v51 = vld [vmem:[#allocation27_spill] sm:$0xff] }
 0x5fd   :  { %7179 = vmatprep.subr.bf16.mxu1 %v16864_v50  ;;  %v16875_v50 = vld [vmem:[#allocation29_spill] sm:$0xff] }
 0x600   :  { %7180 = vmatpush1.bf16.msra.mxu1 %v16865_v3  ;;  %v16876_v3 = vld [vmem:[#allocation23_spill] sm:$0xff] }
 0x601   :  { %7181 = vmatprep.subr.bf16.mxu1 %v16866_v49  ;;  %v16877_v49 = vrot.slane %v16876_v3, 4 }
 0x604   :  { %7182 = vmatpush1.bf16.msra.mxu1 %v14933_v53  ;;  %v16868_v53 = vld [vmem:[#allocation19_spill] sm:$0xff] }
 0x605   :  { %7183 = vmatprep.subr.bf16.mxu1 %v14936_v63 }
 0x608   :  { %7184 = vmatpush1.bf16.msra.mxu1 %v14949_v32  ;;  %v11709_v32 = vld [vmem:[#allocation6 + $0xc0c] ss:$24 sps:$4 sm:$0xff]  }
 0x609   :  { %7185 = vmatprep.subr.bf16.mxu1 %v14952_v57  ;;  %v16869_v57 = vld [vmem:[#allocation57_spill] sm:$0xff] }
 0x60c   :  { %7186 = vmatpush1.bf16.msra.mxu1 %v14957_v56  ;;  %v16870_v56 = vld [vmem:[#allocation54_spill] sm:$0xff] }
 0x60d   :  { %7187 = vmatprep.subr.bf16.mxu1 %v14960_v46  ;;  %v16871_v46 = vrot.slane %v16870_v56, 4  ;;  %v11725_v56 = vld [vmem:[#allocation6 + $0xd8c] ss:$24 sps:$4 sm:$0xff]  }
 0x610   :  { %7188 = vmatpush1.bf16.msra.mxu1 %v14965_v8  ;;  %v15352_v8 = vsel %vm1639_vm2, %v16871_v46, %v16869_v57  ;;  %v11717_v46 = vld [vmem:[#allocation6 + $0xccc] ss:$24 sps:$4 sm:$0xff]  }
 0x611   :  { %7189 = vmatprep.subr.bf16.mxu1 %v14968_v28  ;;  %v16872_v28 = vld [vmem:[#allocation44_spill] sm:$0xff] }
 0x614   :  { %7190 = vmatpush1.bf16.msra.mxu1 %v14973_v6  ;;  %v11727_v6 = vld [vmem:[#allocation6 + $0xdbc] ss:$24 sps:$4 sm:$0xff]  }
 0x615   :  { %7191 = vmatprep.subr.bf16.mxu1 %v14976_v62 }
 0x618   :  { %7192 = vmatpush1.bf16.msra.mxu1 %v14981_v58  ;;  %v11710_v58 = vld [vmem:[#allocation6 + $0xc08] ss:$24 sps:$4 sm:$0xff]  }
 0x619   :  { %7193 = vmatprep.subr.bf16.mxu1 %v16867_v51  ;;  %v15369_v51 = vsel %vm1639_vm2, %v16877_v49, %v16875_v50  ;;  %v11716_v49 = vld [vmem:[#allocation6 + $0xc98] ss:$24 sps:$4 sm:$0xff]  }
 0x61c   :  { %7194 = vmatpush1.bf16.msra.mxu1 %v14989_v17 }
 0x61d   :  { %7224 = vmatprep.subr.bf16.mxu1 %v11709_v32  ;;  %v15372_v32 = vrot.slane %v16763_v35, 4 }
 0x61f   :  { %7196 = vmatmul.mubr.bf16.vlgmr.msra.gmra.mrb[112].mxu1 %v16868_v53 }
 0x620   :  { %v15346_v63 = vpop.f32.mrb[124].mxu0  ;;  %7205 = vmatprep.mubr.bf16.mxu1 %v15352_v8  ;;  %7225 = vmatpush1.bf16.msra.mxu1 %v11710_v58  ;;  %v11714_v58 = vld [vmem:[#allocation6 + $0xc68] ss:$24 sps:$4 sm:$0xff]  }
 0x621   :  { %v15357_v62 = vpop.f32.mrb[125].mxu0  ;;  %7226 = vmatprep.subr.bf16.mxu1 %v11711_v39 }
 0x622   :  { %v15359_v17 = vpop.f32.mrb[126].mxu0 }
 0x623   :  { %16873 = vst [vmem:[#allocation97_spill] sm:$0xff] %v15359_v17  ;;  %v15363_v19 = vpop.f32.mrb[127].mxu0  ;;  %v11724_v17 = vld [vmem:[#allocation6 + $0xd58] ss:$24 sps:$4 sm:$0xff]  }
 0x624   :  { %7227 = vmatpush1.bf16.msra.mxu1 %v11712_v10 }
 0x625   :  { %7228 = vmatprep.subr.bf16.mxu1 %v11713_v30  ;;  %v11715_v30 = vld [vmem:[#allocation6 + $0xc9c] ss:$24 sps:$4 sm:$0xff]  }
 0x627   :  { %7206 = vmatmul.mubr.bf16.gmra.mrb[116].mxu1 %v15369_v51 }
 0x628   :  { %v15375_v57 = vpop.f32.mrb[128].mxu0  ;;  %7215 = vmatprep.mubr.bf16.mxu1 %v15372_v32  ;;  %7229 = vmatpush1.bf16.msra.mxu1 %v11714_v58 }
 0x629   :  { %16878 = vst [vmem:[#allocation89_spill] sm:$0xff] %v15375_v57  ;;  %v15380_v39 = vpop.f32.mrb[129].mxu0  ;;  %7230 = vmatprep.subr.bf16.mxu1 %v11715_v30  ;;  %v11718_v30 = vld [vmem:[#allocation6 + $0xcc8] ss:$24 sps:$4 sm:$0xff]  }
 0x62a   :  { %v15382_v10 = vpop.f32.mrb[130].mxu0  ;;  %v11722_v57 = vld [vmem:[#allocation6 + $0xd28] ss:$24 sps:$4 sm:$0xff]  }
 0x62b   :  { %16880 = vst [vmem:[#allocation20_spill] sm:$0xff] %v15382_v10  ;;  %v15386_v3 = vpop.f32.mrb[131].mxu0  ;;  %v11720_v10 = vld [vmem:[#allocation6 + $0xcf8] ss:$24 sps:$4 sm:$0xff]  }
 0x62c   :  { %7231 = vmatpush1.bf16.msra.mxu1 %v11716_v49  ;;  %v11719_v49 = vld [vmem:[#allocation6 + $0xcfc] ss:$24 sps:$4 sm:$0xff]  }
 0x62d   :  { %7232 = vmatprep.subr.bf16.mxu1 %v11717_v46  ;;  %v11721_v46 = vld [vmem:[#allocation6 + $0xd2c] ss:$24 sps:$4 sm:$0xff]  }
 0x62f   :  { %7216 = vmatmul.mubr.bf16.gmra.mrb[120].mxu1 %v15389_v7 }
 0x630   :  { %v15392_v58 = vpop.f32.mrb[132].mxu0  ;;  %7233 = vmatpush1.bf16.msra.mxu1 %v11718_v30  ;;  %7256 = vmatprep.mubr.bf16.mxu1 %v16807_v40  ;;  %v11726_v30 = vld [vmem:[#allocation6 + $0xd88] ss:$24 sps:$4 sm:$0xff]  }
 0x631   :  { %v15397_v35 = vpop.f32.mrb[133].mxu0  ;;  %7234 = vmatprep.subr.bf16.mxu1 %v11719_v49  ;;  %v11729_v49 = vld [vmem:[#allocation6 + $0xdec] ss:$24 sps:$4 sm:$0xff]  }
 0x632   :  { %v6093_v50 = vpop.f32.mrb[134].mxu0 }
 0x633   :  { %v6094_v11 = vpop.f32.mrb[135].mxu0  ;;  %v11728_v50 = vld [vmem:[#allocation6 + $0xdb8] ss:$24 sps:$4 sm:$0xff]  }
 0x634   :  { %7235 = vmatpush1.bf16.msra.mxu1 %v11720_v10  ;;  %v11730_v11 = vld [vmem:[#allocation6 + $0xde8] ss:$24 sps:$4 sm:$0xff]   ;;  %v11731_v10 = vld [vmem:[#allocation6 + $0xe1c] ss:$24 sps:$4 sm:$0xff]  }
 0x635   :  { %7236 = vmatprep.subr.bf16.mxu1 %v11721_v46  ;;  %v11732_v46 = vld [vmem:[#allocation6 + $0xe18] ss:$24 sps:$4 sm:$0xff]  }
 0x638   :  { %7237 = vmatpush1.bf16.msra.mxu1 %v11722_v57  ;;  %v11733_v57 = vld [vmem:[#allocation6 + $0xe4c] ss:$24 sps:$4 sm:$0xff]  }
 0x639   :  { %7238 = vmatprep.subr.bf16.mxu1 %v11723_v16  ;;  %v11734_v16 = vld [vmem:[#allocation6 + $0xe48] ss:$24 sps:$4 sm:$0xff]  }
 0x63c   :  { %7239 = vmatpush1.bf16.msra.mxu1 %v11724_v17  ;;  %v11735_v17 = vld [vmem:[#allocation6 + $0xe7c] ss:$24 sps:$4 sm:$0xff]  }
 0x63d   :  { %7240 = vmatprep.subr.bf16.mxu1 %v11725_v56  ;;  %v11736_v56 = vld [vmem:[#allocation6 + $0xe78] ss:$24 sps:$4 sm:$0xff]  }
 0x640   :  { %7241 = vmatpush1.bf16.msra.mxu1 %v11726_v30  ;;  %v11737_v30 = vld [vmem:[#allocation6 + $0xeac] ss:$24 sps:$4 sm:$0xff]  }
 0x641   :  { %7242 = vmatprep.subr.bf16.mxu1 %v11727_v6  ;;  %v11738_v6 = vld [vmem:[#allocation6 + $0xea8] ss:$24 sps:$4 sm:$0xff]  }
 0x644   :  { %7243 = vmatpush1.bf16.msra.mxu1 %v11728_v50  ;;  %v11739_v50 = vld [vmem:[#allocation6 + $0xedc] ss:$24 sps:$4 sm:$0xff]  }
 0x645   :  { %7244 = vmatprep.subr.bf16.mxu1 %v11729_v49  ;;  %v11740_v49 = vld [vmem:[#allocation6 + $0xed8] ss:$24 sps:$4 sm:$0xff]  }
 0x648   :  { %7245 = vmatpush1.bf16.msra.mxu1 %v11730_v11  ;;  %v11741_v11 = vld [vmem:[#allocation6 + $0xf0c] ss:$24 sps:$4 sm:$0xff]  }
 0x649   :  { %7246 = vmatprep.subr.bf16.mxu1 %v11731_v10  ;;  %v11742_v10 = vld [vmem:[#allocation6 + $0xf08] ss:$24 sps:$4 sm:$0xff]  }
 0x64c   :  { %7247 = vmatpush1.bf16.msra.mxu1 %v11732_v46  ;;  %v11743_v46 = vld [vmem:[#allocation6 + $0xf3c] ss:$24 sps:$4 sm:$0xff]  }
 0x64d   :  { %7248 = vmatprep.subr.bf16.mxu1 %v11733_v57  ;;  %v11744_v57 = vld [vmem:[#allocation6 + $0xf38] ss:$24 sps:$4 sm:$0xff]  }
 0x650   :  { %7249 = vmatpush1.bf16.msra.mxu1 %v11734_v16  ;;  %v11745_v16 = vld [vmem:[#allocation6 + $0xf6c] ss:$24 sps:$4 sm:$0xff]  }
 0x651   :  { %7250 = vmatprep.subr.bf16.mxu1 %v11735_v17  ;;  %v11746_v17 = vld [vmem:[#allocation6 + $0xf68] ss:$24 sps:$4 sm:$0xff]  }
 0x654   :  { %7251 = vmatpush1.bf16.msra.mxu1 %v11736_v56  ;;  %v11747_v56 = vld [vmem:[#allocation6 + $0xf9c] ss:$24 sps:$4 sm:$0xff]  }
 0x655   :  { %7252 = vmatprep.subr.bf16.mxu1 %v11737_v30  ;;  %v11748_v30 = vld [vmem:[#allocation6 + $0xf98] ss:$24 sps:$4 sm:$0xff]  }
 0x658   :  { %7253 = vmatpush1.bf16.msra.mxu1 %v11738_v6  ;;  %v11749_v6 = vld [vmem:[#allocation6 + $0xfcc] ss:$24 sps:$4 sm:$0xff]  }
 0x659   :  { %7254 = vmatprep.subr.bf16.mxu1 %v11739_v50  ;;  %v11750_v50 = vld [vmem:[#allocation6 + $0xfc8] ss:$24 sps:$4 sm:$0xff]  }
 0x65c   :  { %7255 = vmatpush1.bf16.msra.mxu1 %v11740_v49  ;;  %v11751_v49 = vld [vmem:[#allocation6 + $0xffc] ss:$24 sps:$4 sm:$0xff]  }
 0x65d   :  { %7285 = vmatprep.subr.bf16.mxu1 %v11741_v11  ;;  %v11752_v11 = vld [vmem:[#allocation6 + $0xff8] ss:$24 sps:$4 sm:$0xff]  }
 0x65f   :  { %7257 = vmatmul.mubr.bf16.vlgmr.msra.gmra.mrb[124].mxu1 %v16842_v44 }
 0x660   :  { %7266 = vmatprep.mubr.bf16.mxu1 %v15295_v37  ;;  %7286 = vmatpush1.bf16.msra.mxu1 %v11742_v10  ;;  %v11753_v10 = vld [vmem:[#allocation6 + $0x102c] ss:$24 sps:$4 sm:$0xff]  }
 0x661   :  { %7287 = vmatprep.subr.bf16.mxu1 %v11743_v46  ;;  %v11754_v46 = vld [vmem:[#allocation6 + $0x1028] ss:$24 sps:$4 sm:$0xff]  }
 0x664   :  { %7288 = vmatpush1.bf16.msra.mxu1 %v11744_v57  ;;  %v11755_v57 = vld [vmem:[#allocation6 + $0x105c] ss:$24 sps:$4 sm:$0xff]  }
 0x665   :  { %7289 = vmatprep.subr.bf16.mxu1 %v11745_v16  ;;  %v11756_v16 = vld [vmem:[#allocation6 + $0x1058] ss:$24 sps:$4 sm:$0xff]  }
 0x667   :  { %7267 = vmatmul.mubr.bf16.gmra.mrb[128].mxu1 %v15306_v13 }
 0x668   :  { %7276 = vmatprep.mubr.bf16.mxu1 %v15309_v34  ;;  %7290 = vmatpush1.bf16.msra.mxu1 %v11746_v17  ;;  %v11757_v17 = vld [vmem:[#allocation6 + $0x108c] ss:$24 sps:$4 sm:$0xff]  }
 0x669   :  { %7291 = vmatprep.subr.bf16.mxu1 %v11747_v56  ;;  %v11758_v56 = vld [vmem:[#allocation6 + $0x1088] ss:$24 sps:$4 sm:$0xff]  }
 0x66c   :  { %7292 = vmatpush1.bf16.msra.mxu1 %v11748_v30  ;;  %v11759_v30 = vld [vmem:[#allocation6 + $0x10bc] ss:$24 sps:$4 sm:$0xff]  }
 0x66d   :  { %7293 = vmatprep.subr.bf16.mxu1 %v11749_v6  ;;  %v11760_v6 = vld [vmem:[#allocation6 + $0x10b8] ss:$24 sps:$4 sm:$0xff]  }
 0x66f   :  { %7277 = vmatmul.mubr.bf16.gmra.mrb[132].mxu1 %v15317_v55 }
 0x670   :  { %7294 = vmatpush1.bf16.msra.mxu1 %v11750_v50  ;;  %7317 = vmatprep.mubr.bf16.mxu1 %v16858_v2  ;;  %v11761_v50 = vld [vmem:[#allocation6 + $0x10ec] ss:$24 sps:$4 sm:$0xff]  }
 0x671   :  { %7295 = vmatprep.subr.bf16.mxu1 %v11751_v49  ;;  %v11762_v49 = vld [vmem:[#allocation6 + $0x10e8] ss:$24 sps:$4 sm:$0xff]  }
 0x674   :  { %7296 = vmatpush1.bf16.msra.mxu1 %v11752_v11  ;;  %v11763_v11 = vld [vmem:[#allocation6 + $0x111c] ss:$24 sps:$4 sm:$0xff]  }
 0x675   :  { %7297 = vmatprep.subr.bf16.mxu1 %v11753_v10  ;;  %v11764_v10 = vld [vmem:[#allocation6 + $0x1118] ss:$24 sps:$4 sm:$0xff]  }
 0x678   :  { %7298 = vmatpush1.bf16.msra.mxu1 %v11754_v46  ;;  %v11765_v46 = vld [vmem:[#allocation6 + $0x114c] ss:$24 sps:$4 sm:$0xff]  }
 0x679   :  { %7299 = vmatprep.subr.bf16.mxu1 %v11755_v57  ;;  %v11766_v57 = vld [vmem:[#allocation6 + $0x1148] ss:$24 sps:$4 sm:$0xff]  }
 0x67c   :  { %7300 = vmatpush1.bf16.msra.mxu1 %v11756_v16  ;;  %v11767_v16 = vld [vmem:[#allocation6 + $0x117c] ss:$24 sps:$4 sm:$0xff]  }
 0x67d   :  { %7301 = vmatprep.subr.bf16.mxu1 %v11757_v17  ;;  %v11768_v17 = vld [vmem:[#allocation6 + $0x1178] ss:$24 sps:$4 sm:$0xff]  }
 0x680   :  { %7302 = vmatpush1.bf16.msra.mxu1 %v11758_v56  ;;  %v11769_v56 = vld [vmem:[#allocation6 + $0x11ac] ss:$24 sps:$4 sm:$0xff]  }
 0x681   :  { %7303 = vmatprep.subr.bf16.mxu1 %v11759_v30  ;;  %v11770_v30 = vld [vmem:[#allocation6 + $0x11a8] ss:$24 sps:$4 sm:$0xff]  }
 0x684   :  { %7304 = vmatpush1.bf16.msra.mxu1 %v11760_v6  ;;  %v11771_v6 = vld [vmem:[#allocation6 + $0x11dc] ss:$24 sps:$4 sm:$0xff]  }
 0x685   :  { %7305 = vmatprep.subr.bf16.mxu1 %v11761_v50  ;;  %v11772_v50 = vld [vmem:[#allocation6 + $0x11d8] ss:$24 sps:$4 sm:$0xff]  }
 0x688   :  { %7306 = vmatpush1.bf16.msra.mxu1 %v11762_v49 }
 0x689   :  { %7307 = vmatprep.subr.bf16.mxu1 %v11763_v11 }
 0x68c   :  { %7308 = vmatpush1.bf16.msra.mxu1 %v11764_v10  ;;  %v16883_v10 = vld [vmem:[#allocation86_spill] sm:$0xff] }
 0x68d   :  { %7309 = vmatprep.subr.bf16.mxu1 %v11765_v46 }
 0x690   :  { %7310 = vmatpush1.bf16.msra.mxu1 %v11766_v57  ;;  %v16884_v57 = vld [vmem:[#allocation47_spill] sm:$0xff] }
 0x691   :  { %7311 = vmatprep.subr.bf16.mxu1 %v11767_v16  ;;  %v16894_v16 = vld [vmem:[#allocation50_spill] sm:$0xff] }
 0x694   :  { %7312 = vmatpush1.bf16.msra.mxu1 %v11768_v17 }
 0x695   :  { %7313 = vmatprep.subr.bf16.mxu1 %v11769_v56  ;;  %v16886_v56 = vld [vmem:[#allocation59_spill] sm:$0xff] }
 0x698   :  { %7314 = vmatpush1.bf16.msra.mxu1 %v11770_v30 }
 0x699   :  { %7315 = vmatprep.subr.bf16.mxu1 %v11771_v6  ;;  %v16888_v6 = vld [vmem:[#allocation79_spill] sm:$0xff] }
 0x69c   :  { %7316 = vmatpush1.bf16.msra.mxu1 %v11772_v50 }
 0x69d   :  { %7346 = vmatprep.subr.bf16.mxu1 %v14992_v29 }
 0x69f   :  { %7318 = vmatmul.mubr.bf16.vlgmr.msra.gmra.mrb[124].mxu1 %v16868_v53 }
 0x6a0   :  { %v15407_v49 = vpop.f32.mrb[148].mxu0  ;;  %7327 = vmatprep.mubr.bf16.mxu1 %v15352_v8  ;;  %7347 = vmatpush1.bf16.msra.mxu1 %v16883_v10  ;;  %v16889_v10 = vld [vmem:[#allocation106_spill] sm:$0xff] }
 0x6a1   :  { %v15413_v46 = vpop.f32.mrb[149].mxu0  ;;  %7348 = vmatprep.subr.bf16.mxu1 %v16886_v56  ;;  %v16891_v56 = vld [vmem:[#allocation60_spill] sm:$0xff] }
 0x6a2   :  { %v15417_v17 = vpop.f32.mrb[150].mxu0 }
 0x6a3   :  { %16885 = vst [vmem:[#allocation34_spill] sm:$0xff] %v15417_v17  ;;  %v15422_v30 = vpop.f32.mrb[151].mxu0  ;;  %v16892_v17 = vld [vmem:[#allocation80_spill] sm:$0xff] }
 0x6a4   :  { %16887 = vst [vmem:[#allocation72_spill] sm:$0xff] %v15422_v30  ;;  %7349 = vmatpush1.bf16.msra.mxu1 %v15006_v12  ;;  %v16895_v12 = vld [vmem:[#allocation51_spill] sm:$0xff] }
 0x6a5   :  { %7350 = vmatprep.subr.bf16.mxu1 %v16889_v10 }
 0x6a7   :  { %7328 = vmatmul.mubr.bf16.gmra.mrb[128].mxu1 %v15369_v51 }
 0x6a8   :  { %v15429_v11 = vpop.f32.mrb[152].mxu0  ;;  %7337 = vmatprep.mubr.bf16.mxu1 %v15372_v32  ;;  %7351 = vmatpush1.bf16.msra.mxu1 %v16891_v56 }
 0x6a9   :  { %16890 = vst [vmem:[#allocation92_spill] sm:$0xff] %v15429_v11  ;;  %v15435_v29 = vpop.f32.mrb[153].mxu0  ;;  %7352 = vmatprep.subr.bf16.mxu1 %v15018_v5 }
 0x6aa   :  { %v15439_v30 = vpop.f32.mrb[154].mxu0 }
 0x6ab   :  { %v15444_v10 = vpop.f32.mrb[155].mxu0 }
 0x6ac   :  { %16893 = vst [vmem:[#allocation98_spill] sm:$0xff] %v15444_v10  ;;  %7353 = vmatpush1.bf16.msra.mxu1 %v15024_v36 }
 0x6ad   :  { %7354 = vmatprep.subr.bf16.mxu1 %v15028_v22  ;;  %v16897_v22 = vld [vmem:[#allocation102_spill] sm:$0xff] }
 0x6af   :  { %7338 = vmatmul.mubr.bf16.gmra.mrb[132].mxu1 %v15389_v7 }
 0x6b0   :  { %v15451_v56 = vpop.f32.mrb[156].mxu0  ;;  %7355 = vmatpush1.bf16.msra.mxu1 %v15033_v60  ;;  %7378 = vmatprep.mubr.bf16.mxu1 %v16807_v40  ;;  %v16898_v60 = vld [vmem:[#allocation103_spill] sm:$0xff]  ;;  %v16914_v40 = vld [vmem:[#allocation22_spill] sm:$0xff] }
 0x6b1   :  { %v7511_v50 = vmax.f32 %v15397_v35, %v15451_v56  ;;  %v15457_v5 = vpop.f32.mrb[157].mxu0  ;;  %7356 = vmatprep.subr.bf16.mxu1 %v15036_v43  ;;  %v16896_v43 = vld [vmem:[#allocation101_spill] sm:$0xff]  ;;  %v11535_v35 = vld [vmem:[#allocation9 + $0x158] sm:$0xff]  }
 0x6b2   :  { %v7512_v11 = vmax.f32 %v16895_v12, %v15457_v5  ;;  %v6337_v10 = vpop.f32.mrb[158].mxu0  ;;  %v11537_v56 = vld [vmem:[#allocation9 + $0x168] sm:$0xff]   ;;  %v11539_v12 = vld [vmem:[#allocation9 + $0x178] sm:$0xff]   ;;  %v11540_v5 = vld [vmem:[#allocation9 + $0x40] sm:$0xff]  }
 0x6b3   :  { %v6338_v36 = vpop.f32.mrb[159].mxu0  ;;  %v16916_v10 = vld [vmem:[#allocation105_spill] sm:$0xff] }
 0x6b4   :  { %7357 = vmatpush1.bf16.msra.mxu1 %v15042_v45  ;;  %v16899_v45 = vld [vmem:[#allocation35_spill] sm:$0xff] }
 0x6b5   :  { %7358 = vmatprep.subr.bf16.mxu1 %v15046_v18  ;;  %v16900_v18 = vld [vmem:[#allocation91_spill] sm:$0xff] }
 0x6b6   :  { %v11520_v36 = vld [vmem:[#allocation9 + $0x110] sm:$0xff]  }
 0x6b8   :  { %7359 = vmatpush1.bf16.msra.mxu1 %v15053_v14  ;;  %v16901_v14 = vld [vmem:[#allocation94_spill] sm:$0xff] }
 0x6b9   :  { %7360 = vmatprep.subr.bf16.mxu1 %v15056_v21  ;;  %v16902_v21 = vld [vmem:[#allocation21_spill] sm:$0xff] }
 0x6bc   :  { %7361 = vmatpush1.bf16.msra.mxu1 %v15061_v27  ;;  %v16903_v27 = vld [vmem:[#allocation36_spill] sm:$0xff] }
 0x6bd   :  { %7362 = vmatprep.subr.bf16.mxu1 %v15064_v24 }
 0x6c0   :  { %7363 = vmatpush1.bf16.msra.mxu1 %v15071_v26 }
 0x6c1   :  { %7364 = vmatprep.subr.bf16.mxu1 %v15074_v54 }
 0x6c4   :  { %7365 = vmatpush1.bf16.msra.mxu1 %v15079_v15 }
 0x6c5   :  { %7366 = vmatprep.subr.bf16.mxu1 %v15082_v4  ;;  %v16904_v4 = vld [vmem:[#allocation40_spill] sm:$0xff] }
 0x6c8   :  { %7367 = vmatpush1.bf16.msra.mxu1 %v15089_v47  ;;  %v16905_v47 = vld [vmem:[#allocation58_spill] sm:$0xff] }
 0x6c9   :  { %7368 = vmatprep.subr.bf16.mxu1 %v15092_v33 }
 0x6cc   :  { %7369 = vmatpush1.bf16.msra.mxu1 %v15097_v41 }
 0x6cd   :  { %7370 = vmatprep.subr.bf16.mxu1 %v15100_v52 }
 0x6d0   :  { %7371 = vmatpush1.bf16.msra.mxu1 %v15105_v0  ;;  %v16906_v0 = vld [vmem:[#allocation104_spill] sm:$0xff] }
 0x6d1   :  { %7372 = vmatprep.subr.bf16.mxu1 %v15108_v1 }
 0x6d4   :  { %7373 = vmatpush1.bf16.msra.mxu1 %v15113_v31  ;;  %v16907_v31 = vld [vmem:[#allocation31_spill] sm:$0xff] }
 0x6d5   :  { %7374 = vmatprep.subr.bf16.mxu1 %v15116_v38  ;;  %v16908_v38 = vld [vmem:[#allocation24_spill] sm:$0xff] }
 0x6d8   :  { %7375 = vmatpush1.bf16.msra.mxu1 %v15121_v20  ;;  %v16909_v20 = vld [vmem:[#allocation67_spill] sm:$0xff] }
 0x6d9   :  { %7376 = vmatprep.subr.bf16.mxu1 %v15124_v25 }
 0x6dc   :  { %7377 = vmatpush1.bf16.msra.mxu1 %v15129_v9 }
 0x6dd   :  { %7407 = vmatprep.subr.bf16.mxu1 %v15132_v23 }
 0x6df   :  { %7379 = vmatmul.mubr.bf16.vlgmr.msra.gmra.mrb[136].mxu1 %v16842_v44  ;;  %v11516_v44 = vld [vmem:[#allocation9 + $0x100] sm:$0xff]  }
 0x6e0   :  { %7388 = vmatprep.mubr.bf16.mxu1 %v15295_v37  ;;  %7408 = vmatpush1.bf16.msra.mxu1 %v15137_v48  ;;  %v16910_v48 = vld [vmem:[#allocation95_spill] sm:$0xff]  ;;  %v11517_v37 = vld [vmem:[#allocation9 + $0xc0] sm:$0xff]  }
 0x6e1   :  { %7409 = vmatprep.subr.bf16.mxu1 %v15140_v61  ;;  %9960 = vmatprep.subr.bf16.mxu0 %v11516_v44 }
 0x6e2   :  { %9961 = vmatpush3.bf16.msra.mxu0 %v11517_v37  ;;  %v16926_v37 = vld [vmem:[#allocation97_spill] sm:$0xff] }
 0x6e4   :  { %7410 = vmatpush1.bf16.msra.mxu1 %v16896_v43  ;;  %v16917_v43 = vld [vmem:[#allocation69_spill] sm:$0xff] }
 0x6e5   :  { %7411 = vmatprep.subr.bf16.mxu1 %v16897_v22  ;;  %v11521_v22 = vld [vmem:[#allocation9 + $0xd0] sm:$0xff]  }
 0x6e7   :  { %7389 = vmatmul.mubr.bf16.gmra.mrb[140].mxu1 %v15306_v13  ;;  %v16913_v13 = vld [vmem:[#allocation96_spill] sm:$0xff] }
 0x6e8   :  { %7398 = vmatprep.mubr.bf16.mxu1 %v15309_v34  ;;  %7412 = vmatpush1.bf16.msra.mxu1 %v16898_v60  ;;  %v11518_v34 = vld [vmem:[#allocation9 + $0x108] sm:$0xff]  }
 0x6e9   :  { %7413 = vmatprep.subr.bf16.mxu1 %v16899_v45  ;;  %9962 = vmatprep.subr.bf16.mxu0 %v11518_v34  ;;  %v16918_v60 = vld [vmem:[#allocation30_spill] sm:$0xff]  ;;  %v11522_v45 = vld [vmem:[#allocation9 + $0x118] sm:$0xff]   ;;  %v16927_v34 = vld [vmem:[#allocation49_spill] sm:$0xff] }
 0x6ec   :  { %7414 = vmatpush1.bf16.msra.mxu1 %v16900_v18  ;;  %v16919_v18 = vld [vmem:[#allocation70_spill] sm:$0xff] }
 0x6ed   :  { %7415 = vmatprep.subr.bf16.mxu1 %v16901_v14  ;;  %v11523_v14 = vld [vmem:[#allocation9 + $0xd8] sm:$0xff]  }
 0x6ef   :  { %7399 = vmatmul.mubr.bf16.gmra.mrb[144].mxu1 %v15317_v55  ;;  %v16915_v55 = vld [vmem:[#allocation93_spill] sm:$0xff] }
 0x6f0   :  { %7416 = vmatpush1.bf16.msra.mxu1 %v16902_v21  ;;  %7439 = vmatprep.mubr.bf16.mxu1 %v16858_v2  ;;  %v11519_v2 = vld [vmem:[#allocation9 + $0xc8] sm:$0xff]  }
 0x6f1   :  { %7417 = vmatprep.subr.bf16.mxu1 %v16903_v27  ;;  %9963 = vmatpush3.bf16.msra.mxu0 %v11519_v2  ;;  %v16920_v21 = vld [vmem:[#allocation66_spill] sm:$0xff]  ;;  %v11524_v27 = vld [vmem:[#allocation9 + $0x120] sm:$0xff]  }
 0x6f2   :  { %v15500_v24 = vpop.f32.mrb[112].mxu1  ;;  %9964 = vmatprep.subr.bf16.mxu0 %v11520_v36  ;;  %v11529_v2 = vld [vmem:[#allocation9 + $0xf0] sm:$0xff]  }
 0x6f3   :  { %v15502_v26 = vpop.f32.mrb[113].mxu1 }
 0x6f4   :  { %v15504_v54 = vpop.f32.mrb[114].mxu1  ;;  %7418 = vmatpush1.bf16.msra.mxu1 %v15182_v59  ;;  %v16911_v59 = vld [vmem:[#allocation26_spill] sm:$0xff] }
 0x6f5   :  { %v15507_v15 = vpop.f32.mrb[115].mxu1  ;;  %7419 = vmatprep.subr.bf16.mxu1 %v15186_v42  ;;  %v16912_v42 = vld [vmem:[#allocation68_spill] sm:$0xff]  ;;  %9965 = vmatpush3.bf16.msra.mxu0 %v11521_v22 }
 0x6f6   :  { %9966 = vmatprep.subr.bf16.mxu0 %v11522_v45  ;;  %v11530_v22 = vld [vmem:[#allocation9 + $0x138] sm:$0xff]  }
 0x6f7   :  { %v11531_v45 = vld [vmem:[#allocation9 + $0xf8] sm:$0xff]  }
 0x6f8   :  { %7420 = vmatpush1.bf16.msra.mxu1 %v16904_v4  ;;  %v16921_v4 = vld [vmem:[#allocation53_spill] sm:$0xff] }
 0x6f9   :  { %7421 = vmatprep.subr.bf16.mxu1 %v16905_v47  ;;  %9967 = vmatpush3.bf16.msra.mxu0 %v11523_v14  ;;  %v16922_v47 = vld [vmem:[#allocation71_spill] sm:$0xff] }
 0x6fa   :  { %v15512_v33 = vpop.f32.mrb[116].mxu1  ;;  %9968 = vmatprep.subr.bf16.mxu0 %v11524_v27  ;;  %v16930_v27 = vld [vmem:[#allocation84_spill] sm:$0xff] }
 0x6fb   :  { %v15514_v41 = vpop.f32.mrb[117].mxu1 }
 0x6fc   :  { %v15516_v52 = vpop.f32.mrb[118].mxu1  ;;  %7422 = vmatpush1.bf16.msra.mxu1 %v16906_v0  ;;  %v11525_v0 = vld [vmem:[#allocation9 + $0xe0] sm:$0xff]  }
 0x6fd   :  { %v15519_v1 = vpop.f32.mrb[119].mxu1  ;;  %7423 = vmatprep.subr.bf16.mxu1 %v16907_v31  ;;  %v7543_v31 = vld [vmem:[#allocation7] sm:$0x7]  ;;  %9969 = vmatpush3.bf16.msra.mxu0 %v11525_v0 }
 0x700   :  { %7424 = vmatpush1.bf16.msra.mxu1 %v16908_v38 }
 0x701   :  { %7425 = vmatprep.subr.bf16.mxu1 %v16909_v20 }
 0x702   :  { %v15524_v25 = vpop.f32.mrb[120].mxu1 }
 0x703   :  { %v15526_v9 = vpop.f32.mrb[121].mxu1 }
 0x704   :  { %v7221_v23 = vpop.f32.mrb[122].mxu1  ;;  %7426 = vmatpush1.bf16.msra.mxu1 %v16910_v48 }
 0x705   :  { %v7222_v61 = vpop.f32.mrb[123].mxu1  ;;  %7427 = vmatprep.subr.bf16.mxu1 %v16911_v59  ;;  %v11526_v23 = vld [vmem:[#allocation9 + $0x128] sm:$0xff]  }
 0x706   :  { %v16923_v61 = vld [vmem:[#allocation90_spill] sm:$0xff]  ;;  %9970 = vmatprep.subr.bf16.mxu0 %v11526_v23  ;;  %v16932_v23 = vld [vmem:[#allocation20_spill] sm:$0xff] }
 0x707   :  { %v16924_v59 = vsub.s32 0, %v16923_v61 }
 0x708   :  { %7428 = vmatpush1.bf16.msra.mxu1 %v16912_v42 }
 0x709   :  { %7429 = vmatprep.subr.bf16.mxu1 %v16913_v13  ;;  %v7548_v42 = vrot.slane %v7543_v31, %v16924_v59  ;;  %v11527_v13 = vld [vmem:[#allocation9 + $0xe8] sm:$0xff]  }
 0x70a   :  { %9971 = vmatpush3.bf16.msra.mxu0 %v11527_v13 }
 0x70c   :  { %7430 = vmatpush1.bf16.msra.mxu1 %v16914_v40  ;;  %v11528_v40 = vld [vmem:[#allocation9 + $0x130] sm:$0xff]  }
 0x70d   :  { %7431 = vmatprep.subr.bf16.mxu1 %v16915_v55  ;;  %v16928_v55 = vmax.f32 %v16926_v37, %v16927_v34  ;;  %9972 = vmatprep.subr.bf16.mxu0 %v11528_v40 }
 0x70e   :  { %9973 = vmatpush3.bf16.msra.mxu0 %v11529_v2 }
 0x70f   :  { %9974 = vmatprep.subr.bf16.mxu0 %v11530_v22 }
 0x710   :  { %7432 = vmatpush1.bf16.msra.mxu1 %v16916_v10 }
 0x711   :  { %7433 = vmatprep.subr.bf16.mxu1 %v16917_v43 }
 0x712   :  { %9975 = vmatpush3.bf16.msra.mxu0 %v11531_v45 }
 0x714   :  { %7434 = vmatpush1.bf16.msra.mxu1 %v16918_v60 }
 0x715   :  { %7435 = vmatprep.subr.bf16.mxu1 %v16919_v18 }
 0x718   :  { %7436 = vmatpush1.bf16.msra.mxu1 %v16920_v21  ;;  %v16929_v21 = vld [vmem:[#allocation89_spill] sm:$0xff] }
 0x719   :  { %7437 = vmatprep.subr.bf16.mxu1 %v16921_v4  ;;  %v16931_v4 = vmax.f32 %v16929_v21, %v16930_v27  ;;  %v16939_v27 = vmax.f32 %v15357_v62, %v15407_v49 }
 0x71c   :  { %7438 = vmatpush1.bf16.msra.mxu1 %v16922_v47 }
 0x71f   :  { %7440 = vmatmul.mubr.bf16.vlgmr.msra.gmra.mrb[136].mxu1 %v16868_v53 }
 0x720   :  { %7449 = vmatprep.mubr.bf16.mxu1 %v15352_v8 }
 0x727   :  { %7450 = vmatmul.mubr.bf16.gmra.mrb[140].mxu1 %v15369_v51  ;;  %v16925_v51 = vmax.f32 %v15346_v63, %v16872_v28 }
 0x728   :  { %7459 = vmatprep.mubr.bf16.mxu1 %v15372_v32 }
 0x72f   :  { %7460 = vmatmul.mubr.bf16.gmra.mrb[144].mxu1 %v15389_v7 }
 0x772   :  { %v7319_v38 = vpop.f32.mrb[124].mxu1 }
 0x773   :  { %v7321_v20 = vpop.f32.mrb[125].mxu1 }
 0x774   :  { %v7513_v48 = vmax.f32 %v15500_v24, %v7321_v20  ;;  %v7323_v53 = vpop.f32.mrb[126].mxu1 }
 0x775   :  { %v7325_v8 = vpop.f32.mrb[127].mxu1 }
 0x776   :  { %v7528_v32 = vmax.f32 %v16925_v51, %v7513_v48  ;;  %v7516_v7 = vmax.f32 %v15504_v54, %v7325_v8  ;;  %v16933_v48 = vld [vmem:[#allocation85_spill] sm:$0xff] }
 0x777   :  { %v16934_v59 = vmax.f32 %v16932_v23, %v16933_v48  ;;  %v16941_v23 = vld [vmem:[#allocation34_spill] sm:$0xff] }
 0x778   :  { %v7560_v44 = vadd.f32 %v7548_v42, %v7528_v32  ;;  %v7531_v24 = vmax.f32 %v16928_v55, %v7516_v7  ;;  %v16935_v55 = vld [vmem:[#allocation82_spill] sm:$0xff] }
 0x77a   :  { %v7563_v10 = vadd.f32 %v7548_v42, %v7531_v24  ;;  %v15556_v36 = vpop.f32.mrb[128].mxu1  ;;  %v7575_v60 = vmax.f32 %v7560_v44, 0.0  ;;  %v16936_v24 = vmax.f32 %v15392_v58, %v16935_v55 }
 0x77b   :  { %v7331_v43 = vpop.f32.mrb[129].mxu1 }
 0x77c   :  { %v7578_v63 = vmax.f32 %v7563_v10, 0.0  ;;  %v7519_v28 = vmax.f32 %v15512_v33, %v7331_v43  ;;  %v15559_v54 = vpop.f32.mrb[130].mxu1  ;;  %v11949_v33 = vmov 0.0  }
 0x77d   :  { %v7335_v18 = vpop.f32.mrb[131].mxu1  ;;  %10124 = vmatprep.subr.bf16.mxu0 %v11949_v33 }
 0x77e   :  { %v15561_v14 = vpack.c.bf16 %v7578_v63, %v7575_v60  ;;  %v7534_v47 = vmax.f32 %v16931_v4, %v7519_v28  ;;  %v7522_v0 = vmax.f32 %v15516_v52, %v7335_v18  ;;  %v16937_v60 = vsub.s32 1, %v16923_v61 }
 0x780   :  { %v7566_v20 = vadd.f32 %v7548_v42, %v7534_v47  ;;  %v7537_v13 = vmax.f32 %v16934_v59, %v7522_v0  ;;  %v7552_v63 = vrot.slane %v7543_v31, %v16937_v60  ;;  %v16940_v47 = vmax.f32 %v16884_v57, %v15413_v46 }
 0x782   :  { %v7569_v8 = vadd.f32 %v7548_v42, %v7537_v13  ;;  %v15571_v51 = vpop.f32.mrb[132].mxu1  ;;  %v7581_v7 = vmax.f32 %v7566_v20, 0.0 }
 0x783   :  { %v7341_v32 = vpop.f32.mrb[133].mxu1 }
 0x784   :  { %v7584_v40 = vmax.f32 %v7569_v8, 0.0  ;;  %v7525_v44 = vmax.f32 %v15524_v25, %v7341_v32  ;;  %v7343_v37 = vpop.f32.mrb[134].mxu1  ;;  %v16938_v25 = vsub.s32 2, %v16923_v61 }
 0x785   :  { %v7344_v34 = vpop.f32.mrb[135].mxu1 }
 0x786   :  { %v15574_v52 = vpack.c.bf16 %v7584_v40, %v7581_v7  ;;  %v7540_v2 = vmax.f32 %v16936_v24, %v7525_v44  ;;  %v7556_v18 = vrot.slane %v7543_v31, %v16938_v25  ;;  %v16943_v31 = vld [vmem:[#allocation72_spill] sm:$0xff]  ;;  %v7699_v25 = vrot.slane %v15561_v14, 4 }
 0x787   :  { %v16944_v59 = vmax.f32 %v16888_v6, %v16943_v31 }
 0x788   :  { %v15579_v10 = vadd.f32 %v7548_v42, %v7540_v2 }
 0x7f2   :  { %v7441_v43 = vpop.f32.mrb[136].mxu1 }
 0x7f3   :  { %v7514_v22 = vmax.f32 %v15502_v26, %v7441_v43  ;;  %v7443_v28 = vpop.f32.mrb[137].mxu1  ;;  %v16947_v43 = vmax.f32 %v16892_v17, %v15435_v29 }
 0x7f4   :  { %v7515_v45 = vmax.f32 %v7319_v38, %v7443_v28  ;;  %v7445_v21 = vpop.f32.mrb[138].mxu1  ;;  %v16942_v38 = vmax.f32 %v15363_v19, %v16941_v23  ;;  %v16945_v19 = vld [vmem:[#allocation92_spill] sm:$0xff] }
 0x7f5   :  { %v7529_v4 = vmax.f32 %v16939_v27, %v7514_v22  ;;  %v7517_v58 = vmax.f32 %v15507_v15, %v7445_v21  ;;  %v7447_v42 = vpop.f32.mrb[139].mxu1  ;;  %v16946_v37 = vmax.f32 %v15380_v39, %v16945_v19  ;;  %v11532_v39 = vld [vmem:[#allocation9 + $0x140] sm:$0xff]   ;;  %v16949_v21 = vld [vmem:[#allocation98_spill] sm:$0xff]  ;;  %v11554_v19 = vld [vmem:[#allocation9 + $0x78] sm:$0xff]  }
 0x7f6   :  { %v7530_v26 = vmax.f32 %v16940_v47, %v7515_v45  ;;  %v7518_v0 = vmax.f32 %v7323_v53, %v7447_v42  ;;  %v16950_v27 = vmax.f32 %v16894_v16, %v16949_v21  ;;  %v11571_v21 = vld [vmem:[#allocation9 + $0x198] sm:$0xff]  }
 0x7f7   :  { %v7561_v20 = vadd.f32 %v7552_v63, %v7529_v4  ;;  %v7532_v48 = vmax.f32 %v16942_v38, %v7517_v58 }
 0x7f8   :  { %v7562_v61 = vadd.f32 %v7556_v18, %v7530_v26  ;;  %v7533_v13 = vmax.f32 %v16944_v59, %v7518_v0 }
 0x7f9   :  { %v7564_v62 = vadd.f32 %v7552_v63, %v7532_v48  ;;  %v7576_v15 = vmax.f32 %v7561_v20, 0.0 }
 0x7fa   :  { %v7565_v49 = vadd.f32 %v7556_v18, %v7533_v13  ;;  %v7451_v8 = vpop.f32.mrb[140].mxu1  ;;  %v7577_v57 = vmax.f32 %v7562_v61, 0.0  ;;  %v11542_v13 = vld [vmem:[#allocation9 + $0x48] sm:$0xff]  }
 0x7fb   :  { %v7579_v32 = vmax.f32 %v7564_v62, 0.0  ;;  %v7520_v7 = vmax.f32 %v15514_v41, %v7451_v8  ;;  %v7453_v46 = vpop.f32.mrb[141].mxu1  ;;  %v11543_v62 = vld [vmem:[#allocation9 + $0x8] sm:$0xff]   ;;  %v11545_v8 = vld [vmem:[#allocation9 + $0x10] sm:$0xff]  }
 0x7fc   :  { %v7580_v53 = vmax.f32 %v7565_v49, 0.0  ;;  %v7521_v40 = vmax.f32 %v15556_v36, %v7453_v46  ;;  %v7455_v44 = vpop.f32.mrb[142].mxu1  ;;  %v16948_v36 = vmax.f32 %v15386_v3, %v15439_v30  ;;  %v11533_v30 = vld [vmem:[#allocation9 + $0x148] sm:$0xff]   ;;  %v11544_v49 = vld [vmem:[#allocation9 + $0x50] sm:$0xff]   ;;  %v11549_v46 = vld [vmem:[#allocation9 + $0x20] sm:$0xff]  }
 0x7fd   :  { %v7535_v34 = vmax.f32 %v16946_v37, %v7520_v7  ;;  %v7523_v6 = vmax.f32 %v15519_v1, %v7455_v44  ;;  %v7457_v55 = vpop.f32.mrb[143].mxu1  ;;  %v7591_v24 = vpack.c.bf16 %v7579_v32, %v7576_v15  ;;  %v11546_v15 = vld [vmem:[#allocation9 + $0x58] sm:$0xff]   ;;  %v11548_v7 = vld [vmem:[#allocation9 + $0x60] sm:$0xff]   ;;  %v11553_v44 = vld [vmem:[#allocation9 + $0x30] sm:$0xff]  }
 0x7fe   :  { %v15605_v2 = vpack.c.bf16 %v7580_v53, %v7577_v57  ;;  %v7536_v41 = vmax.f32 %v16947_v43, %v7521_v40  ;;  %v7524_v22 = vmax.f32 %v15559_v54, %v7457_v55  ;;  %v11547_v32 = vld [vmem:[#allocation9 + $0x18] sm:$0xff]   ;;  %v11550_v57 = vld [vmem:[#allocation9 + $0x68] sm:$0xff]   ;;  %v11552_v40 = vld [vmem:[#allocation9 + $0x70] sm:$0xff]  }
 0x7ff   :  { %v7567_v60 = vadd.f32 %v7552_v63, %v7535_v34  ;;  %v7538_v28 = vmax.f32 %v16948_v36, %v7523_v6  ;;  %v7700_v45 = vrot.slane %v7591_v24, 4  ;;  %v11551_v53 = vld [vmem:[#allocation9 + $0x28] sm:$0xff]   ;;  %v11555_v37 = vld [vmem:[#allocation9 + $0x38] sm:$0xff]   ;;  %v11556_v34 = vld [vmem:[#allocation9 + $0x80] sm:$0xff]  }
 0x800   :  { %v7568_v1 = vadd.f32 %v7556_v18, %v7536_v41  ;;  %v7539_v4 = vmax.f32 %v16950_v27, %v7524_v22  ;;  %v11557_v6 = vld [vmem:[#allocation9 + $0x88] sm:$0xff]   ;;  %v11558_v55 = vld [vmem:[#allocation9 + $0x90] sm:$0xff]   ;;  %v11560_v43 = vld [vmem:[#allocation9 + $0xa0] sm:$0xff]  }
 0x801   :  { %v7570_v58 = vadd.f32 %v7552_v63, %v7538_v28  ;;  %7881 = vmatprep.mubr.bf16.mxu0 %v7700_v45  ;;  %v7582_v54 = vmax.f32 %v7567_v60, 0.0  ;;  %v11562_v41 = vld [vmem:[#allocation9 + $0xb0] sm:$0xff]   ;;  %v11563_v22 = vld [vmem:[#allocation9 + $0xb8] sm:$0xff]   ;;  %v11564_v60 = vld [vmem:[#allocation9 + $0x1c0] sm:$0xff]  }
 0x802   :  { %v7571_v17 = vadd.f32 %v7556_v18, %v7539_v4  ;;  %v7461_v29 = vpop.f32.mrb[144].mxu1  ;;  %7882 = vmatmul.mubr.bf16.vlgmr.msra.gmra.mrb[160].mxu0 %v7699_v25  ;;  %v7583_v26 = vmax.f32 %v7568_v1, 0.0  ;;  %v11565_v36 = vld [vmem:[#allocation9 + $0x180] sm:$0xff]   ;;  %v11566_v28 = vld [vmem:[#allocation9 + $0x1c8] sm:$0xff]   ;;  %v11569_v25 = vld [vmem:[#allocation9 + $0x190] sm:$0xff]  }
 0x803   :  { %v7585_v42 = vmax.f32 %v7570_v58, 0.0  ;;  %v7526_v47 = vmax.f32 %v15526_v9, %v7461_v29  ;;  %10125 = vmatpush3.bf16.msra.mxu0 %v11532_v39  ;;  %v7463_v3 = vpop.f32.mrb[145].mxu1  ;;  %10140 = vmatprep.mubr.msk.bf16.mxu0 %vm11950_vm3, %v11949_v33  ;;  %v11567_v45 = vld [vmem:[#allocation9 + $0x188] sm:$0xff]   ;;  %v11568_v39 = vld [vmem:[#allocation9 + $0x1d0] sm:$0xff]   ;;  %v11570_v1 = vld [vmem:[#allocation9 + $0x1d8] sm:$0xff]  }
 0x804   :  { %v7586_v0 = vmax.f32 %v7571_v17, 0.0  ;;  %v7527_v16 = vmax.f32 %v15571_v51, %v7463_v3  ;;  %v7465_v20 = vpop.f32.mrb[146].mxu1  ;;  %10126 = vmatprep.subr.bf16.mxu0 %v11949_v33  ;;  %v11534_v51 = vld [vmem:[#allocation9 + $0x150] sm:$0xff]   ;;  %v11572_v27 = vld [vmem:[#allocation9 + $0x1e0] sm:$0xff]   ;;  %v11574_v58 = vld [vmem:[#allocation9 + $0x1e8] sm:$0xff]  }
 0x805   :  { %v7541_v23 = vmax.f32 %v7511_v50, %v7526_v47  ;;  %v7466_v38 = vpop.f32.mrb[147].mxu1  ;;  %v15626_v9 = vpack.c.bf16 %v7585_v42, %v7582_v54  ;;  %v11536_v50 = vld [vmem:[#allocation9 + $0x160] sm:$0xff]   ;;  %v11576_v17 = vld [vmem:[#allocation9 + $0x1f0] sm:$0xff]   ;;  %v11578_v54 = vld [vmem:[#allocation9 + $0x1f8] sm:$0xff]  }
 0x806   :  { %v15628_v48 = vpack.c.bf16 %v7586_v0, %v7583_v26  ;;  %v7542_v61 = vmax.f32 %v7512_v11, %v7527_v16  ;;  %v11538_v11 = vld [vmem:[#allocation9 + $0x170] sm:$0xff]   ;;  %v11573_v4 = vld [vmem:[#allocation9 + $0x1a0] sm:$0xff]   ;;  %v11579_v42 = vld [vmem:[#allocation9 + $0x1b8] sm:$0xff]  }
 0x807   :  { %v15633_v31 = vadd.f32 %v7552_v63, %v7541_v23  ;;  %10127 = vmatpush3.bf16.msra.mxu0 %v11533_v30  ;;  %v11541_v63 = vld [vmem:[#allocation9] sm:$0xff]   ;;  %v11577_v29 = vld [vmem:[#allocation9 + $0x1b0] sm:$0xff]   ;;  %v11581_v3 = vld [vmem:[#allocation9 + $0x208] sm:$0xff]  }
 0x808   :  { %v15635_v59 = vadd.f32 %v7556_v18, %v7542_v61  ;;  %10128 = vmatprep.subr.bf16.mxu0 %v11949_v33  ;;  %v7701_v18 = vrot.slane %v15605_v2, 4  ;;  %v11580_v47 = vld [vmem:[#allocation9 + $0x200] sm:$0xff]   ;;  %v11582_v30 = vld [vmem:[#allocation9 + $0x210] sm:$0xff]   ;;  %v11583_v26 = vld [vmem:[#allocation9 + $0x218] sm:$0xff]  }
 0x809   :  { %v11584_v0 = vld [vmem:[#allocation9 + $0x220] sm:$0xff]   ;;  %v11585_v16 = vld [vmem:[#allocation9 + $0x228] sm:$0xff]   ;;  %v11586_v20 = vld [vmem:[#allocation9 + $0x230] sm:$0xff]  }
 0x80a   :  { %v11587_v23 = vld [vmem:[#allocation9 + $0x238] sm:$0xff]   ;;  %v11588_v38 = vld [vmem:[#allocation9 + $0x280] sm:$0xff]  }
 0x80b   :  { %10129 = vmatpush3.bf16.msra.mxu0 %v11534_v51  ;;  %v11589_v61 = vld [vmem:[#allocation9 + $0x240] sm:$0xff]   ;;  %v11590_v51 = vld [vmem:[#allocation9 + $0x288] sm:$0xff]  }
 0x80c   :  { %10130 = vmatprep.subr.bf16.mxu0 %v11949_v33 }
 0x80f   :  { %10131 = vmatpush3.bf16.msra.mxu0 %v11535_v35  ;;  %v8480_v35 = vrot.slane %v15626_v9, 4 }
 0x810   :  { %10132 = vmatprep.subr.bf16.mxu0 %v11949_v33 }
 0x813   :  { %10133 = vmatpush3.bf16.msra.mxu0 %v11536_v50  ;;  %v11591_v50 = vld [vmem:[#allocation9 + $0x248] sm:$0xff]  }
 0x814   :  { %10134 = vmatprep.subr.bf16.mxu0 %v11949_v33 }
 0x817   :  { %10135 = vmatpush3.bf16.msra.mxu0 %v11537_v56  ;;  %v11592_v56 = vld [vmem:[#allocation9 + $0x290] sm:$0xff]  }
 0x818   :  { %10136 = vmatprep.subr.bf16.mxu0 %v11949_v33 }
 0x81b   :  { %10137 = vmatpush3.bf16.msra.mxu0 %v11538_v11  ;;  %v11593_v11 = vld [vmem:[#allocation9 + $0x250] sm:$0xff]  }
 0x81c   :  { %10138 = vmatprep.subr.bf16.mxu0 %v11949_v33 }
 0x81f   :  { %10139 = vmatpush3.bf16.msra.mxu0 %v11539_v12  ;;  %v11594_v12 = vld [vmem:[#allocation9 + $0x298] sm:$0xff]  }
 0x820   :  { %9991 = vmatprep.subr.bf16.mxu0 %v11540_v5  ;;  %v11595_v5 = vld [vmem:[#allocation9 + $0x258] sm:$0xff]  }
 0x822   :  { %10141 = vmatmul.mubr.bf16.vlgmr.msra.gmra.mrb[164].mxu0 %v7701_v18  ;;  %v11597_v18 = vld [vmem:[#allocation9 + $0x260] sm:$0xff]  }
 0x823   :  { %9992 = vmatpush3.bf16.msra.mxu0 %v11541_v63  ;;  %8105 = vmatprep.mubr.bf16.mxu0 %v7591_v24  ;;  %v11559_v24 = vld [vmem:[#allocation9 + $0x98] sm:$0xff]   ;;  %v11596_v63 = vld [vmem:[#allocation9 + $0x2a0] sm:$0xff]  }
 0x824   :  { %9993 = vmatprep.subr.bf16.mxu0 %v11542_v13  ;;  %v11598_v13 = vld [vmem:[#allocation9 + $0x2a8] sm:$0xff]  }
 0x827   :  { %9994 = vmatpush3.bf16.msra.mxu0 %v11543_v62  ;;  %v11600_v62 = vld [vmem:[#allocation9 + $0x2b0] sm:$0xff]  }
 0x828   :  { %9995 = vmatprep.subr.bf16.mxu0 %v11544_v49  ;;  %v11601_v49 = vld [vmem:[#allocation9 + $0x270] sm:$0xff]  }
 0x82b   :  { %9996 = vmatpush3.bf16.msra.mxu0 %v11545_v8  ;;  %v11602_v8 = vld [vmem:[#allocation9 + $0x2b8] sm:$0xff]  }
 0x82c   :  { %9997 = vmatprep.subr.bf16.mxu0 %v11546_v15  ;;  %v11603_v15 = vld [vmem:[#allocation9 + $0x278] sm:$0xff]  }
 0x82f   :  { %9998 = vmatpush3.bf16.msra.mxu0 %v11547_v32  ;;  %v11604_v32 = vld [vmem:[#allocation9 + $0x2c0] sm:$0xff]  }
 0x830   :  { %9999 = vmatprep.subr.bf16.mxu0 %v11548_v7  ;;  %v8479_v7 = vrot.slane %v15574_v52, 4 }
 0x833   :  { %10000 = vmatpush3.bf16.msra.mxu0 %v11549_v46  ;;  %v11605_v46 = vld [vmem:[#allocation9 + $0x2c8] sm:$0xff]  }
 0x834   :  { %10001 = vmatprep.subr.bf16.mxu0 %v11550_v57  ;;  %v11606_v57 = vld [vmem:[#allocation9 + $0x2d0] sm:$0xff]  }
 0x837   :  { %10002 = vmatpush3.bf16.msra.mxu0 %v11551_v53  ;;  %v11607_v53 = vld [vmem:[#allocation9 + $0x2d8] sm:$0xff]  }
 0x838   :  { %10003 = vmatprep.subr.bf16.mxu0 %v11552_v40  ;;  %v11609_v40 = vld [vmem:[#allocation9 + $0x2e8] sm:$0xff]  }
 0x83b   :  { %10004 = vmatpush3.bf16.msra.mxu0 %v11553_v44 }
 0x83c   :  { %10005 = vmatprep.subr.bf16.mxu0 %v11554_v19 }
 0x83f   :  { %10006 = vmatpush3.bf16.msra.mxu0 %v11555_v37 }
 0x840   :  { %10144 = vmatprep.subr.bf16.mxu0 %v11949_v33 }
 0x842   :  { %8106 = vmatmul.mubr.bf16.vlgmr.msra.gmra.mrb[168].mxu0 %v15561_v14  ;;  %v11561_v14 = vld [vmem:[#allocation9 + $0xa8] sm:$0xff]  }
 0x843   :  { %10145 = vmatpush3.bf16.msra.mxu0 %v11556_v34  ;;  %10160 = vmatprep.mubr.msk.bf16.mxu0 %vm11950_vm3, %v11949_v33 }
 0x844   :  { %10146 = vmatprep.subr.bf16.mxu0 %v11949_v33 }
 0x847   :  { %10147 = vmatpush3.bf16.msra.mxu0 %v11557_v6  ;;  %v11610_v6 = vld [vmem:[#allocation9 + $0x2f0] sm:$0xff]  }
 0x848   :  { %10148 = vmatprep.subr.bf16.mxu0 %v11949_v33 }
 0x84b   :  { %10149 = vmatpush3.bf16.msra.mxu0 %v11558_v55 }
 0x84c   :  { %10150 = vmatprep.subr.bf16.mxu0 %v11949_v33 }
 0x84f   :  { %10151 = vmatpush3.bf16.msra.mxu0 %v11559_v24  ;;  %v11611_v24 = vld [vmem:[#allocation9 + $0x2f8] sm:$0xff]  }
 0x850   :  { %10152 = vmatprep.subr.bf16.mxu0 %v11949_v33 }
 0x853   :  { %10153 = vmatpush3.bf16.msra.mxu0 %v11560_v43  ;;  %v11612_v43 = vld [vmem:[#allocation9 + $0x340] sm:$0xff]  }
 0x854   :  { %10154 = vmatprep.subr.bf16.mxu0 %v11949_v33 }
 0x857   :  { %10155 = vmatpush3.bf16.msra.mxu0 %v11561_v14  ;;  %v7588_v14 = vmax.f32 %v15633_v31, 0.0  ;;  %v11620_v31 = vld [vmem:[#allocation9 + $0x360] sm:$0xff]  }
 0x858   :  { %10156 = vmatprep.subr.bf16.mxu0 %v11949_v33 }
 0x85b   :  { %10157 = vmatpush3.bf16.msra.mxu0 %v11562_v41  ;;  %v11613_v41 = vld [vmem:[#allocation9 + $0x300] sm:$0xff]  }
 0x85c   :  { %10158 = vmatprep.subr.bf16.mxu0 %v11949_v33 }
 0x85f   :  { %10159 = vmatpush3.bf16.msra.mxu0 %v11563_v22  ;;  %v8481_v22 = vrot.slane %v15628_v48, 4 }
 0x860   :  { %10022 = vmatprep.subr.bf16.mxu0 %v11564_v60  ;;  %v11614_v60 = vld [vmem:[#allocation9 + $0x348] sm:$0xff]  }
 0x862   :  { %10161 = vmatmul.mubr.bf16.vlgmr.msra.gmra.mrb[172].mxu0 %v15605_v2  ;;  %v11575_v2 = vld [vmem:[#allocation9 + $0x1a8] sm:$0xff]  }
 0x863   :  { %10023 = vmatpush3.bf16.msra.mxu0 %v11565_v36  ;;  %8378 = vmatprep.mubr.bf16.mxu0 %v15626_v9  ;;  %v11599_v9 = vld [vmem:[#allocation9 + $0x268] sm:$0xff]   ;;  %v7597_v36 = vpack.c.bf16 %v7588_v14, %v7588_v14 }
 0x864   :  { %10024 = vmatprep.subr.bf16.mxu0 %v11566_v28  ;;  %v11615_v28 = vld [vmem:[#allocation9 + $0x308] sm:$0xff]  }
 0x867   :  { %10025 = vmatpush3.bf16.msra.mxu0 %v11567_v45  ;;  %v11616_v45 = vld [vmem:[#allocation9 + $0x350] sm:$0xff]  }
 0x868   :  { %10026 = vmatprep.subr.bf16.mxu0 %v11568_v39  ;;  %v11617_v39 = vld [vmem:[#allocation9 + $0x310] sm:$0xff]  }
 0x86b   :  { %10027 = vmatpush3.bf16.msra.mxu0 %v11569_v25  ;;  %v11618_v25 = vld [vmem:[#allocation9 + $0x358] sm:$0xff]  }
 0x86c   :  { %10028 = vmatprep.subr.bf16.mxu0 %v11570_v1  ;;  %v11619_v1 = vld [vmem:[#allocation9 + $0x318] sm:$0xff]  }
 0x86f   :  { %10029 = vmatpush3.bf16.msra.mxu0 %v11571_v21  ;;  %v11621_v21 = vld [vmem:[#allocation9 + $0x320] sm:$0xff]  }
 0x870   :  { %10030 = vmatprep.subr.bf16.mxu0 %v11572_v27  ;;  %v11623_v27 = vld [vmem:[#allocation9 + $0x328] sm:$0xff]  }
 0x873   :  { %10031 = vmatpush3.bf16.msra.mxu0 %v11573_v4  ;;  %v11624_v4 = vld [vmem:[#allocation9 + $0x370] sm:$0xff]  }
 0x874   :  { %10032 = vmatprep.subr.bf16.mxu0 %v11574_v58 }
 0x877   :  { %10033 = vmatpush3.bf16.msra.mxu0 %v11575_v2 }
 0x878   :  { %10034 = vmatprep.subr.bf16.mxu0 %v11576_v17 }
 0x87b   :  { %10035 = vmatpush3.bf16.msra.mxu0 %v11577_v29 }
 0x87c   :  { %10036 = vmatprep.subr.bf16.mxu0 %v11578_v54  ;;  %v11625_v54 = vld [vmem:[#allocation9 + $0x330] sm:$0xff]  }
 0x87f   :  { %10037 = vmatpush3.bf16.msra.mxu0 %v11579_v42 }
 0x880   :  { %10164 = vmatprep.subr.bf16.mxu0 %v11949_v33 }
 0x882   :  { %8379 = vmatmul.mubr.bf16.vlgmr.msra.gmra.mrb[176].mxu0 %v15574_v52  ;;  %v11608_v52 = vld [vmem:[#allocation9 + $0x2e0] sm:$0xff]  }
 0x883   :  { %10165 = vmatpush3.bf16.msra.mxu0 %v11580_v47  ;;  %10180 = vmatprep.mubr.msk.bf16.mxu0 %vm11950_vm3, %v11949_v33  ;;  %v11626_v47 = vld [vmem:[#allocation9 + $0x378] sm:$0xff]  }
 0x884   :  { %10166 = vmatprep.subr.bf16.mxu0 %v11949_v33 }
 0x887   :  { %10167 = vmatpush3.bf16.msra.mxu0 %v11581_v3  ;;  %v11627_v3 = vld [vmem:[#allocation9 + $0x338] sm:$0xff]  }
 0x888   :  { %10168 = vmatprep.subr.bf16.mxu0 %v11949_v33 }
 0x88b   :  { %10169 = vmatpush3.bf16.msra.mxu0 %v11582_v30  ;;  %v7587_v30 = vmax.f32 %v15579_v10, 0.0  ;;  %v11631_v10 = vld [vmem:[#allocation9 + $0x398] sm:$0xff]  }
 0x88c   :  { %10170 = vmatprep.subr.bf16.mxu0 %v11949_v33 }
 0x88f   :  { %10171 = vmatpush3.bf16.msra.mxu0 %v11583_v26  ;;  %v11628_v26 = vld [vmem:[#allocation9 + $0x380] sm:$0xff]  }
 0x890   :  { %10172 = vmatprep.subr.bf16.mxu0 %v11949_v33 }
 0x893   :  { %10173 = vmatpush3.bf16.msra.mxu0 %v11584_v0  ;;  %v7596_v0 = vpack.c.bf16 %v7587_v30, %v7587_v30 }
 0x894   :  { %10174 = vmatprep.subr.bf16.mxu0 %v11949_v33 }
 0x897   :  { %10175 = vmatpush3.bf16.msra.mxu0 %v11585_v16  ;;  %v11629_v16 = vld [vmem:[#allocation9 + $0x388] sm:$0xff]  }
 0x898   :  { %10176 = vmatprep.subr.bf16.mxu0 %v11949_v33 }
 0x89b   :  { %10177 = vmatpush3.bf16.msra.mxu0 %v11586_v20  ;;  %v11630_v20 = vld [vmem:[#allocation9 + $0x390] sm:$0xff]  }
 0x89c   :  { %10178 = vmatprep.subr.bf16.mxu0 %v11949_v33 }
 0x89f   :  { %10179 = vmatpush3.bf16.msra.mxu0 %v11587_v23  ;;  %v11632_v23 = vld [vmem:[#allocation9 + $0x3a0] sm:$0xff]  }
 0x8a0   :  { %10053 = vmatprep.subr.bf16.mxu0 %v11588_v38  ;;  %v11633_v38 = vld [vmem:[#allocation9 + $0x3a8] sm:$0xff]  }
 0x8a2   :  { %10181 = vmatmul.mubr.bf16.vlgmr.msra.gmra.mrb[180].mxu0 %v15628_v48  ;;  %v11622_v48 = vld [vmem:[#allocation9 + $0x368] sm:$0xff]  }
 0x8a3   :  { %10054 = vmatpush3.bf16.msra.mxu0 %v11589_v61  ;;  %8661 = vmatprep.mubr.bf16.mxu0 %v8480_v35 }
 0x8a4   :  { %10055 = vmatprep.subr.bf16.mxu0 %v11590_v51 }
 0x8a7   :  { %10056 = vmatpush3.bf16.msra.mxu0 %v11591_v50 }
 0x8a8   :  { %10057 = vmatprep.subr.bf16.mxu0 %v11592_v56  ;;  %v11634_v56 = vld [vmem:[#allocation9 + $0x3b0] sm:$0xff]  }
 0x8ab   :  { %10058 = vmatpush3.bf16.msra.mxu0 %v11593_v11 }
 0x8ac   :  { %10059 = vmatprep.subr.bf16.mxu0 %v11594_v12 }
 0x8af   :  { %10060 = vmatpush3.bf16.msra.mxu0 %v11595_v5  ;;  %v11635_v5 = vld [vmem:[#allocation9 + $0x3b8] sm:$0xff]  }
 0x8b0   :  { %10061 = vmatprep.subr.bf16.mxu0 %v11596_v63  ;;  %v7589_v63 = vmax.f32 %v15635_v59, 0.0 }
 0x8b3   :  { %10062 = vmatpush3.bf16.msra.mxu0 %v11597_v18  ;;  %v7598_v18 = vpack.c.bf16 %v7589_v63, %v7589_v63 }
 0x8b4   :  { %10063 = vmatprep.subr.bf16.mxu0 %v11598_v13 }
 0x8b7   :  { %10064 = vmatpush3.bf16.msra.mxu0 %v11599_v9 }
 0x8b8   :  { %10065 = vmatprep.subr.bf16.mxu0 %v11600_v62 }
 0x8bb   :  { %10066 = vmatpush3.bf16.msra.mxu0 %v11601_v49 }
 0x8bc   :  { %10067 = vmatprep.subr.bf16.mxu0 %v11602_v8 }
 0x8bf   :  { %10068 = vmatpush3.bf16.msra.mxu0 %v11603_v15 }
 0x8c0   :  { %10184 = vmatprep.subr.bf16.mxu0 %v11949_v33 }
 0x8c2   :  { %8662 = vmatmul.mubr.bf16.vlgmr.msra.gmra.mrb[184].mxu0 %v8479_v7 }
 0x8c3   :  { %10185 = vmatpush3.bf16.msra.mxu0 %v11604_v32  ;;  %10200 = vmatprep.mubr.msk.bf16.mxu0 %vm11950_vm3, %v11949_v33 }
 0x8c4   :  { %10186 = vmatprep.subr.bf16.mxu0 %v11949_v33 }
 0x8c7   :  { %10187 = vmatpush3.bf16.msra.mxu0 %v11605_v46 }
 0x8c8   :  { %10188 = vmatprep.subr.bf16.mxu0 %v11949_v33 }
 0x8cb   :  { %10189 = vmatpush3.bf16.msra.mxu0 %v11606_v57  ;;  %v11636_v57 = vld [vmem:[%s15739_s7] sm:$0xff]  }
 0x8cc   :  { %10190 = vmatprep.subr.bf16.mxu0 %v11949_v33 }
 0x8cf   :  { %10191 = vmatpush3.bf16.msra.mxu0 %v11607_v53  ;;  %v11637_v53 = vld [vmem:[%s15739_s7 + $0x8] sm:$0xff]  }
 0x8d0   :  { %10192 = vmatprep.subr.bf16.mxu0 %v11949_v33 }
 0x8d3   :  { %10193 = vmatpush3.bf16.msra.mxu0 %v11608_v52  ;;  %v11638_v52 = vld [vmem:[%s15739_s7 + $0x10] sm:$0xff]  }
 0x8d4   :  { %10194 = vmatprep.subr.bf16.mxu0 %v11949_v33 }
 0x8d5   :  { %v9976_v44 = vpop.f32.mrb[160].mxu0 }
 0x8d6   :  { %v9977_v19 = vpop.f32.mrb[161].mxu0 }
 0x8d7   :  { %v9978_v37 = vadd.f32 %v9977_v19, %v9976_v44  ;;  %10195 = vmatpush3.bf16.msra.mxu0 %v11609_v40  ;;  %v9979_v34 = vpop.f32.mrb[162].mxu0  ;;  %v11639_v40 = vld [vmem:[%s15739_s7 + $0x18] sm:$0xff]   ;;  %v11640_v44 = vld [vmem:[%s15739_s7 + $0x20] sm:$0xff]   ;;  %v11641_v19 = vld [vmem:[%s15739_s7 + $0x28] sm:$0xff]  }
 0x8d8   :  { %v9980_v55 = vpop.f32.mrb[163].mxu0  ;;  %10196 = vmatprep.subr.bf16.mxu0 %v11949_v33 }
 0x8db   :  { %10197 = vmatpush3.bf16.msra.mxu0 %v11610_v6 }
 0x8dc   :  { %10198 = vmatprep.subr.bf16.mxu0 %v11949_v33 }
 0x8df   :  { %10199 = vmatpush3.bf16.msra.mxu0 %v11611_v24  ;;  %v11642_v24 = vld [vmem:[%s15739_s7 + $0x30] sm:$0xff]  }
 0x8e0   :  { %10084 = vmatprep.subr.bf16.mxu0 %v11612_v43 }
 0x8e2   :  { %10201 = vmatmul.mubr.bf16.vlgmr.msra.gmra.mrb[188].mxu0 %v8481_v22 }
 0x8e3   :  { %10085 = vmatpush3.bf16.msra.mxu0 %v11613_v41  ;;  %8935 = vmatprep.mubr.bf16.mxu0 %v7597_v36  ;;  %v11643_v41 = vld [vmem:[%s15739_s7 + $0x38] sm:$0xff]  }
 0x8e4   :  { %10086 = vmatprep.subr.bf16.mxu0 %v11614_v60 }
 0x8e7   :  { %10087 = vmatpush3.bf16.msra.mxu0 %v11615_v28 }
 0x8e8   :  { %10088 = vmatprep.subr.bf16.mxu0 %v11616_v45 }
 0x8eb   :  { %10089 = vmatpush3.bf16.msra.mxu0 %v11617_v39 }
 0x8ec   :  { %10090 = vmatprep.subr.bf16.mxu0 %v11618_v25 }
 0x8ef   :  { %10091 = vmatpush3.bf16.msra.mxu0 %v11619_v1 }
 0x8f0   :  { %10092 = vmatprep.subr.bf16.mxu0 %v11620_v31 }
 0x8f3   :  { %10093 = vmatpush3.bf16.msra.mxu0 %v11621_v21 }
 0x8f4   :  { %10094 = vmatprep.subr.bf16.mxu0 %v11622_v48 }
 0x8f5   :  { %v7923_v58 = vpop.f32.mrb[164].mxu0 }
 0x8f6   :  { %v7924_v2 = vadd.f32 %v9978_v37, %v7923_v58  ;;  %v10142_v17 = vpop.f32.mrb[165].mxu0 }
 0x8f7   :  { %v7926_v29 = vpop.f32.mrb[166].mxu0  ;;  %10095 = vmatpush3.bf16.msra.mxu0 %v11623_v27 }
 0x8f8   :  { %v10143_v42 = vpop.f32.mrb[167].mxu0  ;;  %10096 = vmatprep.subr.bf16.mxu0 %v11624_v4 }
 0x8f9   :  { %v9950_v42 = vld [vmem:[#allocation10] ss:$0 sm:$0xff] }
 0x8fb   :  { %10097 = vmatpush3.bf16.msra.mxu0 %v11625_v54 }
 0x8fc   :  { %10098 = vmatprep.subr.bf16.mxu0 %v11626_v47 }
 0x8ff   :  { %10099 = vmatpush3.bf16.msra.mxu0 %v11627_v3 }
 0x900   :  { %10204 = vmatprep.subr.bf16.mxu0 %v11949_v33 }
 0x902   :  { %8936 = vmatmul.mubr.bf16.vlgmr.msra.gmra.mrb[192].mxu0 %v7596_v0 }
 0x903   :  { %10205 = vmatpush3.bf16.msra.mxu0 %v11628_v26  ;;  %10220 = vmatprep.mubr.msk.bf16.mxu0 %vm11950_vm3, %v11949_v33 }
 0x904   :  { %10206 = vmatprep.subr.bf16.mxu0 %v11949_v33 }
 0x907   :  { %10207 = vmatpush3.bf16.msra.mxu0 %v11629_v16 }
 0x908   :  { %10208 = vmatprep.subr.bf16.mxu0 %v11949_v33 }
 0x90b   :  { %10209 = vmatpush3.bf16.msra.mxu0 %v11630_v20  ;;  %v9951_v20 = vld [vmem:[#allocation12] ss:$0 sm:$0xff] }
 0x90c   :  { %10210 = vmatprep.subr.bf16.mxu0 %v11949_v33 }
 0x90f   :  { %10211 = vmatpush3.bf16.msra.mxu0 %v11631_v10 }
 0x910   :  { %10212 = vmatprep.subr.bf16.mxu0 %v11949_v33 }
 0x913   :  { %10213 = vmatpush3.bf16.msra.mxu0 %v11632_v23 }
 0x914   :  { %10214 = vmatprep.subr.bf16.mxu0 %v11949_v33 }
 0x915   :  { %v10007_v61 = vpop.f32.mrb[168].mxu0 }
 0x916   :  { %v10008_v51 = vpop.f32.mrb[169].mxu0 }
 0x917   :  { %v10009_v35 = vadd.f32 %v10008_v51, %v10007_v61  ;;  %v10010_v50 = vpop.f32.mrb[170].mxu0  ;;  %10215 = vmatpush3.bf16.msra.mxu0 %v11633_v38 }
 0x918   :  { %v10011_v11 = vpop.f32.mrb[171].mxu0  ;;  %10216 = vmatprep.subr.bf16.mxu0 %v11949_v33 }
 0x919   :  { %v8108_v12 = vadd.f32 %v10009_v35, %v7924_v2 }
 0x91b   :  { %10217 = vmatpush3.bf16.msra.mxu0 %v11634_v56 }
 0x91c   :  { %10218 = vmatprep.subr.bf16.mxu0 %v11949_v33 }
 0x91f   :  { %10219 = vmatpush3.bf16.msra.mxu0 %v11635_v5 }
 0x920   :  { %10224 = vmatprep.subr.bf16.mxu0 %v11949_v33 }
 0x922   :  { %10221 = vmatmul.mubr.bf16.vlgmr.msra.gmra.mrb[196].mxu0 %v7598_v18 }
 0x923   :  { %10240 = vmatprep.mubr.msk.bf16.mxu0 %vm11950_vm3, %v11949_v33  ;;  %10225 = vmatpush3.bf16.msra.mxu0 %v11636_v57 }
 0x924   :  { %10226 = vmatprep.subr.bf16.mxu0 %v11949_v33 }
 0x927   :  { %10227 = vmatpush3.bf16.msra.mxu0 %v11637_v53 }
 0x928   :  { %10228 = vmatprep.subr.bf16.mxu0 %v11949_v33 }
 0x92b   :  { %10229 = vmatpush3.bf16.msra.mxu0 %v11638_v52 }
 0x92c   :  { %10230 = vmatprep.subr.bf16.mxu0 %v11949_v33 }
 0x92f   :  { %10231 = vmatpush3.bf16.msra.mxu0 %v11639_v40 }
 0x930   :  { %10232 = vmatprep.subr.bf16.mxu0 %v11949_v33 }
 0x933   :  { %10233 = vmatpush3.bf16.msra.mxu0 %v11640_v44 }
 0x934   :  { %10234 = vmatprep.subr.bf16.mxu0 %v11949_v33 }
 0x935   :  { %v8147_v13 = vpop.f32.mrb[172].mxu0 }
 0x936   :  { %v8148_v9 = vadd.f32 %v8147_v13, %v8108_v12  ;;  %v10162_v62 = vpop.f32.mrb[173].mxu0 }
 0x937   :  { %v8150_v49 = vpop.f32.mrb[174].mxu0  ;;  %10235 = vmatpush3.bf16.msra.mxu0 %v11641_v19 }
 0x938   :  { %v10163_v8 = vpop.f32.mrb[175].mxu0  ;;  %10236 = vmatprep.subr.bf16.mxu0 %v11949_v33 }
 0x93b   :  { %10237 = vmatpush3.bf16.msra.mxu0 %v11642_v24 }
 0x93c   :  { %10238 = vmatprep.subr.bf16.mxu0 %v11949_v33 }
 0x93f   :  { %10239 = vmatpush3.bf16.msra.mxu0 %v11643_v41 }
 0x955   :  { %v10038_v15 = vpop.f32.mrb[176].mxu0 }
 0x956   :  { %v10039_v32 = vpop.f32.mrb[177].mxu0 }
 0x957   :  { %v10040_v7 = vadd.f32 %v10039_v32, %v10038_v15  ;;  %v10041_v46 = vpop.f32.mrb[178].mxu0 }
 0x958   :  { %v10042_v59 = vpop.f32.mrb[179].mxu0 }
 0x975   :  { %v8420_v37 = vpop.f32.mrb[180].mxu0 }
 0x976   :  { %v8421_v34 = vadd.f32 %v10040_v7, %v8420_v37  ;;  %v10182_v6 = vpop.f32.mrb[181].mxu0 }
 0x977   :  { %v8423_v55 = vpop.f32.mrb[182].mxu0 }
 0x978   :  { %v8426_v43 = vadd.f32 %v8421_v34, %v8148_v9  ;;  %v10183_v14 = vpop.f32.mrb[183].mxu0 }
 0x995   :  { %v10069_v22 = vpop.f32.mrb[184].mxu0 }
 0x996   :  { %v10070_v60 = vpop.f32.mrb[185].mxu0 }
 0x997   :  { %v10071_v36 = vadd.f32 %v10070_v60, %v10069_v22  ;;  %v10072_v28 = vpop.f32.mrb[186].mxu0 }
 0x998   :  { %v10073_v45 = vpop.f32.mrb[187].mxu0 }
 0x9b5   :  { %v8703_v39 = vpop.f32.mrb[188].mxu0 }
 0x9b6   :  { %v8704_v25 = vadd.f32 %v10071_v36, %v8703_v39  ;;  %v10202_v1 = vpop.f32.mrb[189].mxu0 }
 0x9b7   :  { %v8706_v31 = vpop.f32.mrb[190].mxu0 }
 0x9b8   :  { %v8709_v21 = vadd.f32 %v8704_v25, %v8426_v43  ;;  %v10203_v48 = vpop.f32.mrb[191].mxu0 }
 0x9d5   :  { %v10100_v27 = vpop.f32.mrb[192].mxu0 }
 0x9d6   :  { %v10101_v4 = vpop.f32.mrb[193].mxu0 }
 0x9d7   :  { %v10102_v58 = vadd.f32 %v10101_v4, %v10100_v27  ;;  %v10103_v33 = vpop.f32.mrb[194].mxu0 }
 0x9d8   :  { %v10104_v2 = vpop.f32.mrb[195].mxu0 }
 0x9f5   :  { %v8977_v17 = vpop.f32.mrb[196].mxu0 }
 0x9f6   :  { %v8978_v29 = vadd.f32 %v10102_v58, %v8977_v17  ;;  %v10222_v54 = vpop.f32.mrb[197].mxu0 }
 0x9f7   :  { %v8980_v47 = vpop.f32.mrb[198].mxu0 }
 0x9f8   :  { %v8983_v3 = vadd.f32 %v8978_v29, %v8709_v21  ;;  %v10223_v30 = vpop.f32.mrb[199].mxu0 }
 0x9fa   :  { %v8991_v26 = vadd.f32 %v9950_v42, %v8983_v3 }
 0x9fc   :  { %v8992_v0 = vmax.f32 %v8991_v26, 0.0 }
 0x9fe   :  { %v8993_v16 = vpack.c.bf16 %v8992_v0, %v8992_v0 }
 0xa00   :  { %10241 = vmatmul.mubr.bf16.vlgmr.msra.gmra.mrb[200].mxu0 %v8993_v16 }
 0xad3   :  { %v9099_v10 = vpop.f32.mrb[200].mxu0 }
 0xad4   :  { %v9100_v23 = vadd.f32 %v9951_v20, %v9099_v10  ;;  %v10242_v38 = vpop.f32.mrb[201].mxu0 }
 0xad5   :  { %v9102_v61 = vpop.f32.mrb[202].mxu0 }
 0xad6   :  { %9106 = vst.msk [vmem:[%s15741_s9] sm:$0xff] %vm9105_vm4, %v9100_v23  ;;  %v10243_v51 = vpop.f32.mrb[203].mxu0 }
 0xad7   :  { %9111 = vsyncpa [#allocation3], 1 }
 0xad8   :  { %9112 = vsyncpa [#allocation5], 1 }
 0xad9   :  { %9113 = vsyncpa [#allocation8], 1 }
 0xada   :  { %9114 = vsyncpa [#allocation11], 1 }

</bundles_post_ra>
